<compile_context>
chip_gen: v5e
topology: v5e:2x2
jax: 0.10.0
libtpu: 0.0.40
codegen_flags: <defaults>
</compile_context>

<pallas_src>
import functools
import math

import jax
import jax.numpy as jnp
from jax import lax
from jax.experimental import pallas as pl
from jax.experimental.pallas import tpu as pltpu

D_HEAD = 64
SEQ_ALIGN = 128                  # sequences are padded to this (keeps all blocks legal)
MASK_NEG = -1e30                 # finite "masked" score (safe in fp32 online softmax)
COMPUTE_DTYPE = jnp.bfloat16     # MXU operand dtype; accumulation is always fp32
MASK_COS_THRESH = 0.5            # cos(60 deg) angular-visibility threshold
# TODO(synk): original get_masks does exact camera-frustum reprojection; approximated
# here (as before) with an angular-proximity test between ray directions, now evaluated
# per tile inside the attention kernel.


@functools.lru_cache(maxsize=1)
def _hw_preset():
    """Per-generation tiling / VMEM preset (v5e/v6e: 128 MiB VMEM, v7x: 64 MiB/TC)."""
    vmem = 64 * 1024 * 1024
    try:
        info = pltpu.get_tpu_info()
        for name in ("vmem_capacity_bytes", "vmem_size_bytes", "vmem_bytes"):
            v = getattr(info, name, None)
            if v:
                vmem = int(v)
                break
    except Exception:
        pass
    if vmem >= 100 * 1024 * 1024:          # v5e / v6e class parts
        return dict(vmem_limit=96 * 1024 * 1024,
                    mm_m=512, mm_n=512, mm_k=512, attn_q=256, attn_k=1024)
    return dict(vmem_limit=48 * 1024 * 1024,   # v7x class (or unknown): conservative
                mm_m=256, mm_n=256, mm_k=512, attn_q=256, attn_k=512)


def _pick_tile(dim, pref):
    """Largest 128-aligned tile <= pref that divides dim; falls back to the full dim
    (legal as a full-extent block; can be VMEM-heavy only for very large odd dims)."""
    cand = min(pref, dim)
    cand -= cand % 128
    while cand >= 128:
        if dim % cand == 0:
            return cand
        cand -= 128
    return dim


# --------------------------- block-sparse tile visibility ---------------------------

def tile_visibility(q_dirs, k_dirs, bq, bk, cos_thresh):
    """Conservative per-(q-tile, k-tile) visibility via bounding cones.

    Never drops a tile containing a visible (q, k) pair; may keep extra tiles.
    Zero-padded directions only make the bound more conservative.
    """
    b, lq, _ = q_dirs.shape
    _, lk, _ = k_dirs.shape
    nq, nk = lq // bq, lk // bk

    def cones(d, n, t):
        dt = d.reshape(b, n, t, 3)
        mean = jnp.mean(dt, axis=2)
        axis = mean / jnp.maximum(jnp.linalg.norm(mean, axis=-1, keepdims=True), 1e-6)
        cos_r = jnp.min(jnp.sum(dt * axis[:, :, None, :], axis=-1), axis=2)
        return axis, jnp.arccos(jnp.clip(cos_r, -1.0, 1.0))

    aq, rq = cones(q_dirs, nq, bq)                  # (b, nq, 3), (b, nq)
    ak, rk = cones(k_dirs, nk, bk)                  # (b, nk, 3), (b, nk)
    ang = jnp.arccos(jnp.clip(jnp.einsum('bqc,bkc->bqk', aq, ak), -1.0, 1.0))
    thresh_ang = jnp.arccos(jnp.clip(jnp.float32(cos_thresh), -1.0, 1.0))
    vis = (ang - rq[:, :, None] - rk[:, None, :]) <= thresh_ang
    return vis.astype(jnp.int32)                    # (b, nq, nk)


# --------------------------- flash-style masked attention ---------------------------

def _flash_attn_kernel(tv_ref, dq_ref, dkt_ref, q_ref, kv_ref, o_ref,
                       m_sc, l_sc, acc_sc, *, nh, dh, nqt, nkt, cos_thresh):
    C = nh * dh
    bb = pl.program_id(0)
    qi = pl.program_id(1)
    ki = pl.program_id(2)

    @pl.when(ki == 0)
    def _init():
        m_sc[...] = jnp.full(m_sc.shape, MASK_NEG, m_sc.dtype)
        l_sc[...] = jnp.zeros(l_sc.shape, l_sc.dtype)
        acc_sc[...] = jnp.zeros(acc_sc.shape, acc_sc.dtype)

    tile_visible = tv_ref[(bb * nqt + qi) * nkt + ki] != 0

    @pl.when(tile_visible)
    def _compute():
        # Visibility from ray directions (pure VPU broadcasts, no mask DMA):
        #   valid[i, j] = <dq[i], dk[j]> > cos_thresh
        dq = dq_ref[0]                                   # (bq, 3)  f32
        dkt = dkt_ref[0]                                 # (3, bk)  f32 (lane-dense)
        dots = (dq[:, 0:1] * dkt[0:1, :]
                + dq[:, 1:2] * dkt[1:2, :]
                + dq[:, 2:3] * dkt[2:3, :])              # (bq, bk) f32
        valid = dots > cos_thresh

        q_all = q_ref[0]                                 # (bq, C)   bf16
        kv = kv_ref[0]                                   # (bk, 2C)  bf16
        for h in range(nh):                              # static unroll over heads
            q = q_all[:, h * dh:(h + 1) * dh]
            k = kv[:, h * dh:(h + 1) * dh]
            v = kv[:, C + h * dh:C + (h + 1) * dh]
            # contract last dims (no explicit K transpose); 1/sqrt(dh) folded into Wq
            s = lax.dot_general(q, k, (((1,), (1,)), ((), ())),
                                preferred_element_type=jnp.float32)
            s = jnp.where(valid, s, MASK_NEG)
            m_prev = m_sc[h]
            m_new = jnp.maximum(m_prev, s.max(axis=-1, keepdims=True))
            alpha = jnp.exp(m_prev - m_new)
            p = jnp.where(valid, jnp.exp(s - m_new), 0.0)
            l_sc[h] = alpha * l_sc[h] + p.sum(axis=-1, keepdims=True)
            acc_sc[h] = alpha * acc_sc[h] + jnp.dot(
                p.astype(kv.dtype), v, preferred_element_type=jnp.float32)
            m_sc[h] = m_new

    @pl.when(ki == pl.num_programs(2) - 1)
    def _finalize():
        outs = []
        for h in range(nh):
            l = l_sc[h]
            # Fully-masked rows (padded queries / invisible pixels) -> zero output.
            inv = jnp.where(l > 0.0, 1.0 / jnp.maximum(l, 1e-30), 0.0)
            outs.append((acc_sc[h] * inv).astype(o_ref.dtype))
        o_ref[0] = jnp.concatenate(outs, axis=-1)        # single lane-dense (bq, C) store


def masked_attention(q, kv, q_dirs, k_dirs, *, nh, cos_thresh=MASK_COS_THRESH):
    """q: (b, Lq, C); kv: (b, Lk, 2C) with K in lanes [0,C), V in [C,2C);
    q_dirs: (b, Lq, 3), k_dirs: (b, Lk, 3) unit ray directions (zeros = padding)."""
    b, Lq, C = q.shape
    _, Lk, C2 = kv.shape
    assert C2 == 2 * C and C % nh == 0
    dh = C // nh
    cfg = _hw_preset()
    bq = _pick_tile(Lq, cfg['attn_q'])
    bk = _pick_tile(Lk, cfg['attn_k'])
    nqt, nkt = Lq // bq, Lk // bk

    # Conservative block-sparse skip map, scalar-prefetched into SMEM (flattened 1D).
    tilemap = tile_visibility(q_dirs, k_dirs, bq, bk, cos_thresh).reshape(-1)
    k_dirs_t = jnp.transpose(k_dirs, (0, 2, 1))          # (b, 3, Lk): lane-dense rows

    kernel = functools.partial(_flash_attn_kernel, nh=nh, dh=dh,
                               nqt=nqt, nkt=nkt, cos_thresh=cos_thresh)
    return pl.pallas_call(
        kernel,
        out_shape=jax.ShapeDtypeStruct((b, Lq, C), q.dtype),
        grid_spec=pltpu.PrefetchScalarGridSpec(
            num_scalar_prefetch=1,
            grid=(b, nqt, nkt),
            in_specs=[
                pl.BlockSpec((1, bq, 3), lambda bb, i, j, tv: (bb, i, 0)),
                pl.BlockSpec((1, 3, bk), lambda bb, i, j, tv: (bb, 0, j)),
                pl.BlockSpec((1, bq, C), lambda bb, i, j, tv: (bb, i, 0)),
                pl.BlockSpec((1, bk, 2 * C), lambda bb, i, j, tv: (bb, j, 0)),
            ],
            out_specs=pl.BlockSpec((1, bq, C), lambda bb, i, j, tv: (bb, i, 0)),
            scratch_shapes=[
                pltpu.VMEM((nh, bq, 1), jnp.float32),    # running max per head
                pltpu.VMEM((nh, bq, 1), jnp.float32),    # running denom per head
                pltpu.VMEM((nh, bq, dh), jnp.float32),   # running numerator per head
            ],
        ),
        compiler_params=pltpu.CompilerParams(
            # batch & q-tile axes are parallel -> megacore sharding on 2-TC parts
            dimension_semantics=("parallel", "parallel", "arbitrary"),
            vmem_limit_bytes=cfg['vmem_limit']),
    )(tilemap, q_dirs, k_dirs_t, q, kv)


# ---------------------------- tiled matmul (+ fused epilogue) ----------------------------

def _matmul_kernel(x_ref, w_ref, o_ref, acc_ref):
    kk = pl.program_id(2)

    @pl.when(kk == 0)
    def _():
        acc_ref[...] = jnp.zeros(acc_ref.shape, acc_ref.dtype)

    acc_ref[...] += jnp.dot(x_ref[...], w_ref[...], preferred_element_type=jnp.float32)

    @pl.when(kk == pl.num_programs(2) - 1)
    def _():
        o_ref[...] = acc_ref[...].astype(o_ref.dtype)


def _matmul_bias_res_kernel(x_ref, w_ref, b_ref, r_ref, o_ref, acc_ref):
    kk = pl.program_id(2)

    @pl.when(kk == 0)
    def _():
        acc_ref[...] = jnp.zeros(acc_ref.shape, acc_ref.dtype)

    acc_ref[...] += jnp.dot(x_ref[...], w_ref[...], preferred_element_type=jnp.float32)

    @pl.when(kk == pl.num_programs(2) - 1)
    def _():
        y = acc_ref[...] + b_ref[...] + r_ref[...].astype(jnp.float32)
        o_ref[...] = y.astype(o_ref.dtype)


def matmul(x, w, bias=None, residual=None, *, out_dtype=None):
    """(M, K) @ (K, N) [+ bias (N,)] [+ residual (M, N)] with K-axis fp32 accumulation."""
    M, K = x.shape
    K2, N = w.shape
    assert K == K2
    cfg = _hw_preset()
    tm = _pick_tile(M, cfg['mm_m'])
    tn = _pick_tile(N, cfg['mm_n'])
    tk = _pick_tile(K, cfg['mm_k'])
    out_dtype = out_dtype or x.dtype
    grid = (M // tm, N // tn, K // tk)

    if bias is None:
        assert residual is None
        kernel = _matmul_kernel
        in_specs = [
            pl.BlockSpec((tm, tk), lambda i, j, kk: (i, kk)),
            pl.BlockSpec((tk, tn), lambda i, j, kk: (kk, j)),
        ]
        args = (x, w)
    else:
        assert residual is not None
        kernel = _matmul_bias_res_kernel
        in_specs = [
            pl.BlockSpec((tm, tk), lambda i, j, kk: (i, kk)),
            pl.BlockSpec((tk, tn), lambda i, j, kk: (kk, j)),
            pl.BlockSpec((1, tn), lambda i, j, kk: (0, j)),
            pl.BlockSpec((tm, tn), lambda i, j, kk: (i, j)),
        ]
        args = (x, w, bias.reshape(1, N).astype(jnp.float32), residual)

    return pl.pallas_call(
        kernel,
        out_shape=jax.ShapeDtypeStruct((M, N), out_dtype),
        grid_spec=pltpu.PrefetchScalarGridSpec(
            num_scalar_prefetch=0,
            grid=grid,
            in_specs=in_specs,
            out_specs=pl.BlockSpec((tm, tn), lambda i, j, kk: (i, j)),
            scratch_shapes=[pltpu.VMEM((tm, tn), jnp.float32)],
        ),
        compiler_params=pltpu.CompilerParams(
            dimension_semantics=("parallel", "parallel", "arbitrary"),
            vmem_limit_bytes=cfg['vmem_limit']),
    )(*args)


# ----------------------- fused LayerNorm(+PE) -> matmul (Q projection) -----------------------

def _ln_pe_matmul_kernel(x_ref, pe_ref, g_ref, b_ref, w_ref, o_ref, h_sc, *, eps):
    # LayerNorm + PE is computed once per row tile (j == 0) and reused for all N tiles.
    @pl.when(pl.program_id(1) == 0)
    def _():
        x = x_ref[...].astype(jnp.float32)
        mu = jnp.mean(x, axis=-1, keepdims=True)
        xc = x - mu
        var = jnp.mean(xc * xc, axis=-1, keepdims=True)
        h = xc * lax.rsqrt(var + eps) * g_ref[...] + b_ref[...] + pe_ref[...].astype(jnp.float32)
        h_sc[...] = h.astype(h_sc.dtype)

    o_ref[...] = jnp.dot(h_sc[...], w_ref[...],
                         preferred_element_type=jnp.float32).astype(o_ref.dtype)


def ln_pe_matmul(x, pe, gamma, beta, w, *, eps=1e-5, out_dtype=None):
    M, C = x.shape
    _, N = w.shape
    cfg = _hw_preset()
    tm = _pick_tile(M, cfg['mm_m'])
    tn = _pick_tile(N, cfg['mm_n'])
    out_dtype = out_dtype or x.dtype
    grid = (M // tm, N // tn)
    return pl.pallas_call(
        functools.partial(_ln_pe_matmul_kernel, eps=eps),
        out_shape=jax.ShapeDtypeStruct((M, N), out_dtype),
        grid_spec=pltpu.PrefetchScalarGridSpec(
            num_scalar_prefetch=0,
            grid=grid,
            in_specs=[
                pl.BlockSpec((tm, C), lambda i, j: (i, 0)),
                pl.BlockSpec((tm, C), lambda i, j: (i, 0)),
                pl.BlockSpec((1, C), lambda i, j: (0, 0)),
                pl.BlockSpec((1, C), lambda i, j: (0, 0)),
                pl.BlockSpec((C, tn), lambda i, j: (0, j)),
            ],
            out_specs=pl.BlockSpec((tm, tn), lambda i, j: (i, j)),
            scratch_shapes=[pltpu.VMEM((tm, C), COMPUTE_DTYPE)],
        ),
        compiler_params=pltpu.CompilerParams(
            dimension_semantics=("parallel", "arbitrary"),   # h_sc carried across j
            vmem_limit_bytes=cfg['vmem_limit']),
    )(x, pe,
      gamma.reshape(1, C).astype(jnp.float32),
      beta.reshape(1, C).astype(jnp.float32), w)


# ----------------------- fused LayerNorm -> GEGLU (LN + 2 matmuls + gate) -----------------------

def _ln_geglu_kernel(x_ref, g_ref, b_ref, wv_ref, bv_ref, wg_ref, bg_ref, o_ref, h_sc, *, eps):
    @pl.when(pl.program_id(1) == 0)
    def _():
        x = x_ref[...].astype(jnp.float32)
        mu = jnp.mean(x, axis=-1, keepdims=True)
        xc = x - mu
        var = jnp.mean(xc * xc, axis=-1, keepdims=True)
        h = xc * lax.rsqrt(var + eps) * g_ref[...] + b_ref[...]
        h_sc[...] = h.astype(h_sc.dtype)

    h = h_sc[...]
    val = jnp.dot(h, wv_ref[...], preferred_element_type=jnp.float32) + bv_ref[...]
    gate = jnp.dot(h, wg_ref[...], preferred_element_type=jnp.float32) + bg_ref[...]
    # TODO(synk): PyTorch/diffusers GEGLU uses exact erf GELU; tanh approximation kept here.
    o_ref[...] = (val * jax.nn.gelu(gate, approximate=True)).astype(o_ref.dtype)


def ln_geglu(x, gamma, beta, wv, bv, wg, bg, *, eps=1e-5, out_dtype=None):
    M, C = x.shape
    _, N = wv.shape
    cfg = _hw_preset()
    tm = _pick_tile(M, cfg['mm_m'])
    tn = _pick_tile(N, cfg['mm_n'])
    out_dtype = out_dtype or x.dtype
    grid = (M // tm, N // tn)
    return pl.pallas_call(
        functools.partial(_ln_geglu_kernel, eps=eps),
        out_shape=jax.ShapeDtypeStruct((M, N), out_dtype),
        grid_spec=pltpu.PrefetchScalarGridSpec(
            num_scalar_prefetch=0,
            grid=grid,
            in_specs=[
                pl.BlockSpec((tm, C), lambda i, j: (i, 0)),
                pl.BlockSpec((1, C), lambda i, j: (0, 0)),
                pl.BlockSpec((1, C), lambda i, j: (0, 0)),
                pl.BlockSpec((C, tn), lambda i, j: (0, j)),
                pl.BlockSpec((1, tn), lambda i, j: (0, j)),
                pl.BlockSpec((C, tn), lambda i, j: (0, j)),
                pl.BlockSpec((1, tn), lambda i, j: (0, j)),
            ],
            out_specs=pl.BlockSpec((tm, tn), lambda i, j: (i, j)),
            scratch_shapes=[pltpu.VMEM((tm, C), COMPUTE_DTYPE)],
        ),
        compiler_params=pltpu.CompilerParams(
            dimension_semantics=("parallel", "arbitrary"),   # h_sc carried across j
            vmem_limit_bytes=cfg['vmem_limit']),
    )(x,
      gamma.reshape(1, C).astype(jnp.float32),
      beta.reshape(1, C).astype(jnp.float32),
      wv, bv.reshape(1, N).astype(jnp.float32),
      wg, bg.reshape(1, N).astype(jnp.float32))


# -------------------------- transformer block (glue) --------------------------

def transformer_block(x, context, q_dirs, k_dirs, query_pe, p, *, nh):
    # Assumed BasicTransformerBlock (diffusers-style): masked multi-head cross-attention
    # where query_pe is added to the LayerNorm'ed query, then a GEGLU feed-forward, each
    # with residual connection.  Visibility is evaluated in-kernel from ray directions.
    b, lq0, c = x.shape
    _, lk0, _ = context.shape

    pad_q = (-lq0) % SEQ_ALIGN
    pad_k = (-lk0) % SEQ_ALIGN
    if pad_q or pad_k:
        x = jnp.pad(x, ((0, 0), (0, pad_q), (0, 0)))
        query_pe = jnp.pad(query_pe, ((0, 0), (0, pad_q), (0, 0)))
        q_dirs = jnp.pad(q_dirs, ((0, 0), (0, pad_q), (0, 0)))
        context = jnp.pad(context, ((0, 0), (0, pad_k), (0, 0)))
        k_dirs = jnp.pad(k_dirs, ((0, 0), (0, pad_k), (0, 0)))
    lq = lq0 + pad_q
    lk = lk0 + pad_k

    x2 = x.reshape(b * lq, c)                                     # fp32 residual stream

    # Q = (LN1(x) + query_pe) @ (Wq / sqrt(d_head)); bf16 output feeds the MXU natively.
    q = ln_pe_matmul(x2, query_pe.reshape(b * lq, c), p['ln1_g'], p['ln1_b'],
                     p['wq_scaled'], out_dtype=COMPUTE_DTYPE).reshape(b, lq, c)
    # K,V = ctx @ [Wk | Wv]; K occupies lanes [0,c), V lanes [c,2c) — consumed directly
    # by the attention kernel (no per-head transposes or KV splits in HBM).
    kv = matmul(context.reshape(b * lk, c).astype(COMPUTE_DTYPE), p['wkv'],
                out_dtype=COMPUTE_DTYPE).reshape(b, lk, 2 * c)

    attn = masked_attention(q, kv, q_dirs, k_dirs, nh=nh)         # (b, lq, c) bf16

    # output projection with fused bias + residual (residual stream stays fp32)
    x2 = matmul(attn.reshape(b * lq, c), p['wo'], bias=p['bo'], residual=x2,
                out_dtype=x2.dtype)

    # feed-forward: LN2 + GEGLU fused, then down-projection with fused bias + residual
    hg = ln_geglu(x2, p['ln2_g'], p['ln2_b'], p['w1v'], p['b1v'], p['w1g'], p['b1g'],
                  out_dtype=COMPUTE_DTYPE)
    x2 = matmul(hg, p['w2'], bias=p['b2'], residual=x2, out_dtype=x2.dtype)

    return x2.reshape(b, lq, c)[:, :lq0]


# ----------------------- geometry / PE helpers (glue) -----------------------

def _sph_to_dir(theta, phi):
    return jnp.stack(
        [jnp.cos(phi) * jnp.sin(theta), jnp.sin(phi), jnp.cos(phi) * jnp.cos(theta)], -1)


def get_coords_and_dirs(ph, pw, eh, ew, cameras):
    # equirectangular pixel grid -> (theta, phi)
    jj = (jnp.arange(ew) + 0.5) / ew
    ii = (jnp.arange(eh) + 0.5) / eh
    theta_e = jnp.broadcast_to(((jj - 0.5) * 2.0 * jnp.pi)[None, :], (eh, ew))
    phi_e = jnp.broadcast_to(((0.5 - ii) * jnp.pi)[:, None], (eh, ew))
    equi_coords = jnp.stack([theta_e, phi_e], -1)            # (eh, ew, 2)
    equi_dirs = _sph_to_dir(theta_e, phi_e)                  # (eh, ew, 3) unit

    # perspective pixel grid -> world ray directions -> (theta, phi)
    R = cameras['rotation']                                  # (b*m, 3, 3) cam-to-world
    fov = cameras['fov']
    f = 0.5 / jnp.tan(fov / 2.0)
    u = (jnp.arange(pw) + 0.5) / pw - 0.5
    v = (jnp.arange(ph) + 0.5) / ph - 0.5
    dx = jnp.broadcast_to(u[None, :] / f, (ph, pw))
    dy = jnp.broadcast_to(-v[:, None] / f, (ph, pw))
    dz = jnp.ones((ph, pw))
    d = jnp.stack([dx, dy, dz], -1)
    d = d / jnp.linalg.norm(d, axis=-1, keepdims=True)
    pers_dirs = jnp.einsum('bij,hwj->bhwi', R, d)            # (b*m, ph, pw, 3) unit
    theta_p = jnp.arctan2(pers_dirs[..., 0], pers_dirs[..., 2])
    phi_p = jnp.arcsin(jnp.clip(pers_dirs[..., 1], -1.0, 1.0))
    pers_coords = jnp.stack([theta_p, phi_p], -1)            # (b*m, ph, pw, 2)
    return pers_coords, equi_coords, pers_dirs, equi_dirs


def spherical_pe(coords, dim):
    # TODO(synk): exact SphericalPE from the original repo is unavailable; using standard
    # Fourier features on (theta, phi), producing `dim` channels.
    n_freqs = dim // 2
    assert n_freqs % 2 == 0
    nf2 = n_freqs // 2
    freqs = 2.0 ** jnp.arange(nf2, dtype=jnp.float32)
    theta = coords[..., :1]
    phi = coords[..., 1:]
    ang_t = theta * freqs
    ang_p = phi * freqs
    return jnp.concatenate(
        [jnp.sin(ang_t), jnp.cos(ang_t), jnp.sin(ang_p), jnp.cos(ang_p)], -1)


# ------------------------------ WarpAttn forward ------------------------------

def prepare_params(params):
    """Fold 1/sqrt(d_head) into Wq and cast matmul weights to the MXU compute dtype."""
    cdt = COMPUTE_DTYPE
    p = dict(params)
    p['wq_scaled'] = (params['wq'] * (1.0 / math.sqrt(D_HEAD))).astype(cdt)
    for name in ('wkv', 'wo', 'w1v', 'w1g', 'w2'):
        p[name] = params[name].astype(cdt)
    return p


def warp_attn_forward(pers_x, equi_x, cameras, params):
    bm, c, ph, pw = pers_x.shape
    b, _, eh, ew = equi_x.shape
    m = bm // b
    nh = c // D_HEAD

    p = prepare_params(params)

    pers_coords, equi_coords, pers_dirs, equi_dirs = get_coords_and_dirs(ph, pw, eh, ew, cameras)

    pers_pe = spherical_pe(pers_coords, c)                        # (bm, ph, pw, c)
    equi_pe_hw = spherical_pe(equi_coords, c)                     # (eh, ew, c)

    pers_seq = jnp.transpose(pers_x, (0, 2, 3, 1))                # (bm, ph, pw, c)
    pers_seq_wpe = pers_seq + pers_pe
    equi_seq = jnp.transpose(equi_x, (0, 2, 3, 1))                # (b, eh, ew, c)
    equi_pe_b = jnp.broadcast_to(equi_pe_hw[None], (b, eh, ew, c))
    equi_seq_wpe = equi_seq + equi_pe_b

    # flattened unit ray directions per token; visibility is computed per tile inside
    # the attention kernel from these (no materialized (b, Lq, Lk) mask in HBM)
    pers_dirs_seq = pers_dirs.reshape(b, m * ph * pw, 3)
    equi_dirs_seq = jnp.broadcast_to(equi_dirs.reshape(1, eh * ew, 3), (b, eh * ew, 3))

    # ---- equi queries attend to perspective keys/values ----
    equi_x_out = transformer_block(
        equi_seq.reshape(b, eh * ew, c),
        pers_seq_wpe.reshape(b, m * ph * pw, c),
        equi_dirs_seq, pers_dirs_seq,
        equi_pe_b.reshape(b, eh * ew, c), p, nh=nh)

    # ---- perspective queries attend to equi keys/values ----
    pers_x_out = transformer_block(
        pers_seq.reshape(b, m * ph * pw, c),
        equi_seq_wpe.reshape(b, eh * ew, c),
        pers_dirs_seq, equi_dirs_seq,
        pers_pe.reshape(b, m * ph * pw, c), p, nh=nh)

    pers_x_out = jnp.transpose(pers_x_out.reshape(b * m, ph, pw, c), (0, 3, 1, 2))
    equi_x_out = jnp.transpose(equi_x_out.reshape(b, eh, ew, c), (0, 3, 1, 2))
    return pers_x_out, equi_x_out


# ------------------------------- parameters -------------------------------

def init_params(key, dim):
    ks = jax.random.split(key, 7)

    def lin(k, fan_in, fan_out):
        return jax.random.normal(k, (fan_in, fan_out), jnp.float32) * 0.02

    wk = lin(ks[1], dim, dim)
    wv = lin(ks[2], dim, dim)
    return dict(
        ln1_g=jnp.ones((dim,), jnp.float32), ln1_b=jnp.zeros((dim,), jnp.float32),
        wq=lin(ks[0], dim, dim),
        wkv=jnp.concatenate([wk, wv], axis=1),                    # fused K|V projection
        wo=lin(ks[3], dim, dim), bo=jnp.zeros((dim,), jnp.float32),
        ln2_g=jnp.ones((dim,), jnp.float32), ln2_b=jnp.zeros((dim,), jnp.float32),
        w1v=lin(ks[4], dim, dim * 4), b1v=jnp.zeros((dim * 4,), jnp.float32),  # GEGLU value
        w1g=lin(ks[5], dim, dim * 4), b1g=jnp.zeros((dim * 4,), jnp.float32),  # GEGLU gate
        w2=lin(ks[6], dim * 4, dim), b2=jnp.zeros((dim,), jnp.float32),
    )


if __name__ == "__main__":
    key = jax.random.PRNGKey(0)
    dim = 128                    # n_heads = dim // 64 = 2, d_head = 64 (lane-dense C=128)
    b, m = 1, 2
    ph_, pw_ = 8, 8
    eh_, ew_ = 8, 16

    k1, k2, k3 = jax.random.split(key, 3)
    pers_x = jax.random.normal(k1, (b * m, dim, ph_, pw_), jnp.float32)
    equi_x = jax.random.normal(k2, (b, dim, eh_, ew_), jnp.float32)

    # cameras: m=2 perspective views (yaw 0 and 180 deg), 90 deg FOV
    yaws = jnp.array([0.0, jnp.pi], jnp.float32)
    c_, s_ = jnp.cos(yaws), jnp.sin(yaws)
    z_, o_ = jnp.zeros_like(c_), jnp.ones_like(c_)
    R = jnp.stack([jnp.stack([c_, z_, s_], -1),
                   jnp.stack([z_, o_, z_], -1),
                   jnp.stack([-s_, z_, c_], -1)], -2)       # (m, 3, 3)
    cameras = {'rotation': jnp.tile(R, (b, 1, 1)), 'fov': jnp.float32(jnp.pi / 2)}

    params = init_params(k3, dim)

    pers_out, equi_out = jax.jit(warp_attn_forward)(pers_x, equi_x, cameras, params)
    jax.block_until_ready((pers_out, equi_out))

    assert pers_out.shape == pers_x.shape and equi_out.shape == equi_x.shape
    assert bool(jnp.all(jnp.isfinite(pers_out))) and bool(jnp.all(jnp.isfinite(equi_out)))
    print("KERNEL_OK")
</pallas_src>

<mosaic_0001>
module attributes {stable_mosaic.version = 11 : i64} {
  func.func @_ln_pe_matmul_kernel(%arg0: i32, %arg1: i32, %arg2: memref<128x128xf32, #tpu.memory_space<vmem>>, %arg3: memref<128x128xf32, #tpu.memory_space<vmem>>, %arg4: memref<1x128xf32, #tpu.memory_space<vmem>>, %arg5: memref<1x128xf32, #tpu.memory_space<vmem>>, %arg6: memref<128x128xbf16, #tpu.memory_space<vmem>>, %arg7: memref<128x128xbf16, #tpu.memory_space<vmem>>, %arg8: memref<128x128xbf16, #tpu.memory_space<vmem>>) attributes {dimension_semantics = [#tpu.dimension_semantics<parallel>, #tpu.dimension_semantics<arbitrary>], iteration_bounds = array<i64: 1, 1>, scalar_prefetch = 0 : i64, scratch_operands = 1 : i64, tpu.core_type = #tpu.core_type<tc>, window_params = [{transform_indices = @transform_0, window_bounds = array<i64: 128, 128>}, {transform_indices = @transform_1, window_bounds = array<i64: 128, 128>}, {pipeline_mode = #tpu.pipeline_mode<synchronous>, transform_indices = @transform_2, window_bounds = array<i64: 1, 128>}, {pipeline_mode = #tpu.pipeline_mode<synchronous>, transform_indices = @transform_3, window_bounds = array<i64: 1, 128>}, {transform_indices = @transform_4, window_bounds = array<i64: 128, 128>}, {transform_indices = @transform_5, window_bounds = array<i64: 128, 128>}]} {
    %c0_i32 = arith.constant 0 : i32
    %0 = arith.cmpi eq, %arg1, %c0_i32 : i32
    %1 = arith.extui %0 : i1 to i32
    %c0_i32_0 = arith.constant 0 : i32
    %2 = arith.cmpi ne, %1, %c0_i32_0 : i32
    scf.if %2 {
      %c0_6 = arith.constant 0 : index
      %c0_7 = arith.constant 0 : index
      %8 = vector.load %arg2[%c0_6, %c0_7] : memref<128x128xf32, #tpu.memory_space<vmem>>, vector<128x128xf32>
      %cst_8 = arith.constant dense<0.000000e+00> : vector<128xf32>
      %9 = vector.multi_reduction <add>, %8, %cst_8 [1] : vector<128x128xf32> to vector<128xf32>
      %10 = vector.shape_cast %9 : vector<128xf32> to vector<128x1xf32>
      %cst_9 = arith.constant 1.280000e+02 : f32
      %11 = vector.broadcast %cst_9 : f32 to vector<128x1xf32>
      %12 = arith.divf %10, %11 : vector<128x1xf32>
      %13 = vector.broadcast %12 : vector<128x1xf32> to vector<128x128xf32>
      %14 = arith.subf %8, %13 : vector<128x128xf32>
      %15 = arith.mulf %14, %14 : vector<128x128xf32>
      %cst_10 = arith.constant dense<0.000000e+00> : vector<128xf32>
      %16 = vector.multi_reduction <add>, %15, %cst_10 [1] : vector<128x128xf32> to vector<128xf32>
      %17 = vector.shape_cast %16 : vector<128xf32> to vector<128x1xf32>
      %cst_11 = arith.constant 1.280000e+02 : f32
      %18 = vector.broadcast %cst_11 : f32 to vector<128x1xf32>
      %19 = arith.divf %17, %18 : vector<128x1xf32>
      %cst_12 = arith.constant 9.99999974E-6 : f32
      %20 = vector.broadcast %cst_12 : f32 to vector<128x1xf32>
      %21 = arith.addf %19, %20 : vector<128x1xf32>
      %22 = math.rsqrt %21 : vector<128x1xf32>
      %23 = vector.broadcast %22 : vector<128x1xf32> to vector<128x128xf32>
      %24 = arith.mulf %14, %23 : vector<128x128xf32>
      %c0_13 = arith.constant 0 : index
      %c0_14 = arith.constant 0 : index
      %25 = vector.load %arg4[%c0_13, %c0_14] : memref<1x128xf32, #tpu.memory_space<vmem>>, vector<1x128xf32>
      %26 = vector.broadcast %25 : vector<1x128xf32> to vector<128x128xf32>
      %27 = arith.mulf %24, %26 : vector<128x128xf32>
      %c0_15 = arith.constant 0 : index
      %c0_16 = arith.constant 0 : index
      %28 = vector.load %arg5[%c0_15, %c0_16] : memref<1x128xf32, #tpu.memory_space<vmem>>, vector<1x128xf32>
      %29 = vector.broadcast %28 : vector<1x128xf32> to vector<128x128xf32>
      %30 = arith.addf %27, %29 : vector<128x128xf32>
      %c0_17 = arith.constant 0 : index
      %c0_18 = arith.constant 0 : index
      %31 = vector.load %arg3[%c0_17, %c0_18] : memref<128x128xf32, #tpu.memory_space<vmem>>, vector<128x128xf32>
      %32 = arith.addf %30, %31 : vector<128x128xf32>
      %33 = arith.truncf %32 : vector<128x128xf32> to vector<128x128xbf16>
      %c0_19 = arith.constant 0 : index
      %c0_20 = arith.constant 0 : index
      %34 = vector.load %arg8[%c0_19, %c0_20] : memref<128x128xbf16, #tpu.memory_space<vmem>>, vector<128x128xbf16>
      tpu.vector_store %arg8[%c0_19, %c0_20], %33 {strides = array<i32>} : memref<128x128xbf16, #tpu.memory_space<vmem>>, vector<128x128xbf16>,
    } else {
    }
    %c0 = arith.constant 0 : index
    %c0_1 = arith.constant 0 : index
    %3 = vector.load %arg8[%c0, %c0_1] : memref<128x128xbf16, #tpu.memory_space<vmem>>, vector<128x128xbf16>
    %c0_2 = arith.constant 0 : index
    %c0_3 = arith.constant 0 : index
    %4 = vector.load %arg6[%c0_2, %c0_3] : memref<128x128xbf16, #tpu.memory_space<vmem>>, vector<128x128xbf16>
    %cst = arith.constant dense<0.000000e+00> : vector<128x128xf32>
    %5 = tpu.matmul %3, %4, %cst {dimension_numbers = #tpu.dot_dimension_numbers<[1], [0], [0], [1], [0, 0, 1, 1], [], []>} : vector<128x128xbf16>, vector<128x128xbf16>, vector<128x128xf32> -> vector<128x128xf32>
    %6 = arith.truncf %5 : vector<128x128xf32> to vector<128x128xbf16>
    %c0_4 = arith.constant 0 : index
    %c0_5 = arith.constant 0 : index
    %7 = vector.load %arg7[%c0_4, %c0_5] : memref<128x128xbf16, #tpu.memory_space<vmem>>, vector<128x128xbf16>
    tpu.vector_store %arg7[%c0_4, %c0_5], %6 {strides = array<i32>} : memref<128x128xbf16, #tpu.memory_space<vmem>>, vector<128x128xbf16>,
    return
  }
  func.func @transform_0(%arg0: i32, %arg1: i32) -> (i32, i32) {
    %c0_i32 = arith.constant 0 : i32
    %c0_i32_0 = arith.constant 0 : i32
    return %arg0, %c0_i32 : i32, i32
  }
  func.func @transform_1(%arg0: i32, %arg1: i32) -> (i32, i32) {
    %c0_i32 = arith.constant 0 : i32
    %c0_i32_0 = arith.constant 0 : i32
    return %arg0, %c0_i32 : i32, i32
  }
  func.func @transform_2(%arg0: i32, %arg1: i32) -> (i32, i32) {
    %c0_i32 = arith.constant 0 : i32
    %c0_i32_0 = arith.constant 0 : i32
    %c0_i32_1 = arith.constant 0 : i32
    return %c0_i32, %c0_i32_0 : i32, i32
  }
  func.func @transform_3(%arg0: i32, %arg1: i32) -> (i32, i32) {
    %c0_i32 = arith.constant 0 : i32
    %c0_i32_0 = arith.constant 0 : i32
    %c0_i32_1 = arith.constant 0 : i32
    return %c0_i32, %c0_i32_0 : i32, i32
  }
  func.func @transform_4(%arg0: i32, %arg1: i32) -> (i32, i32) {
    %c0_i32 = arith.constant 0 : i32
    %c0_i32_0 = arith.constant 0 : i32
    return %c0_i32, %arg1 : i32, i32
  }
  func.func @transform_5(%arg0: i32, %arg1: i32) -> (i32, i32) {
    %c0_i32 = arith.constant 0 : i32
    return %arg0, %arg1 : i32, i32
  }
}

module attributes {stable_mosaic.version = 11 : i64} {
  func.func @_matmul_kernel(%arg0: i32, %arg1: i32, %arg2: i32, %arg3: memref<128x128xbf16, #tpu.memory_space<vmem>>, %arg4: memref<128x256xbf16, #tpu.memory_space<vmem>>, %arg5: memref<128x256xbf16, #tpu.memory_space<vmem>>, %arg6: memref<128x256xf32, #tpu.memory_space<vmem>>) attributes {dimension_semantics = [#tpu.dimension_semantics<parallel>, #tpu.dimension_semantics<parallel>, #tpu.dimension_semantics<arbitrary>], iteration_bounds = array<i64: 1, 1, 1>, scalar_prefetch = 0 : i64, scratch_operands = 1 : i64, tpu.core_type = #tpu.core_type<tc>, window_params = [{transform_indices = @transform_0, window_bounds = array<i64: 128, 128>}, {transform_indices = @transform_1, window_bounds = array<i64: 128, 256>}, {transform_indices = @transform_2, window_bounds = array<i64: 128, 256>}]} {
    %c0_i32 = arith.constant 0 : i32
    %0 = arith.cmpi eq, %arg2, %c0_i32 : i32
    %1 = arith.extui %0 : i1 to i32
    %c0_i32_0 = arith.constant 0 : i32
    %2 = arith.cmpi ne, %1, %c0_i32_0 : i32
    scf.if %2 {
      %cst_10 = arith.constant 0.000000e+00 : f32
      %12 = vector.broadcast %cst_10 : f32 to vector<128x256xf32>
      %c0_11 = arith.constant 0 : index
      %c0_12 = arith.constant 0 : index
      %13 = vector.load %arg6[%c0_11, %c0_12] : memref<128x256xf32, #tpu.memory_space<vmem>>, vector<128x256xf32>
      tpu.vector_store %arg6[%c0_11, %c0_12], %12 {strides = array<i32>} : memref<128x256xf32, #tpu.memory_space<vmem>>, vector<128x256xf32>,
    } else {
    }
    %c0 = arith.constant 0 : index
    %c0_1 = arith.constant 0 : index
    %3 = vector.load %arg6[%c0, %c0_1] : memref<128x256xf32, #tpu.memory_space<vmem>>, vector<128x256xf32>
    %c0_2 = arith.constant 0 : index
    %c0_3 = arith.constant 0 : index
    %4 = vector.load %arg3[%c0_2, %c0_3] : memref<128x128xbf16, #tpu.memory_space<vmem>>, vector<128x128xbf16>
    %c0_4 = arith.constant 0 : index
    %c0_5 = arith.constant 0 : index
    %5 = vector.load %arg4[%c0_4, %c0_5] : memref<128x256xbf16, #tpu.memory_space<vmem>>, vector<128x256xbf16>
    %cst = arith.constant dense<0.000000e+00> : vector<128x256xf32>
    %6 = tpu.matmul %4, %5, %cst {dimension_numbers = #tpu.dot_dimension_numbers<[1], [0], [0], [1], [0, 0, 1, 1], [], []>} : vector<128x128xbf16>, vector<128x256xbf16>, vector<128x256xf32> -> vector<128x256xf32>
    %7 = arith.addf %3, %6 : vector<128x256xf32>
    %c0_6 = arith.constant 0 : index
    %c0_7 = arith.constant 0 : index
    %8 = vector.load %arg6[%c0_6, %c0_7] : memref<128x256xf32, #tpu.memory_space<vmem>>, vector<128x256xf32>
    tpu.vector_store %arg6[%c0_6, %c0_7], %7 {strides = array<i32>} : memref<128x256xf32, #tpu.memory_space<vmem>>, vector<128x256xf32>,
    %c0_i32_8 = arith.constant 0 : i32
    %9 = arith.cmpi eq, %arg2, %c0_i32_8 : i32
    %10 = arith.extui %9 : i1 to i32
    %c0_i32_9 = arith.constant 0 : i32
    %11 = arith.cmpi ne, %10, %c0_i32_9 : i32
    scf.if %11 {
      %c0_10 = arith.constant 0 : index
      %c0_11 = arith.constant 0 : index
      %12 = vector.load %arg6[%c0_10, %c0_11] : memref<128x256xf32, #tpu.memory_space<vmem>>, vector<128x256xf32>
      %13 = arith.truncf %12 : vector<128x256xf32> to vector<128x256xbf16>
      %c0_12 = arith.constant 0 : index
      %c0_13 = arith.constant 0 : index
      %14 = vector.load %arg5[%c0_12, %c0_13] : memref<128x256xbf16, #tpu.memory_space<vmem>>, vector<128x256xbf16>
      tpu.vector_store %arg5[%c0_12, %c0_13], %13 {strides = array<i32>} : memref<128x256xbf16, #tpu.memory_space<vmem>>, vector<128x256xbf16>,
    } else {
    }
    return
  }
  func.func @transform_0(%arg0: i32, %arg1: i32, %arg2: i32) -> (i32, i32) {
    %c0_i32 = arith.constant 0 : i32
    return %arg0, %arg2 : i32, i32
  }
  func.func @transform_1(%arg0: i32, %arg1: i32, %arg2: i32) -> (i32, i32) {
    %c0_i32 = arith.constant 0 : i32
    return %arg2, %arg1 : i32, i32
  }
  func.func @transform_2(%arg0: i32, %arg1: i32, %arg2: i32) -> (i32, i32) {
    %c0_i32 = arith.constant 0 : i32
    return %arg0, %arg1 : i32, i32
  }
}

module attributes {stable_mosaic.version = 11 : i64} {
  func.func @_matmul_bias_res_kernel(%arg0: i32, %arg1: i32, %arg2: i32, %arg3: memref<128x128xbf16, #tpu.memory_space<vmem>>, %arg4: memref<128x128xbf16, #tpu.memory_space<vmem>>, %arg5: memref<1x128xf32, #tpu.memory_space<vmem>>, %arg6: memref<128x128xf32, #tpu.memory_space<vmem>>, %arg7: memref<128x128xf32, #tpu.memory_space<vmem>>, %arg8: memref<128x128xf32, #tpu.memory_space<vmem>>) attributes {dimension_semantics = [#tpu.dimension_semantics<parallel>, #tpu.dimension_semantics<parallel>, #tpu.dimension_semantics<arbitrary>], iteration_bounds = array<i64: 1, 1, 1>, scalar_prefetch = 0 : i64, scratch_operands = 1 : i64, tpu.core_type = #tpu.core_type<tc>, window_params = [{transform_indices = @transform_0, window_bounds = array<i64: 128, 128>}, {transform_indices = @transform_1, window_bounds = array<i64: 128, 128>}, {transform_indices = @transform_2, window_bounds = array<i64: 1, 128>}, {transform_indices = @transform_3, window_bounds = array<i64: 128, 128>}, {transform_indices = @transform_4, window_bounds = array<i64: 128, 128>}]} {
    %c0_i32 = arith.constant 0 : i32
    %0 = arith.cmpi eq, %arg2, %c0_i32 : i32
    %1 = arith.extui %0 : i1 to i32
    %c0_i32_0 = arith.constant 0 : i32
    %2 = arith.cmpi ne, %1, %c0_i32_0 : i32
    scf.if %2 {
      %cst_10 = arith.constant 0.000000e+00 : f32
      %12 = vector.broadcast %cst_10 : f32 to vector<128x128xf32>
      %c0_11 = arith.constant 0 : index
      %c0_12 = arith.constant 0 : index
      %13 = vector.load %arg8[%c0_11, %c0_12] : memref<128x128xf32, #tpu.memory_space<vmem>>, vector<128x128xf32>
      tpu.vector_store %arg8[%c0_11, %c0_12], %12 {strides = array<i32>} : memref<128x128xf32, #tpu.memory_space<vmem>>, vector<128x128xf32>,
    } else {
    }
    %c0 = arith.constant 0 : index
    %c0_1 = arith.constant 0 : index
    %3 = vector.load %arg8[%c0, %c0_1] : memref<128x128xf32, #tpu.memory_space<vmem>>, vector<128x128xf32>
    %c0_2 = arith.constant 0 : index
    %c0_3 = arith.constant 0 : index
    %4 = vector.load %arg3[%c0_2, %c0_3] : memref<128x128xbf16, #tpu.memory_space<vmem>>, vector<128x128xbf16>
    %c0_4 = arith.constant 0 : index
    %c0_5 = arith.constant 0 : index
    %5 = vector.load %arg4[%c0_4, %c0_5] : memref<128x128xbf16, #tpu.memory_space<vmem>>, vector<128x128xbf16>
    %cst = arith.constant dense<0.000000e+00> : vector<128x128xf32>
    %6 = tpu.matmul %4, %5, %cst {dimension_numbers = #tpu.dot_dimension_numbers<[1], [0], [0], [1], [0, 0, 1, 1], [], []>} : vector<128x128xbf16>, vector<128x128xbf16>, vector<128x128xf32> -> vector<128x128xf32>
    %7 = arith.addf %3, %6 : vector<128x128xf32>
    %c0_6 = arith.constant 0 : index
    %c0_7 = arith.constant 0 : index
    %8 = vector.load %arg8[%c0_6, %c0_7] : memref<128x128xf32, #tpu.memory_space<vmem>>, vector<128x128xf32>
    tpu.vector_store %arg8[%c0_6, %c0_7], %7 {strides = array<i32>} : memref<128x128xf32, #tpu.memory_space<vmem>>, vector<128x128xf32>,
    %c0_i32_8 = arith.constant 0 : i32
    %9 = arith.cmpi eq, %arg2, %c0_i32_8 : i32
    %10 = arith.extui %9 : i1 to i32
    %c0_i32_9 = arith.constant 0 : i32
    %11 = arith.cmpi ne, %10, %c0_i32_9 : i32
    scf.if %11 {
      %c0_10 = arith.constant 0 : index
      %c0_11 = arith.constant 0 : index
      %12 = vector.load %arg8[%c0_10, %c0_11] : memref<128x128xf32, #tpu.memory_space<vmem>>, vector<128x128xf32>
      %c0_12 = arith.constant 0 : index
      %c0_13 = arith.constant 0 : index
      %13 = vector.load %arg5[%c0_12, %c0_13] : memref<1x128xf32, #tpu.memory_space<vmem>>, vector<1x128xf32>
      %14 = vector.broadcast %13 : vector<1x128xf32> to vector<128x128xf32>
      %15 = arith.addf %12, %14 : vector<128x128xf32>
      %c0_14 = arith.constant 0 : index
      %c0_15 = arith.constant 0 : index
      %16 = vector.load %arg6[%c0_14, %c0_15] : memref<128x128xf32, #tpu.memory_space<vmem>>, vector<128x128xf32>
      %17 = arith.addf %15, %16 : vector<128x128xf32>
      %c0_16 = arith.constant 0 : index
      %c0_17 = arith.constant 0 : index
      %18 = vector.load %arg7[%c0_16, %c0_17] : memref<128x128xf32, #tpu.memory_space<vmem>>, vector<128x128xf32>
      tpu.vector_store %arg7[%c0_16, %c0_17], %17 {strides = array<i32>} : memref<128x128xf32, #tpu.memory_space<vmem>>, vector<128x128xf32>,
    } else {
    }
    return
  }
  func.func @transform_0(%arg0: i32, %arg1: i32, %arg2: i32) -> (i32, i32) {
    %c0_i32 = arith.constant 0 : i32
    return %arg0, %arg2 : i32, i32
  }
  func.func @transform_1(%arg0: i32, %arg1: i32, %arg2: i32) -> (i32, i32) {
    %c0_i32 = arith.constant 0 : i32
    return %arg2, %arg1 : i32, i32
  }
  func.func @transform_2(%arg0: i32, %arg1: i32, %arg2: i32) -> (i32, i32) {
    %c0_i32 = arith.constant 0 : i32
    %c0_i32_0 = arith.constant 0 : i32
    return %c0_i32, %arg1 : i32, i32
  }
  func.func @transform_3(%arg0: i32, %arg1: i32, %arg2: i32) -> (i32, i32) {
    %c0_i32 = arith.constant 0 : i32
    return %arg0, %arg1 : i32, i32
  }
  func.func @transform_4(%arg0: i32, %arg1: i32, %arg2: i32) -> (i32, i32) {
    %c0_i32 = arith.constant 0 : i32
    return %arg0, %arg1 : i32, i32
  }
}

module attributes {stable_mosaic.version = 11 : i64} {
  func.func @_flash_attn_kernel(%arg0: i32, %arg1: i32, %arg2: i32, %arg3: memref<1xi32, #tpu.memory_space<smem>>, %arg4: memref<1x128x3xf32, #tpu.memory_space<vmem>>, %arg5: memref<1x3x128xf32, #tpu.memory_space<vmem>>, %arg6: memref<1x128x128xbf16, #tpu.memory_space<vmem>>, %arg7: memref<1x128x256xbf16, #tpu.memory_space<vmem>>, %arg8: memref<1x128x128xbf16, #tpu.memory_space<vmem>>, %arg9: memref<2x128x1xf32, #tpu.memory_space<vmem>>, %arg10: memref<2x128x1xf32, #tpu.memory_space<vmem>>, %arg11: memref<2x128x64xf32, #tpu.memory_space<vmem>>) attributes {dimension_semantics = [#tpu.dimension_semantics<parallel>, #tpu.dimension_semantics<parallel>, #tpu.dimension_semantics<arbitrary>], iteration_bounds = array<i64: 1, 1, 1>, scalar_prefetch = 1 : i64, scratch_operands = 3 : i64, tpu.core_type = #tpu.core_type<tc>, window_params = [{transform_indices = @transform_0, window_bounds = array<i64: 1, 128, 3>}, {transform_indices = @transform_1, window_bounds = array<i64: 1, 3, 128>}, {transform_indices = @transform_2, window_bounds = array<i64: 1, 128, 128>}, {transform_indices = @transform_3, window_bounds = array<i64: 1, 128, 256>}, {transform_indices = @transform_4, window_bounds = array<i64: 1, 128, 128>}]} {
    %c0_i32 = arith.constant 0 : i32
    %0 = arith.cmpi eq, %arg2, %c0_i32 : i32
    %1 = arith.extui %0 : i1 to i32
    %c0_i32_0 = arith.constant 0 : i32
    %2 = arith.cmpi ne, %1, %c0_i32_0 : i32
    scf.if %2 {
      %cst = arith.constant -1.000000e+30 : f32
      %15 = vector.broadcast %cst : f32 to vector<2x128x1xf32>
      %c0 = arith.constant 0 : index
      %c0_6 = arith.constant 0 : index
      %c0_7 = arith.constant 0 : index
      %16 = vector.load %arg9[%c0, %c0_6, %c0_7] : memref<2x128x1xf32, #tpu.memory_space<vmem>>, vector<2x128x1xf32>
      tpu.vector_store %arg9[%c0, %c0_6, %c0_7], %15 {strides = array<i32>} : memref<2x128x1xf32, #tpu.memory_space<vmem>>, vector<2x128x1xf32>,
      %cst_8 = arith.constant 0.000000e+00 : f32
      %17 = vector.broadcast %cst_8 : f32 to vector<2x128x1xf32>
      %c0_9 = arith.constant 0 : index
      %c0_10 = arith.constant 0 : index
      %c0_11 = arith.constant 0 : index
      %18 = vector.load %arg10[%c0_9, %c0_10, %c0_11] : memref<2x128x1xf32, #tpu.memory_space<vmem>>, vector<2x128x1xf32>
      tpu.vector_store %arg10[%c0_9, %c0_10, %c0_11], %17 {strides = array<i32>} : memref<2x128x1xf32, #tpu.memory_space<vmem>>, vector<2x128x1xf32>,
      %cst_12 = arith.constant 0.000000e+00 : f32
      %19 = vector.broadcast %cst_12 : f32 to vector<2x128x64xf32>
      %c0_13 = arith.constant 0 : index
      %c0_14 = arith.constant 0 : index
      %c0_15 = arith.constant 0 : index
      %20 = vector.load %arg11[%c0_13, %c0_14, %c0_15] : memref<2x128x64xf32, #tpu.memory_space<vmem>>, vector<2x128x64xf32>
      tpu.vector_store %arg11[%c0_13, %c0_14, %c0_15], %19 {strides = array<i32>} : memref<2x128x64xf32, #tpu.memory_space<vmem>>, vector<2x128x64xf32>,
    } else {
    }
    %c1_i32 = arith.constant 1 : i32
    %3 = arith.muli %arg0, %c1_i32 : i32
    %4 = arith.addi %3, %arg1 : i32
    %c1_i32_1 = arith.constant 1 : i32
    %5 = arith.muli %4, %c1_i32_1 : i32
    %6 = arith.addi %5, %arg2 : i32
    %7 = arith.index_cast %6 : i32 to index
    %8 = memref.load %arg3[%7] : memref<1xi32, #tpu.memory_space<smem>>
    %c0_i32_2 = arith.constant 0 : i32
    %9 = arith.cmpi ne, %8, %c0_i32_2 : i32
    %10 = arith.extui %9 : i1 to i32
    %c0_i32_3 = arith.constant 0 : i32
    %11 = arith.cmpi ne, %10, %c0_i32_3 : i32
    scf.if %11 {
      %c0 = arith.constant 0 : index
      %c0_6 = arith.constant 0 : index
      %c0_7 = arith.constant 0 : index
      %15 = vector.load %arg4[%c0, %c0_6, %c0_7] : memref<1x128x3xf32, #tpu.memory_space<vmem>>, vector<1x128x3xf32>
      %16 = vector.shape_cast %15 : vector<1x128x3xf32> to vector<128x3xf32>
      %c0_8 = arith.constant 0 : index
      %c0_9 = arith.constant 0 : index
      %c0_10 = arith.constant 0 : index
      %17 = vector.load %arg5[%c0_8, %c0_9, %c0_10] : memref<1x3x128xf32, #tpu.memory_space<vmem>>, vector<1x3x128xf32>
      %18 = vector.shape_cast %17 : vector<1x3x128xf32> to vector<3x128xf32>
      %19 = vector.extract_strided_slice %16 {offsets = [0, 0], sizes = [128, 1], strides = [1, 1]} : vector<128x3xf32> to vector<128x1xf32>
      %20 = vector.extract_strided_slice %18 {offsets = [0, 0], sizes = [1, 128], strides = [1, 1]} : vector<3x128xf32> to vector<1x128xf32>
      %21 = vector.broadcast %19 : vector<128x1xf32> to vector<128x128xf32>
      %22 = vector.broadcast %20 : vector<1x128xf32> to vector<128x128xf32>
      %23 = arith.mulf %21, %22 : vector<128x128xf32>
      %24 = vector.extract_strided_slice %16 {offsets = [0, 1], sizes = [128, 1], strides = [1, 1]} : vector<128x3xf32> to vector<128x1xf32>
      %25 = vector.extract_strided_slice %18 {offsets = [1, 0], sizes = [1, 128], strides = [1, 1]} : vector<3x128xf32> to vector<1x128xf32>
      %26 = vector.broadcast %24 : vector<128x1xf32> to vector<128x128xf32>
      %27 = vector.broadcast %25 : vector<1x128xf32> to vector<128x128xf32>
      %28 = arith.mulf %26, %27 : vector<128x128xf32>
      %29 = arith.addf %23, %28 : vector<128x128xf32>
      %30 = vector.extract_strided_slice %16 {offsets = [0, 2], sizes = [128, 1], strides = [1, 1]} : vector<128x3xf32> to vector<128x1xf32>
      %31 = vector.extract_strided_slice %18 {offsets = [2, 0], sizes = [1, 128], strides = [1, 1]} : vector<3x128xf32> to vector<1x128xf32>
      %32 = vector.broadcast %30 : vector<128x1xf32> to vector<128x128xf32>
      %33 = vector.broadcast %31 : vector<1x128xf32> to vector<128x128xf32>
      %34 = arith.mulf %32, %33 : vector<128x128xf32>
      %35 = arith.addf %29, %34 : vector<128x128xf32>
      %cst = arith.constant 5.000000e-01 : f32
      %36 = vector.broadcast %cst : f32 to vector<128x128xf32>
      %37 = arith.cmpf ogt, %35, %36 : vector<128x128xf32>
      %c0_11 = arith.constant 0 : index
      %c0_12 = arith.constant 0 : index
      %c0_13 = arith.constant 0 : index
      %38 = vector.load %arg6[%c0_11, %c0_12, %c0_13] : memref<1x128x128xbf16, #tpu.memory_space<vmem>>, vector<1x128x128xbf16>
      %39 = vector.shape_cast %38 : vector<1x128x128xbf16> to vector<128x128xbf16>
      %c0_14 = arith.constant 0 : index
      %c0_15 = arith.constant 0 : index
      %c0_16 = arith.constant 0 : index
      %40 = vector.load %arg7[%c0_14, %c0_15, %c0_16] : memref<1x128x256xbf16, #tpu.memory_space<vmem>>, vector<1x128x256xbf16>
      %41 = vector.shape_cast %40 : vector<1x128x256xbf16> to vector<128x256xbf16>
      %42 = vector.extract_strided_slice %39 {offsets = [0, 0], sizes = [128, 64], strides = [1, 1]} : vector<128x128xbf16> to vector<128x64xbf16>
      %43 = vector.extract_strided_slice %41 {offsets = [0, 0], sizes = [128, 64], strides = [1, 1]} : vector<128x256xbf16> to vector<128x64xbf16>
      %44 = vector.extract_strided_slice %41 {offsets = [0, 128], sizes = [128, 64], strides = [1, 1]} : vector<128x256xbf16> to vector<128x64xbf16>
      %cst_17 = arith.constant dense<0.000000e+00> : vector<128x128xf32>
      %45 = tpu.matmul %42, %43, %cst_17 {dimension_numbers = #tpu.dot_dimension_numbers<[1], [1], [0], [0], [0, 0, 1, 0], [], []>} : vector<128x64xbf16>, vector<128x64xbf16>, vector<128x128xf32> -> vector<128x128xf32>
      %cst_18 = arith.constant -1.000000e+30 : f32
      %46 = vector.broadcast %cst_18 : f32 to vector<128x128xf32>
      %47 = arith.select %37, %45, %46 : vector<128x128xi1>, vector<128x128xf32>
      %c0_19 = arith.constant 0 : index
      %c0_20 = arith.constant 0 : index
      %c0_21 = arith.constant 0 : index
      %48 = vector.load %arg9[%c0_19, %c0_20, %c0_21] : memref<2x128x1xf32, #tpu.memory_space<vmem>>, vector<1x128x1xf32>
      %49 = vector.shape_cast %48 : vector<1x128x1xf32> to vector<128x1xf32>
      %cst_22 = arith.constant dense<0xFF800000> : vector<128xf32>
      %50 = vector.multi_reduction <maximumf>, %47, %cst_22 [1] : vector<128x128xf32> to vector<128xf32>
      %51 = vector.shape_cast %50 : vector<128xf32> to vector<128x1xf32>
      %52 = arith.maximumf %49, %51 : vector<128x1xf32>
      %53 = arith.subf %49, %52 : vector<128x1xf32>
      %54 = math.exp %53 : vector<128x1xf32>
      %55 = vector.broadcast %52 : vector<128x1xf32> to vector<128x128xf32>
      %56 = arith.subf %47, %55 : vector<128x128xf32>
      %57 = math.exp %56 : vector<128x128xf32>
      %cst_23 = arith.constant 0.000000e+00 : f32
      %58 = vector.broadcast %cst_23 : f32 to vector<128x128xf32>
      %59 = arith.select %37, %57, %58 : vector<128x128xi1>, vector<128x128xf32>
      %c0_24 = arith.constant 0 : index
      %c0_25 = arith.constant 0 : index
      %c0_26 = arith.constant 0 : index
      %60 = vector.load %arg10[%c0_24, %c0_25, %c0_26] : memref<2x128x1xf32, #tpu.memory_space<vmem>>, vector<1x128x1xf32>
      %61 = vector.shape_cast %60 : vector<1x128x1xf32> to vector<128x1xf32>
      %62 = arith.mulf %54, %61 : vector<128x1xf32>
      %cst_27 = arith.constant dense<0.000000e+00> : vector<128xf32>
      %63 = vector.multi_reduction <add>, %59, %cst_27 [1] : vector<128x128xf32> to vector<128xf32>
      %64 = vector.shape_cast %63 : vector<128xf32> to vector<128x1xf32>
      %65 = arith.addf %62, %64 : vector<128x1xf32>
      %c0_28 = arith.constant 0 : index
      %c0_29 = arith.constant 0 : index
      %c0_30 = arith.constant 0 : index
      %66 = vector.load %arg10[%c0_28, %c0_29, %c0_30] : memref<2x128x1xf32, #tpu.memory_space<vmem>>, vector<1x128x1xf32>
      %67 = vector.shape_cast %66 : vector<1x128x1xf32> to vector<128x1xf32>
      %68 = vector.shape_cast %65 : vector<128x1xf32> to vector<1x128x1xf32>
      tpu.vector_store %arg10[%c0_28, %c0_29, %c0_30], %68 {strides = array<i32>} : memref<2x128x1xf32, #tpu.memory_space<vmem>>, vector<1x128x1xf32>,
      %c0_31 = arith.constant 0 : index
      %c0_32 = arith.constant 0 : index
      %c0_33 = arith.constant 0 : index
      %69 = vector.load %arg11[%c0_31, %c0_32, %c0_33] : memref<2x128x64xf32, #tpu.memory_space<vmem>>, vector<1x128x64xf32>
      %70 = vector.shape_cast %69 : vector<1x128x64xf32> to vector<128x64xf32>
      %71 = vector.broadcast %54 : vector<128x1xf32> to vector<128x64xf32>
      %72 = arith.mulf %71, %70 : vector<128x64xf32>
      %73 = arith.truncf %59 : vector<128x128xf32> to vector<128x128xbf16>
      %cst_34 = arith.constant dense<0.000000e+00> : vector<128x64xf32>
      %74 = tpu.matmul %73, %44, %cst_34 {dimension_numbers = #tpu.dot_dimension_numbers<[1], [0], [0], [1], [0, 0, 1, 1], [], []>} : vector<128x128xbf16>, vector<128x64xbf16>, vector<128x64xf32> -> vector<128x64xf32>
      %75 = arith.addf %72, %74 : vector<128x64xf32>
      %c0_35 = arith.constant 0 : index
      %c0_36 = arith.constant 0 : index
      %c0_37 = arith.constant 0 : index
      %76 = vector.load %arg11[%c0_35, %c0_36, %c0_37] : memref<2x128x64xf32, #tpu.memory_space<vmem>>, vector<1x128x64xf32>
      %77 = vector.shape_cast %76 : vector<1x128x64xf32> to vector<128x64xf32>
      %78 = vector.shape_cast %75 : vector<128x64xf32> to vector<1x128x64xf32>
      tpu.vector_store %arg11[%c0_35, %c0_36, %c0_37], %78 {strides = array<i32>} : memref<2x128x64xf32, #tpu.memory_space<vmem>>, vector<1x128x64xf32>,
      %c0_38 = arith.constant 0 : index
      %c0_39 = arith.constant 0 : index
      %c0_40 = arith.constant 0 : index
      %79 = vector.load %arg9[%c0_38, %c0_39, %c0_40] : memref<2x128x1xf32, #tpu.memory_space<vmem>>, vector<1x128x1xf32>
      %80 = vector.shape_cast %79 : vector<1x128x1xf32> to vector<128x1xf32>
      %81 = vector.shape_cast %52 : vector<128x1xf32> to vector<1x128x1xf32>
      tpu.vector_store %arg9[%c0_38, %c0_39, %c0_40], %81 {strides = array<i32>} : memref<2x128x1xf32, #tpu.memory_space<vmem>>, vector<1x128x1xf32>,
      %82 = vector.extract_strided_slice %39 {offsets = [0, 64], sizes = [128, 64], strides = [1, 1]} : vector<128x128xbf16> to vector<128x64xbf16>
      %83 = vector.extract_strided_slice %41 {offsets = [0, 64], sizes = [128, 64], strides = [1, 1]} : vector<128x256xbf16> to vector<128x64xbf16>
      %84 = vector.extract_strided_slice %41 {offsets = [0, 192], sizes = [128, 64], strides = [1, 1]} : vector<128x256xbf16> to vector<128x64xbf16>
      %cst_41 = arith.constant dense<0.000000e+00> : vector<128x128xf32>
      %85 = tpu.matmul %82, %83, %cst_41 {dimension_numbers = #tpu.dot_dimension_numbers<[1], [1], [0], [0], [0, 0, 1, 0], [], []>} : vector<128x64xbf16>, vector<128x64xbf16>, vector<128x128xf32> -> vector<128x128xf32>
      %cst_42 = arith.constant -1.000000e+30 : f32
      %86 = vector.broadcast %cst_42 : f32 to vector<128x128xf32>
      %87 = arith.select %37, %85, %86 : vector<128x128xi1>, vector<128x128xf32>
      %c1 = arith.constant 1 : index
      %c0_43 = arith.constant 0 : index
      %c0_44 = arith.constant 0 : index
      %88 = vector.load %arg9[%c1, %c0_43, %c0_44] : memref<2x128x1xf32, #tpu.memory_space<vmem>>, vector<1x128x1xf32>
      %89 = vector.shape_cast %88 : vector<1x128x1xf32> to vector<128x1xf32>
      %cst_45 = arith.constant dense<0xFF800000> : vector<128xf32>
      %90 = vector.multi_reduction <maximumf>, %87, %cst_45 [1] : vector<128x128xf32> to vector<128xf32>
      %91 = vector.shape_cast %90 : vector<128xf32> to vector<128x1xf32>
      %92 = arith.maximumf %89, %91 : vector<128x1xf32>
      %93 = arith.subf %89, %92 : vector<128x1xf32>
      %94 = math.exp %93 : vector<128x1xf32>
      %95 = vector.broadcast %92 : vector<128x1xf32> to vector<128x128xf32>
      %96 = arith.subf %87, %95 : vector<128x128xf32>
      %97 = math.exp %96 : vector<128x128xf32>
      %cst_46 = arith.constant 0.000000e+00 : f32
      %98 = vector.broadcast %cst_46 : f32 to vector<128x128xf32>
      %99 = arith.select %37, %97, %98 : vector<128x128xi1>, vector<128x128xf32>
      %c1_47 = arith.constant 1 : index
      %c0_48 = arith.constant 0 : index
      %c0_49 = arith.constant 0 : index
      %100 = vector.load %arg10[%c1_47, %c0_48, %c0_49] : memref<2x128x1xf32, #tpu.memory_space<vmem>>, vector<1x128x1xf32>
      %101 = vector.shape_cast %100 : vector<1x128x1xf32> to vector<128x1xf32>
      %102 = arith.mulf %94, %101 : vector<128x1xf32>
      %cst_50 = arith.constant dense<0.000000e+00> : vector<128xf32>
      %103 = vector.multi_reduction <add>, %99, %cst_50 [1] : vector<128x128xf32> to vector<128xf32>
      %104 = vector.shape_cast %103 : vector<128xf32> to vector<128x1xf32>
      %105 = arith.addf %102, %104 : vector<128x1xf32>
      %c1_51 = arith.constant 1 : index
      %c0_52 = arith.constant 0 : index
      %c0_53 = arith.constant 0 : index
      %106 = vector.load %arg10[%c1_51, %c0_52, %c0_53] : memref<2x128x1xf32, #tpu.memory_space<vmem>>, vector<1x128x1xf32>
      %107 = vector.shape_cast %106 : vector<1x128x1xf32> to vector<128x1xf32>
      %108 = vector.shape_cast %105 : vector<128x1xf32> to vector<1x128x1xf32>
      tpu.vector_store %arg10[%c1_51, %c0_52, %c0_53], %108 {strides = array<i32>} : memref<2x128x1xf32, #tpu.memory_space<vmem>>, vector<1x128x1xf32>,
      %c1_54 = arith.constant 1 : index
      %c0_55 = arith.constant 0 : index
      %c0_56 = arith.constant 0 : index
      %109 = vector.load %arg11[%c1_54, %c0_55, %c0_56] : memref<2x128x64xf32, #tpu.memory_space<vmem>>, vector<1x128x64xf32>
      %110 = vector.shape_cast %109 : vector<1x128x64xf32> to vector<128x64xf32>
      %111 = vector.broadcast %94 : vector<128x1xf32> to vector<128x64xf32>
      %112 = arith.mulf %111, %110 : vector<128x64xf32>
      %113 = arith.truncf %99 : vector<128x128xf32> to vector<128x128xbf16>
      %cst_57 = arith.constant dense<0.000000e+00> : vector<128x64xf32>
      %114 = tpu.matmul %113, %84, %cst_57 {dimension_numbers = #tpu.dot_dimension_numbers<[1], [0], [0], [1], [0, 0, 1, 1], [], []>} : vector<128x128xbf16>, vector<128x64xbf16>, vector<128x64xf32> -> vector<128x64xf32>
      %115 = arith.addf %112, %114 : vector<128x64xf32>
      %c1_58 = arith.constant 1 : index
      %c0_59 = arith.constant 0 : index
      %c0_60 = arith.constant 0 : index
      %116 = vector.load %arg11[%c1_58, %c0_59, %c0_60] : memref<2x128x64xf32, #tpu.memory_space<vmem>>, vector<1x128x64xf32>
      %117 = vector.shape_cast %116 : vector<1x128x64xf32> to vector<128x64xf32>
      %118 = vector.shape_cast %115 : vector<128x64xf32> to vector<1x128x64xf32>
      tpu.vector_store %arg11[%c1_58, %c0_59, %c0_60], %118 {strides = array<i32>} : memref<2x128x64xf32, #tpu.memory_space<vmem>>, vector<1x128x64xf32>,
      %c1_61 = arith.constant 1 : index
      %c0_62 = arith.constant 0 : index
      %c0_63 = arith.constant 0 : index
      %119 = vector.load %arg9[%c1_61, %c0_62, %c0_63] : memref<2x128x1xf32, #tpu.memory_space<vmem>>, vector<1x128x1xf32>
      %120 = vector.shape_cast %119 : vector<1x128x1xf32> to vector<128x1xf32>
      %121 = vector.shape_cast %92 : vector<128x1xf32> to vector<1x128x1xf32>
      tpu.vector_store %arg9[%c1_61, %c0_62, %c0_63], %121 {strides = array<i32>} : memref<2x128x1xf32, #tpu.memory_space<vmem>>, vector<1x128x1xf32>,
    } else {
    }
    %c0_i32_4 = arith.constant 0 : i32
    %12 = arith.cmpi eq, %arg2, %c0_i32_4 : i32
    %13 = arith.extui %12 : i1 to i32
    %c0_i32_5 = arith.constant 0 : i32
    %14 = arith.cmpi ne, %13, %c0_i32_5 : i32
    scf.if %14 {
      %c0 = arith.constant 0 : index
      %c0_6 = arith.constant 0 : index
      %c0_7 = arith.constant 0 : index
      %15 = vector.load %arg10[%c0, %c0_6, %c0_7] : memref<2x128x1xf32, #tpu.memory_space<vmem>>, vector<1x128x1xf32>
      %16 = vector.shape_cast %15 : vector<1x128x1xf32> to vector<128x1xf32>
      %cst = arith.constant 0.000000e+00 : f32
      %17 = vector.broadcast %cst : f32 to vector<128x1xf32>
      %18 = arith.cmpf ogt, %16, %17 : vector<128x1xf32>
      %cst_8 = arith.constant 1.000000e-30 : f32
      %19 = vector.broadcast %cst_8 : f32 to vector<128x1xf32>
      %20 = arith.maximumf %16, %19 : vector<128x1xf32>
      %cst_9 = arith.constant 1.000000e+00 : f32
      %21 = vector.broadcast %cst_9 : f32 to vector<128x1xf32>
      %22 = arith.divf %21, %20 : vector<128x1xf32>
      %cst_10 = arith.constant 0.000000e+00 : f32
      %23 = vector.broadcast %cst_10 : f32 to vector<128x1xf32>
      %24 = arith.select %18, %22, %23 : vector<128x1xi1>, vector<128x1xf32>
      %c0_11 = arith.constant 0 : index
      %c0_12 = arith.constant 0 : index
      %c0_13 = arith.constant 0 : index
      %25 = vector.load %arg11[%c0_11, %c0_12, %c0_13] : memref<2x128x64xf32, #tpu.memory_space<vmem>>, vector<1x128x64xf32>
      %26 = vector.shape_cast %25 : vector<1x128x64xf32> to vector<128x64xf32>
      %27 = vector.broadcast %24 : vector<128x1xf32> to vector<128x64xf32>
      %28 = arith.mulf %26, %27 : vector<128x64xf32>
      %29 = arith.truncf %28 : vector<128x64xf32> to vector<128x64xbf16>
      %c1 = arith.constant 1 : index
      %c0_14 = arith.constant 0 : index
      %c0_15 = arith.constant 0 : index
      %30 = vector.load %arg10[%c1, %c0_14, %c0_15] : memref<2x128x1xf32, #tpu.memory_space<vmem>>, vector<1x128x1xf32>
      %31 = vector.shape_cast %30 : vector<1x128x1xf32> to vector<128x1xf32>
      %cst_16 = arith.constant 0.000000e+00 : f32
      %32 = vector.broadcast %cst_16 : f32 to vector<128x1xf32>
      %33 = arith.cmpf ogt, %31, %32 : vector<128x1xf32>
      %cst_17 = arith.constant 1.000000e-30 : f32
      %34 = vector.broadcast %cst_17 : f32 to vector<128x1xf32>
      %35 = arith.maximumf %31, %34 : vector<128x1xf32>
      %cst_18 = arith.constant 1.000000e+00 : f32
      %36 = vector.broadcast %cst_18 : f32 to vector<128x1xf32>
      %37 = arith.divf %36, %35 : vector<128x1xf32>
      %cst_19 = arith.constant 0.000000e+00 : f32
      %38 = vector.broadcast %cst_19 : f32 to vector<128x1xf32>
      %39 = arith.select %33, %37, %38 : vector<128x1xi1>, vector<128x1xf32>
      %c1_20 = arith.constant 1 : index
      %c0_21 = arith.constant 0 : index
      %c0_22 = arith.constant 0 : index
      %40 = vector.load %arg11[%c1_20, %c0_21, %c0_22] : memref<2x128x64xf32, #tpu.memory_space<vmem>>, vector<1x128x64xf32>
      %41 = vector.shape_cast %40 : vector<1x128x64xf32> to vector<128x64xf32>
      %42 = vector.broadcast %39 : vector<128x1xf32> to vector<128x64xf32>
      %43 = arith.mulf %41, %42 : vector<128x64xf32>
      %44 = arith.truncf %43 : vector<128x64xf32> to vector<128x64xbf16>
      %45 = tpu.concatenate %29, %44 in 1 : vector<128x64xbf16>, vector<128x64xbf16> -> vector<128x128xbf16>
      %c0_23 = arith.constant 0 : index
      %c0_24 = arith.constant 0 : index
      %c0_25 = arith.constant 0 : index
      %46 = vector.load %arg8[%c0_23, %c0_24, %c0_25] : memref<1x128x128xbf16, #tpu.memory_space<vmem>>, vector<1x128x128xbf16>
      %47 = vector.shape_cast %46 : vector<1x128x128xbf16> to vector<128x128xbf16>
      %48 = vector.shape_cast %45 : vector<128x128xbf16> to vector<1x128x128xbf16>
      tpu.vector_store %arg8[%c0_23, %c0_24, %c0_25], %48 {strides = array<i32>} : memref<1x128x128xbf16, #tpu.memory_space<vmem>>, vector<1x128x128xbf16>,
    } else {
    }
    return
  }
  func.func @transform_0(%arg0: i32, %arg1: i32, %arg2: i32, %arg3: memref<1xi32, #tpu.memory_space<smem>>) -> (i32, i32, i32) {
    %c0_i32 = arith.constant 0 : i32
    %c0_i32_0 = arith.constant 0 : i32
    return %arg0, %arg1, %c0_i32 : i32, i32, i32
  }
  func.func @transform_1(%arg0: i32, %arg1: i32, %arg2: i32, %arg3: memref<1xi32, #tpu.memory_space<smem>>) -> (i32, i32, i32) {
    %c0_i32 = arith.constant 0 : i32
    %c0_i32_0 = arith.constant 0 : i32
    return %arg0, %c0_i32, %arg2 : i32, i32, i32
  }
  func.func @transform_2(%arg0: i32, %arg1: i32, %arg2: i32, %arg3: memref<1xi32, #tpu.memory_space<smem>>) -> (i32, i32, i32) {
    %c0_i32 = arith.constant 0 : i32
    %c0_i32_0 = arith.constant 0 : i32
    return %arg0, %arg1, %c0_i32 : i32, i32, i32
  }
  func.func @transform_3(%arg0: i32, %arg1: i32, %arg2: i32, %arg3: memref<1xi32, #tpu.memory_space<smem>>) -> (i32, i32, i32) {
    %c0_i32 = arith.constant 0 : i32
    %c0_i32_0 = arith.constant 0 : i32
    return %arg0, %arg2, %c0_i32 : i32, i32, i32
  }
  func.func @transform_4(%arg0: i32, %arg1: i32, %arg2: i32, %arg3: memref<1xi32, #tpu.memory_space<smem>>) -> (i32, i32, i32) {
    %c0_i32 = arith.constant 0 : i32
    %c0_i32_0 = arith.constant 0 : i32
    return %arg0, %arg1, %c0_i32 : i32, i32, i32
  }
}

module attributes {stable_mosaic.version = 11 : i64} {
  func.func @_ln_geglu_kernel(%arg0: i32, %arg1: i32, %arg2: memref<128x128xf32, #tpu.memory_space<vmem>>, %arg3: memref<1x128xf32, #tpu.memory_space<vmem>>, %arg4: memref<1x128xf32, #tpu.memory_space<vmem>>, %arg5: memref<128x256xbf16, #tpu.memory_space<vmem>>, %arg6: memref<1x256xf32, #tpu.memory_space<vmem>>, %arg7: memref<128x256xbf16, #tpu.memory_space<vmem>>, %arg8: memref<1x256xf32, #tpu.memory_space<vmem>>, %arg9: memref<128x256xbf16, #tpu.memory_space<vmem>>, %arg10: memref<128x128xbf16, #tpu.memory_space<vmem>>) attributes {dimension_semantics = [#tpu.dimension_semantics<parallel>, #tpu.dimension_semantics<arbitrary>], iteration_bounds = array<i64: 1, 2>, scalar_prefetch = 0 : i64, scratch_operands = 1 : i64, tpu.core_type = #tpu.core_type<tc>, window_params = [{transform_indices = @transform_0, window_bounds = array<i64: 128, 128>}, {pipeline_mode = #tpu.pipeline_mode<synchronous>, transform_indices = @transform_1, window_bounds = array<i64: 1, 128>}, {pipeline_mode = #tpu.pipeline_mode<synchronous>, transform_indices = @transform_2, window_bounds = array<i64: 1, 128>}, {transform_indices = @transform_3, window_bounds = array<i64: 128, 256>}, {transform_indices = @transform_4, window_bounds = array<i64: 1, 256>}, {transform_indices = @transform_5, window_bounds = array<i64: 128, 256>}, {transform_indices = @transform_6, window_bounds = array<i64: 1, 256>}, {transform_indices = @transform_7, window_bounds = array<i64: 128, 256>}]} {
    %c0_i32 = arith.constant 0 : i32
    %0 = arith.cmpi eq, %arg1, %c0_i32 : i32
    %1 = arith.extui %0 : i1 to i32
    %c0_i32_0 = arith.constant 0 : i32
    %2 = arith.cmpi ne, %1, %c0_i32_0 : i32
    scf.if %2 {
      %c0_17 = arith.constant 0 : index
      %c0_18 = arith.constant 0 : index
      %30 = vector.load %arg2[%c0_17, %c0_18] : memref<128x128xf32, #tpu.memory_space<vmem>>, vector<128x128xf32>
      %cst_19 = arith.constant dense<0.000000e+00> : vector<128xf32>
      %31 = vector.multi_reduction <add>, %30, %cst_19 [1] : vector<128x128xf32> to vector<128xf32>
      %32 = vector.shape_cast %31 : vector<128xf32> to vector<128x1xf32>
      %cst_20 = arith.constant 1.280000e+02 : f32
      %33 = vector.broadcast %cst_20 : f32 to vector<128x1xf32>
      %34 = arith.divf %32, %33 : vector<128x1xf32>
      %35 = vector.broadcast %34 : vector<128x1xf32> to vector<128x128xf32>
      %36 = arith.subf %30, %35 : vector<128x128xf32>
      %37 = arith.mulf %36, %36 : vector<128x128xf32>
      %cst_21 = arith.constant dense<0.000000e+00> : vector<128xf32>
      %38 = vector.multi_reduction <add>, %37, %cst_21 [1] : vector<128x128xf32> to vector<128xf32>
      %39 = vector.shape_cast %38 : vector<128xf32> to vector<128x1xf32>
      %cst_22 = arith.constant 1.280000e+02 : f32
      %40 = vector.broadcast %cst_22 : f32 to vector<128x1xf32>
      %41 = arith.divf %39, %40 : vector<128x1xf32>
      %cst_23 = arith.constant 9.99999974E-6 : f32
      %42 = vector.broadcast %cst_23 : f32 to vector<128x1xf32>
      %43 = arith.addf %41, %42 : vector<128x1xf32>
      %44 = math.rsqrt %43 : vector<128x1xf32>
      %45 = vector.broadcast %44 : vector<128x1xf32> to vector<128x128xf32>
      %46 = arith.mulf %36, %45 : vector<128x128xf32>
      %c0_24 = arith.constant 0 : index
      %c0_25 = arith.constant 0 : index
      %47 = vector.load %arg3[%c0_24, %c0_25] : memref<1x128xf32, #tpu.memory_space<vmem>>, vector<1x128xf32>
      %48 = vector.broadcast %47 : vector<1x128xf32> to vector<128x128xf32>
      %49 = arith.mulf %46, %48 : vector<128x128xf32>
      %c0_26 = arith.constant 0 : index
      %c0_27 = arith.constant 0 : index
      %50 = vector.load %arg4[%c0_26, %c0_27] : memref<1x128xf32, #tpu.memory_space<vmem>>, vector<1x128xf32>
      %51 = vector.broadcast %50 : vector<1x128xf32> to vector<128x128xf32>
      %52 = arith.addf %49, %51 : vector<128x128xf32>
      %53 = arith.truncf %52 : vector<128x128xf32> to vector<128x128xbf16>
      %c0_28 = arith.constant 0 : index
      %c0_29 = arith.constant 0 : index
      %54 = vector.load %arg10[%c0_28, %c0_29] : memref<128x128xbf16, #tpu.memory_space<vmem>>, vector<128x128xbf16>
      tpu.vector_store %arg10[%c0_28, %c0_29], %53 {strides = array<i32>} : memref<128x128xbf16, #tpu.memory_space<vmem>>, vector<128x128xbf16>,
    } else {
    }
    %c0 = arith.constant 0 : index
    %c0_1 = arith.constant 0 : index
    %3 = vector.load %arg10[%c0, %c0_1] : memref<128x128xbf16, #tpu.memory_space<vmem>>, vector<128x128xbf16>
    %c0_2 = arith.constant 0 : index
    %c0_3 = arith.constant 0 : index
    %4 = vector.load %arg5[%c0_2, %c0_3] : memref<128x256xbf16, #tpu.memory_space<vmem>>, vector<128x256xbf16>
    %cst = arith.constant dense<0.000000e+00> : vector<128x256xf32>
    %5 = tpu.matmul %3, %4, %cst {dimension_numbers = #tpu.dot_dimension_numbers<[1], [0], [0], [1], [0, 0, 1, 1], [], []>} : vector<128x128xbf16>, vector<128x256xbf16>, vector<128x256xf32> -> vector<128x256xf32>
    %c0_4 = arith.constant 0 : index
    %c0_5 = arith.constant 0 : index
    %6 = vector.load %arg6[%c0_4, %c0_5] : memref<1x256xf32, #tpu.memory_space<vmem>>, vector<1x256xf32>
    %7 = vector.broadcast %6 : vector<1x256xf32> to vector<128x256xf32>
    %8 = arith.addf %5, %7 : vector<128x256xf32>
    %c0_6 = arith.constant 0 : index
    %c0_7 = arith.constant 0 : index
    %9 = vector.load %arg7[%c0_6, %c0_7] : memref<128x256xbf16, #tpu.memory_space<vmem>>, vector<128x256xbf16>
    %cst_8 = arith.constant dense<0.000000e+00> : vector<128x256xf32>
    %10 = tpu.matmul %3, %9, %cst_8 {dimension_numbers = #tpu.dot_dimension_numbers<[1], [0], [0], [1], [0, 0, 1, 1], [], []>} : vector<128x128xbf16>, vector<128x256xbf16>, vector<128x256xf32> -> vector<128x256xf32>
    %c0_9 = arith.constant 0 : index
    %c0_10 = arith.constant 0 : index
    %11 = vector.load %arg8[%c0_9, %c0_10] : memref<1x256xf32, #tpu.memory_space<vmem>>, vector<1x256xf32>
    %12 = vector.broadcast %11 : vector<1x256xf32> to vector<128x256xf32>
    %13 = arith.addf %10, %12 : vector<128x256xf32>
    %14 = arith.mulf %13, %13 : vector<128x256xf32>
    %15 = arith.mulf %13, %14 : vector<128x256xf32>
    %cst_11 = arith.constant 4.471500e-02 : f32
    %16 = vector.broadcast %cst_11 : f32 to vector<128x256xf32>
    %17 = arith.mulf %16, %15 : vector<128x256xf32>
    %18 = arith.addf %13, %17 : vector<128x256xf32>
    %cst_12 = arith.constant 0.797884583 : f32
    %19 = vector.broadcast %cst_12 : f32 to vector<128x256xf32>
    %20 = arith.mulf %19, %18 : vector<128x256xf32>
    %21 = math.tanh %20 : vector<128x256xf32>
    %cst_13 = arith.constant 1.000000e+00 : f32
    %22 = vector.broadcast %cst_13 : f32 to vector<128x256xf32>
    %23 = arith.addf %22, %21 : vector<128x256xf32>
    %cst_14 = arith.constant 5.000000e-01 : f32
    %24 = vector.broadcast %cst_14 : f32 to vector<128x256xf32>
    %25 = arith.mulf %24, %23 : vector<128x256xf32>
    %26 = arith.mulf %13, %25 : vector<128x256xf32>
    %27 = arith.mulf %8, %26 : vector<128x256xf32>
    %28 = arith.truncf %27 : vector<128x256xf32> to vector<128x256xbf16>
    %c0_15 = arith.constant 0 : index
    %c0_16 = arith.constant 0 : index
    %29 = vector.load %arg9[%c0_15, %c0_16] : memref<128x256xbf16, #tpu.memory_space<vmem>>, vector<128x256xbf16>
    tpu.vector_store %arg9[%c0_15, %c0_16], %28 {strides = array<i32>} : memref<128x256xbf16, #tpu.memory_space<vmem>>, vector<128x256xbf16>,
    return
  }
  func.func @transform_0(%arg0: i32, %arg1: i32) -> (i32, i32) {
    %c0_i32 = arith.constant 0 : i32
    %c0_i32_0 = arith.constant 0 : i32
    return %arg0, %c0_i32 : i32, i32
  }
  func.func @transform_1(%arg0: i32, %arg1: i32) -> (i32, i32) {
    %c0_i32 = arith.constant 0 : i32
    %c0_i32_0 = arith.constant 0 : i32
    %c0_i32_1 = arith.constant 0 : i32
    return %c0_i32, %c0_i32_0 : i32, i32
  }
  func.func @transform_2(%arg0: i32, %arg1: i32) -> (i32, i32) {
    %c0_i32 = arith.constant 0 : i32
    %c0_i32_0 = arith.constant 0 : i32
    %c0_i32_1 = arith.constant 0 : i32
    return %c0_i32, %c0_i32_0 : i32, i32
  }
  func.func @transform_3(%arg0: i32, %arg1: i32) -> (i32, i32) {
    %c0_i32 = arith.constant 0 : i32
    %c0_i32_0 = arith.constant 0 : i32
    return %c0_i32, %arg1 : i32, i32
  }
  func.func @transform_4(%arg0: i32, %arg1: i32) -> (i32, i32) {
    %c0_i32 = arith.constant 0 : i32
    %c0_i32_0 = arith.constant 0 : i32
    return %c0_i32, %arg1 : i32, i32
  }
  func.func @transform_5(%arg0: i32, %arg1: i32) -> (i32, i32) {
    %c0_i32 = arith.constant 0 : i32
    %c0_i32_0 = arith.constant 0 : i32
    return %c0_i32, %arg1 : i32, i32
  }
  func.func @transform_6(%arg0: i32, %arg1: i32) -> (i32, i32) {
    %c0_i32 = arith.constant 0 : i32
    %c0_i32_0 = arith.constant 0 : i32
    return %c0_i32, %arg1 : i32, i32
  }
  func.func @transform_7(%arg0: i32, %arg1: i32) -> (i32, i32) {
    %c0_i32 = arith.constant 0 : i32
    return %arg0, %arg1 : i32, i32
  }
}

module attributes {stable_mosaic.version = 11 : i64} {
  func.func @_matmul_bias_res_kernel(%arg0: i32, %arg1: i32, %arg2: i32, %arg3: memref<128x512xbf16, #tpu.memory_space<vmem>>, %arg4: memref<512x128xbf16, #tpu.memory_space<vmem>>, %arg5: memref<1x128xf32, #tpu.memory_space<vmem>>, %arg6: memref<128x128xf32, #tpu.memory_space<vmem>>, %arg7: memref<128x128xf32, #tpu.memory_space<vmem>>, %arg8: memref<128x128xf32, #tpu.memory_space<vmem>>) attributes {dimension_semantics = [#tpu.dimension_semantics<parallel>, #tpu.dimension_semantics<parallel>, #tpu.dimension_semantics<arbitrary>], iteration_bounds = array<i64: 1, 1, 1>, scalar_prefetch = 0 : i64, scratch_operands = 1 : i64, tpu.core_type = #tpu.core_type<tc>, window_params = [{transform_indices = @transform_0, window_bounds = array<i64: 128, 512>}, {transform_indices = @transform_1, window_bounds = array<i64: 512, 128>}, {transform_indices = @transform_2, window_bounds = array<i64: 1, 128>}, {transform_indices = @transform_3, window_bounds = array<i64: 128, 128>}, {transform_indices = @transform_4, window_bounds = array<i64: 128, 128>}]} {
    %c0_i32 = arith.constant 0 : i32
    %0 = arith.cmpi eq, %arg2, %c0_i32 : i32
    %1 = arith.extui %0 : i1 to i32
    %c0_i32_0 = arith.constant 0 : i32
    %2 = arith.cmpi ne, %1, %c0_i32_0 : i32
    scf.if %2 {
      %cst_10 = arith.constant 0.000000e+00 : f32
      %12 = vector.broadcast %cst_10 : f32 to vector<128x128xf32>
      %c0_11 = arith.constant 0 : index
      %c0_12 = arith.constant 0 : index
      %13 = vector.load %arg8[%c0_11, %c0_12] : memref<128x128xf32, #tpu.memory_space<vmem>>, vector<128x128xf32>
      tpu.vector_store %arg8[%c0_11, %c0_12], %12 {strides = array<i32>} : memref<128x128xf32, #tpu.memory_space<vmem>>, vector<128x128xf32>,
    } else {
    }
    %c0 = arith.constant 0 : index
    %c0_1 = arith.constant 0 : index
    %3 = vector.load %arg8[%c0, %c0_1] : memref<128x128xf32, #tpu.memory_space<vmem>>, vector<128x128xf32>
    %c0_2 = arith.constant 0 : index
    %c0_3 = arith.constant 0 : index
    %4 = vector.load %arg3[%c0_2, %c0_3] : memref<128x512xbf16, #tpu.memory_space<vmem>>, vector<128x512xbf16>
    %c0_4 = arith.constant 0 : index
    %c0_5 = arith.constant 0 : index
    %5 = vector.load %arg4[%c0_4, %c0_5] : memref<512x128xbf16, #tpu.memory_space<vmem>>, vector<512x128xbf16>
    %cst = arith.constant dense<0.000000e+00> : vector<128x128xf32>
    %6 = tpu.matmul %4, %5, %cst {dimension_numbers = #tpu.dot_dimension_numbers<[1], [0], [0], [1], [0, 0, 1, 1], [], []>} : vector<128x512xbf16>, vector<512x128xbf16>, vector<128x128xf32> -> vector<128x128xf32>
    %7 = arith.addf %3, %6 : vector<128x128xf32>
    %c0_6 = arith.constant 0 : index
    %c0_7 = arith.constant 0 : index
    %8 = vector.load %arg8[%c0_6, %c0_7] : memref<128x128xf32, #tpu.memory_space<vmem>>, vector<128x128xf32>
    tpu.vector_store %arg8[%c0_6, %c0_7], %7 {strides = array<i32>} : memref<128x128xf32, #tpu.memory_space<vmem>>, vector<128x128xf32>,
    %c0_i32_8 = arith.constant 0 : i32
    %9 = arith.cmpi eq, %arg2, %c0_i32_8 : i32
    %10 = arith.extui %9 : i1 to i32
    %c0_i32_9 = arith.constant 0 : i32
    %11 = arith.cmpi ne, %10, %c0_i32_9 : i32
    scf.if %11 {
      %c0_10 = arith.constant 0 : index
      %c0_11 = arith.constant 0 : index
      %12 = vector.load %arg8[%c0_10, %c0_11] : memref<128x128xf32, #tpu.memory_space<vmem>>, vector<128x128xf32>
      %c0_12 = arith.constant 0 : index
      %c0_13 = arith.constant 0 : index
      %13 = vector.load %arg5[%c0_12, %c0_13] : memref<1x128xf32, #tpu.memory_space<vmem>>, vector<1x128xf32>
      %14 = vector.broadcast %13 : vector<1x128xf32> to vector<128x128xf32>
      %15 = arith.addf %12, %14 : vector<128x128xf32>
      %c0_14 = arith.constant 0 : index
      %c0_15 = arith.constant 0 : index
      %16 = vector.load %arg6[%c0_14, %c0_15] : memref<128x128xf32, #tpu.memory_space<vmem>>, vector<128x128xf32>
      %17 = arith.addf %15, %16 : vector<128x128xf32>
      %c0_16 = arith.constant 0 : index
      %c0_17 = arith.constant 0 : index
      %18 = vector.load %arg7[%c0_16, %c0_17] : memref<128x128xf32, #tpu.memory_space<vmem>>, vector<128x128xf32>
      tpu.vector_store %arg7[%c0_16, %c0_17], %17 {strides = array<i32>} : memref<128x128xf32, #tpu.memory_space<vmem>>, vector<128x128xf32>,
    } else {
    }
    return
  }
  func.func @transform_0(%arg0: i32, %arg1: i32, %arg2: i32) -> (i32, i32) {
    %c0_i32 = arith.constant 0 : i32
    return %arg0, %arg2 : i32, i32
  }
  func.func @transform_1(%arg0: i32, %arg1: i32, %arg2: i32) -> (i32, i32) {
    %c0_i32 = arith.constant 0 : i32
    return %arg2, %arg1 : i32, i32
  }
  func.func @transform_2(%arg0: i32, %arg1: i32, %arg2: i32) -> (i32, i32) {
    %c0_i32 = arith.constant 0 : i32
    %c0_i32_0 = arith.constant 0 : i32
    return %c0_i32, %arg1 : i32, i32
  }
  func.func @transform_3(%arg0: i32, %arg1: i32, %arg2: i32) -> (i32, i32) {
    %c0_i32 = arith.constant 0 : i32
    return %arg0, %arg1 : i32, i32
  }
  func.func @transform_4(%arg0: i32, %arg1: i32, %arg2: i32) -> (i32, i32) {
    %c0_i32 = arith.constant 0 : i32
    return %arg0, %arg1 : i32, i32
  }
}

</mosaic_0001>

<bundles_post_ra>
// kernel: warp_attn_forward.12
= control target key start
LH: loop header
LB: loop body
LE: loop exit
PB: predicated region body
PF: predicated region fallthrough
CT: control target
= control target key end

     0   :  { %v919_v16 = vmov 128.0   ;;  %s1496_s0 = inlined_call_operand.vmem [shape: f32[128,128], index: 0, kind: input, shape index: {}]   ;;  %s1497_s2 = inlined_call_operand.vmem [shape: f32[1,128], index: 2, kind: input, shape index: {}]   ;;  %s1498_s3 = inlined_call_operand.vmem [shape: f32[1,128], index: 3, kind: input, shape index: {}]   ;;  %s1499_s4 = inlined_call_operand.vmem [shape: bf16[128,128], index: 4, kind: input, shape index: {}]   ;;  %s1500_s1 = inlined_call_operand.vmem [shape: f32[128,128], index: 1, kind: input, shape index: {}]   ;;  %s1501_s5 = inlined_call_operand.vmem [shape: bf16[128,128], index: 5, kind: output, shape index: {}]  }
   0x1   :  { %v36_v0 = vld [vmem:[%s1496_s0 + $0x60] sm:$0xff]  ;;  %v37_v3 = vld [vmem:[%s1496_s0 + $0x68] sm:$0xff]  ;;  %v984_v8 = vld [vmem:[%s1496_s0 + $0x50] sm:$0xff]  ;;  %885 = vrcp.f32 %v919_v16 }
   0x2   :  { %v32_v1 = vld [vmem:[%s1496_s0 + $0x40] sm:$0xff]  ;;  %64 = vadd.xlane.f32.xlu1 %v36_v0  ;;  %v33_v4 = vld [vmem:[%s1496_s0 + $0x48] sm:$0xff]  ;;  %v992_v9 = vld [vmem:[%s1496_s0 + $0x58] sm:$0xff] }
   0x3   :  { %v959_v2 = vld [vmem:[%s1496_s0] sm:$0xff]  ;;  %56 = vadd.xlane.f32.xlu0 %v32_v1  ;;  %v25_v5 = vld [vmem:[%s1496_s0 + $0x8] sm:$0xff]  ;;  %v997_v10 = vld [vmem:[%s1496_s0 + $0x70] sm:$0xff] }
   0x4   :  { %40 = vadd.xlane.f32.xlu2 %v959_v2  ;;  %v974_v6 = vld [vmem:[%s1496_s0 + $0x20] sm:$0xff]  ;;  %v979_v7 = vld [vmem:[%s1496_s0 + $0x28] sm:$0xff]  ;;  %v1002_v11 = vld [vmem:[%s1496_s0 + $0x78] sm:$0xff] }
   0x5   :  { %v1010_v12 = vld [vmem:[%s1496_s0 + $0x10] sm:$0xff]  ;;  %v1015_v13 = vld [vmem:[%s1496_s0 + $0x18] sm:$0xff] }
   0x6   :  { %v1020_v14 = vld [vmem:[%s1496_s0 + $0x30] sm:$0xff]  ;;  %v1028_v15 = vld [vmem:[%s1496_s0 + $0x38] sm:$0xff] }
   0x7   :  { %v886_v17 = vpop.eup %885 }
   0x8   :  { %v73_v18 = vmul.f32 128.0, %v886_v17  ;;  %vm77_vm0 = vweird.f32 %v886_v17 }
   0xa   :  { %66 = vadd.xlane.f32.xlu1 %v37_v3  ;;  %v74_v19 = vsub.f32 1.0, %v73_v18 }
   0xb   :  { %58 = vadd.xlane.f32.xlu0 %v33_v4 }
   0xc   :  { %42 = vadd.xlane.f32.xlu2 %v25_v5  ;;  %v75_v20 = vmul.f32 %v886_v17, %v74_v19 }
   0xe   :  { %v76_v21 = vadd.f32 %v886_v17, %v75_v20 }
  0x10   :  { %v1031_v22 = vsel %vm77_vm0, %v886_v17, %v76_v21 }
  0x12   :  { %50 = vadd.xlane.f32.xlu1 %v979_v7 }
  0x13   :  { %48 = vadd.xlane.f32.xlu0 %v974_v6 }
  0x14   :  { %60 = vadd.xlane.f32.xlu2 %v984_v8 }
  0x1a   :  { %68 = vadd.xlane.f32.xlu1 %v997_v10 }
  0x1b   :  { %62 = vadd.xlane.f32.xlu0 %v992_v9 }
  0x1c   :  { %70 = vadd.xlane.f32.xlu2 %v1002_v11 }
  0x22   :  { %46 = vadd.xlane.f32.xlu1 %v1015_v13 }
  0x23   :  { %44 = vadd.xlane.f32.xlu0 %v1010_v12 }
  0x24   :  { %52 = vadd.xlane.f32.xlu2 %v1020_v14 }
  0x2b   :  { %54 = vadd.xlane.f32.xlu0 %v1028_v15 }
  0x75   :  { %v65_v23 = vpop.xlane.xlu1 %64 }
  0x76   :  { %v57_v24 = vpop.xlane.xlu0 %56  ;;  %v91_v25 = vmul.f32 %v1031_v22, %v65_v23 }
  0x77   :  { %v87_v26 = vmul.f32 %v1031_v22, %v57_v24  ;;  %v41_v27 = vpop.xlane.xlu2 %40 }
  0x78   :  { %v1035_v28 = vsub.f32 %v36_v0, %v91_v25  ;;  %v79_v41 = vmul.f32 %v1031_v22, %v41_v27 }
  0x79   :  { %v1037_v29 = vsub.f32 %v32_v1, %v87_v26 }
  0x7a   :  { %v123_v31 = vmul.f32 %v1035_v28, %v1035_v28  ;;  %v1060_v47 = vsub.f32 %v959_v2, %v79_v41 }
  0x7b   :  { %v119_v30 = vmul.f32 %v1037_v29, %v1037_v29 }
  0x7c   :  { %151 = vadd.xlane.f32.xlu0 %v123_v31  ;;  %v111_v55 = vmul.f32 %v1060_v47, %v1060_v47 }
  0x7d   :  { %143 = vadd.xlane.f32.xlu1 %v119_v30  ;;  %v67_v32 = vpop.xlane.xlu1 %66 }
  0x7e   :  { %v59_v33 = vpop.xlane.xlu0 %58  ;;  %v92_v34 = vmul.f32 %v1031_v22, %v67_v32 }
  0x7f   :  { %v88_v35 = vmul.f32 %v1031_v22, %v59_v33  ;;  %v43_v36 = vpop.xlane.xlu2 %42 }
  0x80   :  { %v80_v37 = vmul.f32 %v1031_v22, %v43_v36  ;;  %v1046_v38 = vsub.f32 %v37_v3, %v92_v34  ;;  %v761_v34 = vld [vmem:[%s1499_s4 + $0x28] sm:$0xff] }
  0x81   :  { %v1048_v39 = vsub.f32 %v33_v4, %v88_v35 }
  0x82   :  { %v1050_v40 = vsub.f32 %v25_v5, %v80_v37  ;;  %v124_v42 = vmul.f32 %v1046_v38, %v1046_v38 }
  0x83   :  { %v120_v43 = vmul.f32 %v1048_v39, %v1048_v39 }
  0x84   :  { %v112_v44 = vmul.f32 %v1050_v40, %v1050_v40 }
  0x85   :  { %153 = vadd.xlane.f32.xlu1 %v124_v42  ;;  %145 = vadd.xlane.f32.xlu2 %v120_v43  ;;  %v51_v46 = vpop.xlane.xlu1 %50 }
  0x86   :  { %129 = vadd.xlane.f32.xlu0 %v112_v44  ;;  %v49_v45 = vpop.xlane.xlu0 %48  ;;  %v84_v52 = vmul.f32 %v1031_v22, %v51_v46 }
  0x87   :  { %v83_v48 = vmul.f32 %v1031_v22, %v49_v45  ;;  %v61_v49 = vpop.xlane.xlu2 %60 }
  0x88   :  { %v89_v50 = vmul.f32 %v1031_v22, %v61_v49  ;;  %v1078_v57 = vsub.f32 %v979_v7, %v84_v52 }
  0x89   :  { %v1065_v51 = vsub.f32 %v974_v6, %v83_v48  ;;  %v760_v48 = vld [vmem:[%s1499_s4 + $0x20] sm:$0xff] }
  0x8a   :  { %v1069_v53 = vsub.f32 %v984_v8, %v89_v50  ;;  %v116_v0 = vmul.f32 %v1078_v57, %v1078_v57 }
  0x8b   :  { %v115_v54 = vmul.f32 %v1065_v51, %v1065_v51 }
  0x8c   :  { %v121_v56 = vmul.f32 %v1069_v53, %v1069_v53 }
  0x8d   :  { %135 = vadd.xlane.f32.xlu1 %v115_v54  ;;  %127 = vadd.xlane.f32.xlu2 %v111_v55  ;;  %v69_v59 = vpop.xlane.xlu1 %68 }
  0x8e   :  { %147 = vadd.xlane.f32.xlu0 %v121_v56  ;;  %v63_v58 = vpop.xlane.xlu0 %62  ;;  %v93_v1 = vmul.f32 %v1031_v22, %v69_v59 }
  0x8f   :  { %v90_v60 = vmul.f32 %v1031_v22, %v63_v58  ;;  %v71_v61 = vpop.xlane.xlu2 %70 }
  0x90   :  { %v94_v62 = vmul.f32 %v1031_v22, %v71_v61  ;;  %v1096_v5 = vsub.f32 %v997_v10, %v93_v1 }
  0x91   :  { %v1083_v63 = vsub.f32 %v992_v9, %v90_v60 }
  0x92   :  { %v1089_v2 = vsub.f32 %v1002_v11, %v94_v62  ;;  %v125_v17 = vmul.f32 %v1096_v5, %v1096_v5 }
  0x93   :  { %v122_v3 = vmul.f32 %v1083_v63, %v1083_v63 }
  0x94   :  { %v126_v4 = vmul.f32 %v1089_v2, %v1089_v2 }
  0x95   :  { %149 = vadd.xlane.f32.xlu1 %v122_v3  ;;  %137 = vadd.xlane.f32.xlu2 %v116_v0  ;;  %v47_v7 = vpop.xlane.xlu1 %46  ;;  %v759_v3 = vld [vmem:[%s1499_s4 + $0x18] sm:$0xff] }
  0x96   :  { %157 = vadd.xlane.f32.xlu0 %v126_v4  ;;  %v45_v6 = vpop.xlane.xlu0 %44  ;;  %v82_v18 = vmul.f32 %v1031_v22, %v47_v7 }
  0x97   :  { %v81_v8 = vmul.f32 %v1031_v22, %v45_v6  ;;  %v53_v9 = vpop.xlane.xlu2 %52 }
  0x98   :  { %v85_v11 = vmul.f32 %v1031_v22, %v53_v9  ;;  %v1114_v21 = vsub.f32 %v1015_v13, %v82_v18  ;;  %v763_v13 = vld [vmem:[%s1499_s4 + $0x38] sm:$0xff] }
  0x99   :  { %v1101_v16 = vsub.f32 %v1010_v12, %v81_v8  ;;  %859 = vmatpush.bf16.msra.mxu2 %v763_v13  ;;  %860 = vmatpush.bf16.msra.mxu3 %v763_v13 }
  0x9a   :  { %v1107_v19 = vsub.f32 %v1020_v14, %v85_v11  ;;  %v114_v14 = vmul.f32 %v1114_v21, %v1114_v21  ;;  %599 = vmatpush.bf16.msra.mxu0 %v763_v13  ;;  %858 = vmatpush.bf16.msra.mxu1 %v763_v13  ;;  %v758_v13 = vld [vmem:[%s1499_s4 + $0x10] sm:$0xff] }
  0x9b   :  { %v113_v10 = vmul.f32 %v1101_v16, %v1101_v16 }
  0x9c   :  { %v117_v20 = vmul.f32 %v1107_v19, %v1107_v19 }
  0x9d   :  { %131 = vadd.xlane.f32.xlu1 %v113_v10  ;;  %155 = vadd.xlane.f32.xlu2 %v125_v17 }
  0x9e   :  { %139 = vadd.xlane.f32.xlu0 %v117_v20  ;;  %v55_v12 = vpop.xlane.xlu0 %54 }
  0x9f   :  { %v86_v23 = vmul.f32 %v1031_v22, %v55_v12  ;;  %v1176_v12 = vld [vmem:[%s1497_s2] ss:$0 sm:$0xff] }
  0xa1   :  { %v1118_v24 = vsub.f32 %v1028_v15, %v86_v23  ;;  %v762_v15 = vld [vmem:[%s1499_s4 + $0x30] sm:$0xff] }
  0xa2   :  { %862 = vmatpush.bf16.msra.mxu2 %v762_v15  ;;  %863 = vmatpush.bf16.msra.mxu3 %v762_v15 }
  0xa3   :  { %v118_v25 = vmul.f32 %v1118_v24, %v1118_v24  ;;  %600 = vmatpush.bf16.msra.mxu0 %v762_v15  ;;  %861 = vmatpush.bf16.msra.mxu1 %v762_v15 }
  0xa5   :  { %141 = vadd.xlane.f32.xlu1 %v118_v25  ;;  %133 = vadd.xlane.f32.xlu2 %v114_v14 }
  0xa6   :  { %865 = vmatpush.bf16.msra.mxu2 %v761_v34  ;;  %866 = vmatpush.bf16.msra.mxu3 %v761_v34 }
  0xa7   :  { %601 = vmatpush.bf16.msra.mxu0 %v761_v34  ;;  %864 = vmatpush.bf16.msra.mxu1 %v761_v34 }
  0xaa   :  { %868 = vmatpush.bf16.msra.mxu2 %v760_v48  ;;  %869 = vmatpush.bf16.msra.mxu3 %v760_v48 }
  0xab   :  { %602 = vmatpush.bf16.msra.mxu0 %v760_v48  ;;  %867 = vmatpush.bf16.msra.mxu1 %v760_v48 }
  0xae   :  { %871 = vmatpush.bf16.msra.mxu2 %v759_v3  ;;  %872 = vmatpush.bf16.msra.mxu3 %v759_v3 }
  0xaf   :  { %603 = vmatpush.bf16.msra.mxu0 %v759_v3  ;;  %870 = vmatpush.bf16.msra.mxu1 %v759_v3  ;;  %v756_v3 = vld [vmem:[%s1499_s4] sm:$0xff] }
  0xb2   :  { %874 = vmatpush.bf16.msra.mxu2 %v758_v13  ;;  %875 = vmatpush.bf16.msra.mxu3 %v758_v13 }
  0xb3   :  { %604 = vmatpush.bf16.msra.mxu0 %v758_v13  ;;  %873 = vmatpush.bf16.msra.mxu1 %v758_v13 }
  0xef   :  { %v152_v27 = vpop.xlane.xlu0 %151 }
  0xf0   :  { %v144_v26 = vpop.xlane.xlu1 %143  ;;  %v171_v31 = vmul.f32 %v152_v27, %v1031_v22 }
  0xf1   :  { %v167_v30 = vmul.f32 %v144_v26, %v1031_v22 }
  0xf2   :  { %v1132_v33 = vadd.f32 1e-05, %v171_v31 }
  0xf3   :  { %v183_v32 = vadd.f32 1e-05, %v167_v30 }
  0xf4   :  { %vm317_vm4 = vweird.f32 %v1132_v33 }
  0xf5   :  { %887 = vrsqrt.f32 %v183_v32  ;;  %vm277_vm2 = vweird.f32 %v183_v32 }
  0xf6   :  { %889 = vrsqrt.f32 %v1132_v33 }
  0xf8   :  { %v154_v35 = vpop.xlane.xlu1 %153  ;;  %v146_v36 = vpop.xlane.xlu2 %145 }
  0xf9   :  { %v172_v37 = vmul.f32 %v154_v35, %v1031_v22  ;;  %v130_v41 = vpop.xlane.xlu0 %129  ;;  %v168_v42 = vmul.f32 %v146_v36, %v1031_v22 }
  0xfa   :  { %v160_v43 = vmul.f32 %v130_v41, %v1031_v22 }
  0xfb   :  { %v888_v44 = vpop.eup %887  ;;  %v1141_v45 = vadd.f32 1e-05, %v172_v37  ;;  %v1143_v46 = vadd.f32 1e-05, %v168_v42 }
  0xfc   :  { %v890_v49 = vpop.eup %889  ;;  %v272_v50 = vmul.f32 %v888_v44, %v183_v32  ;;  %v1148_v52 = vadd.f32 1e-05, %v160_v43  ;;  %vm278_vm1 = vweird.f32 %v888_v44 }
  0xfd   :  { %v312_v54 = vmul.f32 %v890_v49, %v1132_v33  ;;  %891 = vrsqrt.f32 %v1141_v45  ;;  %vm318_vm3 = vweird.f32 %v890_v49  ;;  %vm279_vm5 = vmor %vm277_vm2, %vm278_vm1  ;;  %vm327_vm7 = vweird.f32 %v1141_v45  ;;  %v1199_v33 = vld [vmem:[%s1498_s3] ss:$0 sm:$0xff] }
  0xfe   :  { %v273_v55 = vmul.f32 %v888_v44, %v272_v50  ;;  %893 = vrsqrt.f32 %v1148_v52  ;;  %vm319_vm6 = vmor %vm317_vm4, %vm318_vm3  ;;  %vm207_vm8 = vweird.f32 %v1148_v52  ;;  %vm287_vm9 = vweird.f32 %v1143_v46 }
  0xff   :  { %v313_v56 = vmul.f32 %v890_v49, %v312_v54  ;;  %895 = vrsqrt.f32 %v1143_v46 }
 0x100   :  { %v274_v58 = vmul.f32 0.5, %v273_v55  ;;  %v136_v59 = vpop.xlane.xlu1 %135  ;;  %v128_v60 = vpop.xlane.xlu2 %127 }
 0x101   :  { %v314_v61 = vmul.f32 0.5, %v313_v56  ;;  %v163_v62 = vmul.f32 %v136_v59, %v1031_v22  ;;  %v148_v0 = vpop.xlane.xlu0 %147  ;;  %v159_v1 = vmul.f32 %v128_v60, %v1031_v22 }
 0x102   :  { %v275_v4 = vsub.f32 1.5, %v274_v58  ;;  %v169_v6 = vmul.f32 %v148_v0, %v1031_v22 }
 0x103   :  { %v1160_v7 = vpop.eup %891  ;;  %v315_v8 = vsub.f32 1.5, %v314_v61  ;;  %v1162_v9 = vadd.f32 1e-05, %v163_v62  ;;  %v1183_v25 = vadd.f32 1e-05, %v159_v1  ;;  %v415_v61 = vld [vmem:[%s1500_s1 + $0x40] sm:$0xff] }
 0x104   :  { %v1164_v11 = vpop.eup %893  ;;  %v276_v17 = vmul.f32 %v888_v44, %v275_v4  ;;  %v322_v18 = vmul.f32 %v1160_v7, %v1141_v45  ;;  %v1169_v10 = vadd.f32 1e-05, %v169_v6  ;;  %vm328_vm10 = vweird.f32 %v1160_v7 }
 0x105   :  { %v1171_v20 = vpop.eup %895  ;;  %v316_v23 = vmul.f32 %v890_v49, %v315_v8  ;;  %v202_v14 = vmul.f32 %v1164_v11, %v1148_v52  ;;  %897 = vrsqrt.f32 %v1162_v9  ;;  %vm208_vm11 = vweird.f32 %v1164_v11  ;;  %vm329_vm13 = vmor %vm327_vm7, %vm328_vm10 }
 0x106   :  { %v280_v15 = vsel %vm279_vm5, %v888_v44, %v276_v17  ;;  %v323_v26 = vmul.f32 %v1160_v7, %v322_v18  ;;  %v282_v27 = vmul.f32 %v1171_v20, %v1143_v46  ;;  %899 = vrsqrt.f32 %v1169_v10  ;;  %vm1244_vm15 = vmor %vm207_vm8, %vm208_vm11 }
 0x107   :  { %v359_v30 = vmul.f32 %v280_v15, %v1037_v29  ;;  %v320_v31 = vsel %vm319_vm6, %v890_v49, %v316_v23  ;;  %v203_v32 = vmul.f32 %v1164_v11, %v202_v14  ;;  %901 = vrsqrt.f32 %v1183_v25 }
 0x108   :  { %v363_v34 = vmul.f32 %v320_v31, %v1035_v28  ;;  %v324_v35 = vmul.f32 0.5, %v323_v26  ;;  %v283_v36 = vmul.f32 %v1171_v20, %v282_v27  ;;  %v150_v29 = vpop.xlane.xlu1 %149  ;;  %v1207_v42 = vpop.xlane.xlu2 %137  ;;  %v757_v28 = vld [vmem:[%s1499_s4 + $0x8] sm:$0xff]  ;;  %vm288_vm12 = vweird.f32 %v1171_v20 }
 0x109   :  { %v379_v37 = vmul.f32 %v1176_v12, %v359_v30  ;;  %v204_v41 = vmul.f32 0.5, %v203_v32  ;;  %v158_v49 = vpop.xlane.xlu0 %157  ;;  %v170_v55 = vmul.f32 %v150_v29, %v1031_v22  ;;  %877 = vmatpush.bf16.msra.mxu2 %v757_v28  ;;  %878 = vmatpush.bf16.msra.mxu3 %v757_v28  ;;  %vm237_vm14 = vweird.f32 %v1162_v9  ;;  %vm289_vm0 = vmor %vm287_vm9, %vm288_vm12  ;;  %v420_v31 = vld [vmem:[%s1500_s1 + $0x68] sm:$0xff] }
 0x10a   :  { %v383_v43 = vmul.f32 %v1176_v12, %v363_v34  ;;  %v325_v44 = vsub.f32 1.5, %v324_v35  ;;  %v284_v48 = vmul.f32 0.5, %v283_v36  ;;  %605 = vmatpush.bf16.msra.mxu0 %v757_v28  ;;  %876 = vmatpush.bf16.msra.mxu1 %v757_v28  ;;  %v174_v1 = vmul.f32 %v158_v49, %v1031_v22  ;;  %v416_v28 = vld [vmem:[%s1500_s1 + $0x48] sm:$0xff] }
 0x10b   :  { %v1214_v50 = vpop.eup %897  ;;  %v205_v54 = vsub.f32 1.5, %v204_v41  ;;  %v399_v56 = vadd.f32 %v1199_v33, %v379_v37  ;;  %v1250_v18 = vadd.f32 1e-05, %v170_v55  ;;  %vm297_vm1 = vweird.f32 %v1169_v10 }
 0x10c   :  { %v326_v58 = vmul.f32 %v1160_v7, %v325_v44  ;;  %v285_v59 = vsub.f32 1.5, %v284_v48  ;;  %v232_v60 = vmul.f32 %v1214_v50, %v1162_v9  ;;  %v403_v62 = vadd.f32 %v1199_v33, %v383_v43  ;;  %v1237_v4 = vpop.eup %899 }
 0x10d   :  { %v206_v0 = vmul.f32 %v1164_v11, %v205_v54  ;;  %v1252_v23 = vpop.eup %901  ;;  %v292_v52 = vmul.f32 %v1237_v4, %v1169_v10  ;;  %880 = vmatpush.bf16.msra.mxu2 %v756_v3  ;;  %881 = vmatpush.bf16.msra.mxu3 %v756_v3  ;;  %v431_v13 = vadd.f32 %v415_v61, %v399_v56  ;;  %vm238_vm2 = vweird.f32 %v1214_v50 }
 0x10e   :  { %v330_v6 = vsel %vm329_vm13, %v1160_v7, %v326_v58  ;;  %v286_v8 = vmul.f32 %v1171_v20, %v285_v59  ;;  %v233_v17 = vmul.f32 %v1214_v50, %v232_v60  ;;  %v192_v26 = vmul.f32 %v1252_v23, %v1183_v25  ;;  %606 = vmatpush.bf16.msra.mxu0 %v756_v3  ;;  %vm1298_vm4 = vmor %vm237_vm14, %vm238_vm2 }
 0x10f   :  { %v364_v14 = vmul.f32 %v330_v6, %v1046_v38  ;;  %v210_v7 = vsel %vm1244_vm15, %v1164_v11, %v206_v0  ;;  %v419_v38 = vld [vmem:[%s1500_s1 + $0x60] sm:$0xff]  ;;  %879 = vmatpush.bf16.msra.mxu1 %v756_v3  ;;  %v293_v30 = vmul.f32 %v1237_v4, %v292_v52  ;;  %903 = vrsqrt.f32 %v1250_v18 }
 0x110   :  { %v290_v15 = vsel %vm289_vm0, %v1171_v20, %v286_v8  ;;  %v234_v11 = vmul.f32 0.5, %v233_v17  ;;  %v352_v20 = vmul.f32 %v210_v7, %v1050_v40  ;;  %v193_v34 = vmul.f32 %v1252_v23, %v192_v26  ;;  %v132_v37 = vpop.xlane.xlu1 %131  ;;  %v156_v41 = vpop.xlane.xlu2 %155  ;;  %v408_v7 = vld [vmem:[%s1500_s1 + $0x8] sm:$0xff] }
 0x111   :  { %v384_v46 = vmul.f32 %v1176_v12, %v364_v14  ;;  %v360_v27 = vmul.f32 %v290_v15, %v1048_v39  ;;  %v435_v35 = vadd.f32 %v419_v38, %v403_v62  ;;  %v294_v29 = vmul.f32 0.5, %v293_v30  ;;  %v140_v8 = vpop.xlane.xlu0 %139 }
 0x112   :  { %v235_v32 = vsub.f32 1.5, %v234_v11  ;;  %vm298_vm3 = vweird.f32 %v1237_v4  ;;  %v194_v40 = vmul.f32 0.5, %v193_v34  ;;  %v1288_v44 = vadd.f32 1e-05, %v174_v1 }
 0x113   :  { %v404_v36 = vadd.f32 %v1199_v33, %v384_v46  ;;  %v380_v39 = vmul.f32 %v1176_v12, %v360_v27  ;;  %v295_v54 = vsub.f32 1.5, %v294_v29  ;;  %v164_v55 = vmul.f32 %v1207_v42, %v1031_v22  ;;  %vm1312_vm6 = vmor %vm297_vm1, %vm298_vm3 }
 0x114   :  { %v236_v43 = vmul.f32 %v1214_v50, %v235_v32  ;;  %v372_v56 = vmul.f32 %v1176_v12, %v352_v20  ;;  %v195_v59 = vsub.f32 1.5, %v194_v40  ;;  %vm198_vm5 = vweird.f32 %v1252_v23 }
 0x115   :  { %v436_v48 = vadd.f32 %v420_v31, %v404_v36  ;;  %v400_v49 = vadd.f32 %v1199_v33, %v380_v39  ;;  %905 = vrsqrt.f32 %v1288_v44  ;;  %v296_v62 = vmul.f32 %v1237_v4, %v295_v54  ;;  %v904_v0 = vpop.eup %903 }
 0x116   :  { %v240_v42 = vsel %vm1298_vm4, %v1214_v50, %v236_v43  ;;  %v196_v1 = vmul.f32 %v1252_v23, %v195_v59  ;;  %vm197_vm7 = vweird.f32 %v1183_v25  ;;  %v1318_v3 = vadd.f32 1e-05, %v164_v55 }
 0x117   :  { %v797_v60 = vpack.c.bf16 %v436_v48, %v435_v35  ;;  %v432_v61 = vadd.f32 %v416_v28, %v400_v49  ;;  %v161_v6 = vmul.f32 %v132_v37, %v1031_v22  ;;  %v300_v45 = vsel %vm1312_vm6, %v1237_v4, %v296_v62  ;;  %vm199_vm8 = vmor %vm197_vm7, %vm198_vm5 }
 0x118   :  { %v302_v10 = vmul.f32 %v904_v0, %v1250_v18  ;;  %v392_v17 = vadd.f32 %v1199_v33, %v372_v56  ;;  %v355_v25 = vmul.f32 %v240_v42, %v1065_v51  ;;  %v200_v14 = vsel %vm199_vm8, %v1252_v23, %v196_v1  ;;  %v134_v27 = vpop.xlane.xlu2 %133 }
 0x119   :  { %849 = vst [vmem:[#allocation2 + $0x28] sm:$0xff] %v797_v60   ;;  %v787_v50 = vpack.c.bf16 %v432_v61, %v431_v13  ;;  %907 = vrsqrt.f32 %v1318_v3  ;;  %v351_v4 = vmul.f32 %v200_v14, %v1060_v47  ;;  %v361_v38 = vmul.f32 %v300_v45, %v1069_v53  ;;  %v142_v47 = vpop.xlane.xlu1 %141  ;;  %v407_v53 = vld [vmem:[%s1500_s1] sm:$0xff]  ;;  %v418_v45 = vld [vmem:[%s1500_s1 + $0x58] sm:$0xff] }
 0x11a   :  { %v303_v52 = vmul.f32 %v904_v0, %v302_v10  ;;  %v1338_v15 = vadd.f32 1e-05, %v161_v6  ;;  %v165_v51 = vmul.f32 %v140_v8, %v1031_v22  ;;  %v173_v23 = vmul.f32 %v156_v41, %v1031_v22  ;;  %v411_v6 = vld [vmem:[%s1500_s1 + $0x20] sm:$0xff] }
 0x11b   :  { %847 = vst [vmem:[#allocation2 + $0x8] sm:$0xff] %v787_v50   ;;  %v1335_v13 = vpop.eup %905  ;;  %v371_v11 = vmul.f32 %v1176_v12, %v351_v4  ;;  %vm307_vm9 = vweird.f32 %v1250_v18  ;;  %v424_v30 = vadd.f32 %v408_v7, %v392_v17  ;;  %v375_v31 = vmul.f32 %v1176_v12, %v355_v25  ;;  %v417_v50 = vld [vmem:[%s1500_s1 + $0x50] sm:$0xff] }
 0x11c   :  { %v304_v26 = vmul.f32 0.5, %v303_v52  ;;  %v342_v46 = vmul.f32 %v1335_v13, %v1288_v44  ;;  %vm308_vm10 = vweird.f32 %v904_v0  ;;  %909 = vrsqrt.f32 %v1338_v15 }
 0x11d   :  { %v391_v20 = vadd.f32 %v1199_v33, %v371_v11  ;;  %v1353_v35 = vadd.f32 1e-05, %v165_v51  ;;  %v381_v39 = vmul.f32 %v1176_v12, %v361_v38  ;;  %v1356_v29 = vadd.f32 1e-05, %v173_v23  ;;  %vm309_vm11 = vmor %vm307_vm9, %vm308_vm10 }
 0x11e   :  { %v305_v32 = vsub.f32 1.5, %v304_v26  ;;  %v343_v34 = vmul.f32 %v1335_v13, %v342_v46  ;;  %v166_v37 = vmul.f32 %v142_v47, %v1031_v22  ;;  %v162_v41 = vmul.f32 %v134_v27, %v1031_v22 }
 0x11f   :  { %v908_v36 = vpop.eup %907  ;;  %v423_v43 = vadd.f32 %v407_v53, %v391_v20  ;;  %vm347_vm12 = vweird.f32 %v1288_v44  ;;  %911 = vrsqrt.f32 %v1353_v35  ;;  %v395_v42 = vadd.f32 %v1199_v33, %v375_v31 }
 0x120   :  { %v754_v28 = vld [vmem:[#allocation2 + $0x28] sm:$0xff]  ;;  %v306_v40 = vmul.f32 %v904_v0, %v305_v32  ;;  %v344_v48 = vmul.f32 0.5, %v343_v34  ;;  %v242_v49 = vmul.f32 %v908_v36, %v1318_v3  ;;  %913 = vrsqrt.f32 %v1356_v29 }
 0x121   :  { %637 = vmatmul.bf16.vlgmr.msra.gmra.mxu3 %v754_v28  ;;  %v767_v55 = vpack.c.bf16 %v424_v30, %v423_v43  ;;  %v1370_v61 = vadd.f32 1e-05, %v166_v37  ;;  %v1372_v18 = vadd.f32 1e-05, %v162_v41  ;;  %v401_v62 = vadd.f32 %v1199_v33, %v381_v39  ;;  %v412_v41 = vld [vmem:[%s1500_s1 + $0x28] sm:$0xff] }
 0x122   :  { %v752_v54 = vld [vmem:[#allocation2 + $0x8] sm:$0xff]  ;;  %v310_v56 = vsel %vm309_vm11, %v904_v0, %v306_v40  ;;  %v345_v58 = vsub.f32 1.5, %v344_v48  ;;  %v243_v22 = vmul.f32 %v908_v36, %v242_v49  ;;  %v1366_v59 = vpop.eup %909  ;;  %vm348_vm13 = vweird.f32 %v1335_v13 }
 0x123   :  { %v362_v60 = vmul.f32 %v310_v56, %v1083_v63  ;;  %627 = vmatmul.bf16.vlgmr.msra.gmra.mxu2 %v752_v54  ;;  %768 = vst [vmem:[#allocation2 + $0x30] sm:$0xff] %v767_v55   ;;  %v212_v0 = vmul.f32 %v1366_v59, %v1338_v15  ;;  %915 = vrsqrt.f32 %v1370_v61  ;;  %vm248_vm14 = vweird.f32 %v908_v36  ;;  %vm1396_vm15 = vmor %vm347_vm12, %vm348_vm13 }
 0x124   :  { %v244_v9 = vmul.f32 0.5, %v243_v22  ;;  %v346_v63 = vmul.f32 %v1335_v13, %v345_v58  ;;  %917 = vrsqrt.f32 %v1372_v18  ;;  %vm247_vm0 = vweird.f32 %v1318_v3 }
 0x125   :  { %v382_v1 = vmul.f32 %v1176_v12, %v362_v60  ;;  %v213_v8 = vmul.f32 %v1366_v59, %v212_v0  ;;  %v912_v17 = vpop.eup %911  ;;  %v427_v51 = vadd.f32 %v411_v6, %v395_v42  ;;  %v433_v23 = vadd.f32 %v417_v50, %v401_v62  ;;  %vm249_vm1 = vmor %vm247_vm0, %vm248_vm14 }
 0x126   :  { %v245_v10 = vsub.f32 1.5, %v244_v9  ;;  %v252_v52 = vmul.f32 %v912_v17, %v1353_v35  ;;  %v914_v38 = vpop.eup %913  ;;  %v350_v26 = vsel %vm1396_vm15, %v1335_v13, %v346_v63  ;;  %vm217_vm2 = vweird.f32 %v1338_v15 }
 0x127   :  { %v402_v25 = vadd.f32 %v1199_v33, %v382_v1  ;;  %v214_v4 = vmul.f32 0.5, %v213_v8  ;;  %v332_v27 = vmul.f32 %v914_v38, %v1356_v29  ;;  %vm218_vm3 = vweird.f32 %v1366_v59 }
 0x128   :  { %v246_v7 = vmul.f32 %v908_v36, %v245_v10  ;;  %v253_v47 = vmul.f32 %v912_v17, %v252_v52  ;;  %v366_v39 = vmul.f32 %v350_v26, %v1089_v2  ;;  %vm257_vm4 = vweird.f32 %v1353_v35  ;;  %vm1421_vm5 = vmor %vm217_vm2, %vm218_vm3 }
 0x129   :  { %v434_v11 = vadd.f32 %v418_v45, %v402_v25  ;;  %v215_v46 = vsub.f32 1.5, %v214_v4  ;;  %v916_v30 = vpop.eup %915  ;;  %v333_v34 = vmul.f32 %v914_v38, %v332_v27  ;;  %vm258_vm6 = vweird.f32 %v912_v17 }
 0x12a   :  { %v250_v44 = vsel %vm249_vm1, %v908_v36, %v246_v7  ;;  %v748_v53 = vld [vmem:[#allocation2 + $0x30] sm:$0xff]  ;;  %v918_v20 = vpop.eup %917  ;;  %v254_v13 = vmul.f32 0.5, %v253_v47  ;;  %v262_v36 = vmul.f32 %v916_v30, %v1370_v61  ;;  %vm337_vm7 = vweird.f32 %v1356_v29  ;;  %vm259_vm9 = vmor %vm257_vm4, %vm258_vm6 }
 0x12b   :  { %v792_v3 = vpack.c.bf16 %v434_v11, %v433_v23  ;;  %v356_v31 = vmul.f32 %v250_v44, %v1078_v57  ;;  %v216_v32 = vmul.f32 %v1366_v59, %v215_v46  ;;  %v222_v57 = vmul.f32 %v918_v20, %v1372_v18  ;;  %607 = vmatmul.bf16.vlgmr.msra.gmra.mxu0 %v748_v53  ;;  %v410_v46 = vld [vmem:[%s1500_s1 + $0x18] sm:$0xff] }
 0x12c   :  { %v255_v43 = vsub.f32 1.5, %v254_v13  ;;  %v334_v2 = vmul.f32 0.5, %v333_v34  ;;  %v263_v40 = vmul.f32 %v916_v30, %v262_v36  ;;  %vm338_vm8 = vweird.f32 %v914_v38 }
 0x12d   :  { %848 = vst [vmem:[#allocation2 + $0x20] sm:$0xff] %v792_v3   ;;  %v376_v37 = vmul.f32 %v1176_v12, %v356_v31  ;;  %v220_v49 = vsel %vm1421_vm5, %v1366_v59, %v216_v32  ;;  %v223_v54 = vmul.f32 %v918_v20, %v222_v57  ;;  %v386_v58 = vmul.f32 %v1176_v12, %v366_v39  ;;  %vm339_vm11 = vmor %vm337_vm7, %vm338_vm8 }
 0x12e   :  { %v256_v55 = vmul.f32 %v912_v17, %v255_v43  ;;  %v335_v56 = vsub.f32 1.5, %v334_v2  ;;  %v264_v15 = vmul.f32 0.5, %v263_v40  ;;  %vm268_vm10 = vweird.f32 %v916_v30 }
 0x12f   :  { %v396_v48 = vadd.f32 %v1199_v33, %v376_v37  ;;  %v224_v60 = vmul.f32 0.5, %v223_v54  ;;  %v353_v42 = vmul.f32 %v220_v49, %v1101_v16  ;;  %vm228_vm12 = vweird.f32 %v918_v20 }
 0x130   :  { %v260_v62 = vsel %vm259_vm9, %v912_v17, %v256_v55  ;;  %v336_v9 = vmul.f32 %v914_v38, %v335_v56  ;;  %v265_v59 = vsub.f32 1.5, %v264_v15  ;;  %vm267_vm13 = vweird.f32 %v1370_v61 }
 0x131   :  { %v428_v22 = vadd.f32 %v412_v41, %v396_v48  ;;  %v357_v1 = vmul.f32 %v260_v62, %v1107_v19  ;;  %v225_v63 = vsub.f32 1.5, %v224_v60  ;;  %vm269_vm14 = vmor %vm267_vm13, %vm268_vm10  ;;  %vm227_vm15 = vweird.f32 %v1372_v18  ;;  %v421_v18 = vld [vmem:[%s1500_s1 + $0x70] sm:$0xff] }
 0x132   :  { %v340_v6 = vsel %vm339_vm11, %v914_v38, %v336_v9  ;;  %v266_v50 = vmul.f32 %v916_v30, %v265_v59  ;;  %v373_v19 = vmul.f32 %v1176_v12, %v353_v42  ;;  %vm229_vm0 = vmor %vm227_vm15, %vm228_vm12  ;;  %v406_v8 = vadd.f32 %v1199_v33, %v386_v58 }
 0x133   :  { %v777_v0 = vpack.c.bf16 %v428_v22, %v427_v51  ;;  %v377_v45 = vmul.f32 %v1176_v12, %v357_v1  ;;  %v365_v16 = vmul.f32 %v340_v6, %v1096_v5  ;;  %v226_v10 = vmul.f32 %v918_v20, %v225_v63  ;;  %v422_v5 = vld [vmem:[%s1500_s1 + $0x78] sm:$0xff] }
 0x134   :  { %v753_v35 = vld [vmem:[#allocation2 + $0x20] sm:$0xff]  ;;  %v270_v29 = vsel %vm269_vm14, %v916_v30, %v266_v50  ;;  %v393_v38 = vadd.f32 %v1199_v33, %v373_v19  ;;  %v414_v51 = vld [vmem:[%s1500_s1 + $0x38] sm:$0xff]  ;;  %v438_v11 = vadd.f32 %v422_v5, %v406_v8 }
 0x135   :  { %845 = vst [vmem:[#allocation2 + $0x18] sm:$0xff] %v777_v0   ;;  %632 = vmatmul.bf16.gmra.mxu2 %v753_v35  ;;  %v385_v61 = vmul.f32 %v1176_v12, %v365_v16  ;;  %v358_v17 = vmul.f32 %v270_v29, %v1118_v24  ;;  %v230_v25 = vsel %vm229_vm0, %v918_v20, %v226_v10  ;;  %v413_v24 = vld [vmem:[%s1500_s1 + $0x30] sm:$0xff] }
 0x136   :  { %v354_v14 = vmul.f32 %v230_v25, %v1114_v21  ;;  %v397_v7 = vadd.f32 %v1199_v33, %v377_v45  ;;  %v409_v21 = vld [vmem:[%s1500_s1 + $0x10] sm:$0xff] }
 0x137   :  { %v405_v4 = vadd.f32 %v1199_v33, %v385_v61  ;;  %v378_v52 = vmul.f32 %v1176_v12, %v358_v17  ;;  %v425_v53 = vadd.f32 %v409_v21, %v393_v38 }
 0x138   :  { %v374_v23 = vmul.f32 %v1176_v12, %v354_v14  ;;  %v429_v30 = vadd.f32 %v413_v24, %v397_v7 }
 0x139   :  { %v437_v26 = vadd.f32 %v421_v18, %v405_v4  ;;  %v398_v44 = vadd.f32 %v1199_v33, %v378_v52 }
 0x13a   :  { %v394_v47 = vadd.f32 %v1199_v33, %v374_v23 }
 0x13b   :  { %v802_v3 = vpack.c.bf16 %v438_v11, %v437_v26  ;;  %v430_v31 = vadd.f32 %v414_v51, %v398_v44 }
 0x13c   :  { %v750_v27 = vld [vmem:[#allocation2 + $0x18] sm:$0xff]  ;;  %v426_v12 = vadd.f32 %v410_v46, %v394_v47 }
 0x13d   :  { %617 = vmatmul.bf16.vlgmr.msra.gmra.mxu1 %v750_v27  ;;  %850 = vst [vmem:[#allocation2 + $0x38] sm:$0xff] %v802_v3   ;;  %v782_v20 = vpack.c.bf16 %v430_v31, %v429_v30 }
 0x13e   :  { %v772_v32 = vpack.c.bf16 %v426_v12, %v425_v53 }
 0x13f   :  { %846 = vst [vmem:[#allocation2 + $0x10] sm:$0xff] %v782_v20  }
 0x140   :  { %844 = vst [vmem:[#allocation2] sm:$0xff] %v772_v32  }
 0x144   :  { %v755_v13 = vld [vmem:[#allocation2 + $0x38] sm:$0xff] }
 0x145   :  { %642 = vmatmul.bf16.gmra.mxu3 %v755_v13 }
 0x146   :  { %v751_v36 = vld [vmem:[#allocation2 + $0x10] sm:$0xff] }
 0x147   :  { %v749_v34 = vld [vmem:[#allocation2] sm:$0xff] }
 0x148   :  { %612 = vmatmul.bf16.gmra.mxu0 %v749_v34 }
 0x14d   :  { %622 = vmatmul.bf16.gmra.mxu1 %v751_v36 }
 0x1a4   :  { %v638_v39 = vpop.f32.mrf.mxu3 }
 0x1a6   :  { %v628_v33 = vpop.f32.mrf.mxu2 }
 0x1a8   :  { %v608_v37 = vpop.f32.mrf.mxu0 }
 0x1ac   :  { %v640_v57 = vpop.f32.mrf.mxu3 }
 0x1ad   :  { %v837_v41 = vpack.c.bf16 %v640_v57, %v638_v39 }
 0x1ae   :  { %v630_v28 = vpop.f32.mrf.mxu2 }
 0x1af   :  { %v827_v43 = vpack.c.bf16 %v630_v28, %v628_v33  ;;  %856 = vst [vmem:[%s1501_s5 + $0x30] sm:$0xff] %v837_v41  }
 0x1b0   :  { %v610_v2 = vpop.f32.mrf.mxu0 }
 0x1b1   :  { %854 = vst [vmem:[%s1501_s5 + $0x20] sm:$0xff] %v827_v43   ;;  %v807_v40 = vpack.c.bf16 %v610_v2, %v608_v37 }
 0x1b3   :  { %808 = vst [vmem:[%s1501_s5] sm:$0xff] %v807_v40  }
 0x1b8   :  { %v633_v48 = vpop.f32.mrf.mxu2 }
 0x1ba   :  { %v618_v49 = vpop.f32.mrf.mxu1 }
 0x1c0   :  { %v635_v54 = vpop.f32.mrf.mxu2 }
 0x1c1   :  { %v832_v55 = vpack.c.bf16 %v635_v54, %v633_v48 }
 0x1c2   :  { %v620_v56 = vpop.f32.mrf.mxu1 }
 0x1c3   :  { %v817_v15 = vpack.c.bf16 %v620_v56, %v618_v49  ;;  %855 = vst [vmem:[%s1501_s5 + $0x28] sm:$0xff] %v832_v55  }
 0x1c5   :  { %852 = vst [vmem:[%s1501_s5 + $0x10] sm:$0xff] %v817_v15   ;;  %v613_v58 = vpop.f32.mrf.mxu0 }
 0x1c8   :  { %v643_v22 = vpop.f32.mrf.mxu3 }
 0x1ca   :  { %v623_v60 = vpop.f32.mrf.mxu1 }
 0x1cd   :  { %v615_v42 = vpop.f32.mrf.mxu0 }
 0x1ce   :  { %v812_v62 = vpack.c.bf16 %v615_v42, %v613_v58 }
 0x1d0   :  { %v645_v9 = vpop.f32.mrf.mxu3  ;;  %851 = vst [vmem:[%s1501_s5 + $0x8] sm:$0xff] %v812_v62  }
 0x1d1   :  { %v842_v0 = vpack.c.bf16 %v645_v9, %v643_v22 }
 0x1d2   :  { %v625_v59 = vpop.f32.mrf.mxu1 }
 0x1d3   :  { %v822_v1 = vpack.c.bf16 %v625_v59, %v623_v60  ;;  %857 = vst [vmem:[%s1501_s5 + $0x38] sm:$0xff] %v842_v0  }
 0x1d5   :  { %853 = vst [vmem:[%s1501_s5 + $0x18] sm:$0xff] %v822_v1  }

// kernel: warp_attn_forward.13
= control target key start
LH: loop header
LB: loop body
LE: loop exit
PB: predicated region body
PF: predicated region fallthrough
CT: control target
= control target key end

     0   :  { %s791_s1 = inlined_call_operand.vmem [shape: bf16[128,256], index: 1, kind: input, shape index: {}]   ;;  %s792_s0 = inlined_call_operand.vmem [shape: bf16[128,128], index: 0, kind: input, shape index: {}]   ;;  %s793_s2 = inlined_call_operand.vmem [shape: bf16[128,256], index: 2, kind: output, shape index: {}]  }
   0x1   :  { %v562_v0 = vld [vmem:[%s791_s1 + $0x70] sm:$0xf]  ;;  %v591_v1 = vld [vmem:[%s791_s1 + $0x74] sm:$0xf0]  ;;  %v590_v2 = vld [vmem:[%s791_s1 + $0x74] sm:$0xf] }
   0x2   :  { %v563_v3 = vor.u32 %v591_v1, %v562_v0  ;;  %v564_v4 = vld [vmem:[%s791_s1 + $0x78] sm:$0xf0]  ;;  %v554_v5 = vld [vmem:[%s791_s1 + $0x60] sm:$0xf]  ;;  %v589_v6 = vld [vmem:[%s791_s1 + $0x64] sm:$0xf0] }
   0x3   :  { %v567_v7 = vor.u32 %v590_v2, %v564_v4  ;;  %v588_v8 = vld [vmem:[%s791_s1 + $0x64] sm:$0xf]  ;;  %v556_v9 = vld [vmem:[%s791_s1 + $0x68] sm:$0xf0]  ;;  %v555_v10 = vor.u32 %v589_v6, %v554_v5  ;;  %v546_v12 = vld [vmem:[%s791_s1 + $0x50] sm:$0xf] }
   0x4   :  { %239 = vmatpush.bf16.msra.mxu0 %v563_v3  ;;  %592 = vmatpush.bf16.msra.mxu2 %v563_v3  ;;  %v559_v11 = vor.u32 %v588_v8, %v556_v9  ;;  %v587_v13 = vld [vmem:[%s791_s1 + $0x54] sm:$0xf0]  ;;  %v586_v14 = vld [vmem:[%s791_s1 + $0x54] sm:$0xf]  ;;  %v548_v15 = vld [vmem:[%s791_s1 + $0x58] sm:$0xf0] }
   0x5   :  { %288 = vmatpush.bf16.msra.mxu1 %v567_v7  ;;  %600 = vmatpush.bf16.msra.mxu3 %v567_v7  ;;  %v547_v16 = vor.u32 %v587_v13, %v546_v12  ;;  %v551_v17 = vor.u32 %v586_v14, %v548_v15  ;;  %v538_v18 = vld [vmem:[%s791_s1 + $0x40] sm:$0xf]  ;;  %v585_v19 = vld [vmem:[%s791_s1 + $0x44] sm:$0xf0]  ;;  %v584_v20 = vld [vmem:[%s791_s1 + $0x44] sm:$0xf] }
   0x6   :  { %v540_v21 = vld [vmem:[%s791_s1 + $0x48] sm:$0xf0]  ;;  %v539_v22 = vor.u32 %v585_v19, %v538_v18  ;;  %v530_v24 = vld [vmem:[%s791_s1 + $0x30] sm:$0xf]  ;;  %v583_v25 = vld [vmem:[%s791_s1 + $0x34] sm:$0xf0] }
   0x7   :  { %v543_v23 = vor.u32 %v584_v20, %v540_v21  ;;  %v582_v26 = vld [vmem:[%s791_s1 + $0x34] sm:$0xf]  ;;  %v532_v27 = vld [vmem:[%s791_s1 + $0x38] sm:$0xf0]  ;;  %v531_v28 = vor.u32 %v583_v25, %v530_v24  ;;  %v522_v30 = vld [vmem:[%s791_s1 + $0x20] sm:$0xf] }
   0x8   :  { %240 = vmatpush.bf16.msra.mxu0 %v555_v10  ;;  %593 = vmatpush.bf16.msra.mxu2 %v555_v10  ;;  %v535_v29 = vor.u32 %v582_v26, %v532_v27  ;;  %v581_v31 = vld [vmem:[%s791_s1 + $0x24] sm:$0xf0]  ;;  %v580_v32 = vld [vmem:[%s791_s1 + $0x24] sm:$0xf]  ;;  %v524_v33 = vld [vmem:[%s791_s1 + $0x28] sm:$0xf0] }
   0x9   :  { %289 = vmatpush.bf16.msra.mxu1 %v559_v11  ;;  %601 = vmatpush.bf16.msra.mxu3 %v559_v11  ;;  %v523_v34 = vor.u32 %v581_v31, %v522_v30  ;;  %v527_v35 = vor.u32 %v580_v32, %v524_v33  ;;  %v514_v36 = vld [vmem:[%s791_s1 + $0x10] sm:$0xf]  ;;  %v579_v37 = vld [vmem:[%s791_s1 + $0x14] sm:$0xf0]  ;;  %v578_v38 = vld [vmem:[%s791_s1 + $0x14] sm:$0xf] }
   0xa   :  { %v516_v39 = vld [vmem:[%s791_s1 + $0x18] sm:$0xf0]  ;;  %v515_v40 = vor.u32 %v579_v37, %v514_v36  ;;  %v506_v42 = vld [vmem:[%s791_s1] sm:$0xf]  ;;  %v577_v43 = vld [vmem:[%s791_s1 + $0x4] sm:$0xf0] }
   0xb   :  { %v519_v41 = vor.u32 %v578_v38, %v516_v39  ;;  %v576_v44 = vld [vmem:[%s791_s1 + $0x4] sm:$0xf]  ;;  %v508_v45 = vld [vmem:[%s791_s1 + $0x8] sm:$0xf0]  ;;  %v507_v46 = vor.u32 %v577_v43, %v506_v42  ;;  %v570_v52 = vld [vmem:[%s792_s0 + $0x10] sm:$0xff] }
   0xc   :  { %241 = vmatpush.bf16.msra.mxu0 %v547_v16  ;;  %594 = vmatpush.bf16.msra.mxu2 %v547_v16  ;;  %v511_v47 = vor.u32 %v576_v44, %v508_v45  ;;  %v568_v48 = vld [vmem:[%s792_s0] sm:$0xff]  ;;  %v569_v50 = vld [vmem:[%s792_s0 + $0x8] sm:$0xff]  ;;  %v574_v53 = vld [vmem:[%s792_s0 + $0x30] sm:$0xff] }
   0xd   :  { %290 = vmatpush.bf16.msra.mxu1 %v551_v17  ;;  %602 = vmatpush.bf16.msra.mxu3 %v551_v17  ;;  %v572_v49 = vld [vmem:[%s792_s0 + $0x20] sm:$0xff]  ;;  %v573_v51 = vld [vmem:[%s792_s0 + $0x28] sm:$0xff]  ;;  %v571_v54 = vld [vmem:[%s792_s0 + $0x18] sm:$0xff] }
   0xe   :  { %v575_v55 = vld [vmem:[%s792_s0 + $0x38] sm:$0xff] }
  0x10   :  { %242 = vmatpush.bf16.msra.mxu0 %v539_v22  ;;  %595 = vmatpush.bf16.msra.mxu2 %v539_v22 }
  0x11   :  { %291 = vmatpush.bf16.msra.mxu1 %v543_v23  ;;  %603 = vmatpush.bf16.msra.mxu3 %v543_v23 }
  0x14   :  { %243 = vmatpush.bf16.msra.mxu0 %v531_v28  ;;  %596 = vmatpush.bf16.msra.mxu2 %v531_v28 }
  0x15   :  { %292 = vmatpush.bf16.msra.mxu1 %v535_v29  ;;  %604 = vmatpush.bf16.msra.mxu3 %v535_v29 }
  0x18   :  { %244 = vmatpush.bf16.msra.mxu0 %v523_v34  ;;  %597 = vmatpush.bf16.msra.mxu2 %v523_v34 }
  0x19   :  { %293 = vmatpush.bf16.msra.mxu1 %v527_v35  ;;  %605 = vmatpush.bf16.msra.mxu3 %v527_v35 }
  0x1c   :  { %245 = vmatpush.bf16.msra.mxu0 %v515_v40  ;;  %598 = vmatpush.bf16.msra.mxu2 %v515_v40 }
  0x1d   :  { %294 = vmatpush.bf16.msra.mxu1 %v519_v41  ;;  %606 = vmatpush.bf16.msra.mxu3 %v519_v41 }
  0x20   :  { %246 = vmatpush.bf16.msra.mxu0 %v507_v46  ;;  %599 = vmatpush.bf16.msra.mxu2 %v507_v46 }
  0x21   :  { %295 = vmatpush.bf16.msra.mxu1 %v511_v47  ;;  %607 = vmatpush.bf16.msra.mxu3 %v511_v47 }
  0x23   :  { %247 = vmatmul.bf16.vlgmr.msra.gmra.mxu0 %v568_v48  ;;  %267 = vmatmul.bf16.vlgmr.msra.gmra.mxu2 %v572_v49 }
  0x24   :  { %296 = vmatmul.bf16.vlgmr.msra.gmra.mxu1 %v568_v48  ;;  %316 = vmatmul.bf16.vlgmr.msra.gmra.mxu3 %v572_v49 }
  0x33   :  { %252 = vmatmul.bf16.gmra.mxu0 %v569_v50  ;;  %272 = vmatmul.bf16.gmra.mxu2 %v573_v51 }
  0x34   :  { %301 = vmatmul.bf16.gmra.mxu1 %v569_v50  ;;  %321 = vmatmul.bf16.gmra.mxu3 %v573_v51 }
  0x43   :  { %257 = vmatmul.bf16.gmra.mxu0 %v570_v52  ;;  %277 = vmatmul.bf16.gmra.mxu2 %v574_v53 }
  0x44   :  { %306 = vmatmul.bf16.gmra.mxu1 %v570_v52  ;;  %326 = vmatmul.bf16.gmra.mxu3 %v574_v53 }
  0x53   :  { %262 = vmatmul.bf16.gmra.mxu0 %v571_v54  ;;  %282 = vmatmul.bf16.gmra.mxu2 %v575_v55 }
  0x54   :  { %311 = vmatmul.bf16.gmra.mxu1 %v571_v54  ;;  %331 = vmatmul.bf16.gmra.mxu3 %v575_v55 }
  0xa0   :  { %v248_v56 = vpop.f32.mrf.mxu0 }
  0xa1   :  { %v297_v57 = vpop.f32.mrf.mxu1 }
  0xa2   :  { %v436_v58 = vpack.c.bf16 %v297_v57, %v248_v56 }
  0xa4   :  { %452 = vst [vmem:[%s793_s2] sm:$0xff] %v436_v58 }
  0xa6   :  { %v268_v59 = vpop.f32.mrf.mxu2 }
  0xa7   :  { %v317_v60 = vpop.f32.mrf.mxu3 }
  0xa8   :  { %v444_v61 = vpack.c.bf16 %v317_v60, %v268_v59  ;;  %v250_v62 = vpop.f32.mrf.mxu0 }
  0xa9   :  { %v299_v63 = vpop.f32.mrf.mxu1 }
  0xaa   :  { %460 = vst [vmem:[%s793_s2 + $0x40] sm:$0xff] %v444_v61  ;;  %v437_v0 = vpack.c.bf16 %v299_v63, %v250_v62 }
  0xac   :  { %453 = vst [vmem:[%s793_s2 + $0x8] sm:$0xff] %v437_v0 }
  0xae   :  { %v270_v1 = vpop.f32.mrf.mxu2 }
  0xaf   :  { %v319_v2 = vpop.f32.mrf.mxu3 }
  0xb0   :  { %v445_v3 = vpack.c.bf16 %v319_v2, %v270_v1  ;;  %v253_v4 = vpop.f32.mrf.mxu0 }
  0xb1   :  { %v302_v5 = vpop.f32.mrf.mxu1 }
  0xb2   :  { %461 = vst [vmem:[%s793_s2 + $0x48] sm:$0xff] %v445_v3  ;;  %v438_v6 = vpack.c.bf16 %v302_v5, %v253_v4 }
  0xb4   :  { %454 = vst [vmem:[%s793_s2 + $0x10] sm:$0xff] %v438_v6 }
  0xb6   :  { %v273_v7 = vpop.f32.mrf.mxu2 }
  0xb7   :  { %v322_v8 = vpop.f32.mrf.mxu3 }
  0xb8   :  { %v446_v9 = vpack.c.bf16 %v322_v8, %v273_v7  ;;  %v255_v10 = vpop.f32.mrf.mxu0 }
  0xb9   :  { %v304_v11 = vpop.f32.mrf.mxu1 }
  0xba   :  { %462 = vst [vmem:[%s793_s2 + $0x50] sm:$0xff] %v446_v9  ;;  %v439_v12 = vpack.c.bf16 %v304_v11, %v255_v10 }
  0xbc   :  { %455 = vst [vmem:[%s793_s2 + $0x18] sm:$0xff] %v439_v12 }
  0xbe   :  { %v275_v13 = vpop.f32.mrf.mxu2 }
  0xbf   :  { %v324_v14 = vpop.f32.mrf.mxu3 }
  0xc0   :  { %v447_v15 = vpack.c.bf16 %v324_v14, %v275_v13  ;;  %v258_v16 = vpop.f32.mrf.mxu0 }
  0xc1   :  { %v307_v17 = vpop.f32.mrf.mxu1 }
  0xc2   :  { %463 = vst [vmem:[%s793_s2 + $0x58] sm:$0xff] %v447_v15  ;;  %v440_v18 = vpack.c.bf16 %v307_v17, %v258_v16 }
  0xc4   :  { %456 = vst [vmem:[%s793_s2 + $0x20] sm:$0xff] %v440_v18 }
  0xc6   :  { %v278_v19 = vpop.f32.mrf.mxu2 }
  0xc7   :  { %v327_v20 = vpop.f32.mrf.mxu3 }
  0xc8   :  { %v448_v21 = vpack.c.bf16 %v327_v20, %v278_v19  ;;  %v260_v22 = vpop.f32.mrf.mxu0 }
  0xc9   :  { %v309_v23 = vpop.f32.mrf.mxu1 }
  0xca   :  { %464 = vst [vmem:[%s793_s2 + $0x60] sm:$0xff] %v448_v21  ;;  %v441_v24 = vpack.c.bf16 %v309_v23, %v260_v22 }
  0xcc   :  { %457 = vst [vmem:[%s793_s2 + $0x28] sm:$0xff] %v441_v24 }
  0xce   :  { %v280_v25 = vpop.f32.mrf.mxu2 }
  0xcf   :  { %v329_v26 = vpop.f32.mrf.mxu3 }
  0xd0   :  { %v449_v27 = vpack.c.bf16 %v329_v26, %v280_v25  ;;  %v263_v28 = vpop.f32.mrf.mxu0 }
  0xd1   :  { %v312_v29 = vpop.f32.mrf.mxu1 }
  0xd2   :  { %465 = vst [vmem:[%s793_s2 + $0x68] sm:$0xff] %v449_v27  ;;  %v442_v30 = vpack.c.bf16 %v312_v29, %v263_v28 }
  0xd4   :  { %458 = vst [vmem:[%s793_s2 + $0x30] sm:$0xff] %v442_v30 }
  0xd6   :  { %v283_v31 = vpop.f32.mrf.mxu2 }
  0xd7   :  { %v332_v32 = vpop.f32.mrf.mxu3 }
  0xd8   :  { %v450_v33 = vpack.c.bf16 %v332_v32, %v283_v31  ;;  %v265_v34 = vpop.f32.mrf.mxu0 }
  0xd9   :  { %v314_v35 = vpop.f32.mrf.mxu1 }
  0xda   :  { %466 = vst [vmem:[%s793_s2 + $0x70] sm:$0xff] %v450_v33  ;;  %v443_v36 = vpack.c.bf16 %v314_v35, %v265_v34 }
  0xdc   :  { %459 = vst [vmem:[%s793_s2 + $0x38] sm:$0xff] %v443_v36 }
  0xde   :  { %v285_v37 = vpop.f32.mrf.mxu2 }
  0xdf   :  { %v334_v38 = vpop.f32.mrf.mxu3 }
  0xe0   :  { %v451_v39 = vpack.c.bf16 %v334_v38, %v285_v37 }
  0xe2   :  { %467 = vst [vmem:[%s793_s2 + $0x78] sm:$0xff] %v451_v39 }

// kernel: warp_attn_forward.15
= control target key start
LH: loop header
LB: loop body
LE: loop exit
PB: predicated region body
PF: predicated region fallthrough
CT: control target
= control target key end

     0   :  { %s648_s1 = inlined_call_operand.vmem [shape: bf16[128,128], index: 1, kind: input, shape index: {}]   ;;  %s649_s2 = inlined_call_operand.vmem [shape: f32[1,128], index: 2, kind: input, shape index: {}]   ;;  %s650_s0 = inlined_call_operand.vmem [shape: bf16[128,128], index: 0, kind: input, shape index: {}]   ;;  %s651_s3 = inlined_call_operand.vmem [shape: f32[128,128], index: 3, kind: input, shape index: {}]   ;;  %s652_s4 = inlined_call_operand.vmem [shape: f32[128,128], index: 4, kind: output, shape index: {}]  }
   0x1   :  { %v432_v0 = vld [vmem:[%s648_s1 + $0x38] sm:$0xff]  ;;  %v431_v1 = vld [vmem:[%s648_s1 + $0x30] sm:$0xff]  ;;  %v430_v2 = vld [vmem:[%s648_s1 + $0x28] sm:$0xff] }
   0x2   :  { %181 = vmatpush.bf16.msra.mxu0 %v432_v0  ;;  %433 = vmatpush.bf16.msra.mxu1 %v432_v0  ;;  %v429_v3 = vld [vmem:[%s648_s1 + $0x20] sm:$0xff]  ;;  %v428_v4 = vld [vmem:[%s648_s1 + $0x18] sm:$0xff]  ;;  %v427_v5 = vld [vmem:[%s648_s1 + $0x10] sm:$0xff] }
   0x3   :  { %434 = vmatpush.bf16.msra.mxu2 %v432_v0  ;;  %435 = vmatpush.bf16.msra.mxu3 %v432_v0  ;;  %v426_v6 = vld [vmem:[%s648_s1 + $0x8] sm:$0xff]  ;;  %v425_v7 = vld [vmem:[%s648_s1] sm:$0xff]  ;;  %v419_v9 = vld [vmem:[%s650_s0 + $0x10] sm:$0xff] }
   0x4   :  { %v417_v8 = vld [vmem:[%s650_s0] sm:$0xff]  ;;  %v423_v11 = vld [vmem:[%s650_s0 + $0x30] sm:$0xff]  ;;  %v418_v12 = vld [vmem:[%s650_s0 + $0x8] sm:$0xff] }
   0x5   :  { %v421_v10 = vld [vmem:[%s650_s0 + $0x20] sm:$0xff]  ;;  %v420_v13 = vld [vmem:[%s650_s0 + $0x18] sm:$0xff]  ;;  %v422_v14 = vld [vmem:[%s650_s0 + $0x28] sm:$0xff] }
   0x6   :  { %182 = vmatpush.bf16.msra.mxu0 %v431_v1  ;;  %436 = vmatpush.bf16.msra.mxu1 %v431_v1  ;;  %v424_v15 = vld [vmem:[%s650_s0 + $0x38] sm:$0xff]  ;;  %v534_v16 = vld [vmem:[%s649_s2] ss:$0 sm:$0xff]  ;;  %v302_v32 = vld [vmem:[%s651_s3 + $0x8] sm:$0xff] }
   0x7   :  { %437 = vmatpush.bf16.msra.mxu2 %v431_v1  ;;  %438 = vmatpush.bf16.msra.mxu3 %v431_v1  ;;  %v301_v18 = vld [vmem:[%s651_s3] sm:$0xff]  ;;  %v306_v34 = vld [vmem:[%s651_s3 + $0x28] sm:$0xff]  ;;  %v303_v48 = vld [vmem:[%s651_s3 + $0x10] sm:$0xff] }
   0x8   :  { %v305_v20 = vld [vmem:[%s651_s3 + $0x20] sm:$0xff]  ;;  %v310_v42 = vld [vmem:[%s651_s3 + $0x48] sm:$0xff]  ;;  %v307_v50 = vld [vmem:[%s651_s3 + $0x30] sm:$0xff] }
   0x9   :  { %v309_v26 = vld [vmem:[%s651_s3 + $0x40] sm:$0xff]  ;;  %v314_v44 = vld [vmem:[%s651_s3 + $0x68] sm:$0xff]  ;;  %v311_v58 = vld [vmem:[%s651_s3 + $0x50] sm:$0xff] }
   0xa   :  { %183 = vmatpush.bf16.msra.mxu0 %v430_v2  ;;  %439 = vmatpush.bf16.msra.mxu1 %v430_v2  ;;  %v313_v28 = vld [vmem:[%s651_s3 + $0x60] sm:$0xff]  ;;  %v315_v60 = vld [vmem:[%s651_s3 + $0x70] sm:$0xff]  ;;  %v304_v0 = vld [vmem:[%s651_s3 + $0x18] sm:$0xff] }
   0xb   :  { %440 = vmatpush.bf16.msra.mxu2 %v430_v2  ;;  %441 = vmatpush.bf16.msra.mxu3 %v430_v2  ;;  %v308_v2 = vld [vmem:[%s651_s3 + $0x38] sm:$0xff] }
   0xe   :  { %184 = vmatpush.bf16.msra.mxu0 %v429_v3  ;;  %442 = vmatpush.bf16.msra.mxu1 %v429_v3 }
   0xf   :  { %443 = vmatpush.bf16.msra.mxu2 %v429_v3  ;;  %444 = vmatpush.bf16.msra.mxu3 %v429_v3 }
  0x12   :  { %185 = vmatpush.bf16.msra.mxu0 %v428_v4  ;;  %445 = vmatpush.bf16.msra.mxu1 %v428_v4 }
  0x13   :  { %446 = vmatpush.bf16.msra.mxu2 %v428_v4  ;;  %447 = vmatpush.bf16.msra.mxu3 %v428_v4 }
  0x16   :  { %186 = vmatpush.bf16.msra.mxu0 %v427_v5  ;;  %448 = vmatpush.bf16.msra.mxu1 %v427_v5 }
  0x17   :  { %449 = vmatpush.bf16.msra.mxu2 %v427_v5  ;;  %450 = vmatpush.bf16.msra.mxu3 %v427_v5 }
  0x1a   :  { %187 = vmatpush.bf16.msra.mxu0 %v426_v6  ;;  %451 = vmatpush.bf16.msra.mxu1 %v426_v6 }
  0x1b   :  { %452 = vmatpush.bf16.msra.mxu2 %v426_v6  ;;  %453 = vmatpush.bf16.msra.mxu3 %v426_v6 }
  0x1e   :  { %188 = vmatpush.bf16.msra.mxu0 %v425_v7  ;;  %454 = vmatpush.bf16.msra.mxu1 %v425_v7 }
  0x1f   :  { %455 = vmatpush.bf16.msra.mxu2 %v425_v7  ;;  %456 = vmatpush.bf16.msra.mxu3 %v425_v7 }
  0x21   :  { %189 = vmatmul.bf16.vlgmr.msra.gmra.mxu0 %v417_v8  ;;  %199 = vmatmul.bf16.vlgmr.msra.gmra.mxu1 %v419_v9 }
  0x22   :  { %209 = vmatmul.bf16.vlgmr.msra.gmra.mxu2 %v421_v10  ;;  %219 = vmatmul.bf16.vlgmr.msra.gmra.mxu3 %v423_v11  ;;  %v312_v10 = vld [vmem:[%s651_s3 + $0x58] sm:$0xff] }
  0x31   :  { %194 = vmatmul.bf16.gmra.mxu0 %v418_v12  ;;  %204 = vmatmul.bf16.gmra.mxu1 %v420_v13  ;;  %v316_v12 = vld [vmem:[%s651_s3 + $0x78] sm:$0xff] }
  0x32   :  { %214 = vmatmul.bf16.gmra.mxu2 %v422_v14  ;;  %224 = vmatmul.bf16.gmra.mxu3 %v424_v15 }
  0x9e   :  { %v190_v17 = vpop.f32.mrf.mxu0  ;;  %v200_v19 = vpop.f32.mrf.mxu1 }
  0x9f   :  { %v285_v21 = vadd.f32 %v534_v16, %v190_v17  ;;  %v289_v22 = vadd.f32 %v534_v16, %v200_v19 }
  0xa1   :  { %v317_v23 = vadd.f32 %v301_v18, %v285_v21  ;;  %v321_v24 = vadd.f32 %v305_v20, %v289_v22 }
  0xa3   :  { %333 = vst [vmem:[%s652_s4] sm:$0xff] %v317_v23 }
  0xa4   :  { %337 = vst [vmem:[%s652_s4 + $0x20] sm:$0xff] %v321_v24 }
  0xa5   :  { %v210_v25 = vpop.f32.mrf.mxu2  ;;  %v220_v27 = vpop.f32.mrf.mxu3 }
  0xa6   :  { %v293_v29 = vadd.f32 %v534_v16, %v210_v25  ;;  %v297_v30 = vadd.f32 %v534_v16, %v220_v27  ;;  %v192_v31 = vpop.f32.mrf.mxu0  ;;  %v202_v33 = vpop.f32.mrf.mxu1 }
  0xa7   :  { %v286_v35 = vadd.f32 %v534_v16, %v192_v31  ;;  %v290_v36 = vadd.f32 %v534_v16, %v202_v33 }
  0xa8   :  { %v325_v37 = vadd.f32 %v309_v26, %v293_v29  ;;  %v329_v38 = vadd.f32 %v313_v28, %v297_v30 }
  0xa9   :  { %v318_v39 = vadd.f32 %v302_v32, %v286_v35  ;;  %v322_v40 = vadd.f32 %v306_v34, %v290_v36 }
  0xaa   :  { %341 = vst [vmem:[%s652_s4 + $0x40] sm:$0xff] %v325_v37 }
  0xab   :  { %345 = vst [vmem:[%s652_s4 + $0x60] sm:$0xff] %v329_v38 }
  0xac   :  { %334 = vst [vmem:[%s652_s4 + $0x8] sm:$0xff] %v318_v39 }
  0xad   :  { %338 = vst [vmem:[%s652_s4 + $0x28] sm:$0xff] %v322_v40  ;;  %v212_v41 = vpop.f32.mrf.mxu2  ;;  %v222_v43 = vpop.f32.mrf.mxu3 }
  0xae   :  { %v294_v45 = vadd.f32 %v534_v16, %v212_v41  ;;  %v298_v46 = vadd.f32 %v534_v16, %v222_v43  ;;  %v195_v47 = vpop.f32.mrf.mxu0  ;;  %v205_v49 = vpop.f32.mrf.mxu1 }
  0xaf   :  { %v287_v51 = vadd.f32 %v534_v16, %v195_v47  ;;  %v291_v52 = vadd.f32 %v534_v16, %v205_v49 }
  0xb0   :  { %v326_v53 = vadd.f32 %v310_v42, %v294_v45  ;;  %v330_v54 = vadd.f32 %v314_v44, %v298_v46 }
  0xb1   :  { %v319_v55 = vadd.f32 %v303_v48, %v287_v51  ;;  %v323_v56 = vadd.f32 %v307_v50, %v291_v52 }
  0xb2   :  { %342 = vst [vmem:[%s652_s4 + $0x48] sm:$0xff] %v326_v53 }
  0xb3   :  { %346 = vst [vmem:[%s652_s4 + $0x68] sm:$0xff] %v330_v54 }
  0xb4   :  { %335 = vst [vmem:[%s652_s4 + $0x10] sm:$0xff] %v319_v55 }
  0xb5   :  { %339 = vst [vmem:[%s652_s4 + $0x30] sm:$0xff] %v323_v56  ;;  %v215_v57 = vpop.f32.mrf.mxu2  ;;  %v225_v59 = vpop.f32.mrf.mxu3 }
  0xb6   :  { %v295_v61 = vadd.f32 %v534_v16, %v215_v57  ;;  %v299_v62 = vadd.f32 %v534_v16, %v225_v59  ;;  %v197_v63 = vpop.f32.mrf.mxu0  ;;  %v207_v1 = vpop.f32.mrf.mxu1 }
  0xb7   :  { %v288_v3 = vadd.f32 %v534_v16, %v197_v63  ;;  %v292_v4 = vadd.f32 %v534_v16, %v207_v1 }
  0xb8   :  { %v327_v5 = vadd.f32 %v311_v58, %v295_v61  ;;  %v331_v6 = vadd.f32 %v315_v60, %v299_v62 }
  0xb9   :  { %v320_v7 = vadd.f32 %v304_v0, %v288_v3  ;;  %v324_v8 = vadd.f32 %v308_v2, %v292_v4 }
  0xba   :  { %343 = vst [vmem:[%s652_s4 + $0x50] sm:$0xff] %v327_v5 }
  0xbb   :  { %347 = vst [vmem:[%s652_s4 + $0x70] sm:$0xff] %v331_v6 }
  0xbc   :  { %336 = vst [vmem:[%s652_s4 + $0x18] sm:$0xff] %v320_v7 }
  0xbd   :  { %340 = vst [vmem:[%s652_s4 + $0x38] sm:$0xff] %v324_v8  ;;  %v217_v9 = vpop.f32.mrf.mxu2  ;;  %v227_v11 = vpop.f32.mrf.mxu3 }
  0xbe   :  { %v296_v13 = vadd.f32 %v534_v16, %v217_v9  ;;  %v300_v14 = vadd.f32 %v534_v16, %v227_v11 }
  0xc0   :  { %v328_v15 = vadd.f32 %v312_v10, %v296_v13  ;;  %v332_v17 = vadd.f32 %v316_v12, %v300_v14 }
  0xc2   :  { %344 = vst [vmem:[%s652_s4 + $0x58] sm:$0xff] %v328_v15 }
  0xc3   :  { %348 = vst [vmem:[%s652_s4 + $0x78] sm:$0xff] %v332_v17 }

// kernel: warp_attn_forward.16
= control target key start
LH: loop header
LB: loop body
LE: loop exit
PB: predicated region body
PF: predicated region fallthrough
CT: control target
= control target key end

     0   :  { %s2518_s24 = smov 0   ;;  %s2520_s25 = smov 0   ;;  %s3489_s0 = inlined_call_operand.vmem [shape: f32[128,128], index: 0, kind: input, shape index: {}]   ;;  %s3490_s1 = inlined_call_operand.vmem [shape: f32[1,128], index: 1, kind: input, shape index: {}]   ;;  %s3491_s2 = inlined_call_operand.vmem [shape: f32[1,128], index: 2, kind: input, shape index: {}]   ;;  %s3492_s3 = inlined_call_operand.vmem [shape: bf16[128,512], index: 3, kind: input, shape index: {}]   ;;  %s3493_s4 = inlined_call_operand.vmem [shape: f32[1,512], index: 4, kind: input, shape index: {}]   ;;  %s3494_s5 = inlined_call_operand.vmem [shape: bf16[128,512], index: 5, kind: input, shape index: {}]   ;;  %s3495_s6 = inlined_call_operand.vmem [shape: f32[1,512], index: 6, kind: input, shape index: {}]   ;;  %s3496_s7 = inlined_call_operand.vmem [shape: bf16[128,512], index: 7, kind: output, shape index: {}]  }
   0x1   :  { %s2522_s26 = smov 0   ;;  %s2524_s27 = smov 0  }
   0x2   :  { %s2526_s28 = smov 0  }
   0x3 LB: > { %s26_s29 = sadd.s32 1, %s2471_s27  ;;  %s2023_s30 = sadd.s32 4294967295, %s2475_s28   ;;  %s2475_s28 = sphi %s2526_s28, %s17_s28   ;;  %s2471_s27 = sphi %s2524_s27, %s3510_s27   ;;  %s2467_s26 = sphi %s2522_s26, %s3509_s26   ;;  %s2463_s25 = sphi %s2520_s25, %s3508_s25   ;;  %s2459_s24 = sphi %s2518_s24, %s3507_s24  }
   0x4   : > { %p27_p0 = scmp.ge.s32.totalorder %s26_s29, 2  ;;  %p111_p1 = scmp.ne.s32.totalorder %s2463_s25, %s2459_s24 }
   0x5   : > { %p112_p2 = scmp.eq.s32.totalorder %s2475_s28, 0  ;;  %p221_p4 = scmp.eq.s32.totalorder %s2023_s30, 1 }
   0x6   : > { %s3512_s29 = smov (%p27_p0, %s26_s29), 0  ;;  %s104_s10 = sadd.s32 1, %s2463_s25 }
   0x7   : > { %p2550_p3 = por %p112_p2, %p111_p1  ;;  %s101_s9 = ssub.s32 %s2471_s27, %s3512_s29 }
   0x8   : > { %p102_p5 = scmp.eq.s32.totalorder %s101_s9, 0  ;;  %p2557_p6 = por %p221_p4, %p111_p1 }
   0x9   : > { %p2027_p7 = scmp.ge.s32.totalorder %s2475_s28, 2 }
   0xa   : > { %s2562_s12 = scalar_select %p102_p5, %s2463_s25, %s104_s10  }
   0xb   : > { %258 = sbr.rel (%p2027_p7) target bundleno = 56 (0x38), region = 28 }
  0x10   : > { %261 = sbr.rel (!%p2550_p3) target bundleno = 36 (0x24), region = 32  ;;  %s263_s13 = sand.u32 (%p2550_p3), 1, %s2463_s25  }
  0x11   : > { %s2206_s14 = sshll.u32 (%p2550_p3), %s2471_s27, 3  ;;  %s2028_s15 = sshll.u32 (%p2550_p3), %s263_s13, 7 }
  0x12   : > { %s2572_s18 = scalar_lea.vmem (%p2550_p3), %s3492_s3, %s2206_s14  ;;  %s265_s19 = scalar_lea.vmem (%p2550_p3), [#allocation3], %s2028_s15 }
  0x13   : > { %v327_v0 = vld [vmem:[%s2572_s18] sm:$0xff] (%p2550_p3)  ;;  %v329_v1 = vld [vmem:[%s2572_s18 + $0x10] sm:$0xff] (%p2550_p3) }
  0x14   : > { %v331_v2 = vld [vmem:[%s2572_s18 + $0x20] sm:$0xff] (%p2550_p3)  ;;  %328 = vst [vmem:[%s265_s19] sm:$0xff] (%p2550_p3), %v327_v0  ;;  %v333_v3 = vld [vmem:[%s2572_s18 + $0x30] sm:$0xff] (%p2550_p3) }
  0x15   : > { %330 = vst [vmem:[%s265_s19 + $0x8] sm:$0xff] %v329_v1  ;;  %v335_v4 = vld [vmem:[%s2572_s18 + $0x40] sm:$0xff]  ;;  %v337_v5 = vld [vmem:[%s2572_s18 + $0x50] sm:$0xff] }
  0x16   : > { %332 = vst [vmem:[%s265_s19 + $0x10] sm:$0xff] %v331_v2  ;;  %v339_v6 = vld [vmem:[%s2572_s18 + $0x60] sm:$0xff]  ;;  %v341_v7 = vld [vmem:[%s2572_s18 + $0x70] sm:$0xff] }
  0x17   : > { %334 = vst [vmem:[%s265_s19 + $0x18] sm:$0xff] %v333_v3  ;;  %v343_v8 = vld [vmem:[%s2572_s18 + $0x80] sm:$0xff]  ;;  %v345_v9 = vld [vmem:[%s2572_s18 + $0x90] sm:$0xff] }
  0x18   : > { %336 = vst [vmem:[%s265_s19 + $0x20] sm:$0xff] %v335_v4  ;;  %v347_v10 = vld [vmem:[%s2572_s18 + $0xa0] sm:$0xff]  ;;  %v349_v11 = vld [vmem:[%s2572_s18 + $0xb0] sm:$0xff] }
  0x19   : > { %338 = vst [vmem:[%s265_s19 + $0x28] sm:$0xff] %v337_v5  ;;  %v351_v12 = vld [vmem:[%s2572_s18 + $0xc0] sm:$0xff]  ;;  %v353_v13 = vld [vmem:[%s2572_s18 + $0xd0] sm:$0xff] }
  0x1a   : > { %340 = vst [vmem:[%s265_s19 + $0x30] sm:$0xff] %v339_v6  ;;  %v355_v14 = vld [vmem:[%s2572_s18 + $0xe0] sm:$0xff]  ;;  %v357_v15 = vld [vmem:[%s2572_s18 + $0xf0] sm:$0xff] }
  0x1b   : > { %342 = vst [vmem:[%s265_s19 + $0x38] sm:$0xff] %v341_v7 }
  0x1c   : > { %344 = vst [vmem:[%s265_s19 + $0x40] sm:$0xff] %v343_v8 }
  0x1d   : > { %346 = vst [vmem:[%s265_s19 + $0x48] sm:$0xff] %v345_v9 }
  0x1e   : > { %348 = vst [vmem:[%s265_s19 + $0x50] sm:$0xff] %v347_v10 }
  0x1f   : > { %350 = vst [vmem:[%s265_s19 + $0x58] sm:$0xff] %v349_v11 }
  0x20   : > { %352 = vst [vmem:[%s265_s19 + $0x60] sm:$0xff] %v351_v12 }
  0x21   : > { %354 = vst [vmem:[%s265_s19 + $0x68] sm:$0xff] %v353_v13 }
  0x22   : > { %356 = vst [vmem:[%s265_s19 + $0x70] sm:$0xff] %v355_v14 }
  0x23   : > { %358 = vst [vmem:[%s265_s19 + $0x78] sm:$0xff] %v357_v15 }
  0x24 PF: > { %372 = sbr.rel (!%p2550_p3) target bundleno = 56 (0x38), region = 74  ;;  %s374_s20 = sand.u32 (%p2550_p3), 1, %s2463_s25  }
  0x25   : > { %s2207_s21 = sshll.u32 (%p2550_p3), %s2471_s27, 3  ;;  %s2031_s22 = sshll.u32 (%p2550_p3), %s374_s20, 7 }
  0x26   : > { %s2597_s9 = scalar_lea.vmem (%p2550_p3), %s3494_s5, %s2207_s21  ;;  %s376_s8 = scalar_lea.vmem (%p2550_p3), [#allocation4], %s2031_s22 }
  0x27   : > { %v438_v16 = vld [vmem:[%s2597_s9] sm:$0xff] (%p2550_p3)  ;;  %v440_v17 = vld [vmem:[%s2597_s9 + $0x10] sm:$0xff] (%p2550_p3) }
  0x28   : > { %v442_v18 = vld [vmem:[%s2597_s9 + $0x20] sm:$0xff] (%p2550_p3)  ;;  %439 = vst [vmem:[%s376_s8] sm:$0xff] (%p2550_p3), %v438_v16  ;;  %v444_v19 = vld [vmem:[%s2597_s9 + $0x30] sm:$0xff] (%p2550_p3) }
  0x29   : > { %441 = vst [vmem:[%s376_s8 + $0x8] sm:$0xff] %v440_v17  ;;  %v446_v20 = vld [vmem:[%s2597_s9 + $0x40] sm:$0xff]  ;;  %v448_v21 = vld [vmem:[%s2597_s9 + $0x50] sm:$0xff] }
  0x2a   : > { %443 = vst [vmem:[%s376_s8 + $0x10] sm:$0xff] %v442_v18  ;;  %v450_v22 = vld [vmem:[%s2597_s9 + $0x60] sm:$0xff]  ;;  %v452_v23 = vld [vmem:[%s2597_s9 + $0x70] sm:$0xff] }
  0x2b   : > { %445 = vst [vmem:[%s376_s8 + $0x18] sm:$0xff] %v444_v19  ;;  %v454_v24 = vld [vmem:[%s2597_s9 + $0x80] sm:$0xff]  ;;  %v456_v25 = vld [vmem:[%s2597_s9 + $0x90] sm:$0xff] }
  0x2c   : > { %447 = vst [vmem:[%s376_s8 + $0x20] sm:$0xff] %v446_v20  ;;  %v458_v26 = vld [vmem:[%s2597_s9 + $0xa0] sm:$0xff]  ;;  %v460_v27 = vld [vmem:[%s2597_s9 + $0xb0] sm:$0xff] }
  0x2d   : > { %449 = vst [vmem:[%s376_s8 + $0x28] sm:$0xff] %v448_v21  ;;  %v462_v28 = vld [vmem:[%s2597_s9 + $0xc0] sm:$0xff]  ;;  %v464_v29 = vld [vmem:[%s2597_s9 + $0xd0] sm:$0xff] }
  0x2e   : > { %451 = vst [vmem:[%s376_s8 + $0x30] sm:$0xff] %v450_v22  ;;  %v466_v30 = vld [vmem:[%s2597_s9 + $0xe0] sm:$0xff]  ;;  %v468_v31 = vld [vmem:[%s2597_s9 + $0xf0] sm:$0xff] }
  0x2f   : > { %453 = vst [vmem:[%s376_s8 + $0x38] sm:$0xff] %v452_v23 }
  0x30   : > { %455 = vst [vmem:[%s376_s8 + $0x40] sm:$0xff] %v454_v24 }
  0x31   : > { %457 = vst [vmem:[%s376_s8 + $0x48] sm:$0xff] %v456_v25 }
  0x32   : > { %459 = vst [vmem:[%s376_s8 + $0x50] sm:$0xff] %v458_v26 }
  0x33   : > { %461 = vst [vmem:[%s376_s8 + $0x58] sm:$0xff] %v460_v27 }
  0x34   : > { %463 = vst [vmem:[%s376_s8 + $0x60] sm:$0xff] %v462_v28 }
  0x35   : > { %465 = vst [vmem:[%s376_s8 + $0x68] sm:$0xff] %v464_v29 }
  0x36   : > { %467 = vst [vmem:[%s376_s8 + $0x70] sm:$0xff] %v466_v30 }
  0x37   : > { %469 = vst [vmem:[%s376_s8 + $0x78] sm:$0xff] %v468_v31 }
  0x38 PF: > { %p2034_p8 = scmp.ge.s32.totalorder %s2475_s28, 1  ;;  %p482_p9 = scmp.lt.s32.totalorder %s2475_s28, 3 }
  0x3a   : > { %p483_p10 = pnand %p2034_p8, %p482_p9 }
  0x3b   : > { %s489_s10 = sand.u32 (!%p483_p10), 1, %s2459_s24   ;;  %s2038_s13 = sshll.u32 (!%p483_p10), %s2467_s26, 1 }
  0x3c   : > { %486 = sbr.rel (%p483_p10) target bundleno = 714 (0x2ca), region = 116  ;;  %s2035_s14 = sshll.u32 (!%p483_p10), %s489_s10, 7 }
  0x3d   : > { %p551_p11 = scmp.lt.s32.totalorder (!%p483_p10), %s2038_s13, 3  ;;  %s2629_s21 = scalar_lea.vmem (!%p483_p10), [#allocation3], %s2035_s14 }
  0x3e   : > { %s2631_s22 = scalar_lea.vmem (!%p483_p10), [#allocation4], %s2035_s14  ;;  %s2633_s24 = scalar_lea.vmem (!%p483_p10), [#allocation5], %s2035_s14 }
  0x3f   : > { %p2040_p12 = scmp.ne.s32.totalorder (!%p483_p10), %s2467_s26, 0 }
  0x41   : > { %s3514_s13 = smov (!%p551_p11, %s2038_s13), 3  ;;  %566 = sbr.rel (%p2040_p12) target bundleno = 389 (0x185), region = 128 }
  0x42   : > { %s553_s17 = scalar_lea.vmem %s3493_s4, %s3514_s13  ;;  %s559_s20 = scalar_lea.vmem %s3495_s6, %s3514_s13 }
  0x46   : > { %v2639_v32 = vld [vmem:[%s3489_s0 + $0x20] sm:$0xff]  ;;  %v569_v33 = vld [vmem:[%s3489_s0 + $0x10] sm:$0xff]  ;;  %v572_v35 = vld [vmem:[%s3489_s0 + $0x28] sm:$0xff]  ;;  %v2477_v48 = vmov 128.0  }
  0x47   : > { %v567_v34 = vld [vmem:[%s3489_s0] sm:$0xff]  ;;  %591 = vadd.xlane.f32.xlu2 %v2639_v32  ;;  %587 = vadd.xlane.f32.xlu1 %v569_v33  ;;  %v570_v36 = vld [vmem:[%s3489_s0 + $0x18] sm:$0xff]  ;;  %v568_v37 = vld [vmem:[%s3489_s0 + $0x8] sm:$0xff]  ;;  %2339 = vrcp.f32 %v2477_v48 }
  0x48   : > { %583 = vadd.xlane.f32.xlu0 %v567_v34  ;;  %v575_v38 = vld [vmem:[%s3489_s0 + $0x40] sm:$0xff]  ;;  %v2663_v39 = vld [vmem:[%s3489_s0 + $0x38] sm:$0xff]  ;;  %v573_v40 = vld [vmem:[%s3489_s0 + $0x30] sm:$0xff] }
  0x49   : > { %v2672_v41 = vld [vmem:[%s3489_s0 + $0x58] sm:$0xff]  ;;  %v2677_v42 = vld [vmem:[%s3489_s0 + $0x50] sm:$0xff]  ;;  %v2682_v43 = vld [vmem:[%s3489_s0 + $0x48] sm:$0xff] }
  0x4a   : > { %v2690_v44 = vld [vmem:[%s3489_s0 + $0x70] sm:$0xff]  ;;  %v2695_v45 = vld [vmem:[%s3489_s0 + $0x68] sm:$0xff]  ;;  %v2700_v46 = vld [vmem:[%s3489_s0 + $0x60] sm:$0xff] }
  0x4b   : > { %v2708_v47 = vld [vmem:[%s3489_s0 + $0x78] sm:$0xff] }
  0x4d   : > { %v2340_v49 = vpop.eup %2339 }
  0x4e   : > { %v616_v50 = vmul.f32 128.0, %v2340_v49  ;;  %vm620_vm0 = vweird.f32 %v2340_v49 }
  0x4f   : > { %593 = vadd.xlane.f32.xlu2 %v572_v35  ;;  %589 = vadd.xlane.f32.xlu1 %v570_v36 }
  0x50   : > { %585 = vadd.xlane.f32.xlu0 %v568_v37  ;;  %v617_v51 = vsub.f32 1.0, %v616_v50 }
  0x52   : > { %v618_v52 = vmul.f32 %v2340_v49, %v617_v51 }
  0x54   : > { %v619_v53 = vadd.f32 %v2340_v49, %v618_v52 }
  0x56   : > { %v2711_v54 = vsel %vm620_vm0, %v2340_v49, %v619_v53 }
  0x57   : > { %599 = vadd.xlane.f32.xlu2 %v575_v38  ;;  %597 = vadd.xlane.f32.xlu1 %v2663_v39 }
  0x58   : > { %595 = vadd.xlane.f32.xlu0 %v573_v40 }
  0x5f   : > { %605 = vadd.xlane.f32.xlu2 %v2672_v41  ;;  %603 = vadd.xlane.f32.xlu1 %v2677_v42 }
  0x60   : > { %601 = vadd.xlane.f32.xlu0 %v2682_v43 }
  0x67   : > { %611 = vadd.xlane.f32.xlu2 %v2690_v44  ;;  %609 = vadd.xlane.f32.xlu1 %v2695_v45 }
  0x68   : > { %607 = vadd.xlane.f32.xlu0 %v2700_v46 }
  0x70   : > { %613 = vadd.xlane.f32.xlu0 %v2708_v47 }
  0xba   : > { %v592_v55 = vpop.xlane.xlu2 %591  ;;  %v588_v56 = vpop.xlane.xlu1 %587 }
  0xbb   : > { %v624_v57 = vmul.f32 %v2711_v54, %v588_v56  ;;  %v584_v58 = vpop.xlane.xlu0 %583  ;;  %v626_v11 = vmul.f32 %v2711_v54, %v592_v55 }
  0xbc   : > { %v622_v59 = vmul.f32 %v2711_v54, %v584_v58 }
  0xbd   : > { %v2715_v60 = vsub.f32 %v569_v33, %v624_v57  ;;  %v2741_v17 = vsub.f32 %v2639_v32, %v626_v11 }
  0xbe   : > { %v2717_v61 = vsub.f32 %v567_v34, %v622_v59 }
  0xbf   : > { %v656_v62 = vmul.f32 %v2715_v60, %v2715_v60  ;;  %v658_v23 = vmul.f32 %v2741_v17, %v2741_v17 }
  0xc0   : > { %v654_v63 = vmul.f32 %v2717_v61, %v2717_v61 }
  0xc1   : > { %674 = vadd.xlane.f32.xlu0 %v656_v62 }
  0xc2   : > { %670 = vadd.xlane.f32.xlu1 %v654_v63  ;;  %v594_v0 = vpop.xlane.xlu2 %593  ;;  %v590_v1 = vpop.xlane.xlu1 %589 }
  0xc3   : > { %v627_v2 = vmul.f32 %v2711_v54, %v594_v0  ;;  %v625_v3 = vmul.f32 %v2711_v54, %v590_v1  ;;  %v586_v4 = vpop.xlane.xlu0 %585 }
  0xc4   : > { %v623_v5 = vmul.f32 %v2711_v54, %v586_v4 }
  0xc5   : > { %v2726_v6 = vsub.f32 %v572_v35, %v627_v2  ;;  %v2728_v7 = vsub.f32 %v570_v36, %v625_v3 }
  0xc6   : > { %v2730_v8 = vsub.f32 %v568_v37, %v623_v5 }
  0xc7   : > { %v659_v9 = vmul.f32 %v2726_v6, %v2726_v6  ;;  %v657_v10 = vmul.f32 %v2728_v7, %v2728_v7 }
  0xc8   : > { %v655_v12 = vmul.f32 %v2730_v8, %v2730_v8 }
  0xc9   : > { %680 = vadd.xlane.f32.xlu0 %v659_v9 }
  0xca   : > { %676 = vadd.xlane.f32.xlu1 %v657_v10  ;;  %672 = vadd.xlane.f32.xlu2 %v655_v12  ;;  %v600_v13 = vpop.xlane.xlu2 %599  ;;  %v598_v14 = vpop.xlane.xlu1 %597 }
  0xcb   : > { %v630_v15 = vmul.f32 %v2711_v54, %v600_v13  ;;  %v596_v16 = vpop.xlane.xlu0 %595  ;;  %v629_v21 = vmul.f32 %v2711_v54, %v598_v14 }
  0xcc   : > { %v628_v18 = vmul.f32 %v2711_v54, %v596_v16 }
  0xcd   : > { %v2744_v19 = vsub.f32 %v575_v38, %v630_v15  ;;  %v2756_v26 = vsub.f32 %v2663_v39, %v629_v21 }
  0xce   : > { %v2746_v20 = vsub.f32 %v573_v40, %v628_v18 }
  0xcf   : > { %v662_v22 = vmul.f32 %v2744_v19, %v2744_v19  ;;  %v661_v33 = vmul.f32 %v2756_v26, %v2756_v26 }
  0xd0   : > { %v660_v24 = vmul.f32 %v2746_v20, %v2746_v20 }
  0xd1   : > { %686 = vadd.xlane.f32.xlu0 %v662_v22 }
  0xd2   : > { %678 = vadd.xlane.f32.xlu2 %v658_v23  ;;  %682 = vadd.xlane.f32.xlu1 %v660_v24  ;;  %v606_v25 = vpop.xlane.xlu2 %605  ;;  %v604_v27 = vpop.xlane.xlu1 %603 }
  0xd3   : > { %v633_v28 = vmul.f32 %v2711_v54, %v606_v25  ;;  %v602_v29 = vpop.xlane.xlu0 %601  ;;  %v632_v34 = vmul.f32 %v2711_v54, %v604_v27 }
  0xd4   : > { %v631_v30 = vmul.f32 %v2711_v54, %v602_v29 }
  0xd5   : > { %v2761_v31 = vsub.f32 %v2672_v41, %v633_v28  ;;  %v2774_v38 = vsub.f32 %v2677_v42, %v632_v34 }
  0xd6   : > { %v2764_v32 = vsub.f32 %v2682_v43, %v631_v30 }
  0xd7   : > { %v665_v35 = vmul.f32 %v2761_v31, %v2761_v31  ;;  %v664_v50 = vmul.f32 %v2774_v38, %v2774_v38 }
  0xd8   : > { %v663_v36 = vmul.f32 %v2764_v32, %v2764_v32 }
  0xd9   : > { %692 = vadd.xlane.f32.xlu0 %v665_v35 }
  0xda   : > { %684 = vadd.xlane.f32.xlu2 %v661_v33  ;;  %688 = vadd.xlane.f32.xlu1 %v663_v36  ;;  %v612_v37 = vpop.xlane.xlu2 %611  ;;  %v610_v41 = vpop.xlane.xlu1 %609 }
  0xdb   : > { %v636_v39 = vmul.f32 %v2711_v54, %v612_v37  ;;  %v608_v40 = vpop.xlane.xlu0 %607  ;;  %v635_v51 = vmul.f32 %v2711_v54, %v610_v41 }
  0xdc   : > { %v634_v43 = vmul.f32 %v2711_v54, %v608_v40 }
  0xdd   : > { %v2779_v48 = vsub.f32 %v2690_v44, %v636_v39  ;;  %v2792_v44 = vsub.f32 %v2695_v45, %v635_v51 }
  0xde   : > { %v2782_v49 = vsub.f32 %v2700_v46, %v634_v43 }
  0xdf   : > { %v668_v42 = vmul.f32 %v2779_v48, %v2779_v48  ;;  %v667_v56 = vmul.f32 %v2792_v44, %v2792_v44 }
  0xe0   : > { %v666_v52 = vmul.f32 %v2782_v49, %v2782_v49 }
  0xe1   : > { %698 = vadd.xlane.f32.xlu0 %v668_v42 }
  0xe2   : > { %690 = vadd.xlane.f32.xlu2 %v664_v50  ;;  %694 = vadd.xlane.f32.xlu1 %v666_v52 }
  0xe3   : > { %v614_v53 = vpop.xlane.xlu0 %613 }
  0xe4   : > { %v637_v46 = vmul.f32 %v2711_v54, %v614_v53 }
  0xe6   : > { %v2796_v55 = vsub.f32 %v2708_v47, %v637_v46 }
  0xe8   : > { %v669_v57 = vmul.f32 %v2796_v55, %v2796_v55 }
  0xea   : > { %696 = vadd.xlane.f32.xlu2 %v667_v56  ;;  %700 = vadd.xlane.f32.xlu1 %v669_v57 }
 0x134   : > { %v675_v58 = vpop.xlane.xlu0 %674 }
 0x135   : > { %v671_v59 = vpop.xlane.xlu1 %670  ;;  %v704_v62 = vmul.f32 %v675_v58, %v2711_v54 }
 0x136   : > { %v702_v45 = vmul.f32 %v671_v59, %v2711_v54 }
 0x137   : > { %v720_v63 = vadd.f32 1e-05, %v704_v62  ;;  %v2848_v62 = vld [vmem:[%s3490_s1] ss:$0 sm:$0xff] }
 0x138   : > { %v718_v0 = vadd.f32 1e-05, %v702_v45 }
 0x139   : > { %2341 = vrsqrt.f32 %v720_v63  ;;  %vm760_vm3 = vweird.f32 %v720_v63 }
 0x13a   : > { %2343 = vrsqrt.f32 %v718_v0  ;;  %vm740_vm4 = vweird.f32 %v718_v0 }
 0x13c   : > { %v681_v47 = vpop.xlane.xlu0 %680 }
 0x13d   : > { %v677_v1 = vpop.xlane.xlu1 %676  ;;  %v673_v2 = vpop.xlane.xlu2 %672  ;;  %v707_v3 = vmul.f32 %v681_v47, %v2711_v54 }
 0x13e   : > { %v705_v4 = vmul.f32 %v677_v1, %v2711_v54  ;;  %v703_v5 = vmul.f32 %v673_v2, %v2711_v54 }
 0x13f   : > { %v2342_v9 = vpop.eup %2341  ;;  %v2807_v10 = vadd.f32 1e-05, %v707_v3 }
 0x140   : > { %v2344_v11 = vpop.eup %2343  ;;  %v755_v12 = vmul.f32 %v2342_v9, %v720_v63  ;;  %v2809_v13 = vadd.f32 1e-05, %v705_v4  ;;  %v2811_v14 = vadd.f32 1e-05, %v703_v5  ;;  %vm761_vm1 = vweird.f32 %v2342_v9 }
 0x141   : > { %v735_v15 = vmul.f32 %v2344_v11, %v718_v0  ;;  %2345 = vrsqrt.f32 %v2807_v10  ;;  %vm741_vm2 = vweird.f32 %v2344_v11  ;;  %vm2828_vm5 = vmor %vm760_vm3, %vm761_vm1  ;;  %vm790_vm7 = vweird.f32 %v2807_v10 }
 0x142   : > { %v756_v16 = vmul.f32 %v2342_v9, %v755_v12  ;;  %2347 = vrsqrt.f32 %v2809_v13  ;;  %vm742_vm6 = vmor %vm740_vm4, %vm741_vm2  ;;  %vm770_vm9 = vweird.f32 %v2809_v13  ;;  %vm750_vm11 = vweird.f32 %v2811_v14  ;;  %v2863_v12 = vld [vmem:[%s3491_s2] ss:$0 sm:$0xff] }
 0x143   : > { %v736_v18 = vmul.f32 %v2344_v11, %v735_v15  ;;  %2349 = vrsqrt.f32 %v2811_v14 }
 0x144   : > { %v757_v21 = vmul.f32 0.5, %v756_v16  ;;  %v687_v22 = vpop.xlane.xlu0 %686 }
 0x145   : > { %v737_v23 = vmul.f32 0.5, %v736_v18  ;;  %v679_v24 = vpop.xlane.xlu2 %678  ;;  %v683_v25 = vpop.xlane.xlu1 %682  ;;  %v710_v30 = vmul.f32 %v687_v22, %v2711_v54 }
 0x146   : > { %v758_v27 = vsub.f32 1.5, %v757_v21  ;;  %v706_v28 = vmul.f32 %v679_v24, %v2711_v54  ;;  %v708_v29 = vmul.f32 %v683_v25, %v2711_v54 }
 0x147   : > { %v2819_v33 = vpop.eup %2345  ;;  %v738_v34 = vsub.f32 1.5, %v737_v23  ;;  %v2840_v46 = vadd.f32 1e-05, %v710_v30 }
 0x148   : > { %v2348_v35 = vpop.eup %2347  ;;  %v759_v36 = vmul.f32 %v2342_v9, %v758_v27  ;;  %v785_v37 = vmul.f32 %v2819_v33, %v2807_v10  ;;  %v2823_v39 = vadd.f32 1e-05, %v706_v28  ;;  %v2833_v51 = vadd.f32 1e-05, %v708_v29 }
 0x149   : > { %v2825_v40 = vpop.eup %2349  ;;  %v739_v41 = vmul.f32 %v2344_v11, %v738_v34  ;;  %v765_v50 = vmul.f32 %v2348_v35, %v2809_v13  ;;  %vm791_vm8 = vweird.f32 %v2819_v33  ;;  %vm771_vm10 = vweird.f32 %v2348_v35 }
 0x14a   : > { %v763_v42 = vsel %vm2828_vm5, %v2342_v9, %v759_v36  ;;  %v745_v52 = vmul.f32 %v2825_v40, %v2811_v14  ;;  %v786_v53 = vmul.f32 %v2819_v33, %v785_v37  ;;  %2351 = vrsqrt.f32 %v2823_v39  ;;  %vm2871_vm13 = vmor %vm790_vm7, %vm791_vm8 }
 0x14b   : > { %v743_v56 = vsel %vm742_vm6, %v2344_v11, %v739_v41  ;;  %v766_v57 = vmul.f32 %v2348_v35, %v765_v50  ;;  %v896_v63 = vmul.f32 %v763_v42, %v2715_v60  ;;  %2353 = vrsqrt.f32 %v2833_v51  ;;  %vm772_vm14 = vmor %vm770_vm9, %vm771_vm10 }
 0x14c   : > { %v746_v58 = vmul.f32 %v2825_v40, %v745_v52  ;;  %v787_v59 = vmul.f32 0.5, %v786_v53  ;;  %v894_v45 = vmul.f32 %v743_v56, %v2717_v61  ;;  %2355 = vrsqrt.f32 %v2840_v46  ;;  %v693_v9 = vpop.xlane.xlu0 %692 }
 0x14d   : > { %v767_v0 = vmul.f32 0.5, %v766_v57  ;;  %v685_v47 = vpop.xlane.xlu2 %684  ;;  %v689_v5 = vpop.xlane.xlu1 %688  ;;  %vm751_vm12 = vweird.f32 %v2825_v40  ;;  %v916_v16 = vmul.f32 %v2848_v62, %v896_v63  ;;  %vm780_vm15 = vweird.f32 %v2823_v39 }
 0x14e   : > { %v747_v1 = vmul.f32 0.5, %v746_v58  ;;  %v788_v2 = vsub.f32 1.5, %v787_v59  ;;  %v709_v4 = vmul.f32 %v685_v47, %v2711_v54  ;;  %v914_v15 = vmul.f32 %v2848_v62, %v894_v45  ;;  %vm752_vm0 = vmor %vm750_vm11, %vm751_vm12 }
 0x14f   : > { %v768_v3 = vsub.f32 1.5, %v767_v0  ;;  %v711_v25 = vmul.f32 %v689_v5, %v2711_v54  ;;  %v713_v28 = vmul.f32 %v693_v9, %v2711_v54  ;;  %v936_v37 = vadd.f32 %v2863_v12, %v916_v16 }
 0x150   : > { %v748_v61 = vsub.f32 1.5, %v747_v1  ;;  %v789_v60 = vmul.f32 %v2819_v33, %v788_v2  ;;  %v2352_v11 = vpop.eup %2351  ;;  %v2875_v22 = vadd.f32 1e-05, %v709_v4  ;;  %v934_v14 = vadd.f32 %v2863_v12, %v914_v15 }
 0x151   : > { %v769_v18 = vmul.f32 %v2348_v35, %v768_v3  ;;  %v775_v24 = vmul.f32 %v2352_v11, %v2823_v39  ;;  %v2884_v27 = vpop.eup %2353  ;;  %vm781_vm1 = vweird.f32 %v2352_v11  ;;  %v2911_v56 = vadd.f32 1e-05, %v711_v25 }
 0x152   : > { %v749_v23 = vmul.f32 %v2825_v40, %v748_v61  ;;  %v793_v13 = vsel %vm2871_vm13, %v2819_v33, %v789_v60  ;;  %2357 = vrsqrt.f32 %v2875_v22  ;;  %v2895_v29 = vpop.eup %2355  ;;  %v795_v36 = vmul.f32 %v2884_v27, %v2833_v51  ;;  %vm782_vm3 = vmor %vm780_vm15, %vm781_vm1 }
 0x153   : > { %v773_v10 = vsel %vm772_vm14, %v2348_v35, %v769_v18  ;;  %v776_v35 = vmul.f32 %v2352_v11, %v775_v24  ;;  %v815_v41 = vmul.f32 %v2895_v29, %v2840_v46  ;;  %v899_v52 = vmul.f32 %v793_v13, %v2726_v6 }
 0x154   : > { %v897_v30 = vmul.f32 %v773_v10, %v2728_v7  ;;  %v753_v34 = vsel %vm752_vm0, %v2825_v40, %v749_v23  ;;  %v796_v7 = vmul.f32 %v2884_v27, %v795_v36  ;;  %v2914_v59 = vadd.f32 1e-05, %v713_v28 }
 0x155   : > { %v895_v33 = vmul.f32 %v753_v34, %v2730_v8  ;;  %v691_v43 = vpop.xlane.xlu2 %690  ;;  %v777_v42 = vmul.f32 0.5, %v776_v35  ;;  %v816_v53 = vmul.f32 %v2895_v29, %v815_v41  ;;  %vm801_vm2 = vweird.f32 %v2884_v27  ;;  %v695_v6 = vpop.xlane.xlu1 %694 }
 0x156   : > { %v917_v50 = vmul.f32 %v2848_v62, %v897_v30  ;;  %v797_v58 = vmul.f32 0.5, %v796_v7  ;;  %2359 = vrsqrt.f32 %v2911_v56  ;;  %vm800_vm4 = vweird.f32 %v2833_v51 }
 0x157   : > { %v915_v40 = vmul.f32 %v2848_v62, %v895_v33  ;;  %v778_v57 = vsub.f32 1.5, %v777_v42  ;;  %v817_v0 = vmul.f32 0.5, %v816_v53  ;;  %2361 = vrsqrt.f32 %v2914_v59  ;;  %vm2934_vm5 = vmor %vm800_vm4, %vm801_vm2 }
 0x158   : > { %v937_v8 = vadd.f32 %v2863_v12, %v917_v50  ;;  %v2916_v45 = vpop.eup %2357  ;;  %v798_v2 = vsub.f32 1.5, %v797_v58  ;;  %v919_v61 = vmul.f32 %v2848_v62, %v899_v52  ;;  %vm820_vm6 = vweird.f32 %v2840_v46 }
 0x159   : > { %v935_v63 = vadd.f32 %v2863_v12, %v915_v40  ;;  %v779_v1 = vmul.f32 %v2352_v11, %v778_v57  ;;  %v805_v3 = vmul.f32 %v2916_v45, %v2875_v22  ;;  %v818_v5 = vsub.f32 1.5, %v817_v0 }
 0x15a   : > { %v2257_v47 = vpack.c.bf16 %v937_v8, %v936_v37  ;;  %v799_v9 = vmul.f32 %v2884_v27, %v798_v2  ;;  %v712_v51 = vmul.f32 %v691_v43, %v2711_v54  ;;  %vm821_vm7 = vweird.f32 %v2895_v29 }
 0x15b   : > { %v2252_v4 = vpack.c.bf16 %v935_v63, %v934_v14  ;;  %v783_v60 = vsel %vm782_vm3, %v2352_v11, %v779_v1  ;;  %v806_v15 = vmul.f32 %v2916_v45, %v805_v3  ;;  %vm810_vm8 = vweird.f32 %v2875_v22  ;;  %vm2963_vm10 = vmor %vm820_vm6, %vm821_vm7 }
 0x15c   : > { %2289 = vst [vmem:[#allocation2] sm:$0xff] %v2257_v47   ;;  %v898_v16 = vmul.f32 %v783_v60, %v2741_v17  ;;  %v803_v11 = vsel %vm2934_vm5, %v2884_v27, %v799_v9  ;;  %v699_v17 = vpop.xlane.xlu0 %698  ;;  %v2360_v21 = vpop.eup %2359  ;;  %v819_v24 = vmul.f32 %v2895_v29, %v818_v5  ;;  %v2947_v25 = vadd.f32 1e-05, %v712_v51 }
 0x15d   : > { %2253 = vst [vmem:[#allocation2 + $0x30] sm:$0xff] %v2252_v4   ;;  %v807_v18 = vmul.f32 0.5, %v806_v15  ;;  %v714_v10 = vmul.f32 %v695_v6, %v2711_v54  ;;  %v697_v13 = vpop.xlane.xlu2 %696  ;;  %v939_v28 = vadd.f32 %v2863_v12, %v919_v61  ;;  %vm811_vm9 = vweird.f32 %v2916_v45  ;;  %v2953_v34 = vpop.eup %2361 }
 0x15e   : > { %v918_v23 = vmul.f32 %v2848_v62, %v898_v16  ;;  %v825_v27 = vmul.f32 %v2360_v21, %v2911_v56  ;;  %v900_v36 = vmul.f32 %v803_v11, %v2746_v20  ;;  %2363 = vrsqrt.f32 %v2947_v25  ;;  %vm812_vm11 = vmor %vm810_vm8, %vm811_vm9  ;;  %v701_v7 = vpop.xlane.xlu1 %700 }
 0x15f   : > { %v808_v30 = vsub.f32 1.5, %v807_v18  ;;  %v716_v14 = vmul.f32 %v699_v17, %v2711_v54  ;;  %v845_v43 = vmul.f32 %v2953_v34, %v2914_v59  ;;  %v715_v20 = vmul.f32 %v697_v13, %v2711_v54 }
 0x160   : > { %v938_v35 = vadd.f32 %v2863_v12, %v918_v23  ;;  %v826_v41 = vmul.f32 %v2360_v21, %v825_v27  ;;  %v823_v42 = vsel %vm2963_vm10, %v2895_v29, %v819_v24  ;;  %vm830_vm12 = vweird.f32 %v2911_v56 }
 0x161   : > { %v809_v33 = vmul.f32 %v2916_v45, %v808_v30  ;;  %v2977_v46 = vadd.f32 1e-05, %v714_v10  ;;  %vm831_vm13 = vweird.f32 %v2360_v21  ;;  %v846_v53 = vmul.f32 %v2953_v34, %v845_v43 }
 0x162   : > { %v2262_v50 = vpack.c.bf16 %v939_v28, %v938_v35  ;;  %v827_v52 = vmul.f32 0.5, %v826_v41  ;;  %v920_v8 = vmul.f32 %v2848_v62, %v900_v36  ;;  %v2984_v22 = vadd.f32 1e-05, %v716_v14  ;;  %vm832_vm0 = vmor %vm830_vm12, %vm831_vm13 }
 0x163   : > { %v813_v40 = vsel %vm812_vm11, %v2916_v45, %v809_v33  ;;  %2365 = vrsqrt.f32 %v2977_v46  ;;  %v847_v58 = vmul.f32 0.5, %v846_v53  ;;  %v2986_v63 = vadd.f32 1e-05, %v715_v20 }
 0x164   : > { %2290 = vst [vmem:[#allocation2 + $0x18] sm:$0xff] %v2262_v50   ;;  %v901_v57 = vmul.f32 %v813_v40, %v2756_v26  ;;  %v828_v29 = vsub.f32 1.5, %v827_v52  ;;  %v717_v0 = vmul.f32 %v701_v7, %v2711_v54  ;;  %v2364_v45 = vpop.eup %2363  ;;  %v902_v6 = vmul.f32 %v823_v42, %v2744_v19 }
 0x165   : > { %vm850_vm14 = vweird.f32 %v2914_v59  ;;  %2367 = vrsqrt.f32 %v2984_v22  ;;  %v848_v1 = vsub.f32 1.5, %v847_v58  ;;  %vm851_vm15 = vweird.f32 %v2953_v34 }
 0x166   : > { %v921_v47 = vmul.f32 %v2848_v62, %v901_v57  ;;  %v829_v26 = vmul.f32 %v2360_v21, %v828_v29  ;;  %v835_v2 = vmul.f32 %v2364_v45, %v2947_v25  ;;  %v940_v3 = vadd.f32 %v2863_v12, %v920_v8  ;;  %vm852_vm1 = vmor %vm850_vm14, %vm851_vm15 }
 0x167   : > { %2369 = vrsqrt.f32 %v2986_v63  ;;  %v3001_v54 = vadd.f32 1e-05, %v717_v0  ;;  %v849_v5 = vmul.f32 %v2953_v34, %v848_v1  ;;  %v922_v9 = vmul.f32 %v2848_v62, %v902_v6 }
 0x168   : > { %v941_v4 = vadd.f32 %v2863_v12, %v921_v47  ;;  %v833_v19 = vsel %vm832_vm0, %v2360_v21, %v829_v26  ;;  %v836_v61 = vmul.f32 %v2364_v45, %v835_v2  ;;  %vm841_vm2 = vweird.f32 %v2364_v45 }
 0x169   : > { %v2366_v60 = vpop.eup %2365  ;;  %v903_v16 = vmul.f32 %v833_v19, %v2764_v32  ;;  %2371 = vrsqrt.f32 %v3001_v54  ;;  %v853_v56 = vsel %vm852_vm1, %v2953_v34, %v849_v5  ;;  %v942_v59 = vadd.f32 %v2863_v12, %v922_v9 }
 0x16a   : > { %v2267_v15 = vpack.c.bf16 %v941_v4, %v940_v3  ;;  %v837_v39 = vmul.f32 0.5, %v836_v61  ;;  %v855_v51 = vmul.f32 %v2366_v60, %v2977_v46  ;;  %v905_v10 = vmul.f32 %v853_v56, %v2761_v31 }
 0x16b   : > { %v2368_v11 = vpop.eup %2367  ;;  %v923_v18 = vmul.f32 %v2848_v62, %v903_v16  ;;  %vm840_vm3 = vweird.f32 %v2947_v25  ;;  %vm860_vm5 = vweird.f32 %v2977_v46  ;;  %vm861_vm6 = vweird.f32 %v2366_v60 }
 0x16c   : > { %2291 = vst [vmem:[#allocation2 + $0x10] sm:$0xff] %v2267_v15   ;;  %v838_v17 = vsub.f32 1.5, %v837_v39  ;;  %v856_v21 = vmul.f32 %v2366_v60, %v855_v51  ;;  %v875_v23 = vmul.f32 %v2368_v11, %v2984_v22  ;;  %vm842_vm4 = vmor %vm840_vm3, %vm841_vm2  ;;  %v925_v31 = vmul.f32 %v2848_v62, %v905_v10 }
 0x16d   : > { %v2370_v32 = vpop.eup %2369  ;;  %v943_v24 = vadd.f32 %v2863_v12, %v923_v18  ;;  %vm880_vm7 = vweird.f32 %v2984_v22  ;;  %vm881_vm8 = vweird.f32 %v2368_v11  ;;  %vm862_vm9 = vmor %vm860_vm5, %vm861_vm6  ;;  %vm870_vm12 = vweird.f32 %v2986_v63 }
 0x16e   : > { %v839_v13 = vmul.f32 %v2364_v45, %v838_v17  ;;  %v857_v28 = vmul.f32 0.5, %v856_v21  ;;  %v876_v30 = vmul.f32 %v2368_v11, %v875_v23  ;;  %v865_v27 = vmul.f32 %v2370_v32, %v2986_v63  ;;  %vm882_vm11 = vmor %vm880_vm7, %vm881_vm8 }
 0x16f   : > { %v2372_v34 = vpop.eup %2371  ;;  %v2272_v35 = vpack.c.bf16 %v943_v24, %v942_v59  ;;  %vm871_vm10 = vweird.f32 %v2370_v32  ;;  %vm890_vm15 = vweird.f32 %v3001_v54 }
 0x170   : > { %v843_v36 = vsel %vm842_vm4, %v2364_v45, %v839_v13  ;;  %v858_v14 = vsub.f32 1.5, %v857_v28  ;;  %v877_v37 = vmul.f32 0.5, %v876_v30  ;;  %v866_v33 = vmul.f32 %v2370_v32, %v865_v27  ;;  %vm872_vm13 = vmor %vm870_vm12, %vm871_vm10 }
 0x171   : > { %2292 = vst [vmem:[#allocation2 + $0x8] sm:$0xff] %v2272_v35   ;;  %v904_v25 = vmul.f32 %v843_v36, %v2774_v38  ;;  %v885_v41 = vmul.f32 %v2372_v34, %v3001_v54  ;;  %v945_v38 = vadd.f32 %v2863_v12, %v925_v31  ;;  %vm891_vm14 = vweird.f32 %v2372_v34 }
 0x172   : > { %v859_v43 = vmul.f32 %v2366_v60, %v858_v14  ;;  %v878_v20 = vsub.f32 1.5, %v877_v37  ;;  %v867_v50 = vmul.f32 0.5, %v866_v33  ;;  %vm892_vm0 = vmor %vm890_vm15, %vm891_vm14 }
 0x173   : > { %v924_v42 = vmul.f32 %v2848_v62, %v904_v25  ;;  %v886_v7 = vmul.f32 %v2372_v34, %v885_v41 }
 0x174   : > { %v863_v40 = vsel %vm862_vm9, %v2366_v60, %v859_v43  ;;  %v879_v52 = vmul.f32 %v2368_v11, %v878_v20  ;;  %v868_v53 = vsub.f32 1.5, %v867_v50 }
 0x175   : > { %v944_v8 = vadd.f32 %v2863_v12, %v924_v42  ;;  %v906_v57 = vmul.f32 %v863_v40, %v2782_v49  ;;  %v887_v29 = vmul.f32 0.5, %v886_v7 }
 0x176   : > { %v883_v58 = vsel %vm882_vm11, %v2368_v11, %v879_v52  ;;  %v869_v0 = vmul.f32 %v2370_v32, %v868_v53 }
 0x177   : > { %v2277_v46 = vpack.c.bf16 %v945_v38, %v944_v8  ;;  %v888_v45 = vsub.f32 1.5, %v887_v29  ;;  %v908_v6 = vmul.f32 %v883_v58, %v2779_v48  ;;  %v926_v26 = vmul.f32 %v2848_v62, %v906_v57 }
 0x178   : > { %v873_v47 = vsel %vm872_vm13, %v2370_v32, %v869_v0 }
 0x179   : > { %2293 = vst [vmem:[#allocation2 + $0x20] sm:$0xff] %v2277_v46   ;;  %v907_v49 = vmul.f32 %v873_v47, %v2792_v44  ;;  %v889_v1 = vmul.f32 %v2372_v34, %v888_v45  ;;  %v928_v63 = vmul.f32 %v2848_v62, %v908_v6  ;;  %v946_v4 = vadd.f32 %v2863_v12, %v926_v26 }
 0x17b   : > { %v927_v22 = vmul.f32 %v2848_v62, %v907_v49  ;;  %v893_v2 = vsel %vm892_vm0, %v2372_v34, %v889_v1  ;;  %v948_v44 = vadd.f32 %v2863_v12, %v928_v63 }
 0x17c   : > { %v909_v3 = vmul.f32 %v893_v2, %v2796_v55 }
 0x17d   : > { %v947_v48 = vadd.f32 %v2863_v12, %v927_v22 }
 0x17e   : > { %v929_v19 = vmul.f32 %v2848_v62, %v909_v3 }
 0x17f   : > { %v2282_v5 = vpack.c.bf16 %v947_v48, %v946_v4 }
 0x180   : > { %v949_v61 = vadd.f32 %v2863_v12, %v929_v19 }
 0x181   : > { %2294 = vst [vmem:[#allocation2 + $0x28] sm:$0xff] %v2282_v5  }
 0x182   : > { %v2287_v54 = vpack.c.bf16 %v949_v61, %v948_v44 }
 0x184   : > { %2295 = vst [vmem:[#allocation2 + $0x38] sm:$0xff] %v2287_v54  }
 0x185 PF: > { %v2195_v55 = vld [vmem:[%s2631_s22 + $0x70] sm:$0xf]  ;;  %v2247_v62 = vld [vmem:[%s2631_s22 + $0x74] sm:$0xf0]  ;;  %v2246_v60 = vld [vmem:[%s2631_s22 + $0x74] sm:$0xf] }
 0x186   : > { %v2196_v12 = vor.u32 %v2247_v62, %v2195_v55  ;;  %v2197_v9 = vld [vmem:[%s2631_s22 + $0x78] sm:$0xf0]  ;;  %v2187_v15 = vld [vmem:[%s2631_s22 + $0x60] sm:$0xf]  ;;  %v2245_v16 = vld [vmem:[%s2631_s22 + $0x64] sm:$0xf0] }
 0x187   : > { %v2200_v56 = vor.u32 %v2246_v60, %v2197_v9  ;;  %v2244_v39 = vld [vmem:[%s2631_s22 + $0x64] sm:$0xf]  ;;  %v2189_v51 = vld [vmem:[%s2631_s22 + $0x68] sm:$0xf0]  ;;  %v2188_v11 = vor.u32 %v2245_v16, %v2187_v15  ;;  %v2179_v17 = vld [vmem:[%s2631_s22 + $0x50] sm:$0xf] }
 0x188   : > { %1348 = vmatpush.bf16.msra.mxu2 %v2196_v12  ;;  %v2192_v18 = vor.u32 %v2244_v39, %v2189_v51  ;;  %v2243_v21 = vld [vmem:[%s2631_s22 + $0x54] sm:$0xf0]  ;;  %v2242_v23 = vld [vmem:[%s2631_s22 + $0x54] sm:$0xf]  ;;  %v2181_v32 = vld [vmem:[%s2631_s22 + $0x58] sm:$0xf0] }
 0x189   : > { %1397 = vmatpush.bf16.msra.mxu3 %v2200_v56  ;;  %v2180_v59 = vor.u32 %v2243_v21, %v2179_v17  ;;  %v2171_v24 = vld [vmem:[%s2631_s22 + $0x40] sm:$0xf]  ;;  %v2241_v10 = vld [vmem:[%s2631_s22 + $0x44] sm:$0xf0]  ;;  %v2184_v13 = vor.u32 %v2242_v23, %v2181_v32  ;;  %v2131_v28 = vld [vmem:[%s2629_s21 + $0x70] sm:$0xf] }
 0x18a   : > { %v2231_v30 = vld [vmem:[%s2629_s21 + $0x74] sm:$0xf0]  ;;  %v2230_v27 = vld [vmem:[%s2629_s21 + $0x74] sm:$0xf]  ;;  %v2240_v34 = vld [vmem:[%s2631_s22 + $0x44] sm:$0xf]  ;;  %v2172_v31 = vor.u32 %v2241_v10, %v2171_v24 }
 0x18b   : > { %v2173_v35 = vld [vmem:[%s2631_s22 + $0x48] sm:$0xf0]  ;;  %v2132_v36 = vor.u32 %v2231_v30, %v2131_v28  ;;  %v2133_v14 = vld [vmem:[%s2629_s21 + $0x78] sm:$0xf0]  ;;  %v2123_v33 = vld [vmem:[%s2629_s21 + $0x60] sm:$0xf] }
 0x18c   : > { %1349 = vmatpush.bf16.msra.mxu2 %v2188_v11  ;;  %v2136_v37 = vor.u32 %v2230_v27, %v2133_v14  ;;  %v2229_v25 = vld [vmem:[%s2629_s21 + $0x64] sm:$0xf0]  ;;  %v2228_v41 = vld [vmem:[%s2629_s21 + $0x64] sm:$0xf]  ;;  %v2125_v43 = vld [vmem:[%s2629_s21 + $0x68] sm:$0xf0]  ;;  %v2176_v20 = vor.u32 %v2240_v34, %v2173_v35 }
 0x18d   : > { %1398 = vmatpush.bf16.msra.mxu3 %v2192_v18  ;;  %1148 = vmatpush.bf16.msra.mxu0 %v2132_v36  ;;  %v2163_v50 = vld [vmem:[%s2631_s22 + $0x30] sm:$0xf]  ;;  %v2239_v42 = vld [vmem:[%s2631_s22 + $0x34] sm:$0xf0]  ;;  %v2238_v7 = vld [vmem:[%s2631_s22 + $0x34] sm:$0xf]  ;;  %v2124_v40 = vor.u32 %v2229_v25, %v2123_v33  ;;  %v2128_v52 = vor.u32 %v2228_v41, %v2125_v43 }
 0x18e   : > { %1197 = vmatpush.bf16.msra.mxu1 %v2136_v37  ;;  %v2165_v53 = vld [vmem:[%s2631_s22 + $0x38] sm:$0xf0]  ;;  %v2115_v38 = vld [vmem:[%s2629_s21 + $0x50] sm:$0xf]  ;;  %v2227_v8 = vld [vmem:[%s2629_s21 + $0x54] sm:$0xf0]  ;;  %v2164_v58 = vor.u32 %v2239_v42, %v2163_v50 }
 0x18f   : > { %v2226_v57 = vld [vmem:[%s2629_s21 + $0x54] sm:$0xf]  ;;  %v2117_v29 = vld [vmem:[%s2629_s21 + $0x58] sm:$0xf0]  ;;  %v2155_v0 = vld [vmem:[%s2631_s22 + $0x20] sm:$0xf]  ;;  %v2116_v45 = vor.u32 %v2227_v8, %v2115_v38  ;;  %v2168_v6 = vor.u32 %v2238_v7, %v2165_v53 }
 0x190   : > { %1350 = vmatpush.bf16.msra.mxu2 %v2180_v59  ;;  %v2237_v46 = vld [vmem:[%s2631_s22 + $0x24] sm:$0xf0]  ;;  %v2236_v47 = vld [vmem:[%s2631_s22 + $0x24] sm:$0xf]  ;;  %v2120_v26 = vor.u32 %v2226_v57, %v2117_v29  ;;  %v2107_v49 = vld [vmem:[%s2629_s21 + $0x40] sm:$0xf] }
 0x191   : > { %1399 = vmatpush.bf16.msra.mxu3 %v2184_v13  ;;  %1149 = vmatpush.bf16.msra.mxu0 %v2124_v40  ;;  %v2225_v1 = vld [vmem:[%s2629_s21 + $0x44] sm:$0xf0]  ;;  %v2157_v22 = vld [vmem:[%s2631_s22 + $0x28] sm:$0xf0]  ;;  %v2224_v2 = vld [vmem:[%s2629_s21 + $0x44] sm:$0xf]  ;;  %v2156_v3 = vor.u32 %v2237_v46, %v2155_v0 }
 0x192   : > { %1198 = vmatpush.bf16.msra.mxu1 %v2128_v52  ;;  %v2109_v63 = vld [vmem:[%s2629_s21 + $0x48] sm:$0xf0]  ;;  %v2147_v4 = vld [vmem:[%s2631_s22 + $0x10] sm:$0xf]  ;;  %v2235_v48 = vld [vmem:[%s2631_s22 + $0x14] sm:$0xf0]  ;;  %v2108_v19 = vor.u32 %v2225_v1, %v2107_v49  ;;  %v2160_v5 = vor.u32 %v2236_v47, %v2157_v22 }
 0x193   : > { %v2234_v44 = vld [vmem:[%s2631_s22 + $0x14] sm:$0xf]  ;;  %v2112_v61 = vor.u32 %v2224_v2, %v2109_v63  ;;  %v2099_v54 = vld [vmem:[%s2629_s21 + $0x30] sm:$0xf]  ;;  %v2223_v55 = vld [vmem:[%s2629_s21 + $0x34] sm:$0xf0]  ;;  %v2148_v9 = vor.u32 %v2235_v48, %v2147_v4 }
 0x194   : > { %1351 = vmatpush.bf16.msra.mxu2 %v2172_v31  ;;  %v2149_v62 = vld [vmem:[%s2631_s22 + $0x18] sm:$0xf0]  ;;  %v2222_v60 = vld [vmem:[%s2629_s21 + $0x34] sm:$0xf]  ;;  %v2139_v15 = vld [vmem:[%s2631_s22] sm:$0xf]  ;;  %v2100_v56 = vor.u32 %v2223_v55, %v2099_v54 }
 0x195   : > { %1400 = vmatpush.bf16.msra.mxu3 %v2176_v20  ;;  %1150 = vmatpush.bf16.msra.mxu0 %v2116_v45  ;;  %v2101_v12 = vld [vmem:[%s2629_s21 + $0x38] sm:$0xf0]  ;;  %v2233_v16 = vld [vmem:[%s2631_s22 + $0x4] sm:$0xf0]  ;;  %v2152_v39 = vor.u32 %v2234_v44, %v2149_v62  ;;  %v2232_v51 = vld [vmem:[%s2631_s22 + $0x4] sm:$0xf] }
 0x196   : > { %1199 = vmatpush.bf16.msra.mxu1 %v2120_v26  ;;  %v2104_v11 = vor.u32 %v2222_v60, %v2101_v12  ;;  %v2091_v18 = vld [vmem:[%s2629_s21 + $0x20] sm:$0xf]  ;;  %v2221_v17 = vld [vmem:[%s2629_s21 + $0x24] sm:$0xf0]  ;;  %v2141_v21 = vld [vmem:[%s2631_s22 + $0x8] sm:$0xf0]  ;;  %v2140_v59 = vor.u32 %v2233_v16, %v2139_v15 }
 0x197   : > { %v2220_v23 = vld [vmem:[%s2629_s21 + $0x24] sm:$0xf]  ;;  %v2093_v32 = vld [vmem:[%s2629_s21 + $0x28] sm:$0xf0]  ;;  %v2092_v24 = vor.u32 %v2221_v17, %v2091_v18  ;;  %v2144_v10 = vor.u32 %v2232_v51, %v2141_v21  ;;  %v2083_v28 = vld [vmem:[%s2629_s21 + $0x10] sm:$0xf] }
 0x198   : > { %1352 = vmatpush.bf16.msra.mxu2 %v2164_v58  ;;  %v2096_v13 = vor.u32 %v2220_v23, %v2093_v32  ;;  %v2219_v30 = vld [vmem:[%s2629_s21 + $0x14] sm:$0xf0]  ;;  %v2218_v27 = vld [vmem:[%s2629_s21 + $0x14] sm:$0xf]  ;;  %v2085_v34 = vld [vmem:[%s2629_s21 + $0x18] sm:$0xf0] }
 0x199   : > { %1401 = vmatpush.bf16.msra.mxu3 %v2168_v6  ;;  %1151 = vmatpush.bf16.msra.mxu0 %v2108_v19  ;;  %v2208_v35 = vld [vmem:[#allocation2 + $0x30] sm:$0xff]  ;;  %v2084_v36 = vor.u32 %v2219_v30, %v2083_v28  ;;  %v2088_v14 = vor.u32 %v2218_v27, %v2085_v34  ;;  %v2075_v37 = vld [vmem:[%s2629_s21] sm:$0xf]  ;;  %v2217_v33 = vld [vmem:[%s2629_s21 + $0x4] sm:$0xf0]  ;;  %s2248_s13 = sshll.u32 (%p2557_p6), %s2467_s26, 3 }
 0x19a   : > { %1200 = vmatpush.bf16.msra.mxu1 %v2112_v61  ;;  %v2216_v31 = vld [vmem:[%s2629_s21 + $0x4] sm:$0xf]  ;;  %v2077_v25 = vld [vmem:[%s2629_s21 + $0x8] sm:$0xf0]  ;;  %v2076_v41 = vor.u32 %v2217_v33, %v2075_v37  ;;  %v2210_v50 = vld [vmem:[#allocation2 + $0x18] sm:$0xff]  ;;  %s1810_s18 = scalar_lea.vmem (%p2557_p6), %s3496_s7, %s2248_s13 }
 0x19b   : > { %v2080_v43 = vor.u32 %v2216_v31, %v2077_v25  ;;  %v2209_v20 = vld [vmem:[#allocation2] sm:$0xff]  ;;  %v2211_v42 = vld [vmem:[#allocation2 + $0x10] sm:$0xff]  ;;  %v2212_v7 = vld [vmem:[#allocation2 + $0x8] sm:$0xff] }
 0x19c   : > { %1353 = vmatpush.bf16.msra.mxu2 %v2156_v3  ;;  %v2213_v40 = vld [vmem:[#allocation2 + $0x20] sm:$0xff]  ;;  %v2214_v52 = vld [vmem:[#allocation2 + $0x28] sm:$0xff]  ;;  %v2215_v53 = vld [vmem:[#allocation2 + $0x38] sm:$0xff] }
 0x19d   : > { %1402 = vmatpush.bf16.msra.mxu3 %v2160_v5  ;;  %1152 = vmatpush.bf16.msra.mxu0 %v2100_v56  ;;  %v1262_v38 = vld [vmem:[%s559_s20] sm:$0x3] }
 0x19e   : > { %1201 = vmatpush.bf16.msra.mxu1 %v2104_v11  ;;  %v3114_v8 = vperm.slane %v1262_v38, 0  ;;  %v3116_v57 = vperm.slane %v1262_v38, 1  ;;  %v1014_v16 = vld [vmem:[%s553_s17] sm:$0x3] }
 0x19f   : > { %v3146_v21 = vperm.slane %v1014_v16, 0 }
 0x1a0   : > { %1354 = vmatpush.bf16.msra.mxu2 %v2148_v9 }
 0x1a1   : > { %1403 = vmatpush.bf16.msra.mxu3 %v2152_v39  ;;  %1153 = vmatpush.bf16.msra.mxu0 %v2092_v24 }
 0x1a2   : > { %1202 = vmatpush.bf16.msra.mxu1 %v2096_v13 }
 0x1a4   : > { %1355 = vmatpush.bf16.msra.mxu2 %v2140_v59 }
 0x1a5   : > { %1404 = vmatpush.bf16.msra.mxu3 %v2144_v10  ;;  %1154 = vmatpush.bf16.msra.mxu0 %v2084_v36  ;;  %v3153_v10 = vperm.slane %v1014_v16, 1 }
 0x1a6   : > { %1203 = vmatpush.bf16.msra.mxu1 %v2088_v14 }
 0x1a7   : > { %1356 = vmatmul.bf16.vlgmr.msra.gmra.mxu2 %v2208_v35 }
 0x1a8   : > { %1405 = vmatmul.bf16.vlgmr.msra.gmra.mxu3 %v2208_v35 }
 0x1a9   : > { %1155 = vmatpush.bf16.msra.mxu0 %v2076_v41 }
 0x1aa   : > { %1204 = vmatpush.bf16.msra.mxu1 %v2080_v43 }
 0x1ac   : > { %1156 = vmatmul.bf16.vlgmr.msra.gmra.mxu0 %v2208_v35 }
 0x1ad   : > { %1205 = vmatmul.bf16.vlgmr.msra.gmra.mxu1 %v2208_v35 }
 0x1b7   : > { %1361 = vmatmul.bf16.gmra.mxu2 %v2209_v20 }
 0x1b8   : > { %1410 = vmatmul.bf16.gmra.mxu3 %v2209_v20 }
 0x1bc   : > { %1161 = vmatmul.bf16.gmra.mxu0 %v2209_v20 }
 0x1bd   : > { %1210 = vmatmul.bf16.gmra.mxu1 %v2209_v20 }
 0x1c7   : > { %1366 = vmatmul.bf16.gmra.mxu2 %v2210_v50 }
 0x1c8   : > { %1415 = vmatmul.bf16.gmra.mxu3 %v2210_v50 }
 0x1cc   : > { %1166 = vmatmul.bf16.gmra.mxu0 %v2210_v50 }
 0x1cd   : > { %1215 = vmatmul.bf16.gmra.mxu1 %v2210_v50 }
 0x1d7   : > { %1371 = vmatmul.bf16.gmra.mxu2 %v2211_v42 }
 0x1d8   : > { %1420 = vmatmul.bf16.gmra.mxu3 %v2211_v42 }
 0x1dc   : > { %1171 = vmatmul.bf16.gmra.mxu0 %v2211_v42 }
 0x1dd   : > { %1220 = vmatmul.bf16.gmra.mxu1 %v2211_v42 }
 0x1e7   : > { %1376 = vmatmul.bf16.gmra.mxu2 %v2212_v7 }
 0x1e8   : > { %1425 = vmatmul.bf16.gmra.mxu3 %v2212_v7 }
 0x1ec   : > { %1176 = vmatmul.bf16.gmra.mxu0 %v2212_v7 }
 0x1ed   : > { %1225 = vmatmul.bf16.gmra.mxu1 %v2212_v7 }
 0x1f7   : > { %1381 = vmatmul.bf16.gmra.mxu2 %v2213_v40 }
 0x1f8   : > { %1430 = vmatmul.bf16.gmra.mxu3 %v2213_v40 }
 0x1fc   : > { %1181 = vmatmul.bf16.gmra.mxu0 %v2213_v40 }
 0x1fd   : > { %1230 = vmatmul.bf16.gmra.mxu1 %v2213_v40 }
 0x207   : > { %1386 = vmatmul.bf16.gmra.mxu2 %v2214_v52 }
 0x208   : > { %1435 = vmatmul.bf16.gmra.mxu3 %v2214_v52 }
 0x20c   : > { %1186 = vmatmul.bf16.gmra.mxu0 %v2214_v52 }
 0x20d   : > { %1235 = vmatmul.bf16.gmra.mxu1 %v2214_v52 }
 0x217   : > { %1391 = vmatmul.bf16.gmra.mxu2 %v2215_v53 }
 0x218   : > { %1440 = vmatmul.bf16.gmra.mxu3 %v2215_v53 }
 0x21c   : > { %1191 = vmatmul.bf16.gmra.mxu0 %v2215_v53 }
 0x21d   : > { %1240 = vmatmul.bf16.gmra.mxu1 %v2215_v53 }
 0x229   : > { %v1157_v45 = vpop.f32.mrf.mxu0 }
 0x22a   : > { %v1357_v29 = vpop.f32.mrf.mxu2  ;;  %v1206_v47 = vpop.f32.mrf.mxu1  ;;  %v1158_v37 = vadd.f32 %v1157_v45, %v3146_v21 }
 0x22b   : > { %v1358_v58 = vadd.f32 %v1357_v29, %v3114_v8  ;;  %v1406_v0 = vpop.f32.mrf.mxu3  ;;  %v1207_v25 = vadd.f32 %v1206_v47, %v3153_v10 }
 0x22c   : > { %v1407_v46 = vadd.f32 %v1406_v0, %v3116_v57 }
 0x22d   : > { %v1446_v6 = vmul.f32 %v1358_v58, %v1358_v58 }
 0x22e   : > { %v1447_v26 = vmul.f32 %v1407_v46, %v1407_v46 }
 0x22f   : > { %v1478_v49 = vmul.f32 %v1446_v6, %v1358_v58 }
 0x230   : > { %v1479_v1 = vmul.f32 %v1447_v26, %v1407_v46 }
 0x231   : > { %v1510_v22 = vmul.f32 0.044715, %v1478_v49  ;;  %v3126_v44 = vpop.f32.mrf.mxu0 }
 0x232   : > { %v1511_v2 = vmul.f32 0.044715, %v1479_v1  ;;  %v1359_v63 = vpop.f32.mrf.mxu2  ;;  %v3130_v55 = vpop.f32.mrf.mxu1 }
 0x233   : > { %v1542_v3 = vadd.f32 %v1510_v22, %v1358_v58  ;;  %v3121_v4 = vadd.f32 %v1359_v63, %v3114_v8  ;;  %v1408_v48 = vpop.f32.mrf.mxu3  ;;  %v1209_v16 = vadd.f32 %v3130_v55, %v3153_v10 }
 0x234   : > { %v1543_v19 = vadd.f32 %v1511_v2, %v1407_v46  ;;  %v3124_v5 = vadd.f32 %v1408_v48, %v3116_v57 }
 0x235   : > { %v1574_v61 = vmul.f32 0.7978846, %v1542_v3  ;;  %v1448_v54 = vmul.f32 %v3121_v4, %v3121_v4 }
 0x236   : > { %v1575_v62 = vmul.f32 0.7978846, %v1543_v19  ;;  %v1449_v60 = vmul.f32 %v3124_v5, %v3124_v5 }
 0x237   : > { %v1480_v12 = vmul.f32 %v1448_v54, %v3121_v4  ;;  %2373 = vtanh.f32 %v1574_v61 }
 0x238   : > { %v1481_v9 = vmul.f32 %v1449_v60, %v3124_v5  ;;  %2375 = vtanh.f32 %v1575_v62  ;;  %v1160_v60 = vadd.f32 %v3126_v44, %v3146_v21 }
 0x239   : > { %v1512_v15 = vmul.f32 0.044715, %v1480_v12  ;;  %v3151_v32 = vpop.f32.mrf.mxu0 }
 0x23a   : > { %v1513_v56 = vmul.f32 0.044715, %v1481_v9  ;;  %v1362_v39 = vpop.f32.mrf.mxu2  ;;  %v3157_v28 = vpop.f32.mrf.mxu1 }
 0x23b   : > { %v1544_v51 = vadd.f32 %v1512_v15, %v3121_v4  ;;  %v3143_v11 = vadd.f32 %v1362_v39, %v3114_v8  ;;  %v1411_v18 = vpop.f32.mrf.mxu3 }
 0x23c   : > { %v1545_v17 = vadd.f32 %v1513_v56, %v3124_v5  ;;  %v3149_v23 = vadd.f32 %v1411_v18, %v3116_v57 }
 0x23d   : > { %v2374_v59 = vpop.eup %2373  ;;  %v1576_v24 = vmul.f32 0.7978846, %v1544_v51  ;;  %v1450_v13 = vmul.f32 %v3143_v11, %v3143_v11 }
 0x23e   : > { %v2376_v30 = vpop.eup %2375  ;;  %v1577_v27 = vmul.f32 0.7978846, %v1545_v17  ;;  %v1638_v34 = vadd.f32 1.0, %v2374_v59  ;;  %v1451_v35 = vmul.f32 %v3149_v23, %v3149_v23 }
 0x23f   : > { %v1639_v36 = vadd.f32 1.0, %v2376_v30  ;;  %v1482_v14 = vmul.f32 %v1450_v13, %v3143_v11  ;;  %2377 = vtanh.f32 %v1576_v24 }
 0x240   : > { %v1670_v33 = vmul.f32 0.5, %v1638_v34  ;;  %v1483_v31 = vmul.f32 %v1451_v35, %v3149_v23  ;;  %2379 = vtanh.f32 %v1577_v27 }
 0x241   : > { %v1671_v41 = vmul.f32 0.5, %v1639_v36  ;;  %v1514_v43 = vmul.f32 0.044715, %v1482_v14  ;;  %v3173_v45 = vpop.f32.mrf.mxu0 }
 0x242   : > { %v1702_v20 = vmul.f32 %v1670_v33, %v1358_v58  ;;  %v1515_v50 = vmul.f32 0.044715, %v1483_v31  ;;  %v1364_v42 = vpop.f32.mrf.mxu2  ;;  %v3177_v26 = vpop.f32.mrf.mxu1  ;;  %v1163_v31 = vadd.f32 %v3151_v32, %v3146_v21 }
 0x243   : > { %v1703_v7 = vmul.f32 %v1671_v41, %v1407_v46  ;;  %v1546_v40 = vadd.f32 %v1514_v43, %v3143_v11  ;;  %v3167_v52 = vadd.f32 %v1364_v42, %v3114_v8  ;;  %v1413_v53 = vpop.f32.mrf.mxu3  ;;  %v1212_v43 = vadd.f32 %v3157_v28, %v3153_v10 }
 0x244   : > { %v1734_v38 = vmul.f32 %v1702_v20, %v1158_v37  ;;  %v1547_v29 = vadd.f32 %v1515_v50, %v3149_v23  ;;  %v3171_v0 = vadd.f32 %v1413_v53, %v3116_v57 }
 0x245   : > { %v2378_v6 = vpop.eup %2377  ;;  %v1735_v58 = vmul.f32 %v1703_v7, %v1207_v25  ;;  %v1578_v47 = vmul.f32 0.7978846, %v1546_v40  ;;  %v1452_v46 = vmul.f32 %v3167_v52, %v3167_v52 }
 0x246   : > { %v2380_v49 = vpop.eup %2379  ;;  %v1579_v1 = vmul.f32 0.7978846, %v1547_v29  ;;  %v1640_v22 = vadd.f32 1.0, %v2378_v6  ;;  %v1453_v2 = vmul.f32 %v3171_v0, %v3171_v0 }
 0x247   : > { %v1766_v63 = vpack.c.bf16 %v1735_v58, %v1734_v38  ;;  %v1641_v3 = vadd.f32 1.0, %v2380_v49  ;;  %v1484_v48 = vmul.f32 %v1452_v46, %v3167_v52  ;;  %2381 = vtanh.f32 %v1578_v47 }
 0x248   : > { %v1672_v19 = vmul.f32 0.5, %v1640_v22  ;;  %v1485_v61 = vmul.f32 %v1453_v2, %v3171_v0  ;;  %2383 = vtanh.f32 %v1579_v1 }
 0x249   : > { %1782 = vst [vmem:[%s2633_s24] sm:$0xff] %v1766_v63  ;;  %v1673_v54 = vmul.f32 0.5, %v1641_v3  ;;  %v1516_v62 = vmul.f32 0.044715, %v1484_v48 }
 0x24a   : > { %v1704_v12 = vmul.f32 %v1672_v19, %v3121_v4  ;;  %v1517_v9 = vmul.f32 0.044715, %v1485_v61  ;;  %v1367_v15 = vpop.f32.mrf.mxu2  ;;  %v3198_v4 = vpop.f32.mrf.mxu0 }
 0x24b   : > { %v1705_v56 = vmul.f32 %v1673_v54, %v3124_v5  ;;  %v1548_v39 = vadd.f32 %v1516_v62, %v3167_v52  ;;  %v3192_v51 = vadd.f32 %v1367_v15, %v3114_v8  ;;  %v1416_v18 = vpop.f32.mrf.mxu3  ;;  %v3202_v30 = vpop.f32.mrf.mxu1 }
 0x24c   : > { %v1736_v17 = vmul.f32 %v1704_v12, %v1160_v60  ;;  %v1549_v59 = vadd.f32 %v1517_v9, %v3171_v0  ;;  %v3196_v44 = vadd.f32 %v1416_v18, %v3116_v57  ;;  %v1165_v9 = vadd.f32 %v3173_v45, %v3146_v21 }
 0x24d   : > { %v2382_v24 = vpop.eup %2381  ;;  %v1737_v13 = vmul.f32 %v1705_v56, %v1209_v16  ;;  %v1580_v55 = vmul.f32 0.7978846, %v1548_v39  ;;  %v1454_v5 = vmul.f32 %v3192_v51, %v3192_v51  ;;  %v1214_v39 = vadd.f32 %v3177_v26, %v3153_v10 }
 0x24e   : > { %v2384_v27 = vpop.eup %2383  ;;  %v1581_v34 = vmul.f32 0.7978846, %v1549_v59  ;;  %v1642_v35 = vadd.f32 1.0, %v2382_v24  ;;  %v1455_v36 = vmul.f32 %v3196_v44, %v3196_v44 }
 0x24f   : > { %v1767_v14 = vpack.c.bf16 %v1737_v13, %v1736_v17  ;;  %v1643_v37 = vadd.f32 1.0, %v2384_v27  ;;  %v1486_v33 = vmul.f32 %v1454_v5, %v3192_v51  ;;  %2385 = vtanh.f32 %v1580_v55 }
 0x250   : > { %v1674_v25 = vmul.f32 0.5, %v1642_v35  ;;  %v1487_v41 = vmul.f32 %v1455_v36, %v3196_v44  ;;  %2387 = vtanh.f32 %v1581_v34 }
 0x251   : > { %1783 = vst [vmem:[%s2633_s24 + $0x8] sm:$0xff] %v1767_v14  ;;  %v1675_v20 = vmul.f32 0.5, %v1643_v37  ;;  %v1518_v50 = vmul.f32 0.044715, %v1486_v33 }
 0x252   : > { %v1706_v42 = vmul.f32 %v1674_v25, %v3143_v11  ;;  %v1519_v7 = vmul.f32 0.044715, %v1487_v41  ;;  %v1369_v40 = vpop.f32.mrf.mxu2  ;;  %v3223_v28 = vpop.f32.mrf.mxu0  ;;  %v1168_v41 = vadd.f32 %v3198_v4, %v3146_v21 }
 0x253   : > { %v1707_v53 = vmul.f32 %v1675_v20, %v3149_v23  ;;  %v1550_v38 = vadd.f32 %v1518_v50, %v3192_v51  ;;  %v3217_v32 = vadd.f32 %v1369_v40, %v3114_v8  ;;  %v1418_v29 = vpop.f32.mrf.mxu3  ;;  %v3227_v1 = vpop.f32.mrf.mxu1  ;;  %v1217_v50 = vadd.f32 %v3202_v30, %v3153_v10 }
 0x254   : > { %v1738_v6 = vmul.f32 %v1706_v42, %v1163_v31  ;;  %v1551_v58 = vadd.f32 %v1519_v7, %v3196_v44  ;;  %v3221_v47 = vadd.f32 %v1418_v29, %v3116_v57 }
 0x255   : > { %v2386_v46 = vpop.eup %2385  ;;  %v1739_v11 = vmul.f32 %v1707_v53, %v1212_v43  ;;  %v1582_v49 = vmul.f32 0.7978846, %v1550_v38  ;;  %v1456_v23 = vmul.f32 %v3217_v32, %v3217_v32 }
 0x256   : > { %v2388_v22 = vpop.eup %2387  ;;  %v1583_v2 = vmul.f32 0.7978846, %v1551_v58  ;;  %v1644_v63 = vadd.f32 1.0, %v2386_v46  ;;  %v1457_v3 = vmul.f32 %v3221_v47, %v3221_v47 }
 0x257   : > { %v1768_v48 = vpack.c.bf16 %v1739_v11, %v1738_v6  ;;  %v1645_v19 = vadd.f32 1.0, %v2388_v22  ;;  %v1488_v61 = vmul.f32 %v1456_v23, %v3217_v32  ;;  %2389 = vtanh.f32 %v1582_v49 }
 0x258   : > { %v1676_v54 = vmul.f32 0.5, %v1644_v63  ;;  %v1489_v62 = vmul.f32 %v1457_v3, %v3221_v47  ;;  %2391 = vtanh.f32 %v1583_v2 }
 0x259   : > { %1784 = vst [vmem:[%s2633_s24 + $0x10] sm:$0xff] %v1768_v48  ;;  %v1677_v60 = vmul.f32 0.5, %v1645_v19  ;;  %v1520_v12 = vmul.f32 0.044715, %v1488_v61 }
 0x25a   : > { %v1708_v15 = vmul.f32 %v1676_v54, %v3167_v52  ;;  %v1521_v16 = vmul.f32 0.044715, %v1489_v62  ;;  %v1372_v56 = vpop.f32.mrf.mxu2 }
 0x25b   : > { %v1709_v18 = vmul.f32 %v1677_v60, %v3171_v0  ;;  %v1552_v17 = vadd.f32 %v1520_v12, %v3217_v32  ;;  %v3242_v59 = vadd.f32 %v1372_v56, %v3114_v8  ;;  %v1421_v24 = vpop.f32.mrf.mxu3  ;;  %v3250_v0 = vpop.f32.mrf.mxu0 }
 0x25c   : > { %v1740_v13 = vmul.f32 %v1708_v15, %v1165_v9  ;;  %v1553_v55 = vadd.f32 %v1521_v16, %v3221_v47  ;;  %v3246_v45 = vadd.f32 %v1421_v24, %v3116_v57  ;;  %v3254_v37 = vpop.f32.mrf.mxu1  ;;  %v1170_v16 = vadd.f32 %v3223_v28, %v3146_v21 }
 0x25d   : > { %v2390_v52 = vpop.eup %2389  ;;  %v1741_v5 = vmul.f32 %v1709_v18, %v1214_v39  ;;  %v1584_v27 = vmul.f32 0.7978846, %v1552_v17  ;;  %v1458_v26 = vmul.f32 %v3242_v59, %v3242_v59  ;;  %v1219_v17 = vadd.f32 %v3227_v1, %v3153_v10 }
 0x25e   : > { %v2392_v34 = vpop.eup %2391  ;;  %v1585_v35 = vmul.f32 0.7978846, %v1553_v55  ;;  %v1646_v36 = vadd.f32 1.0, %v2390_v52  ;;  %v1459_v14 = vmul.f32 %v3246_v45, %v3246_v45 }
 0x25f   : > { %v1769_v33 = vpack.c.bf16 %v1741_v5, %v1740_v13  ;;  %v1647_v31 = vadd.f32 1.0, %v2392_v34  ;;  %v1490_v25 = vmul.f32 %v1458_v26, %v3242_v59  ;;  %2393 = vtanh.f32 %v1584_v27 }
 0x260   : > { %v1678_v43 = vmul.f32 0.5, %v1646_v36  ;;  %v1491_v20 = vmul.f32 %v1459_v14, %v3246_v45  ;;  %2395 = vtanh.f32 %v1585_v35 }
 0x261   : > { %1785 = vst [vmem:[%s2633_s24 + $0x18] sm:$0xff] %v1769_v33  ;;  %v1679_v42 = vmul.f32 0.5, %v1647_v31  ;;  %v1522_v7 = vmul.f32 0.044715, %v1490_v25 }
 0x262   : > { %v1710_v40 = vmul.f32 %v1678_v43, %v3192_v51  ;;  %v1523_v53 = vmul.f32 0.044715, %v1491_v20  ;;  %v1374_v38 = vpop.f32.mrf.mxu2 }
 0x263   : > { %v1711_v29 = vmul.f32 %v1679_v42, %v3196_v44  ;;  %v1554_v6 = vadd.f32 %v1522_v7, %v3242_v59  ;;  %v3267_v4 = vadd.f32 %v1374_v38, %v3114_v8  ;;  %v1423_v58 = vpop.f32.mrf.mxu3  ;;  %v3278_v54 = vpop.f32.mrf.mxu0 }
 0x264   : > { %v1742_v46 = vmul.f32 %v1710_v40, %v1168_v41  ;;  %v1555_v11 = vadd.f32 %v1523_v53, %v3246_v45  ;;  %v3271_v49 = vadd.f32 %v1423_v58, %v3116_v57  ;;  %v3281_v12 = vpop.f32.mrf.mxu1  ;;  %v1173_v41 = vadd.f32 %v3250_v0, %v3146_v21 }
 0x265   : > { %v2394_v30 = vpop.eup %2393  ;;  %v1743_v23 = vmul.f32 %v1711_v29, %v1217_v50  ;;  %v1586_v51 = vmul.f32 0.7978846, %v1554_v6  ;;  %v1460_v22 = vmul.f32 %v3267_v4, %v3267_v4  ;;  %v1222_v50 = vadd.f32 %v3254_v37, %v3153_v10 }
 0x266   : > { %v2396_v44 = vpop.eup %2395  ;;  %v1587_v2 = vmul.f32 0.7978846, %v1555_v11  ;;  %v1648_v63 = vadd.f32 1.0, %v2394_v30  ;;  %v1461_v3 = vmul.f32 %v3271_v49, %v3271_v49 }
 0x267   : > { %v1770_v48 = vpack.c.bf16 %v1743_v23, %v1742_v46  ;;  %v1649_v19 = vadd.f32 1.0, %v2396_v44  ;;  %v1492_v61 = vmul.f32 %v1460_v22, %v3267_v4  ;;  %2397 = vtanh.f32 %v1586_v51 }
 0x268   : > { %v1680_v62 = vmul.f32 0.5, %v1648_v63  ;;  %v1493_v60 = vmul.f32 %v1461_v3, %v3271_v49  ;;  %2399 = vtanh.f32 %v1587_v2 }
 0x269   : > { %1786 = vst [vmem:[%s2633_s24 + $0x20] sm:$0xff] %v1770_v48  ;;  %v1681_v9 = vmul.f32 0.5, %v1649_v19  ;;  %v1524_v15 = vmul.f32 0.044715, %v1492_v61 }
 0x26a   : > { %v1712_v56 = vmul.f32 %v1680_v62, %v3217_v32  ;;  %v1525_v39 = vmul.f32 0.044715, %v1493_v60  ;;  %v1377_v18 = vpop.f32.mrf.mxu2 }
 0x26b   : > { %v1713_v24 = vmul.f32 %v1681_v9, %v3221_v47  ;;  %v1556_v13 = vadd.f32 %v1524_v15, %v3267_v4  ;;  %v3292_v55 = vadd.f32 %v1377_v18, %v3114_v8  ;;  %v1426_v52 = vpop.f32.mrf.mxu3  ;;  %v1177_v40 = vpop.f32.mrf.mxu0 }
 0x26c   : > { %v1744_v5 = vmul.f32 %v1712_v56, %v1170_v16  ;;  %v1557_v27 = vadd.f32 %v1525_v39, %v3271_v49  ;;  %v3296_v28 = vadd.f32 %v1426_v52, %v3116_v57  ;;  %v1226_v6 = vpop.f32.mrf.mxu1  ;;  %v1175_v16 = vadd.f32 %v3278_v54, %v3146_v21 }
 0x26d   : > { %v2398_v32 = vpop.eup %2397  ;;  %v1745_v26 = vmul.f32 %v1713_v24, %v1219_v17  ;;  %v1588_v34 = vmul.f32 0.7978846, %v1556_v13  ;;  %v1462_v1 = vmul.f32 %v3292_v55, %v3292_v55  ;;  %v1224_v17 = vadd.f32 %v3281_v12, %v3153_v10 }
 0x26e   : > { %v2400_v47 = vpop.eup %2399  ;;  %v1589_v35 = vmul.f32 0.7978846, %v1557_v27  ;;  %v1650_v36 = vadd.f32 1.0, %v2398_v32  ;;  %v1463_v14 = vmul.f32 %v3296_v28, %v3296_v28 }
 0x26f   : > { %v1771_v33 = vpack.c.bf16 %v1745_v26, %v1744_v5  ;;  %v1651_v31 = vadd.f32 1.0, %v2400_v47  ;;  %v1494_v25 = vmul.f32 %v1462_v1, %v3292_v55  ;;  %2401 = vtanh.f32 %v1588_v34 }
 0x270   : > { %v1682_v43 = vmul.f32 0.5, %v1650_v36  ;;  %v1495_v20 = vmul.f32 %v1463_v14, %v3296_v28  ;;  %2403 = vtanh.f32 %v1589_v35 }
 0x271   : > { %1787 = vst [vmem:[%s2633_s24 + $0x28] sm:$0xff] %v1771_v33  ;;  %v1683_v42 = vmul.f32 0.5, %v1651_v31  ;;  %v1526_v7 = vmul.f32 0.044715, %v1494_v25 }
 0x272   : > { %v1714_v53 = vmul.f32 %v1682_v43, %v3242_v59  ;;  %v1527_v38 = vmul.f32 0.044715, %v1495_v20  ;;  %v1379_v29 = vpop.f32.mrf.mxu2 }
 0x273   : > { %v1715_v58 = vmul.f32 %v1683_v42, %v3246_v45  ;;  %v1558_v0 = vadd.f32 %v1526_v7, %v3292_v55  ;;  %v3313_v46 = vadd.f32 %v1379_v29, %v3114_v8  ;;  %v1428_v11 = vpop.f32.mrf.mxu3  ;;  %v1179_v27 = vpop.f32.mrf.mxu0 }
 0x274   : > { %v1746_v30 = vmul.f32 %v1714_v53, %v1173_v41  ;;  %v1559_v23 = vadd.f32 %v1527_v38, %v3296_v28  ;;  %v3317_v37 = vadd.f32 %v1428_v11, %v3116_v57  ;;  %v1178_v41 = vadd.f32 %v1177_v40, %v3146_v21 }
 0x275   : > { %v2402_v51 = vpop.eup %2401  ;;  %v1747_v59 = vmul.f32 %v1715_v58, %v1222_v50  ;;  %v1590_v22 = vmul.f32 0.7978846, %v1558_v0  ;;  %v1464_v44 = vmul.f32 %v3313_v46, %v3313_v46  ;;  %v1227_v50 = vadd.f32 %v1226_v6, %v3153_v10 }
 0x276   : > { %v2404_v45 = vpop.eup %2403  ;;  %v1591_v2 = vmul.f32 0.7978846, %v1559_v23  ;;  %v1652_v63 = vadd.f32 1.0, %v2402_v51  ;;  %v1465_v3 = vmul.f32 %v3317_v37, %v3317_v37 }
 0x277   : > { %v1772_v48 = vpack.c.bf16 %v1747_v59, %v1746_v30  ;;  %v1653_v19 = vadd.f32 1.0, %v2404_v45  ;;  %v1496_v61 = vmul.f32 %v1464_v44, %v3313_v46  ;;  %2405 = vtanh.f32 %v1590_v22 }
 0x278   : > { %v1684_v62 = vmul.f32 0.5, %v1652_v63  ;;  %v1497_v60 = vmul.f32 %v1465_v3, %v3317_v37  ;;  %2407 = vtanh.f32 %v1591_v2 }
 0x279   : > { %1788 = vst [vmem:[%s2633_s24 + $0x30] sm:$0xff] %v1772_v48  ;;  %v1685_v9 = vmul.f32 0.5, %v1653_v19  ;;  %v1528_v15 = vmul.f32 0.044715, %v1496_v61 }
 0x27a   : > { %v1716_v56 = vmul.f32 %v1684_v62, %v3267_v4  ;;  %v1529_v39 = vmul.f32 0.044715, %v1497_v60  ;;  %v1382_v18 = vpop.f32.mrf.mxu2  ;;  %v1228_v4 = vpop.f32.mrf.mxu1 }
 0x27b   : > { %v1717_v24 = vmul.f32 %v1685_v9, %v3271_v49  ;;  %v1560_v13 = vadd.f32 %v1528_v15, %v3313_v46  ;;  %v3334_v52 = vadd.f32 %v1382_v18, %v3114_v8  ;;  %v1431_v5 = vpop.f32.mrf.mxu3 }
 0x27c   : > { %v1748_v32 = vmul.f32 %v1716_v56, %v1175_v16  ;;  %v1561_v26 = vadd.f32 %v1529_v39, %v3317_v37  ;;  %v3338_v54 = vadd.f32 %v1431_v5, %v3116_v57  ;;  %v1180_v16 = vadd.f32 %v1179_v27, %v3146_v21 }
 0x27d   : > { %v2406_v34 = vpop.eup %2405  ;;  %v1749_v1 = vmul.f32 %v1717_v24, %v1224_v17  ;;  %v1592_v12 = vmul.f32 0.7978846, %v1560_v13  ;;  %v1466_v49 = vmul.f32 %v3334_v52, %v3334_v52  ;;  %v1229_v17 = vadd.f32 %v1228_v4, %v3153_v10 }
 0x27e   : > { %v2408_v47 = vpop.eup %2407  ;;  %v1593_v35 = vmul.f32 0.7978846, %v1561_v26  ;;  %v1654_v36 = vadd.f32 1.0, %v2406_v34  ;;  %v1467_v14 = vmul.f32 %v3338_v54, %v3338_v54 }
 0x27f   : > { %v1773_v33 = vpack.c.bf16 %v1749_v1, %v1748_v32  ;;  %v1655_v31 = vadd.f32 1.0, %v2408_v47  ;;  %v1498_v25 = vmul.f32 %v1466_v49, %v3334_v52  ;;  %2409 = vtanh.f32 %v1592_v12 }
 0x280   : > { %v1686_v43 = vmul.f32 0.5, %v1654_v36  ;;  %v1499_v20 = vmul.f32 %v1467_v14, %v3338_v54  ;;  %2411 = vtanh.f32 %v1593_v35 }
 0x281   : > { %1789 = vst [vmem:[%s2633_s24 + $0x38] sm:$0xff] %v1773_v33  ;;  %v1687_v42 = vmul.f32 0.5, %v1655_v31  ;;  %v1530_v7 = vmul.f32 0.044715, %v1498_v25 }
 0x282   : > { %v1718_v53 = vmul.f32 %v1686_v43, %v3292_v55  ;;  %v1531_v38 = vmul.f32 0.044715, %v1499_v20  ;;  %v1384_v29 = vpop.f32.mrf.mxu2  ;;  %v1231_v3 = vpop.f32.mrf.mxu1 }
 0x283   : > { %v1719_v58 = vmul.f32 %v1687_v42, %v3296_v28  ;;  %v1562_v0 = vadd.f32 %v1530_v7, %v3334_v52  ;;  %v3353_v11 = vadd.f32 %v1384_v29, %v3114_v8  ;;  %v1433_v40 = vpop.f32.mrf.mxu3  ;;  %v1182_v28 = vpop.f32.mrf.mxu0 }
 0x284   : > { %v1750_v30 = vmul.f32 %v1718_v53, %v1178_v41  ;;  %v1563_v23 = vadd.f32 %v1531_v38, %v3338_v54  ;;  %v3357_v51 = vadd.f32 %v1433_v40, %v3116_v57  ;;  %v1183_v25 = vadd.f32 %v1182_v28, %v3146_v21 }
 0x285   : > { %v2410_v6 = vpop.eup %2409  ;;  %v1751_v59 = vmul.f32 %v1719_v58, %v1227_v50  ;;  %v1594_v55 = vmul.f32 0.7978846, %v1562_v0  ;;  %v1468_v22 = vmul.f32 %v3353_v11, %v3353_v11  ;;  %v1232_v50 = vadd.f32 %v1231_v3, %v3153_v10 }
 0x286   : > { %v2412_v44 = vpop.eup %2411  ;;  %v1595_v45 = vmul.f32 0.7978846, %v1563_v23  ;;  %v1656_v2 = vadd.f32 1.0, %v2410_v6  ;;  %v1469_v63 = vmul.f32 %v3357_v51, %v3357_v51 }
 0x287   : > { %v1774_v48 = vpack.c.bf16 %v1751_v59, %v1750_v30  ;;  %v1657_v19 = vadd.f32 1.0, %v2412_v44  ;;  %v1500_v61 = vmul.f32 %v1468_v22, %v3353_v11  ;;  %2413 = vtanh.f32 %v1594_v55 }
 0x288   : > { %v1688_v62 = vmul.f32 0.5, %v1656_v2  ;;  %v1501_v60 = vmul.f32 %v1469_v63, %v3357_v51  ;;  %2415 = vtanh.f32 %v1595_v45 }
 0x289   : > { %1790 = vst [vmem:[%s2633_s24 + $0x40] sm:$0xff] %v1774_v48  ;;  %v1689_v9 = vmul.f32 0.5, %v1657_v19  ;;  %v1532_v15 = vmul.f32 0.044715, %v1500_v61 }
 0x28a   : > { %v1720_v56 = vmul.f32 %v1688_v62, %v3313_v46  ;;  %v1533_v39 = vmul.f32 0.044715, %v1501_v60  ;;  %v1387_v18 = vpop.f32.mrf.mxu2  ;;  %v1233_v20 = vpop.f32.mrf.mxu1 }
 0x28b   : > { %v1721_v24 = vmul.f32 %v1689_v9, %v3317_v37  ;;  %v1564_v13 = vadd.f32 %v1532_v15, %v3353_v11  ;;  %v3372_v5 = vadd.f32 %v1387_v18, %v3114_v8  ;;  %v1436_v32 = vpop.f32.mrf.mxu3  ;;  %v1184_v31 = vpop.f32.mrf.mxu0 }
 0x28c   : > { %v1752_v26 = vmul.f32 %v1720_v56, %v1180_v16  ;;  %v1565_v34 = vadd.f32 %v1533_v39, %v3357_v51  ;;  %v3376_v1 = vadd.f32 %v1436_v32, %v3116_v57  ;;  %v1185_v15 = vadd.f32 %v1184_v31, %v3146_v21 }
 0x28d   : > { %v2414_v27 = vpop.eup %2413  ;;  %v1753_v46 = vmul.f32 %v1721_v24, %v1229_v17  ;;  %v1596_v12 = vmul.f32 0.7978846, %v1564_v13  ;;  %v1470_v4 = vmul.f32 %v3372_v5, %v3372_v5  ;;  %v1234_v17 = vadd.f32 %v1233_v20, %v3153_v10 }
 0x28e   : > { %v2416_v37 = vpop.eup %2415  ;;  %v1597_v49 = vmul.f32 0.7978846, %v1565_v34  ;;  %v1658_v47 = vadd.f32 1.0, %v2414_v27  ;;  %v1471_v35 = vmul.f32 %v3376_v1, %v3376_v1 }
 0x28f   : > { %v1775_v36 = vpack.c.bf16 %v1753_v46, %v1752_v26  ;;  %v1659_v14 = vadd.f32 1.0, %v2416_v37  ;;  %v1502_v33 = vmul.f32 %v1470_v4, %v3372_v5  ;;  %2417 = vtanh.f32 %v1596_v12 }
 0x290   : > { %v1690_v41 = vmul.f32 0.5, %v1658_v47  ;;  %v1503_v43 = vmul.f32 %v1471_v35, %v3376_v1  ;;  %2419 = vtanh.f32 %v1597_v49 }
 0x291   : > { %1791 = vst [vmem:[%s2633_s24 + $0x48] sm:$0xff] %v1775_v36  ;;  %v1691_v42 = vmul.f32 0.5, %v1659_v14  ;;  %v1534_v7 = vmul.f32 0.044715, %v1502_v33 }
 0x292   : > { %v1722_v53 = vmul.f32 %v1690_v41, %v3334_v52  ;;  %v1535_v38 = vmul.f32 0.044715, %v1503_v43  ;;  %v1389_v29 = vpop.f32.mrf.mxu2  ;;  %v1236_v39 = vpop.f32.mrf.mxu1 }
 0x293   : > { %v1723_v58 = vmul.f32 %v1691_v42, %v3338_v54  ;;  %v1566_v0 = vadd.f32 %v1534_v7, %v3372_v5  ;;  %v3391_v40 = vadd.f32 %v1389_v29, %v3114_v8  ;;  %v1438_v30 = vpop.f32.mrf.mxu3  ;;  %v1187_v9 = vpop.f32.mrf.mxu0  ;;  %v1237_v43 = vadd.f32 %v1236_v39, %v3153_v10 }
 0x294   : > { %v1754_v23 = vmul.f32 %v1722_v53, %v1183_v25  ;;  %v1567_v6 = vadd.f32 %v1535_v38, %v3376_v1  ;;  %v3395_v59 = vadd.f32 %v1438_v30, %v3116_v57  ;;  %v1188_v31 = vadd.f32 %v1187_v9, %v3146_v21 }
 0x295   : > { %v2418_v55 = vpop.eup %2417  ;;  %v1755_v22 = vmul.f32 %v1723_v58, %v1232_v50  ;;  %v1598_v52 = vmul.f32 0.7978846, %v1566_v0  ;;  %v1472_v28 = vmul.f32 %v3391_v40, %v3391_v40 }
 0x296   : > { %v2420_v54 = vpop.eup %2419  ;;  %v1599_v44 = vmul.f32 0.7978846, %v1567_v6  ;;  %v1660_v45 = vadd.f32 1.0, %v2418_v55  ;;  %v1473_v2 = vmul.f32 %v3395_v59, %v3395_v59 }
 0x297   : > { %v1776_v63 = vpack.c.bf16 %v1755_v22, %v1754_v23  ;;  %v1661_v3 = vadd.f32 1.0, %v2420_v54  ;;  %v1504_v48 = vmul.f32 %v1472_v28, %v3391_v40  ;;  %2421 = vtanh.f32 %v1598_v52 }
 0x298   : > { %v1692_v19 = vmul.f32 0.5, %v1660_v45  ;;  %v1505_v61 = vmul.f32 %v1473_v2, %v3395_v59  ;;  %2423 = vtanh.f32 %v1599_v44 }
 0x299   : > { %1792 = vst [vmem:[%s2633_s24 + $0x50] sm:$0xff] %v1776_v63  ;;  %v1693_v62 = vmul.f32 0.5, %v1661_v3  ;;  %v1536_v60 = vmul.f32 0.044715, %v1504_v48 }
 0x29a   : > { %v1724_v16 = vmul.f32 %v1692_v19, %v3353_v11  ;;  %v1537_v56 = vmul.f32 0.044715, %v1505_v61  ;;  %v1392_v18 = vpop.f32.mrf.mxu2  ;;  %v1238_v55 = vpop.f32.mrf.mxu1 }
 0x29b   : > { %v1725_v24 = vmul.f32 %v1693_v62, %v3357_v51  ;;  %v1568_v13 = vadd.f32 %v1536_v60, %v3391_v40  ;;  %v3410_v32 = vadd.f32 %v1392_v18, %v3114_v8  ;;  %v1441_v26 = vpop.f32.mrf.mxu3  ;;  %v1189_v58 = vpop.f32.mrf.mxu0 }
 0x29c   : > { %v1756_v34 = vmul.f32 %v1724_v16, %v1185_v15  ;;  %v1569_v27 = vadd.f32 %v1537_v56, %v3395_v59  ;;  %v3414_v46 = vadd.f32 %v1441_v26, %v3116_v57  ;;  %v1190_v62 = vadd.f32 %v1189_v58, %v3146_v21 }
 0x29d   : > { %v2422_v11 = vpop.eup %2421  ;;  %v1757_v12 = vmul.f32 %v1725_v24, %v1234_v17  ;;  %v1600_v4 = vmul.f32 0.7978846, %v1568_v13  ;;  %v1474_v37 = vmul.f32 %v3410_v32, %v3410_v32  ;;  %v1239_v15 = vadd.f32 %v1238_v55, %v3153_v10  ;;  %v1879_v55 = vld [vmem:[%s2633_s24 + $0x28] sm:$0xff] (%p2557_p6) }
 0x29e   : > { %v2424_v51 = vpop.eup %2423  ;;  %v1601_v49 = vmul.f32 0.7978846, %v1569_v27  ;;  %v1662_v47 = vadd.f32 1.0, %v2422_v11  ;;  %v1475_v35 = vmul.f32 %v3414_v46, %v3414_v46  ;;  %1880 = vst [vmem:[%s1810_s18 + $0x50] sm:$0xff] (%p2557_p6), %v1879_v55 }
 0x29f   : > { %v1777_v36 = vpack.c.bf16 %v1757_v12, %v1756_v34  ;;  %v1663_v14 = vadd.f32 1.0, %v2424_v51  ;;  %v1506_v33 = vmul.f32 %v1474_v37, %v3410_v32  ;;  %2425 = vtanh.f32 %v1600_v4 }
 0x2a0   : > { %v1694_v25 = vmul.f32 0.5, %v1662_v47  ;;  %v1507_v41 = vmul.f32 %v1475_v35, %v3414_v46  ;;  %2427 = vtanh.f32 %v1601_v49 }
 0x2a1   : > { %1793 = vst [vmem:[%s2633_s24 + $0x58] sm:$0xff] %v1777_v36  ;;  %v1695_v20 = vmul.f32 0.5, %v1663_v14  ;;  %v1538_v50 = vmul.f32 0.044715, %v1506_v33 }
 0x2a2   : > { %v1726_v42 = vmul.f32 %v1694_v25, %v3372_v5  ;;  %v1539_v7 = vmul.f32 0.044715, %v1507_v41  ;;  %v1394_v53 = vpop.f32.mrf.mxu2  ;;  %v1241_v12 = vpop.f32.mrf.mxu1 }
 0x2a3   : > { %v1727_v38 = vmul.f32 %v1695_v20, %v3376_v1  ;;  %v1570_v29 = vadd.f32 %v1538_v50, %v3410_v32  ;;  %v3429_v0 = vadd.f32 %v1394_v53, %v3114_v8  ;;  %v1443_v30 = vpop.f32.mrf.mxu3  ;;  %v1192_v26 = vpop.f32.mrf.mxu0 }
 0x2a4   : > { %v1758_v23 = vmul.f32 %v1726_v42, %v1188_v31  ;;  %v1571_v6 = vadd.f32 %v1539_v7, %v3414_v46  ;;  %v1444_v22 = vadd.f32 %v1443_v30, %v3116_v57  ;;  %v1193_v37 = vadd.f32 %v1192_v26, %v3146_v21 }
 0x2a5   : > { %v2426_v52 = vpop.eup %2425  ;;  %v1759_v5 = vmul.f32 %v1727_v38, %v1237_v43  ;;  %v1602_v28 = vmul.f32 0.7978846, %v1570_v29  ;;  %v1476_v1 = vmul.f32 %v3429_v0, %v3429_v0 }
 0x2a6   : > { %v2428_v54 = vpop.eup %2427  ;;  %v1603_v44 = vmul.f32 0.7978846, %v1571_v6  ;;  %v1664_v45 = vadd.f32 1.0, %v2426_v52  ;;  %v1477_v2 = vmul.f32 %v1444_v22, %v1444_v22  ;;  %v1877_v6 = vld [vmem:[%s2633_s24 + $0x20] sm:$0xff] (%p2557_p6)  ;;  %v1883_v52 = vld [vmem:[%s2633_s24 + $0x38] sm:$0xff] (%p2557_p6) }
 0x2a7   : > { %v1778_v8 = vpack.c.bf16 %v1759_v5, %v1758_v23  ;;  %v1665_v63 = vadd.f32 1.0, %v2428_v54  ;;  %v1508_v3 = vmul.f32 %v1476_v1, %v3429_v0  ;;  %2429 = vtanh.f32 %v1602_v28  ;;  %v1875_v23 = vld [vmem:[%s2633_s24 + $0x18] sm:$0xff] (%p2557_p6)  ;;  %1878 = vst [vmem:[%s1810_s18 + $0x40] sm:$0xff] (%p2557_p6), %v1877_v6  ;;  %v1885_v5 = vld [vmem:[%s2633_s24 + $0x40] sm:$0xff] (%p2557_p6)  ;;  %v1887_v28 = vld [vmem:[%s2633_s24 + $0x48] sm:$0xff] (%p2557_p6) }
 0x2a8   : > { %v1696_v48 = vmul.f32 0.5, %v1664_v45  ;;  %v1509_v19 = vmul.f32 %v1477_v2, %v1444_v22  ;;  %2431 = vtanh.f32 %v1603_v44  ;;  %1876 = vst [vmem:[%s1810_s18 + $0x30] sm:$0xff] (%p2557_p6), %v1875_v23  ;;  %v1889_v1 = vld [vmem:[%s2633_s24 + $0x50] sm:$0xff] (%p2557_p6)  ;;  %v1891_v54 = vld [vmem:[%s2633_s24 + $0x58] sm:$0xff] (%p2557_p6) }
 0x2a9   : > { %1794 = vst [vmem:[%s2633_s24 + $0x60] sm:$0xff] %v1778_v8  ;;  %v1697_v57 = vmul.f32 0.5, %v1665_v63  ;;  %v1540_v61 = vmul.f32 0.044715, %v1508_v3 }
 0x2aa   : > { %v1728_v60 = vmul.f32 %v1696_v48, %v3391_v40  ;;  %v1541_v9 = vmul.f32 0.044715, %v1509_v19  ;;  %v1243_v42 = vpop.f32.mrf.mxu1  ;;  %1884 = vst [vmem:[%s1810_s18 + $0x70] sm:$0xff] (%p2557_p6), %v1883_v52 }
 0x2ab   : > { %v1729_v16 = vmul.f32 %v1697_v57, %v3395_v59  ;;  %v1572_v56 = vadd.f32 %v1540_v61, %v3429_v0  ;;  %v1242_v59 = vadd.f32 %v1241_v12, %v3153_v10  ;;  %v1194_v43 = vpop.f32.mrf.mxu0  ;;  %1886 = vst [vmem:[%s1810_s18 + $0x80] sm:$0xff] (%p2557_p6), %v1885_v5 }
 0x2ac   : > { %v1760_v39 = vmul.f32 %v1728_v60, %v1190_v62  ;;  %v1573_v18 = vadd.f32 %v1541_v9, %v1444_v22  ;;  %v1195_v53 = vadd.f32 %v1194_v43, %v3146_v21  ;;  %v1869_v21 = vld [vmem:[%s2633_s24] sm:$0xff] (%p2557_p6)  ;;  %1888 = vst [vmem:[%s1810_s18 + $0x90] sm:$0xff] (%p2557_p6), %v1887_v28 }
 0x2ad   : > { %v2430_v17 = vpop.eup %2429  ;;  %v1761_v24 = vmul.f32 %v1729_v16, %v1239_v15  ;;  %v1604_v13 = vmul.f32 0.7978846, %v1572_v56  ;;  %1870 = vst [vmem:[%s1810_s18] sm:$0xff] (%p2557_p6), %v1869_v21 }
 0x2ae   : > { %v2432_v34 = vpop.eup %2431  ;;  %v1605_v27 = vmul.f32 0.7978846, %v1573_v18  ;;  %v1666_v11 = vadd.f32 1.0, %v2430_v17  ;;  %1890 = vst [vmem:[%s1810_s18 + $0xa0] sm:$0xff] (%p2557_p6), %v1889_v1 }
 0x2af   : > { %v1779_v4 = vpack.c.bf16 %v1761_v24, %v1760_v39  ;;  %v1667_v40 = vadd.f32 1.0, %v2432_v34  ;;  %2433 = vtanh.f32 %v1604_v13  ;;  %1892 = vst [vmem:[%s1810_s18 + $0xb0] sm:$0xff] (%p2557_p6), %v1891_v54 }
 0x2b0   : > { %v1698_v51 = vmul.f32 0.5, %v1666_v11  ;;  %2435 = vtanh.f32 %v1605_v27  ;;  %v1893_v44 = vld [vmem:[%s2633_s24 + $0x60] sm:$0xff] (%p2557_p6) }
 0x2b1   : > { %1795 = vst [vmem:[%s2633_s24 + $0x68] sm:$0xff] %v1779_v4  ;;  %v1699_v49 = vmul.f32 0.5, %v1667_v40 }
 0x2b2   : > { %v1730_v47 = vmul.f32 %v1698_v51, %v3410_v32  ;;  %v1244_v32 = vadd.f32 %v1243_v42, %v3153_v10  ;;  %v1871_v10 = vld [vmem:[%s2633_s24 + $0x8] sm:$0xff] (%p2557_p6)  ;;  %1894 = vst [vmem:[%s1810_s18 + $0xc0] sm:$0xff] (%p2557_p6), %v1893_v44 }
 0x2b3   : > { %v1731_v35 = vmul.f32 %v1699_v49, %v3414_v46  ;;  %1872 = vst [vmem:[%s1810_s18 + $0x10] sm:$0xff] (%p2557_p6), %v1871_v10 }
 0x2b4   : > { %v1762_v36 = vmul.f32 %v1730_v47, %v1193_v37 }
 0x2b5   : > { %v2434_v14 = vpop.eup %2433  ;;  %v1763_v33 = vmul.f32 %v1731_v35, %v1242_v59 }
 0x2b6   : > { %v2436_v31 = vpop.eup %2435  ;;  %v1668_v25 = vadd.f32 1.0, %v2434_v14 }
 0x2b7   : > { %v1780_v41 = vpack.c.bf16 %v1763_v33, %v1762_v36  ;;  %v1669_v20 = vadd.f32 1.0, %v2436_v31 }
 0x2b8   : > { %v1700_v50 = vmul.f32 0.5, %v1668_v25  ;;  %v1895_v45 = vld [vmem:[%s2633_s24 + $0x68] sm:$0xff] (%p2557_p6) }
 0x2b9   : > { %1796 = vst [vmem:[%s2633_s24 + $0x70] sm:$0xff] %v1780_v41  ;;  %v1701_v7 = vmul.f32 0.5, %v1669_v20 }
 0x2ba   : > { %v1732_v38 = vmul.f32 %v1700_v50, %v3429_v0  ;;  %v1873_v0 = vld [vmem:[%s2633_s24 + $0x10] sm:$0xff] (%p2557_p6)  ;;  %1896 = vst [vmem:[%s1810_s18 + $0xd0] sm:$0xff] (%p2557_p6), %v1895_v45 }
 0x2bb   : > { %v1733_v46 = vmul.f32 %v1701_v7, %v1444_v22  ;;  %1874 = vst [vmem:[%s1810_s18 + $0x20] sm:$0xff] (%p2557_p6), %v1873_v0  ;;  %v1881_v22 = vld [vmem:[%s2633_s24 + $0x30] sm:$0xff] (%p2557_p6) }
 0x2bc   : > { %v1764_v29 = vmul.f32 %v1732_v38, %v1195_v53  ;;  %1882 = vst [vmem:[%s1810_s18 + $0x60] sm:$0xff] (%p2557_p6), %v1881_v22 }
 0x2bd   : > { %v1765_v58 = vmul.f32 %v1733_v46, %v1244_v32  ;;  %1804 = sbr.rel (!%p2557_p6) target bundleno = 714 (0x2ca), region = 132 }
 0x2bf   : > { %v1781_v30 = vpack.c.bf16 %v1765_v58, %v1764_v29 }
 0x2c0   : > { %v1897_v2 = vld [vmem:[%s2633_s24 + $0x70] sm:$0xff] (%p2557_p6) }
 0x2c1   : > { %1797 = vst [vmem:[%s2633_s24 + $0x78] sm:$0xff] %v1781_v30 }
 0x2c2   : > { %1898 = vst [vmem:[%s1810_s18 + $0xe0] sm:$0xff] %v1897_v2 }
 0x2c8   : > { %v1899_v8 = vld [vmem:[%s2633_s24 + $0x78] sm:$0xff] }
 0x2c9   : > { %1900 = vst [vmem:[%s1810_s18 + $0xf0] sm:$0xff] %v1899_v8 }
 0x2ca PF: > { %s17_s28 = sadd.s32 1, %s2475_s28   ;;  %s3507_s24 = smov %s2463_s25 }
 0x2cb   : > { %p14_p13 = scmp.ge.s32.totalorder %s17_s28, 4   ;;  %s3508_s25 = smov %s2562_s12 }
 0x2cc   : > { %s3509_s26 = smov %s2471_s27  ;;  %s3510_s27 = smov %s3512_s29 }
 0x2cd   :  { %16 = sbr.rel (!%p14_p13) target bundleno = 3 (0x3), region = 218 }

// kernel: warp_attn_forward.14
= control target key start
LH: loop header
LB: loop body
LE: loop exit
PB: predicated region body
PF: predicated region fallthrough
CT: control target
= control target key end

     0   :  { %vm23_vm0 = vcmask 7168   ;;  %v3486_v0 = vmov -1e+30   ;;  %v3487_v1 = vmov 0.0   ;;  %vm6312_vm1 = vcmask 523264   ;;  %s6227_s0 = inlined_call_operand.<no memory space> [shape: s32[1], index: 0, kind: input, shape index: {}]   ;;  %s6228_s1 = inlined_call_operand.vmem [shape: f32[1,128,3], index: 1, kind: input, shape index: {}]   ;;  %s6229_s2 = inlined_call_operand.vmem [shape: f32[1,3,128], index: 2, kind: input, shape index: {}]   ;;  %s6230_s3 = inlined_call_operand.vmem [shape: bf16[1,128,128], index: 3, kind: input, shape index: {}]   ;;  %s6231_s4 = inlined_call_operand.vmem [shape: bf16[1,128,256], index: 4, kind: input, shape index: {}]   ;;  %s6232_s5 = inlined_call_operand.vmem [shape: bf16[1,128,128], index: 5, kind: output, shape index: {}]  }
   0x1   :  { %24 = vst.msk [vmem:[#allocation2] sm:$0xff] %vm23_vm0, %v3486_v0  ;;  %p3087_p0 = scmp.eq.s32.totalorder %s6227_s0, 0 }
   0x2   :  { %25 = vst.msk [vmem:[#allocation2 + $0x8] sm:$0xff] %vm23_vm0, %v3486_v0 }
   0x3   :  { %26 = vst.msk [vmem:[#allocation2 + $0x10] sm:$0xff] %vm23_vm0, %v3486_v0 }
   0x4   :  { %27 = vst.msk [vmem:[#allocation2 + $0x18] sm:$0xff] %vm23_vm0, %v3486_v0 }
   0x5   :  { %28 = vst.msk [vmem:[#allocation2 + $0x20] sm:$0xff] %vm23_vm0, %v3486_v0 }
   0x6   :  { %29 = vst.msk [vmem:[#allocation2 + $0x28] sm:$0xff] %vm23_vm0, %v3486_v0 }
   0x7   :  { %30 = vst.msk [vmem:[#allocation2 + $0x30] sm:$0xff] %vm23_vm0, %v3486_v0 }
   0x8   :  { %31 = vst.msk [vmem:[#allocation2 + $0x38] sm:$0xff] %vm23_vm0, %v3486_v0 }
   0x9   :  { %32 = vst.msk [vmem:[#allocation2 + $0x40] sm:$0xff] %vm23_vm0, %v3486_v0 }
   0xa   :  { %33 = vst.msk [vmem:[#allocation2 + $0x48] sm:$0xff] %vm23_vm0, %v3486_v0 }
   0xb   :  { %34 = vst.msk [vmem:[#allocation2 + $0x50] sm:$0xff] %vm23_vm0, %v3486_v0 }
   0xc   :  { %35 = vst.msk [vmem:[#allocation2 + $0x58] sm:$0xff] %vm23_vm0, %v3486_v0 }
   0xd   :  { %36 = vst.msk [vmem:[#allocation2 + $0x60] sm:$0xff] %vm23_vm0, %v3486_v0 }
   0xe   :  { %37 = vst.msk [vmem:[#allocation2 + $0x68] sm:$0xff] %vm23_vm0, %v3486_v0 }
   0xf   :  { %38 = vst.msk [vmem:[#allocation2 + $0x70] sm:$0xff] %vm23_vm0, %v3486_v0 }
  0x10   :  { %39 = vst.msk [vmem:[#allocation2 + $0x78] sm:$0xff] %vm23_vm0, %v3486_v0 }
  0x11   :  { %40 = vst.msk [vmem:[#allocation2 + $0x80] sm:$0xff] %vm23_vm0, %v3486_v0 }
  0x12   :  { %41 = vst.msk [vmem:[#allocation2 + $0x88] sm:$0xff] %vm23_vm0, %v3486_v0 }
  0x13   :  { %42 = vst.msk [vmem:[#allocation2 + $0x90] sm:$0xff] %vm23_vm0, %v3486_v0 }
  0x14   :  { %43 = vst.msk [vmem:[#allocation2 + $0x98] sm:$0xff] %vm23_vm0, %v3486_v0 }
  0x15   :  { %44 = vst.msk [vmem:[#allocation2 + $0xa0] sm:$0xff] %vm23_vm0, %v3486_v0 }
  0x16   :  { %45 = vst.msk [vmem:[#allocation2 + $0xa8] sm:$0xff] %vm23_vm0, %v3486_v0 }
  0x17   :  { %46 = vst.msk [vmem:[#allocation2 + $0xb0] sm:$0xff] %vm23_vm0, %v3486_v0 }
  0x18   :  { %47 = vst.msk [vmem:[#allocation2 + $0xb8] sm:$0xff] %vm23_vm0, %v3486_v0 }
  0x19   :  { %48 = vst.msk [vmem:[#allocation2 + $0xc0] sm:$0xff] %vm23_vm0, %v3486_v0 }
  0x1a   :  { %49 = vst.msk [vmem:[#allocation2 + $0xc8] sm:$0xff] %vm23_vm0, %v3486_v0 }
  0x1b   :  { %50 = vst.msk [vmem:[#allocation2 + $0xd0] sm:$0xff] %vm23_vm0, %v3486_v0 }
  0x1c   :  { %51 = vst.msk [vmem:[#allocation2 + $0xd8] sm:$0xff] %vm23_vm0, %v3486_v0 }
  0x1d   :  { %52 = vst.msk [vmem:[#allocation2 + $0xe0] sm:$0xff] %vm23_vm0, %v3486_v0 }
  0x1e   :  { %53 = vst.msk [vmem:[#allocation2 + $0xe8] sm:$0xff] %vm23_vm0, %v3486_v0 }
  0x1f   :  { %54 = vst.msk [vmem:[#allocation2 + $0xf0] sm:$0xff] %vm23_vm0, %v3486_v0 }
  0x20   :  { %55 = vst.msk [vmem:[#allocation2 + $0xf8] sm:$0xff] %vm23_vm0, %v3486_v0 }
  0x21   :  { %56 = vst.msk [vmem:[#allocation3] sm:$0xff] %vm23_vm0, %v3487_v1 }
  0x22   :  { %57 = vst.msk [vmem:[#allocation3 + $0x8] sm:$0xff] %vm23_vm0, %v3487_v1 }
  0x23   :  { %58 = vst.msk [vmem:[#allocation3 + $0x10] sm:$0xff] %vm23_vm0, %v3487_v1 }
  0x24   :  { %59 = vst.msk [vmem:[#allocation3 + $0x18] sm:$0xff] %vm23_vm0, %v3487_v1 }
  0x25   :  { %60 = vst.msk [vmem:[#allocation3 + $0x20] sm:$0xff] %vm23_vm0, %v3487_v1 }
  0x26   :  { %61 = vst.msk [vmem:[#allocation3 + $0x28] sm:$0xff] %vm23_vm0, %v3487_v1 }
  0x27   :  { %62 = vst.msk [vmem:[#allocation3 + $0x30] sm:$0xff] %vm23_vm0, %v3487_v1 }
  0x28   :  { %63 = vst.msk [vmem:[#allocation3 + $0x38] sm:$0xff] %vm23_vm0, %v3487_v1 }
  0x29   :  { %64 = vst.msk [vmem:[#allocation3 + $0x40] sm:$0xff] %vm23_vm0, %v3487_v1 }
  0x2a   :  { %65 = vst.msk [vmem:[#allocation3 + $0x48] sm:$0xff] %vm23_vm0, %v3487_v1 }
  0x2b   :  { %66 = vst.msk [vmem:[#allocation3 + $0x50] sm:$0xff] %vm23_vm0, %v3487_v1 }
  0x2c   :  { %67 = vst.msk [vmem:[#allocation3 + $0x58] sm:$0xff] %vm23_vm0, %v3487_v1 }
  0x2d   :  { %68 = vst.msk [vmem:[#allocation3 + $0x60] sm:$0xff] %vm23_vm0, %v3487_v1 }
  0x2e   :  { %69 = vst.msk [vmem:[#allocation3 + $0x68] sm:$0xff] %vm23_vm0, %v3487_v1 }
  0x2f   :  { %70 = vst.msk [vmem:[#allocation3 + $0x70] sm:$0xff] %vm23_vm0, %v3487_v1 }
  0x30   :  { %71 = vst.msk [vmem:[#allocation3 + $0x78] sm:$0xff] %vm23_vm0, %v3487_v1 }
  0x31   :  { %72 = vst.msk [vmem:[#allocation3 + $0x80] sm:$0xff] %vm23_vm0, %v3487_v1 }
  0x32   :  { %73 = vst.msk [vmem:[#allocation3 + $0x88] sm:$0xff] %vm23_vm0, %v3487_v1 }
  0x33   :  { %74 = vst.msk [vmem:[#allocation3 + $0x90] sm:$0xff] %vm23_vm0, %v3487_v1 }
  0x34   :  { %75 = vst.msk [vmem:[#allocation3 + $0x98] sm:$0xff] %vm23_vm0, %v3487_v1 }
  0x35   :  { %76 = vst.msk [vmem:[#allocation3 + $0xa0] sm:$0xff] %vm23_vm0, %v3487_v1 }
  0x36   :  { %77 = vst.msk [vmem:[#allocation3 + $0xa8] sm:$0xff] %vm23_vm0, %v3487_v1 }
  0x37   :  { %78 = vst.msk [vmem:[#allocation3 + $0xb0] sm:$0xff] %vm23_vm0, %v3487_v1 }
  0x38   :  { %79 = vst.msk [vmem:[#allocation3 + $0xb8] sm:$0xff] %vm23_vm0, %v3487_v1 }
  0x39   :  { %80 = vst.msk [vmem:[#allocation3 + $0xc0] sm:$0xff] %vm23_vm0, %v3487_v1 }
  0x3a   :  { %81 = vst.msk [vmem:[#allocation3 + $0xc8] sm:$0xff] %vm23_vm0, %v3487_v1 }
  0x3b   :  { %82 = vst.msk [vmem:[#allocation3 + $0xd0] sm:$0xff] %vm23_vm0, %v3487_v1 }
  0x3c   :  { %83 = vst.msk [vmem:[#allocation3 + $0xd8] sm:$0xff] %vm23_vm0, %v3487_v1 }
  0x3d   :  { %84 = vst.msk [vmem:[#allocation3 + $0xe0] sm:$0xff] %vm23_vm0, %v3487_v1 }
  0x3e   :  { %85 = vst.msk [vmem:[#allocation3 + $0xe8] sm:$0xff] %vm23_vm0, %v3487_v1 }
  0x3f   :  { %86 = vst.msk [vmem:[#allocation3 + $0xf0] sm:$0xff] %vm23_vm0, %v3487_v1 }
  0x40   :  { %87 = vst.msk [vmem:[#allocation3 + $0xf8] sm:$0xff] %vm23_vm0, %v3487_v1 }
  0x41   :  { %89 = vst.msk [vmem:[#allocation4] sm:$0xff] %vm6312_vm1, %v3487_v1 }
  0x42   :  { %90 = vst.msk [vmem:[#allocation4 + $0x8] sm:$0xff] %vm6312_vm1, %v3487_v1 }
  0x43   :  { %91 = vst.msk [vmem:[#allocation4 + $0x10] sm:$0xff] %vm6312_vm1, %v3487_v1 }
  0x44   :  { %92 = vst.msk [vmem:[#allocation4 + $0x18] sm:$0xff] %vm6312_vm1, %v3487_v1 }
  0x45   :  { %93 = vst.msk [vmem:[#allocation4 + $0x20] sm:$0xff] %vm6312_vm1, %v3487_v1 }
  0x46   :  { %94 = vst.msk [vmem:[#allocation4 + $0x28] sm:$0xff] %vm6312_vm1, %v3487_v1 }
  0x47   :  { %95 = vst.msk [vmem:[#allocation4 + $0x30] sm:$0xff] %vm6312_vm1, %v3487_v1 }
  0x48   :  { %96 = vst.msk [vmem:[#allocation4 + $0x38] sm:$0xff] %vm6312_vm1, %v3487_v1 }
  0x49   :  { %97 = vst.msk [vmem:[#allocation4 + $0x40] sm:$0xff] %vm6312_vm1, %v3487_v1 }
  0x4a   :  { %98 = vst.msk [vmem:[#allocation4 + $0x48] sm:$0xff] %vm6312_vm1, %v3487_v1 }
  0x4b   :  { %99 = vst.msk [vmem:[#allocation4 + $0x50] sm:$0xff] %vm6312_vm1, %v3487_v1 }
  0x4c   :  { %100 = vst.msk [vmem:[#allocation4 + $0x58] sm:$0xff] %vm6312_vm1, %v3487_v1 }
  0x4d   :  { %101 = vst.msk [vmem:[#allocation4 + $0x60] sm:$0xff] %vm6312_vm1, %v3487_v1 }
  0x4e   :  { %102 = vst.msk [vmem:[#allocation4 + $0x68] sm:$0xff] %vm6312_vm1, %v3487_v1 }
  0x4f   :  { %103 = vst.msk [vmem:[#allocation4 + $0x70] sm:$0xff] %vm6312_vm1, %v3487_v1 }
  0x50   :  { %104 = vst.msk [vmem:[#allocation4 + $0x78] sm:$0xff] %vm6312_vm1, %v3487_v1 }
  0x51   :  { %105 = vst.msk [vmem:[#allocation4 + $0x80] sm:$0xff] %vm6312_vm1, %v3487_v1 }
  0x52   :  { %106 = vst.msk [vmem:[#allocation4 + $0x88] sm:$0xff] %vm6312_vm1, %v3487_v1 }
  0x53   :  { %107 = vst.msk [vmem:[#allocation4 + $0x90] sm:$0xff] %vm6312_vm1, %v3487_v1 }
  0x54   :  { %108 = vst.msk [vmem:[#allocation4 + $0x98] sm:$0xff] %vm6312_vm1, %v3487_v1 }
  0x55   :  { %109 = vst.msk [vmem:[#allocation4 + $0xa0] sm:$0xff] %vm6312_vm1, %v3487_v1 }
  0x56   :  { %110 = vst.msk [vmem:[#allocation4 + $0xa8] sm:$0xff] %vm6312_vm1, %v3487_v1 }
  0x57   :  { %111 = vst.msk [vmem:[#allocation4 + $0xb0] sm:$0xff] %vm6312_vm1, %v3487_v1 }
  0x58   :  { %112 = vst.msk [vmem:[#allocation4 + $0xb8] sm:$0xff] %vm6312_vm1, %v3487_v1 }
  0x59   :  { %113 = vst.msk [vmem:[#allocation4 + $0xc0] sm:$0xff] %vm6312_vm1, %v3487_v1 }
  0x5a   :  { %114 = vst.msk [vmem:[#allocation4 + $0xc8] sm:$0xff] %vm6312_vm1, %v3487_v1 }
  0x5b   :  { %115 = vst.msk [vmem:[#allocation4 + $0xd0] sm:$0xff] %vm6312_vm1, %v3487_v1 }
  0x5c   :  { %116 = vst.msk [vmem:[#allocation4 + $0xd8] sm:$0xff] %vm6312_vm1, %v3487_v1  ;;  %127 = sbr.rel (%p3087_p0) target bundleno = 1599 (0x63f), region = 25 }
  0x5d   :  { %117 = vst.msk [vmem:[#allocation4 + $0xe0] sm:$0xff] %vm6312_vm1, %v3487_v1 }
  0x5e   :  { %118 = vst.msk [vmem:[#allocation4 + $0xe8] sm:$0xff] %vm6312_vm1, %v3487_v1 }
  0x5f   :  { %119 = vst.msk [vmem:[#allocation4 + $0xf0] sm:$0xff] %vm6312_vm1, %v3487_v1 }
  0x60   :  { %120 = vst.msk [vmem:[#allocation4 + $0xf8] sm:$0xff] %vm6312_vm1, %v3487_v1 }
  0x61   :  { %v3690_v2 = vld [vmem:[%s6228_s1 + $0x20] sm:$0xff]  ;;  %v3695_v3 = vld [vmem:[%s6228_s1 + $0x10] sm:$0xff]  ;;  %v3488_v5 = vmov 1   ;;  %v3489_v6 = vmov 0   ;;  %v3271_v7 = vld [vmem:[%s6231_s4 + $0x74] sm:$0xf0] }
  0x62   :  { %v3150_v4 = vld [vmem:[%s6231_s4 + $0x70] sm:$0xf]  ;;  %3284 = vset.pattern.permute.xlu0 %v3488_v5  ;;  %3281 = vset.pattern.permute.xlu2 %v3489_v6  ;;  %v3146_v9 = vld [vmem:[%s6231_s4 + $0x60] sm:$0xf]  ;;  %v3269_v10 = vld [vmem:[%s6231_s4 + $0x64] sm:$0xf0] }
  0x63   :  { %3280 = vset.pattern.permute.xlu1 %v3489_v6  ;;  %167 = vperm.xlu2 %3281, %v3690_v2   ;;  %v3706_v8 = vor.u32 %v3271_v7, %v3150_v4  ;;  %v3718_v12 = vor.u32 %v3269_v10, %v3146_v9  ;;  %v3723_v13 = vld [vmem:[%s6228_s1 + $0x28] sm:$0xff]  ;;  %v3728_v14 = vld [vmem:[%s6228_s1 + $0x38] sm:$0xff]  ;;  %v3142_v17 = vld [vmem:[%s6231_s4 + $0x50] sm:$0xf]  ;;  %v3490_v35 = vmov 2   ;;  %s3491_s13 = smov 64  }
  0x64   :  { %251 = vperm.xlu0 %3284, %v3695_v3   ;;  %157 = vperm.xlu1 %3280, %v3695_v3   ;;  %v3733_v15 = vld [vmem:[%s6228_s1 + $0x18] sm:$0xff]  ;;  %v136_v20 = vld [vmem:[%s6228_s1 + $0x40] sm:$0xff]  ;;  %v3754_v21 = vld [vmem:[%s6228_s1 + $0x50] sm:$0xff] }
  0x65   :  { %v611_v11 = vsel %vm6312_vm1, %v3706_v8, 0  ;;  %v608_v16 = vsel %vm6312_vm1, %v3718_v12, 0  ;;  %v3267_v18 = vld [vmem:[%s6231_s4 + $0x54] sm:$0xf0]  ;;  %v3138_v23 = vld [vmem:[%s6231_s4 + $0x40] sm:$0xf] }
  0x66   :  { %613 = vmatpush.bf16.xpose.msra.mxu0 %v611_v11  ;;  %v3746_v19 = vor.u32 %v3267_v18, %v3142_v17  ;;  %v3265_v24 = vld [vmem:[%s6231_s4 + $0x44] sm:$0xf0]  ;;  %v139_v26 = vld [vmem:[%s6228_s1 + $0x58] sm:$0xff]  ;;  %v3134_v29 = vld [vmem:[%s6231_s4 + $0x30] sm:$0xf] }
  0x67   :  { %v3766_v25 = vor.u32 %v3265_v24, %v3138_v23  ;;  %v3774_v27 = vld [vmem:[%s6228_s1 + $0x68] sm:$0xff]  ;;  %v3263_v30 = vld [vmem:[%s6231_s4 + $0x34] sm:$0xf0]  ;;  %v142_v32 = vld [vmem:[%s6228_s1 + $0x70] sm:$0xff] }
  0x68   :  { %v605_v22 = vsel %vm6312_vm1, %v3746_v19, 0  ;;  %v3786_v31 = vor.u32 %v3263_v30, %v3134_v29  ;;  %v128_v33 = vld [vmem:[%s6228_s1] sm:$0xff]  ;;  %v3261_v37 = vld [vmem:[%s6231_s4 + $0x24] sm:$0xf0]  ;;  %v3126_v41 = vld [vmem:[%s6231_s4 + $0x10] sm:$0xf] }
  0x69   :  { %v602_v28 = vsel %vm6312_vm1, %v3766_v25, 0  ;;  %v3130_v36 = vld [vmem:[%s6231_s4 + $0x20] sm:$0xf]  ;;  %v129_v39 = vld [vmem:[%s6228_s1 + $0x8] sm:$0xff]  ;;  %v3259_v42 = vld [vmem:[%s6231_s4 + $0x14] sm:$0xf0] }
  0x6a   :  { %v599_v34 = vsel %vm6312_vm1, %v3786_v31, 0  ;;  %v3803_v38 = vor.u32 %v3261_v37, %v3130_v36  ;;  %v3817_v43 = vor.u32 %v3259_v42, %v3126_v41  ;;  %v3122_v45 = vld [vmem:[%s6231_s4] sm:$0xf]  ;;  %v3257_v46 = vld [vmem:[%s6231_s4 + $0x4] sm:$0xf0]  ;;  %v134_v48 = vld [vmem:[%s6228_s1 + $0x30] sm:$0xff] }
  0x6b   :  { %172 = vperm.xlu2 %3281, %v3723_v13   ;;  %v3829_v47 = vor.u32 %v3257_v46, %v3122_v45  ;;  %v3840_v50 = vld [vmem:[%s6230_s3] sm:$0xff]  ;;  %v137_v51 = vld [vmem:[%s6228_s1 + $0x48] sm:$0xff]  ;;  %v143_v54 = vld [vmem:[%s6228_s1 + $0x78] sm:$0xff] }
  0x6c   :  { %271 = vperm.xlu0 %3284, %v3728_v14   ;;  %162 = vperm.xlu1 %3280, %v3733_v15   ;;  %v596_v40 = vsel %vm6312_vm1, %v3803_v38, 0  ;;  %v593_v44 = vsel %vm6312_vm1, %v3817_v43, 0  ;;  %v140_v52 = vld [vmem:[%s6228_s1 + $0x60] sm:$0xff]  ;;  %v3854_v53 = vld [vmem:[%s6230_s3 + $0x8] sm:$0xff]  ;;  %v3867_v56 = vld [vmem:[%s6230_s3 + $0x10] sm:$0xff] }
  0x6d   :  { %v590_v49 = vsel %vm6312_vm1, %v3829_v47, 0  ;;  %v3881_v59 = vld [vmem:[%s6230_s3 + $0x18] sm:$0xff]  ;;  %v3931_v9 = vld [vmem:[%s6230_s3 + $0x28] sm:$0xff] }
  0x6e   :  { %614 = vmatpush.bf16.xpose.msra.mxu0 %v608_v16 }
  0x73   :  { %187 = vperm.xlu2 %3281, %v136_v20  }
  0x74   :  { %283 = vperm.xlu0 %3284, %v3754_v21   ;;  %182 = vperm.xlu1 %3280, %v3728_v14  }
  0x76   :  { %615 = vmatpush.bf16.xpose.msra.mxu0 %v605_v22 }
  0x7b   :  { %202 = vperm.xlu2 %3281, %v139_v26  }
  0x7c   :  { %295 = vperm.xlu0 %3284, %v3774_v27   ;;  %197 = vperm.xlu1 %3280, %v3754_v21  }
  0x7e   :  { %616 = vmatpush.bf16.xpose.msra.mxu0 %v602_v28 }
  0x83   :  { %217 = vperm.xlu2 %3281, %v142_v32  }
  0x84   :  { %3285 = vset.pattern.permute.xlu0 %v3490_v35  ;;  %212 = vperm.xlu1 %3280, %v3774_v27  }
  0x85   :  { %340 = vperm.xlu0 %3285, %v128_v33  }
  0x86   :  { %617 = vmatpush.bf16.xpose.msra.mxu0 %v599_v34 }
  0x8b   :  { %3283 = vset.pattern.permute.xlu2 %v3488_v5 }
  0x8c   :  { %3282 = vset.pattern.permute.xlu1 %v3488_v5  ;;  %247 = vperm.xlu2 %3283, %v129_v39  }
  0x8d   :  { %360 = vperm.xlu0 %3285, %v3723_v13   ;;  %243 = vperm.xlu1 %3282, %v128_v33  }
  0x8e   :  { %618 = vmatpush.bf16.xpose.msra.mxu0 %v596_v40 }
  0x94   :  { %259 = vperm.xlu2 %3283, %v3690_v2  }
  0x95   :  { %372 = vperm.xlu0 %3285, %v136_v20   ;;  %255 = vperm.xlu1 %3282, %v3733_v15  }
  0x96   :  { %619 = vmatpush.bf16.xpose.msra.mxu0 %v593_v44 }
  0x9c   :  { %267 = vperm.xlu2 %3283, %v134_v48  }
  0x9d   :  { %384 = vperm.xlu0 %3285, %v139_v26   ;;  %263 = vperm.xlu1 %3282, %v3723_v13  }
  0x9e   :  { %620 = vmatpush.bf16.xpose.msra.mxu0 %v590_v49 }
  0xa4   :  { %279 = vperm.xlu2 %3283, %v137_v51  }
  0xa5   :  { %3152 = vmatmul.msk.bf16.vlgmr.msra.gmra.mxu0 %vm6312_vm1, %v3840_v50  ;;  %396 = vperm.xlu0 %3285, %v142_v32  }
  0xa6   :  { %275 = vperm.xlu1 %3282, %v136_v20  }
  0xac   :  { %291 = vperm.xlu2 %3283, %v140_v52  }
  0xad   :  { %3288 = vset.pattern.permute.xlu0 %v3489_v6 }
  0xae   :  { %287 = vperm.xlu1 %3282, %v139_v26   ;;  %147 = vperm.xlu0 %3288, %v128_v33  }
  0xb4   :  { %303 = vperm.xlu2 %3283, %v143_v54  }
  0xb5   :  { %3153 = vmatmul.msk.bf16.gmra.mxu0 %vm6312_vm1, %v3854_v53 }
  0xb6   :  { %299 = vperm.xlu1 %3282, %v142_v32   ;;  %152 = vperm.xlu0 %3288, %v129_v39  }
  0xbc   :  { %3287 = vset.pattern.permute.xlu2 %v3490_v35 }
  0xbd   :  { %v3861_v55 = vpop.permute.xlu2 %167  ;;  %348 = vperm.xlu2 %3287, %v3695_v3  }
  0xbe   :  { %3286 = vset.pattern.permute.xlu1 %v3490_v35  ;;  %177 = vperm.xlu0 %3288, %v134_v48  }
  0xbf   :  { %344 = vperm.xlu1 %3286, %v129_v39  }
  0xc5   :  { %3154 = vmatmul.msk.bf16.gmra.mxu0 %vm6312_vm1, %v3867_v56  ;;  %v3871_v57 = vpop.permute.xlu2 %172  ;;  %356 = vperm.xlu2 %3287, %v3690_v2   ;;  %v3904_v2 = vld [vmem:[%s6230_s3 + $0x20] sm:$0xff] }
  0xc6   :  { %192 = vperm.xlu0 %3288, %v137_v51  }
  0xc7   :  { %352 = vperm.xlu1 %3286, %v3733_v15   ;;  %v3952_v15 = vld [vmem:[%s6230_s3 + $0x30] sm:$0xff] }
  0xcd   :  { %v3875_v58 = vpop.permute.xlu2 %187  ;;  %368 = vperm.xlu2 %3287, %v3728_v14  }
  0xce   :  { %207 = vperm.xlu0 %3288, %v140_v52  }
  0xcf   :  { %364 = vperm.xlu1 %3286, %v134_v48  }
  0xd5   :  { %3155 = vmatmul.msk.bf16.gmra.mxu0 %vm6312_vm1, %v3881_v59  ;;  %v3885_v60 = vpop.permute.xlu2 %202  ;;  %380 = vperm.xlu2 %3287, %v3754_v21   ;;  %v3969_v21 = vld [vmem:[%s6230_s3 + $0x38] sm:$0xff] }
  0xd6   :  { %v3888_v61 = vpop.permute.xlu0 %251  ;;  %v3890_v62 = vpop.permute.xlu1 %157  ;;  %222 = vperm.xlu0 %3288, %v143_v54  }
  0xd7   :  { %376 = vperm.xlu1 %3286, %v137_v51  }
  0xdd   :  { %392 = vperm.xlu2 %3287, %v3774_v27   ;;  %v3899_v1 = vpop.permute.xlu2 %217 }
  0xde   :  { %v3893_v63 = vpop.permute.xlu0 %271  ;;  %v3895_v0 = vpop.permute.xlu1 %162  ;;  %1310 = vrot.lane.b32.xlu0 %v3706_v8, %s3491_s13 }
  0xdf   :  { %388 = vperm.xlu1 %3286, %v140_v52  }
  0xe5   :  { %3156 = vmatmul.msk.bf16.gmra.mxu0 %vm6312_vm1, %v3904_v2  ;;  %1308 = vrot.lane.b32.xlu2 %v3718_v12, %s3491_s13 }
  0xe6   :  { %v3910_v3 = vpop.permute.xlu0 %283  ;;  %v3912_v4 = vpop.permute.xlu1 %182  ;;  %1304 = vrot.lane.b32.xlu0 %v3766_v25, %s3491_s13  ;;  %3289 = vset.pattern.permute.xlu2 %v3489_v6  ;;  %v144_v25 = vld [vmem:[%s6229_s2] sm:$0x7] }
  0xe7   :  { %400 = vperm.xlu1 %3286, %v143_v54   ;;  %v248_v5 = vpop.permute.xlu2 %247  ;;  %v3984_v27 = vperm.slane %v144_v25, 0  ;;  %v3986_v28 = vperm.slane %v144_v25, 1  ;;  %v3988_v29 = vperm.slane %v144_v25, 2 }
  0xe9   :  { %v309_v39 = vmul.f32 %v3986_v28, %v3888_v61  ;;  %v228_v40 = vmul.f32 %v3984_v27, %v3890_v62  ;;  %v308_v49 = vmul.f32 %v3986_v28, %v248_v5 }
  0xeb   :  { %v325_v46 = vadd.f32 %v309_v39, %v228_v40 }
  0xed   :  { %1302 = vrot.lane.b32.xlu2 %v3786_v31, %s3491_s13 }
  0xee   :  { %v3919_v7 = vpop.permute.xlu0 %295  ;;  %v3921_v8 = vpop.permute.xlu1 %197  ;;  %1300 = vrot.lane.b32.xlu0 %v3803_v38, %s3491_s13 }
  0xef   :  { %1306 = vrot.lane.b32.xlu1 %v3746_v19, %s3491_s13  ;;  %v3933_v10 = vpop.permute.xlu2 %259 }
  0xf0   :  { %3290 = vset.pattern.permute.xlu1 %v3489_v6 }
  0xf5   :  { %3157 = vmatmul.msk.bf16.gmra.mxu0 %vm6312_vm1, %v3931_v9  ;;  %1298 = vrot.lane.b32.xlu2 %v3817_v43, %s3491_s13 }
  0xf6   :  { %v3939_v11 = vpop.permute.xlu1 %212 }
  0xf7   :  { %v341_v12 = vpop.permute.xlu0 %340  ;;  %1296 = vrot.lane.b32.xlu1 %v3829_v47, %s3491_s13  ;;  %v3945_v6 = vpop.permute.xlu2 %267 }
  0xf8   :  { %v404_v35 = vmul.f32 %v3988_v29, %v341_v12 }
  0xfd   :  { %1280 = vrot.lane.b32.xlu2 %v3840_v50, %s3491_s13 }
  0xff   :  { %v3947_v13 = vpop.permute.xlu0 %360  ;;  %v244_v14 = vpop.permute.xlu1 %243 }
 0x100   :  { %v3958_v17 = vpop.permute.xlu2 %279  ;;  %v307_v32 = vmul.f32 %v3986_v28, %v244_v14 }
 0x105   :  { %3158 = vmatmul.msk.bf16.gmra.mxu0 %vm6312_vm1, %v3952_v15 }
 0x107   :  { %v3956_v16 = vpop.permute.xlu0 %372  ;;  %v3960_v18 = vpop.permute.xlu1 %255 }
 0x108   :  { %v3971_v22 = vpop.permute.xlu2 %291 }
 0x10f   :  { %v3962_v19 = vpop.permute.xlu0 %384  ;;  %v3964_v20 = vpop.permute.xlu1 %263 }
 0x110   :  { %v3982_v26 = vpop.permute.xlu2 %303 }
 0x115   :  { %3159 = vmatmul.msk.bf16.gmra.mxu0 %vm6312_vm1, %v3969_v21 }
 0x117   :  { %v3975_v23 = vpop.permute.xlu0 %396 }
 0x118   :  { %v3977_v24 = vpop.permute.xlu1 %275  ;;  %v349_v38 = vpop.permute.xlu2 %348 }
 0x119   :  { %v406_v44 = vmul.f32 %v3988_v29, %v349_v38 }
 0x11b   :  { %v4010_v47 = vadd.f32 %v406_v44, %v325_v46 }
 0x11d   :  { %6315 = vst [vmem:[#allocation9_spill] sm:$0xff] %v4010_v47  ;;  %vm6281_vm3 = vcmp.gt.f32.partialorder %v4010_v47, 0.5 }
 0x120   :  { %v3990_v30 = vpop.permute.xlu1 %287  ;;  %v148_v31 = vpop.permute.xlu0 %147 }
 0x121   :  { %v226_v33 = vmul.f32 %v3984_v27, %v148_v31  ;;  %v4014_v50 = vpop.permute.xlu2 %356 }
 0x122   :  { %v622_v34 = vpop.f32.mrf.mxu0 }
 0x123   :  { %v323_v36 = vadd.f32 %v307_v32, %v226_v33 }
 0x125   :  { %v3995_v37 = vadd.f32 %v404_v35, %v323_v36 }
 0x127   :  { %6313 = vst [vmem:[#allocation7_spill] sm:$0xff] %v3995_v37  ;;  %vm6286_vm2 = vcmp.gt.f32.partialorder %v3995_v37, 0.5 }
 0x128   :  { %v4002_v41 = vpop.permute.xlu1 %299  ;;  %v153_v42 = vpop.permute.xlu0 %152  ;;  %v4006_v43 = vsel %vm6286_vm2, %v622_v34, -1e+30 }
 0x129   :  { %6314 = vst [vmem:[#allocation8_spill] sm:$0xff] %v4006_v43  ;;  %694 = vmax.xlane.f32.xlu2 %v4006_v43  ;;  %v227_v48 = vmul.f32 %v3984_v27, %v153_v42  ;;  %v4033_v32 = vpop.permute.xlu2 %368 }
 0x12a   :  { %v624_v45 = vpop.f32.mrf.mxu0 }
 0x12b   :  { %v324_v54 = vadd.f32 %v308_v49, %v227_v48 }
 0x130   :  { %v178_v51 = vpop.permute.xlu0 %177 }
 0x131   :  { %v345_v52 = vpop.permute.xlu1 %344  ;;  %v4041_v38 = vpop.permute.xlu2 %380 }
 0x132   :  { %v405_v61 = vmul.f32 %v3988_v29, %v345_v52  ;;  %v627_v62 = vpop.f32.mrf.mxu0 }
 0x133   :  { %v4020_v12 = vsel %vm6281_vm3, %v627_v62, -1e+30  ;;  %v310_v62 = vmul.f32 %v3986_v28, %v3960_v18  ;;  %v232_v18 = vmul.f32 %v3984_v27, %v178_v51 }
 0x134   :  { %6316 = vst [vmem:[#allocation10_spill] sm:$0xff] %v4020_v12  ;;  %v4022_v14 = vadd.f32 %v405_v61, %v324_v54  ;;  %698 = vmax.xlane.f32.xlu1 %v4020_v12 }
 0x136   :  { %6317 = vst [vmem:[#allocation11_spill] sm:$0xff] %v4022_v14  ;;  %vm6280_vm4 = vcmp.gt.f32.partialorder %v4022_v14, 0.5 }
 0x137   :  { %v4028_v5 = vsel %vm6280_vm4, %v624_v45, -1e+30 }
 0x138   :  { %6318 = vst [vmem:[#allocation12_spill] sm:$0xff] %v4028_v5  ;;  %696 = vmax.xlane.f32.xlu0 %v4028_v5  ;;  %v4031_v25 = vpop.permute.xlu0 %192  ;;  %v231_v5 = vmul.f32 %v3984_v27, %v3871_v57  ;;  %v315_v57 = vmul.f32 %v3986_v28, %v3977_v24 }
 0x139   :  { %v353_v31 = vpop.permute.xlu1 %352  ;;  %v4053_v44 = vpop.permute.xlu2 %392 }
 0x13a   :  { %v629_v33 = vpop.f32.mrf.mxu0 }
 0x140   :  { %v4035_v34 = vpop.permute.xlu0 %207 }
 0x141   :  { %v365_v35 = vpop.permute.xlu1 %364  ;;  %1282 = vrot.lane.b32.xlu2 %v3854_v53, %s3491_s13  ;;  %v1309_v49 = vpop.permute.xlu2 %1308 }
 0x142   :  { %v4039_v36 = vpop.f32.mrf.mxu0 }
 0x148   :  { %v4043_v39 = vpop.permute.xlu0 %222 }
 0x149   :  { %v4045_v40 = vpop.permute.xlu1 %376  ;;  %1284 = vrot.lane.b32.xlu2 %v3867_v56, %s3491_s13  ;;  %v1355_v56 = vsel %vm6312_vm1, %v1309_v49, 0  ;;  %v312_v49 = vmul.f32 %v3986_v28, %v3964_v20  ;;  %v311_v20 = vmul.f32 %v3986_v28, %v3933_v10  ;;  %v1303_v51 = vpop.permute.xlu2 %1302  ;;  %v234_v10 = vmul.f32 %v3984_v27, %v3875_v58 }
 0x14a   :  { %v634_v42 = vpop.f32.mrf.mxu0  ;;  %v412_v58 = vmul.f32 %v3988_v29, %v3956_v16 }
 0x14b   :  { %v328_v47 = vadd.f32 %v312_v49, %v231_v5  ;;  %v230_v5 = vmul.f32 %v3984_v27, %v3861_v55  ;;  %v1346_v55 = vsel %vm6312_vm1, %v1303_v51, 0  ;;  %v233_v49 = vmul.f32 %v3984_v27, %v3912_v4 }
 0x14c   :  { %1286 = vrot.lane.b32.xlu0 %v3881_v59, %s3491_s13  ;;  %v411_v4 = vmul.f32 %v3988_v29, %v4033_v32 }
 0x14d   :  { %1288 = vrot.lane.b32.xlu1 %v3904_v2, %s3491_s13  ;;  %v327_v24 = vadd.f32 %v311_v20, %v230_v5 }
 0x150   :  { %v1311_v53 = vpop.permute.xlu0 %1310 }
 0x151   :  { %v4055_v45 = vpop.permute.xlu1 %388  ;;  %v1358_v46 = vsel %vm6312_vm1, %v1311_v53, 0  ;;  %v229_v53 = vmul.f32 %v3984_v27, %v3895_v0  ;;  %v313_v0 = vmul.f32 %v3986_v28, %v3945_v6  ;;  %v408_v6 = vmul.f32 %v3988_v29, %v4014_v50 }
 0x152   :  { %v637_v48 = vpop.f32.mrf.mxu0  ;;  %1360 = vmatpush.bf16.xpose.msra.mxu2 %v1358_v46  ;;  %v407_v46 = vmul.f32 %v3988_v29, %v353_v31  ;;  %v410_v31 = vmul.f32 %v3988_v29, %v365_v35 }
 0x153   :  { %v326_v43 = vadd.f32 %v310_v62, %v229_v53  ;;  %v4108_v50 = vadd.f32 %v408_v6, %v327_v24  ;;  %v321_v6 = vmul.f32 %v3986_v28, %v4002_v41 }
 0x155   :  { %6320 = vst [vmem:[#allocation14_spill] sm:$0xff] %v4108_v50  ;;  %vm6282_vm8 = vcmp.gt.f32.partialorder %v4108_v50, 0.5 }
 0x158   :  { %v1305_v12 = vpop.permute.xlu0 %1304 }
 0x159   :  { %v4058_v52 = vpop.permute.xlu1 %400 }
 0x15a   :  { %v4061_v54 = vpop.f32.mrf.mxu0  ;;  %1361 = vmatpush.bf16.xpose.msra.mxu2 %v1355_v56  ;;  %v1349_v56 = vsel %vm6312_vm1, %v1305_v12, 0  ;;  %v409_v12 = vmul.f32 %v3988_v29, %v3947_v13 }
 0x15c   :  { %v4091_v62 = vadd.f32 %v409_v12, %v328_v47  ;;  %v331_v47 = vadd.f32 %v315_v57, %v234_v10 }
 0x15e   :  { %vm6283_vm6 = vcmp.gt.f32.partialorder %v4091_v62, 0.5  ;;  %v4126_v16 = vadd.f32 %v412_v58, %v331_v47  ;;  %v418_v47 = vmul.f32 %v3988_v29, %v3975_v23  ;;  %v4193_v23 = vld [vmem:[#allocation2] sm:$0xff] }
 0x160   :  { %vm6287_vm9 = vcmp.gt.f32.partialorder %v4126_v16, 0.5 }
 0x161   :  { %v1307_v59 = vpop.permute.xlu1 %1306 }
 0x162   :  { %v642_v61 = vpop.f32.mrf.mxu0  ;;  %v1352_v2 = vsel %vm6312_vm1, %v1307_v59, 0  ;;  %v4074_v59 = vadd.f32 %v407_v46, %v326_v43  ;;  %v329_v43 = vadd.f32 %v313_v0, %v232_v18  ;;  %v1301_v46 = vpop.permute.xlu0 %1300  ;;  %v314_v18 = vmul.f32 %v3986_v28, %v3893_v63 }
 0x163   :  { %1362 = vmatpush.bf16.xpose.msra.mxu2 %v1352_v2  ;;  %v1343_v0 = vsel %vm6312_vm1, %v1301_v46, 0  ;;  %v237_v63 = vmul.f32 %v3984_v27, %v3885_v60  ;;  %v4148_v32 = vsel %vm6287_vm9, %v642_v61, -1e+30  ;;  %v1299_v60 = vpop.permute.xlu2 %1298 }
 0x164   :  { %vm6285_vm5 = vcmp.gt.f32.partialorder %v4074_v59, 0.5  ;;  %v4097_v35 = vadd.f32 %v410_v31, %v329_v43  ;;  %v330_v31 = vadd.f32 %v314_v18, %v233_v49  ;;  %v1340_v61 = vsel %vm6312_vm1, %v1299_v60, 0 }
 0x165   :  { %v4101_v13 = vsel %vm6285_vm5, %v629_v33, -1e+30  ;;  %v4115_v33 = vsel %vm6283_vm6, %v634_v42, -1e+30  ;;  %v318_v42 = vmul.f32 %v3986_v28, %v3990_v30 }
 0x166   :  { %6319 = vst [vmem:[#allocation13_spill] sm:$0xff] %v4097_v35  ;;  %vm6284_vm7 = vcmp.gt.f32.partialorder %v4097_v35, 0.5  ;;  %v4144_v12 = vadd.f32 %v411_v4, %v330_v31 }
 0x167   :  { %v334_v30 = vadd.f32 %v318_v42, %v237_v63  ;;  %v4203_v42 = vld [vmem:[#allocation2 + $0x10] sm:$0xff] }
 0x168   :  { %6321 = vst [vmem:[#allocation15_spill] sm:$0xff] %v4144_v12  ;;  %vm443_vm10 = vcmp.gt.f32.partialorder %v4144_v12, 0.5 }
 0x169   :  { %v4159_v43 = vsel %vm443_vm10, %v4061_v54, -1e+30  ;;  %v1297_v5 = vpop.permute.xlu1 %1296  ;;  %v240_v54 = vmul.f32 %v3984_v27, %v3899_v1 }
 0x16a   :  { %v4076_v2 = vpop.f32.mrf.mxu0  ;;  %v1337_v10 = vsel %vm6312_vm1, %v1297_v5, 0 }
 0x16b   :  { %1363 = vmatpush.bf16.xpose.msra.mxu2 %v1349_v56  ;;  %v4122_v56 = vsel %vm6284_vm7, %v637_v48, -1e+30  ;;  %v4138_v48 = vsel %vm6282_vm8, %v4039_v36, -1e+30  ;;  %v415_v36 = vmul.f32 %v3988_v29, %v3962_v19  ;;  %v337_v24 = vadd.f32 %v321_v6, %v240_v54  ;;  %v1281_v41 = vpop.permute.xlu2 %1280 }
 0x16c   :  { %v319_v6 = vmul.f32 %v3986_v28, %v3971_v22  ;;  %v236_v22 = vmul.f32 %v3984_v27, %v3921_v8 }
 0x16d   :  { %v4153_v57 = vadd.f32 %v415_v36, %v334_v30  ;;  %v4180_v58 = vadd.f32 %v418_v47, %v337_v24  ;;  %v316_v30 = vmul.f32 %v3986_v28, %v3958_v17  ;;  %v413_v36 = vmul.f32 %v3988_v29, %v4045_v40 }
 0x16e   :  { %v416_v17 = vmul.f32 %v3988_v29, %v4055_v45  ;;  %v322_v24 = vmul.f32 %v3986_v28, %v3982_v26  ;;  %v419_v45 = vmul.f32 %v3988_v29, %v4058_v52  ;;  %v414_v47 = vmul.f32 %v3988_v29, %v4041_v38 }
 0x16f   :  { %vm447_vm11 = vcmp.gt.f32.partialorder %v4153_v57, 0.5  ;;  %6322 = vst [vmem:[#allocation16_spill] sm:$0xff] %v4180_v58  ;;  %vm6238_vm12 = vcmp.gt.f32.partialorder %v4180_v58, 0.5  ;;  %v239_v38 = vmul.f32 %v3984_v27, %v3939_v11  ;;  %v320_v52 = vmul.f32 %v3986_v28, %v3919_v7 }
 0x172   :  { %v4103_v53 = vpop.f32.mrf.mxu0  ;;  %700 = vmax.xlane.f32.xlu2 %v4101_v13 }
 0x173   :  { %1364 = vmatpush.bf16.xpose.msra.mxu2 %v1346_v55 }
 0x176   :  { %704 = vmax.xlane.f32.xlu0 %v4115_v33 }
 0x177   :  { %706 = vmax.xlane.f32.xlu1 %v4122_v56 }
 0x17a   :  { %v649_v20 = vpop.f32.mrf.mxu0  ;;  %702 = vmax.xlane.f32.xlu2 %v4138_v48 }
 0x17b   :  { %1365 = vmatpush.bf16.xpose.msra.mxu2 %v1343_v0  ;;  %v4168_v19 = vsel %vm447_vm11, %v649_v20, -1e+30  ;;  %v4208_v0 = vld [vmem:[#allocation2 + $0x8] sm:$0xff]  ;;  %v3260_v20 = vld [vmem:[%s6231_s4 + $0x24] sm:$0xf] }
 0x17e   :  { %710 = vmax.xlane.f32.xlu0 %v4148_v32 }
 0x182   :  { %v4161_v51 = vpop.f32.mrf.mxu0  ;;  %708 = vmax.xlane.f32.xlu2 %v4159_v43 }
 0x183   :  { %1366 = vmatpush.bf16.xpose.msra.mxu2 %v1340_v61 }
 0x186   :  { %716 = vmax.xlane.f32.xlu0 %v4168_v19 }
 0x18a   :  { %v4176_v55 = vpop.f32.mrf.mxu0 }
 0x18b   :  { %1367 = vmatpush.bf16.xpose.msra.mxu2 %v1337_v10 }
 0x190   :  { %1292 = vrot.lane.b32.xlu1 %v3952_v15, %s3491_s13 }
 0x192   :  { %3216 = vmatmul.msk.bf16.vlgmr.msra.gmra.mxu2 %vm6312_vm1, %v1281_v41  ;;  %v657_v1 = vpop.f32.mrf.mxu0 }
 0x193   :  { %v4188_v46 = vsel %vm6238_vm12, %v657_v1, -1e+30 }
 0x194   :  { %6323 = vst [vmem:[#allocation17_spill] sm:$0xff] %v4188_v46  ;;  %722 = vmax.xlane.f32.xlu0 %v4188_v46 }
 0x19a   :  { %1290 = vrot.lane.b32.xlu2 %v3931_v9, %s3491_s13 }
 0x19c   :  { %v695_v49 = vpop.xlane.xlu2 %694 }
 0x19d   :  { %v4196_v15 = vmax.f32 %v4193_v23, %v695_v49 }
 0x19f   :  { %1264 = vst.msk [vmem:[#allocation2] sm:$0xff] %vm23_vm0, %v4196_v15 }
 0x1a2   :  { %1294 = vrot.lane.b32.xlu2 %v3969_v21, %s3491_s13  ;;  %v235_v21 = vmul.f32 %v3984_v27, %v4031_v25  ;;  %v238_v25 = vmul.f32 %v3984_v27, %v4035_v34  ;;  %v241_v34 = vmul.f32 %v3984_v27, %v4043_v39  ;;  %v336_v27 = vadd.f32 %v320_v52, %v239_v38  ;;  %v4355_v52 = vld [vmem:[#allocation2 + $0x70] sm:$0xff] }
 0x1a3   :  { %6331 = vst [vmem:[#allocation25_spill] sm:$0xff] %v4355_v52 }
 0x1a4   :  { %v1283_v18 = vpop.permute.xlu2 %1282  ;;  %v332_v60 = vadd.f32 %v316_v30, %v235_v21  ;;  %v335_v54 = vadd.f32 %v319_v6, %v238_v25  ;;  %v338_v8 = vadd.f32 %v322_v24, %v241_v34  ;;  %v4306_v21 = vld [vmem:[#allocation2 + $0x30] sm:$0xff]  ;;  %v4330_v34 = vld [vmem:[#allocation2 + $0x40] sm:$0xff] }
 0x1a5   :  { %3217 = vmatmul.msk.bf16.gmra.mxu2 %vm6312_vm1, %v1283_v18  ;;  %6330 = vst [vmem:[#allocation24_spill] sm:$0xff] %v4330_v34 }
 0x1a6   :  { %v4226_v5 = vadd.f32 %v413_v36, %v332_v60  ;;  %v4242_v10 = vadd.f32 %v416_v17, %v335_v54  ;;  %v4263_v1 = vadd.f32 %v419_v45, %v338_v8  ;;  %v3270_v17 = vld [vmem:[%s6231_s4 + $0x74] sm:$0xf]  ;;  %v3188_v54 = vld [vmem:[%s6231_s4 + $0x78] sm:$0xf0] }
 0x1a7   :  { %v699_v4 = vpop.xlane.xlu1 %698 }
 0x1a8   :  { %v4206_v9 = vmax.f32 %v4203_v42, %v699_v4  ;;  %6324 = vst [vmem:[#allocation18_spill] sm:$0xff] %v4226_v5  ;;  %vm445_vm13 = vcmp.gt.f32.partialorder %v4226_v5, 0.5  ;;  %vm6239_vm14 = vcmp.gt.f32.partialorder %v4242_v10, 0.5  ;;  %vm6261_vm15 = vcmp.gt.f32.partialorder %v4263_v1, 0.5 }
 0x1a9   :  { %v4239_v40 = vsel %vm445_vm13, %v4076_v2, -1e+30  ;;  %6325 = vst [vmem:[#allocation19_spill] sm:$0xff] %v4242_v10  ;;  %v317_v2 = vmul.f32 %v3986_v28, %v3910_v3  ;;  %v4260_v39 = vsel %vm6239_vm14, %v4161_v51, -1e+30  ;;  %v659_v3 = vpop.f32.mrf.mxu0  ;;  %v417_v51 = vmul.f32 %v3988_v29, %v4053_v44  ;;  %v4297_v44 = vld [vmem:[#allocation2 + $0x18] sm:$0xff] }
 0x1aa   :  { %1266 = vst.msk [vmem:[#allocation2 + $0x10] sm:$0xff] %vm23_vm0, %v4206_v9  ;;  %v4278_v18 = vsel %vm6261_vm15, %v659_v3, -1e+30  ;;  %vm4512_vm15 = vmpackc.low %vm6280_vm4, %vm6286_vm2  ;;  %v6398_v50 = vld [vmem:[#allocation25_spill] sm:$0xff] }
 0x1ab   :  { %v697_v63 = vpop.xlane.xlu0 %696  ;;  %v333_v41 = vadd.f32 %v317_v2, %v236_v22  ;;  %6326 = vst [vmem:[#allocation20_spill] sm:$0xff] %v4263_v1  ;;  %v4287_v7 = vadd.f32 %v417_v51, %v336_v27  ;;  %v3191_v22 = vor.u32 %v3270_v17, %v3188_v54  ;;  %v4338_v2 = vld [vmem:[#allocation2 + $0x38] sm:$0xff]  ;;  %v3268_v54 = vld [vmem:[%s6231_s4 + $0x64] sm:$0xf] }
 0x1ac   :  { %v4213_v31 = vmax.f32 %v4208_v0, %v697_v63  ;;  %v1285_v61 = vpop.permute.xlu2 %1284  ;;  %6328 = vst [vmem:[#allocation22_spill] sm:$0xff] %v4278_v18  ;;  %v4302_v63 = vld [vmem:[#allocation2 + $0x28] sm:$0xff]  ;;  %v3164_v1 = vld [vmem:[%s6231_s4 + $0x18] sm:$0xf0] }
 0x1ad   :  { %v4265_v49 = vadd.f32 %v414_v47, %v333_v41  ;;  %6329 = vst [vmem:[#allocation23_spill] sm:$0xff] %v4287_v7  ;;  %vm6293_vm14 = vcmp.gt.f32.partialorder %v4287_v7, 0.5  ;;  %1183 = vmatpush.bf16.msra.mxu1 %v3191_v22 }
 0x1ae   :  { %1265 = vst.msk [vmem:[#allocation2 + $0x8] sm:$0xff] %vm23_vm0, %v4213_v31  ;;  %797 = vperm.xlu0 %3288, %v4213_v31   ;;  %v4293_v28 = vsel %vm6293_vm14, %v4176_v55, -1e+30  ;;  %v6343_v58 = vsub.f32 %v4208_v0, %v4213_v31 }
 0x1af   :  { %6327 = vst [vmem:[#allocation21_spill] sm:$0xff] %v4265_v49  ;;  %vm6294_vm12 = vcmp.gt.f32.partialorder %v4265_v49, 0.5 }
 0x1b0   :  { %v4284_v11 = vsel %vm6294_vm12, %v4103_v53, -1e+30  ;;  %v760_v46 = vmul.f32 1.442695, %v6343_v58  ;;  %v4488_v58 = vld [vmem:[#allocation2 + $0x68] sm:$0xff] }
 0x1b1   :  { %6347 = vst [vmem:[#allocation39_spill] sm:$0xff] %v4488_v58 }
 0x1b2   :  { %3291 = vpow2.f32 %v760_v46  ;;  %v6399_v35 = vld [vmem:[#allocation20_spill] sm:$0xff] }
 0x1b5   :  { %3218 = vmatmul.msk.bf16.gmra.mxu2 %vm6312_vm1, %v1285_v61  ;;  %v4315_v61 = vld [vmem:[#allocation2 + $0x20] sm:$0xff] }
 0x1b8   :  { %v4490_v0 = vpop.eup %3291 }
 0x1ba   :  { %712 = vmax.xlane.f32.xlu1 %v4239_v40 }
 0x1be   :  { %v1287_v26 = vpop.permute.xlu0 %1286 }
 0x1bf   :  { %v1289_v29 = vpop.permute.xlu1 %1288 }
 0x1c2   :  { %718 = vmax.xlane.f32.xlu1 %v4260_v39 }
 0x1c5   :  { %3219 = vmatmul.msk.bf16.gmra.mxu2 %vm6312_vm1, %v1287_v26  ;;  %v4345_v26 = vld [vmem:[#allocation2 + $0x58] sm:$0xff] }
 0x1ca   :  { %724 = vmax.xlane.f32.xlu1 %v4278_v18  ;;  %v4475_v18 = vld [vmem:[#allocation2 + $0x50] sm:$0xff] }
 0x1cb   :  { %714 = vmax.xlane.f32.xlu2 %v4284_v11  ;;  %6345 = vst [vmem:[#allocation37_spill] sm:$0xff] %v4475_v18 }
 0x1d3   :  { %720 = vmax.xlane.f32.xlu2 %v4293_v28 }
 0x1d5   :  { %3220 = vmatmul.msk.bf16.gmra.mxu2 %vm6312_vm1, %v1289_v29 }
 0x1e3   :  { %1914 = vrot.lane.b32.xlu1 %v3191_v22, %s3491_s13  ;;  %v3184_v22 = vld [vmem:[%s6231_s4 + $0x68] sm:$0xf0] }
 0x1e5   :  { %v701_v53 = vpop.xlane.xlu2 %700 }
 0x1e6   :  { %v4300_v4 = vmax.f32 %v4297_v44, %v701_v53 }
 0x1e8   :  { %1267 = vst.msk [vmem:[#allocation2 + $0x18] sm:$0xff] %vm23_vm0, %v4300_v4 }
 0x1e9   :  { %v705_v55 = vpop.xlane.xlu0 %704 }
 0x1ea   :  { %v4309_v30 = vmax.f32 %v4302_v63, %v705_v55  ;;  %v707_v36 = vpop.xlane.xlu1 %706 }
 0x1eb   :  { %v4312_v60 = vmax.f32 %v4306_v21, %v707_v36  ;;  %792 = vperm.xlu2 %3289, %v4196_v15  }
 0x1ec   :  { %1269 = vst.msk [vmem:[#allocation2 + $0x28] sm:$0xff] %vm23_vm0, %v4309_v30 }
 0x1ed   :  { %1270 = vst.msk [vmem:[#allocation2 + $0x30] sm:$0xff] %vm23_vm0, %v4312_v60  ;;  %v703_v25 = vpop.xlane.xlu2 %702 }
 0x1ee   :  { %v4322_v6 = vmax.f32 %v4315_v61, %v703_v25 }
 0x1f0   :  { %1268 = vst.msk [vmem:[#allocation2 + $0x20] sm:$0xff] %vm23_vm0, %v4322_v6 }
 0x1f1   :  { %v711_v24 = vpop.xlane.xlu0 %710 }
 0x1f2   :  { %v4336_v45 = vmax.f32 %v4330_v34, %v711_v24  ;;  %v4380_v24 = vor.u32 %v3268_v54, %v3184_v22  ;;  %v4406_v22 = vld [vmem:[#allocation2 + $0x48] sm:$0xff] }
 0x1f3   :  { %6337 = vst [vmem:[#allocation30_spill] sm:$0xff] %v4406_v22 }
 0x1f4   :  { %1272 = vst.msk [vmem:[#allocation2 + $0x40] sm:$0xff] %vm23_vm0, %v4336_v45  ;;  %1184 = vmatpush.bf16.msra.mxu1 %v4380_v24 }
 0x1f5   :  { %v709_v47 = vpop.xlane.xlu2 %708 }
 0x1f6   :  { %v4343_v8 = vmax.f32 %v4338_v2, %v709_v47  ;;  %v3266_v47 = vld [vmem:[%s6231_s4 + $0x54] sm:$0xf] }
 0x1f8   :  { %1271 = vst.msk [vmem:[#allocation2 + $0x38] sm:$0xff] %vm23_vm0, %v4343_v8 }
 0x1f9   :  { %v717_v41 = vpop.xlane.xlu0 %716 }
 0x1fa   :  { %v4350_v3 = vmax.f32 %v4345_v26, %v717_v41  ;;  %v3180_v41 = vld [vmem:[%s6231_s4 + $0x58] sm:$0xf0] }
 0x1fc   :  { %1275 = vst.msk [vmem:[#allocation2 + $0x58] sm:$0xff] %vm23_vm0, %v4350_v3 }
 0x1fd   :  { %v1291_v38 = vpop.permute.xlu2 %1290 }
 0x1fe   :  { %3221 = vmatmul.msk.bf16.gmra.mxu2 %vm6312_vm1, %v1291_v38  ;;  %v4389_v38 = vor.u32 %v3266_v47, %v3180_v41  ;;  %v3262_v47 = vld [vmem:[%s6231_s4 + $0x34] sm:$0xf]  ;;  %v3172_v41 = vld [vmem:[%s6231_s4 + $0x38] sm:$0xf0] }
 0x200   :  { %1185 = vmatpush.bf16.msra.mxu1 %v4389_v38 }
 0x202   :  { %v1293_v29 = vpop.permute.xlu1 %1292 }
 0x205   :  { %v1295_v36 = vpop.permute.xlu2 %1294 }
 0x207   :  { %v723_v51 = vpop.xlane.xlu0 %722 }
 0x208   :  { %v4358_v27 = vmax.f32 %v4355_v52, %v723_v51  ;;  %v3264_v51 = vld [vmem:[%s6231_s4 + $0x44] sm:$0xf]  ;;  %v3160_v52 = vld [vmem:[%s6231_s4 + $0x8] sm:$0xf0] }
 0x20a   :  { %6332 = vst [vmem:[#allocation26_spill] sm:$0xff] %v4358_v27 }
 0x20b   :  { %1278 = vst.msk [vmem:[#allocation2 + $0x70] sm:$0xff] %vm23_vm0, %v4358_v27 }
 0x20e   :  { %3222 = vmatmul.msk.bf16.gmra.mxu2 %vm6312_vm1, %v1293_v29  ;;  %v3176_v29 = vld [vmem:[%s6231_s4 + $0x48] sm:$0xf0] }
 0x211   :  { %v6397_v12 = vld [vmem:[#allocation26_spill] sm:$0xff] }
 0x215   :  { %v1369_v53 = vpop.f32.mrf.mxu2 }
 0x216   :  { %v4365_v55 = vsel %vm6286_vm2, %v1369_v53, -1e+30 }
 0x217   :  { %6333 = vst [vmem:[#allocation27_spill] sm:$0xff] %v4365_v55  ;;  %1442 = vmax.xlane.f32.xlu2 %v4365_v55  ;;  %v4438_v55 = vld [vmem:[#allocation2 + $0x60] sm:$0xff] }
 0x218   :  { %6340 = vst [vmem:[#allocation33_spill] sm:$0xff] %v4438_v55 }
 0x21d   :  { %v1371_v25 = vpop.f32.mrf.mxu2 }
 0x21e   :  { %v4370_v17 = vsel %vm6280_vm4, %v1371_v25, -1e+30  ;;  %3223 = vmatmul.msk.bf16.gmra.mxu2 %vm6312_vm1, %v1295_v36  ;;  %v4398_v36 = vor.u32 %v3264_v51, %v3176_v29  ;;  %v4414_v51 = vor.u32 %v3262_v47, %v3172_v41 }
 0x21f   :  { %6334 = vst [vmem:[#allocation28_spill] sm:$0xff] %v4370_v17  ;;  %1444 = vmax.xlane.f32.xlu2 %v4370_v17  ;;  %v3258_v17 = vld [vmem:[%s6231_s4 + $0x14] sm:$0xf] }
 0x220   :  { %1186 = vmatpush.bf16.msra.mxu1 %v4398_v36 }
 0x224   :  { %1187 = vmatpush.bf16.msra.mxu1 %v4414_v51 }
 0x228   :  { %v1374_v53 = vpop.f32.mrf.mxu2 }
 0x229   :  { %v4402_v54 = vsel %vm6281_vm3, %v1374_v53, -1e+30 }
 0x22a   :  { %6336 = vst [vmem:[#allocation29_spill] sm:$0xff] %v4402_v54  ;;  %1446 = vmax.xlane.f32.xlu2 %v4402_v54  ;;  %v3168_v54 = vld [vmem:[%s6231_s4 + $0x28] sm:$0xf0] }
 0x22b   :  { %v4430_v41 = vor.u32 %v3260_v20, %v3168_v54  ;;  %v4446_v20 = vor.u32 %v3258_v17, %v3164_v1 }
 0x22d   :  { %v713_v29 = vpop.xlane.xlu1 %712  ;;  %6338 = vst [vmem:[#allocation31_spill] sm:$0xff] %v4430_v41  ;;  %1188 = vmatpush.bf16.msra.mxu1 %v4430_v41 }
 0x22e   :  { %v4417_v53 = vmax.f32 %v4406_v22, %v713_v29  ;;  %v4473_v22 = vld [vmem:[#allocation2 + $0x78] sm:$0xff] }
 0x22f   :  { %6344 = vst [vmem:[#allocation36_spill] sm:$0xff] %v4473_v22 }
 0x230   :  { %1273 = vst.msk [vmem:[#allocation2 + $0x48] sm:$0xff] %vm23_vm0, %v4417_v53  ;;  %v1376_v47 = vpop.f32.mrf.mxu2 }
 0x231   :  { %v4434_v29 = vsel %vm6285_vm5, %v1376_v47, -1e+30  ;;  %1189 = vmatpush.bf16.msra.mxu1 %v4446_v20 }
 0x232   :  { %6339 = vst [vmem:[#allocation32_spill] sm:$0xff] %v4434_v29  ;;  %1448 = vmax.xlane.f32.xlu0 %v4434_v29  ;;  %v3256_v29 = vld [vmem:[%s6231_s4 + $0x4] sm:$0xf] }
 0x233   :  { %v4462_v17 = vor.u32 %v3256_v29, %v3160_v52 }
 0x235   :  { %v719_v54 = vpop.xlane.xlu1 %718  ;;  %1190 = vmatpush.bf16.msra.mxu1 %v4462_v17 }
 0x236   :  { %v4449_v47 = vmax.f32 %v4438_v55, %v719_v54 }
 0x238   :  { %6341 = vst [vmem:[#allocation34_spill] sm:$0xff] %v4449_v47  ;;  %v1379_v1 = vpop.f32.mrf.mxu2 }
 0x239   :  { %1276 = vst.msk [vmem:[#allocation2 + $0x60] sm:$0xff] %vm23_vm0, %v4449_v47  ;;  %v4466_v54 = vsel %vm6282_vm8, %v1379_v1, -1e+30 }
 0x23a   :  { %6342 = vst [vmem:[#allocation35_spill] sm:$0xff] %v4466_v54  ;;  %1450 = vmax.xlane.f32.xlu1 %v4466_v54 }
 0x23d   :  { %v725_v55 = vpop.xlane.xlu1 %724 }
 0x23e   :  { %v4478_v52 = vmax.f32 %v4473_v22, %v725_v55  ;;  %v715_v29 = vpop.xlane.xlu2 %714  ;;  %v798_v55 = vpop.permute.xlu0 %797 }
 0x23f   :  { %v4481_v1 = vmax.f32 %v4475_v18, %v715_v29  ;;  %v6348_v29 = vld [vmem:[#allocation12_spill] sm:$0xff] }
 0x240   :  { %6346 = vst [vmem:[#allocation38_spill] sm:$0xff] %v4478_v52  ;;  %v871_v54 = vsub.f32 %v6348_v29, %v798_v55 }
 0x241   :  { %1279 = vst.msk [vmem:[#allocation2 + $0x78] sm:$0xff] %vm23_vm0, %v4478_v52  ;;  %v6349_v52 = vld [vmem:[#allocation8_spill] sm:$0xff] }
 0x242   :  { %1274 = vst.msk [vmem:[#allocation2 + $0x50] sm:$0xff] %vm23_vm0, %v4481_v1  ;;  %807 = vperm.xlu2 %3289, %v4300_v4   ;;  %v888_v22 = vmul.f32 1.442695, %v871_v54 }
 0x244   :  { %3293 = vpow2.f32 %v888_v22  ;;  %v4524_v22 = vld [vmem:[#allocation2 + $0x80] sm:$0xff] }
 0x245   :  { %6353 = vst [vmem:[#allocation8_spill] sm:$0xff] %v4524_v22 }
 0x246   :  { %v721_v31 = vpop.xlane.xlu2 %720  ;;  %1054 = vperm.xlu0 %3288, %v4490_v0  }
 0x247   :  { %v4494_v46 = vmax.f32 %v4488_v58, %v721_v31 }
 0x249   :  { %1277 = vst.msk [vmem:[#allocation2 + $0x68] sm:$0xff] %vm23_vm0, %v4494_v46 }
 0x24a   :  { %817 = vperm.xlu2 %3289, %v4309_v30   ;;  %v3294_v31 = vpop.eup %3293 }
 0x24b   :  { %v919_v37 = vsel %vm6280_vm4, %v3294_v31, 0.0  ;;  %vm4576_vm4 = vmpackc.low %vm6285_vm5, %vm6281_vm3 }
 0x24e   :  { %v793_v18 = vpop.permute.xlu2 %792  ;;  %832 = vperm.xlu0 %3288, %v4336_v45  }
 0x24f   :  { %v870_v34 = vsub.f32 %v6349_v52, %v793_v18  ;;  %v6350_v18 = vmov 0  ;;  %v4531_v52 = vld [vmem:[#allocation2 + $0x88] sm:$0xff] }
 0x250   :  { %v6351_v18 = vsel %vm4512_vm15, 4294967295, %v6350_v18  ;;  %6354 = vst [vmem:[#allocation40_spill] sm:$0xff] %v4531_v52 }
 0x251   :  { %v886_v41 = vmul.f32 1.442695, %v870_v34  ;;  %6352 = vst [vmem:[#allocation12_spill] sm:$0xff] %v6351_v18 }
 0x252   :  { %827 = vperm.xlu2 %3289, %v4343_v8  }
 0x253   :  { %3295 = vpow2.f32 %v886_v41  ;;  %802 = vperm.xlu1 %3290, %v4206_v9  }
 0x255   :  { %v1915_v34 = vpop.permute.xlu1 %1914 }
 0x256   :  { %852 = vperm.xlu0 %3288, %v4449_v47   ;;  %1924 = vmatpush.bf16.msra.mxu3 %v1915_v34 }
 0x259   :  { %v3296_v58 = vpop.eup %3295 }
 0x25a   :  { %v3193_v55 = vpack.c.bf16 %v3294_v31, %v3296_v58  ;;  %1912 = vrot.lane.b32.xlu2 %v4380_v24, %s3491_s13  ;;  %v918_v24 = vsel %vm6286_vm2, %v3296_v58, 0.0  ;;  %v4538_v58 = vld [vmem:[#allocation2 + $0x90] sm:$0xff] }
 0x25b   :  { %812 = vperm.xlu1 %3290, %v4322_v6   ;;  %6356 = vst [vmem:[#allocation42_spill] sm:$0xff] %v4538_v58 }
 0x25c   :  { %3194 = vmatmul.msk.bf16.vlgmr.msra.gmra.mxu1 %vm4512_vm15, %v3193_v55 }
 0x263   :  { %822 = vperm.xlu1 %3290, %v4312_v60  }
 0x26b   :  { %837 = vperm.xlu1 %3290, %v4417_v53  }
 0x273   :  { %847 = vperm.xlu1 %3290, %v4350_v3  }
 0x27b   :  { %862 = vperm.xlu1 %3290, %v4358_v27  }
 0x280   :  { %966 = vadd.xlane.f32.xlu0 %v918_v24 }
 0x28a   :  { %v1443_v41 = vpop.xlane.xlu2 %1442 }
 0x28b   :  { %v4527_v54 = vmax.f32 %v4524_v22, %v1443_v41  ;;  %v4545_v41 = vld [vmem:[#allocation2 + $0x98] sm:$0xff] }
 0x28c   :  { %6358 = vst [vmem:[#allocation44_spill] sm:$0xff] %v4545_v41 }
 0x28d   :  { %2005 = vst.msk [vmem:[#allocation2 + $0x80] sm:$0xff] %vm23_vm0, %v4527_v54 }
 0x292   :  { %v1445_v29 = vpop.xlane.xlu2 %1444 }
 0x293   :  { %v4534_v55 = vmax.f32 %v4531_v52, %v1445_v29 }
 0x295   :  { %6355 = vst [vmem:[#allocation41_spill] sm:$0xff] %v4534_v55 }
 0x296   :  { %2006 = vst.msk [vmem:[#allocation2 + $0x88] sm:$0xff] %vm23_vm0, %v4534_v55 }
 0x29d   :  { %v1447_v34 = vpop.xlane.xlu2 %1446 }
 0x29e   :  { %v4541_v24 = vmax.f32 %v4538_v58, %v1447_v34  ;;  %v4555_v34 = vld [vmem:[#allocation2 + $0xa0] sm:$0xff] }
 0x29f   :  { %6360 = vst [vmem:[#allocation46_spill] sm:$0xff] %v4555_v34 }
 0x2a0   :  { %6357 = vst [vmem:[#allocation43_spill] sm:$0xff] %v4541_v24 }
 0x2a1   :  { %2007 = vst.msk [vmem:[#allocation2 + $0x90] sm:$0xff] %vm23_vm0, %v4541_v24 }
 0x2a5   :  { %v808_v22 = vpop.permute.xlu2 %807  ;;  %v1449_v29 = vpop.xlane.xlu0 %1448  ;;  %968 = vadd.xlane.f32.xlu1 %v919_v37 }
 0x2a6   :  { %v873_v52 = vsub.f32 %v4101_v13, %v808_v22  ;;  %v4551_v18 = vmax.f32 %v4545_v41, %v1449_v29 }
 0x2a8   :  { %6359 = vst [vmem:[#allocation45_spill] sm:$0xff] %v4551_v18  ;;  %v892_v55 = vmul.f32 1.442695, %v873_v52 }
 0x2a9   :  { %2008 = vst.msk [vmem:[#allocation2 + $0x98] sm:$0xff] %vm23_vm0, %v4551_v18 }
 0x2aa   :  { %3297 = vpow2.f32 %v892_v55 }
 0x2ad   :  { %v818_v58 = vpop.permute.xlu2 %817  ;;  %v1451_v24 = vpop.xlane.xlu1 %1450 }
 0x2ae   :  { %v875_v14 = vsub.f32 %v4115_v33, %v818_v58  ;;  %v4559_v31 = vmax.f32 %v4555_v34, %v1451_v24  ;;  %v6362_v58 = vld [vmem:[#allocation10_spill] sm:$0xff] }
 0x2b0   :  { %6361 = vst [vmem:[#allocation47_spill] sm:$0xff] %v4559_v31  ;;  %v3298_v37 = vpop.eup %3297  ;;  %v896_v27 = vmul.f32 1.442695, %v875_v14 }
 0x2b1   :  { %2009 = vst.msk [vmem:[#allocation2 + $0xa0] sm:$0xff] %vm23_vm0, %v4559_v31  ;;  %v921_v13 = vsel %vm6285_vm5, %v3298_v37, 0.0  ;;  %vm6375_vm5 = vcmp.gt.f32.partialorder %v4242_v10, 0.5 }
 0x2b2   :  { %3299 = vpow2.f32 %v896_v27  ;;  %972 = vadd.xlane.f32.xlu1 %v921_v13  ;;  %vm4751_vm2 = vmpackc.low %vm6293_vm14, %vm6375_vm5 }
 0x2b5   :  { %v828_v55 = vpop.permute.xlu2 %827 }
 0x2b6   :  { %v877_v29 = vsub.f32 %v4159_v43, %v828_v55 }
 0x2b8   :  { %v3300_v22 = vpop.eup %3299  ;;  %v900_v41 = vmul.f32 1.442695, %v877_v29 }
 0x2b9   :  { %v923_v52 = vsel %vm6283_vm6, %v3300_v22, 0.0 }
 0x2ba   :  { %976 = vadd.xlane.f32.xlu1 %v923_v52 }
 0x2c5   :  { %v803_v33 = vpop.permute.xlu1 %802 }
 0x2c6   :  { %v872_v24 = vsub.f32 %v6362_v58, %v803_v33 }
 0x2c8   :  { %v890_v14 = vmul.f32 1.442695, %v872_v24 }
 0x2ca   :  { %3301 = vpow2.f32 %v890_v14 }
 0x2cb   :  { %3303 = vpow2.f32 %v900_v41  ;;  %v1055_v41 = vpop.permute.xlu0 %1054 }
 0x2cd   :  { %v813_v34 = vpop.permute.xlu1 %812 }
 0x2ce   :  { %v874_v18 = vsub.f32 %v4138_v48, %v813_v34 }
 0x2d0   :  { %v3302_v47 = vpop.eup %3301  ;;  %v894_v27 = vmul.f32 1.442695, %v874_v18 }
 0x2d1   :  { %v920_v13 = vsel %vm6281_vm3, %v3302_v47, 0.0  ;;  %v3196_v31 = vpack.c.bf16 %v3298_v37, %v3302_v47  ;;  %v3304_v18 = vpop.eup %3303  ;;  %vm4604_vm3 = vmpackc.low %vm6283_vm6, %vm6282_vm8 }
 0x2d2   :  { %3305 = vpow2.f32 %v894_v27  ;;  %970 = vadd.xlane.f32.xlu2 %v920_v13  ;;  %v925_v55 = vsel %vm443_vm10, %v3304_v18, 0.0 }
 0x2d3   :  { %1908 = vrot.lane.b32.xlu1 %v4398_v36, %s3491_s13  ;;  %3197 = vmatmul.msk.bf16.gmra.mxu1 %vm4576_vm4, %v3196_v31  ;;  %v1032_v36 = vld [vmem:[#allocation4 + $0x8] sm:$0xff]  ;;  %v1381_v31 = vpop.f32.mrf.mxu2  ;;  %v833_v14 = vpop.permute.xlu0 %832 }
 0x2d4   :  { %v1128_v29 = vmul.f32 %v1055_v41, %v1032_v36  ;;  %v4595_v13 = vsel %vm6283_vm6, %v1381_v31, -1e+30  ;;  %v934_v31 = vld [vmem:[#allocation3] sm:$0xff]  ;;  %vm4645_vm6 = vmpackc.low %vm445_vm13, %vm6287_vm9 }
 0x2d5   :  { %v823_v48 = vpop.permute.xlu1 %822 }
 0x2d6   :  { %v876_v47 = vsub.f32 %v4122_v56, %v823_v48  ;;  %v742_v56 = vsub.f32 %v4193_v23, %v4196_v15  ;;  %v1913_v15 = vpop.permute.xlu2 %1912 }
 0x2d7   :  { %1925 = vmatpush.bf16.msra.mxu3 %v1913_v15 }
 0x2d8   :  { %v3306_v34 = vpop.eup %3305  ;;  %v898_v37 = vmul.f32 1.442695, %v876_v47 }
 0x2d9   :  { %v4585_v52 = vpop.f32.mrf.mxu1  ;;  %v922_v33 = vsel %vm6282_vm8, %v3306_v34, 0.0  ;;  %v3199_v47 = vpack.c.bf16 %v3300_v22, %v3306_v34  ;;  %v758_v22 = vmul.f32 1.442695, %v742_v56  ;;  %vm4623_vm8 = vmpackc.low %vm443_vm10, %vm6284_vm7 }
 0x2da   :  { %3307 = vpow2.f32 %v898_v37  ;;  %980 = vadd.xlane.f32.xlu2 %v925_v55  ;;  %974 = vadd.xlane.f32.xlu0 %v922_v33 }
 0x2db   :  { %3309 = vpow2.f32 %v758_v22  ;;  %v4611_v34 = vpop.permute.xlu0 %852  ;;  %v1384_v15 = vpop.f32.mrf.mxu2 }
 0x2dd   :  { %v838_v58 = vpop.permute.xlu1 %837 }
 0x2e0   :  { %v3308_v24 = vpop.eup %3307 }
 0x2e1   :  { %v1194_v27 = vpop.f32.mrf.mxu1  ;;  %v924_v48 = vsel %vm6284_vm7, %v3308_v24, 0.0  ;;  %v4614_v33 = vpop.eup %3309 }
 0x2e2   :  { %v1233_v37 = vadd.f32 %v1194_v27, %v1128_v29  ;;  %1452 = vmax.xlane.f32.xlu2 %v4595_v13  ;;  %978 = vadd.xlane.f32.xlu0 %v924_v48  ;;  %v879_v29 = vsub.f32 %v4239_v40, %v838_v58  ;;  %v3202_v27 = vpack.c.bf16 %v3304_v18, %v3308_v24 }
 0x2e3   :  { %3200 = vmatmul.msk.bf16.gmra.mxu1 %vm4604_vm3, %v3199_v47  ;;  %v878_v48 = vsub.f32 %v4148_v32, %v833_v14  ;;  %v950_v47 = vmul.f32 %v4614_v33, %v934_v31 }
 0x2e4   :  { %1249 = vst.msk [vmem:[#allocation4 + $0x8] sm:$0xff] %vm6312_vm1, %v1233_v37  ;;  %v904_v37 = vmul.f32 1.442695, %v879_v29 }
 0x2e5   :  { %v848_v41 = vpop.permute.xlu1 %847  ;;  %v902_v18 = vmul.f32 1.442695, %v878_v48 }
 0x2e6   :  { %v881_v55 = vsub.f32 %v4168_v19, %v848_v41  ;;  %v4653_v41 = vsel %vm6284_vm7, %v1384_v15, -1e+30  ;;  %v744_v15 = vsub.f32 %v4203_v42, %v4206_v9  ;;  %v748_v42 = vsub.f32 %v4306_v21, %v4312_v60  ;;  %vm4725_vm7 = vmpackc.low %vm447_vm11, %vm6294_vm12 }
 0x2e8   :  { %v908_v36 = vmul.f32 1.442695, %v881_v55  ;;  %v745_v55 = vsub.f32 %v4297_v44, %v4300_v4 }
 0x2ea   :  { %3311 = vpow2.f32 %v908_v36  ;;  %v935_v36 = vld [vmem:[#allocation3 + $0x8] sm:$0xff]  ;;  %v764_v31 = vmul.f32 1.442695, %v745_v55 }
 0x2eb   :  { %3313 = vpow2.f32 %v904_v37  ;;  %v951_v29 = vmul.f32 %v4490_v0, %v935_v36  ;;  %v937_v37 = vld [vmem:[#allocation3 + $0x18] sm:$0xff]  ;;  %v746_v36 = vsub.f32 %v4315_v61, %v4322_v6 }
 0x2ec   :  { %3315 = vpow2.f32 %v902_v18 }
 0x2ed   :  { %3317 = vpow2.f32 %v764_v31  ;;  %v749_v31 = vsub.f32 %v4338_v2, %v4343_v8  ;;  %v941_v2 = vld [vmem:[#allocation3 + $0x38] sm:$0xff]  ;;  %v938_v8 = vld [vmem:[#allocation3 + $0x20] sm:$0xff] }
 0x2f0   :  { %v4632_v32 = vpop.eup %3311 }
 0x2f1   :  { %v929_v58 = vsel %vm447_vm11, %v4632_v32, 0.0  ;;  %v3314_v24 = vpop.eup %3313 }
 0x2f2   :  { %v3316_v14 = vpop.eup %3315  ;;  %v927_v55 = vsel %vm445_vm13, %v3314_v24, 0.0 }
 0x2f3   :  { %v967_v19 = vpop.xlane.xlu0 %966  ;;  %3203 = vmatmul.msk.bf16.gmra.mxu1 %vm4623_vm8, %v3202_v27  ;;  %v3205_v22 = vpack.c.bf16 %v3314_v24, %v3316_v14 }
 0x2f4   :  { %v998_v40 = vadd.f32 %v967_v19, %v950_v47  ;;  %v747_v47 = vsub.f32 %v4302_v63, %v4309_v30  ;;  %v4669_v19 = vpop.eup %3317  ;;  %v926_v30 = vsel %vm6287_vm9, %v3316_v14, 0.0  ;;  %v772_v14 = vmul.f32 1.442695, %v749_v31 }
 0x2f6   :  { %1015 = vst.msk [vmem:[#allocation3] sm:$0xff] %vm23_vm0, %v998_v40  ;;  %1910 = vrot.lane.b32.xlu0 %v4389_v38, %s3491_s13  ;;  %v939_v40 = vld [vmem:[#allocation3 + $0x28] sm:$0xff] }
 0x2fa   :  { %842 = vperm.xlu2 %3289, %v4481_v1  }
 0x2fd   :  { %988 = vadd.xlane.f32.xlu1 %v929_v58 }
 0x2fe   :  { %1906 = vrot.lane.b32.xlu0 %v4414_v51, %s3491_s13  ;;  %v4659_v51 = vpop.permute.xlu1 %862 }
 0x302   :  { %857 = vperm.xlu2 %3289, %v4494_v46  }
 0x303   :  { %3206 = vmatmul.msk.bf16.gmra.mxu1 %vm4645_vm6, %v3205_v22  ;;  %v762_v22 = vmul.f32 1.442695, %v744_v15 }
 0x305   :  { %1454 = vmax.xlane.f32.xlu1 %v4653_v41 }
 0x306   :  { %1540 = vperm.xlu0 %3288, %v4527_v54  }
 0x30a   :  { %1902 = vrot.lane.b32.xlu2 %v4446_v20, %s3491_s13  ;;  %v768_v20 = vmul.f32 1.442695, %v747_v47 }
 0x30c   :  { %3319 = vpow2.f32 %v768_v20  ;;  %v770_v20 = vmul.f32 1.442695, %v748_v42 }
 0x30d   :  { %3321 = vpow2.f32 %v762_v22 }
 0x312   :  { %1900 = vrot.lane.b32.xlu2 %v4462_v17, %s3491_s13  ;;  %v953_v17 = vmul.f32 %v4669_v19, %v937_v37  ;;  %v4673_v0 = vpop.eup %3319 }
 0x313   :  { %v955_v18 = vmul.f32 %v4673_v0, %v939_v40 }
 0x318   :  { %v969_v27 = vpop.xlane.xlu1 %968 }
 0x319   :  { %v999_v48 = vadd.f32 %v969_v27, %v951_v29  ;;  %v766_v29 = vmul.f32 1.442695, %v746_v36  ;;  %v4687_v27 = vpop.eup %3321 }
 0x31b   :  { %1016 = vst.msk [vmem:[#allocation3 + $0x8] sm:$0xff] %vm23_vm0, %v999_v48  ;;  %v936_v48 = vld [vmem:[#allocation3 + $0x10] sm:$0xff]  ;;  %3323 = vpow2.f32 %v766_v29  ;;  %v753_v29 = vsub.f32 %v4345_v26, %v4350_v3  ;;  %v1386_v26 = vpop.f32.mrf.mxu2 }
 0x31c   :  { %3325 = vpow2.f32 %v772_v14  ;;  %v952_v9 = vmul.f32 %v4687_v27, %v936_v48 }
 0x31d   :  { %3327 = vpow2.f32 %v770_v20  ;;  %v780_v48 = vmul.f32 1.442695, %v753_v29  ;;  %v6376_v29 = vmov 0 }
 0x31e   :  { %v6377_v29 = vsel %vm4751_vm2, 4294967295, %v6376_v29 }
 0x31f   :  { %6378 = vst [vmem:[#allocation49_spill] sm:$0xff] %v6377_v29 }
 0x321   :  { %v4692_v61 = vpop.eup %3323 }
 0x322   :  { %v4695_v6 = vpop.eup %3325 }
 0x323   :  { %v957_v37 = vmul.f32 %v4695_v6, %v941_v2  ;;  %v4700_v40 = vpop.eup %3327 }
 0x325   :  { %v973_v44 = vpop.xlane.xlu1 %972 }
 0x326   :  { %v1001_v4 = vadd.f32 %v973_v44, %v953_v17  ;;  %v954_v17 = vmul.f32 %v4692_v61, %v938_v8 }
 0x328   :  { %1018 = vst.msk [vmem:[#allocation3 + $0x18] sm:$0xff] %vm23_vm0, %v1001_v4 }
 0x32d   :  { %v977_v58 = vpop.xlane.xlu1 %976 }
 0x32e   :  { %v1003_v63 = vadd.f32 %v977_v58, %v955_v18  ;;  %v940_v18 = vld [vmem:[#allocation3 + $0x30] sm:$0xff]  ;;  %v4703_v58 = vld [vmem:[#allocation2 + $0xa8] sm:$0xff] }
 0x32f   :  { %6371 = vst [vmem:[#allocation10_spill] sm:$0xff] %v4703_v58 }
 0x330   :  { %1020 = vst.msk [vmem:[#allocation3 + $0x28] sm:$0xff] %vm23_vm0, %v1003_v63  ;;  %982 = vadd.xlane.f32.xlu0 %v926_v30  ;;  %v956_v63 = vmul.f32 %v4700_v40, %v940_v18  ;;  %v1389_v18 = vpop.f32.mrf.mxu2 }
 0x338   :  { %984 = vadd.xlane.f32.xlu0 %v927_v55 }
 0x345   :  { %v971_v24 = vpop.xlane.xlu2 %970 }
 0x346   :  { %v1000_v47 = vadd.f32 %v971_v24, %v952_v9  ;;  %v1909_v24 = vpop.permute.xlu1 %1908 }
 0x348   :  { %1017 = vst.msk [vmem:[#allocation3 + $0x10] sm:$0xff] %vm23_vm0, %v1000_v47 }
 0x34d   :  { %v981_v21 = vpop.xlane.xlu2 %980  ;;  %v975_v60 = vpop.xlane.xlu0 %974 }
 0x34e   :  { %v1005_v44 = vadd.f32 %v981_v21, %v957_v37  ;;  %v1002_v4 = vadd.f32 %v975_v60, %v954_v17 }
 0x350   :  { %1022 = vst.msk [vmem:[#allocation3 + $0x38] sm:$0xff] %vm23_vm0, %v1005_v44 }
 0x351   :  { %1019 = vst.msk [vmem:[#allocation3 + $0x20] sm:$0xff] %vm23_vm0, %v1002_v4 }
 0x355   :  { %v1453_v30 = vpop.xlane.xlu2 %1452  ;;  %v979_v15 = vpop.xlane.xlu0 %978 }
 0x356   :  { %v4707_v22 = vmax.f32 %v4703_v58, %v1453_v30  ;;  %v1004_v55 = vadd.f32 %v979_v15, %v956_v63  ;;  %v4737_v63 = vld [vmem:[#allocation2 + $0xb0] sm:$0xff] }
 0x358   :  { %6372 = vst [vmem:[#allocation48_spill] sm:$0xff] %v4707_v22 }
 0x359   :  { %2010 = vst.msk [vmem:[#allocation2 + $0xa8] sm:$0xff] %vm23_vm0, %v4707_v22 }
 0x35a   :  { %1021 = vst.msk [vmem:[#allocation3 + $0x30] sm:$0xff] %vm23_vm0, %v1004_v55  ;;  %v4741_v55 = vsel %vm6287_vm9, %v1389_v18, -1e+30 }
 0x35d   :  { %v843_v36 = vpop.permute.xlu2 %842 }
 0x35e   :  { %v880_v31 = vsub.f32 %v4284_v11, %v843_v36  ;;  %v882_v11 = vsub.f32 %v4260_v39, %v4611_v34 }
 0x360   :  { %v906_v14 = vmul.f32 1.442695, %v880_v31  ;;  %v910_v17 = vmul.f32 1.442695, %v882_v11 }
 0x362   :  { %3329 = vpow2.f32 %v906_v14  ;;  %v6379_v14 = vld [vmem:[#allocation31_spill] sm:$0xff] }
 0x363   :  { %3331 = vpow2.f32 %v780_v48  ;;  %v6380_v48 = vld [vmem:[#allocation24_spill] sm:$0xff] }
 0x365   :  { %v858_v42 = vpop.permute.xlu2 %857 }
 0x366   :  { %v883_v9 = vsub.f32 %v4293_v28, %v858_v42  ;;  %v750_v42 = vsub.f32 %v6380_v48, %v4336_v45 }
 0x368   :  { %v3330_v47 = vpop.eup %3329  ;;  %v912_v20 = vmul.f32 1.442695, %v883_v9  ;;  %v1911_v2 = vpop.permute.xlu0 %1910  ;;  %v6381_v9 = vld [vmem:[#allocation38_spill] sm:$0xff] }
 0x369   :  { %v928_v8 = vsel %vm6294_vm12, %v3330_v47, 0.0  ;;  %v3208_v37 = vpack.c.bf16 %v4632_v32, %v3330_v47  ;;  %1926 = vmatpush.bf16.msra.mxu3 %v1911_v2  ;;  %v4731_v3 = vpop.eup %3331  ;;  %v945_v32 = vld [vmem:[#allocation3 + $0x58] sm:$0xff] }
 0x36a   :  { %3333 = vpow2.f32 %v912_v20  ;;  %986 = vadd.xlane.f32.xlu0 %v928_v8  ;;  %v961_v21 = vmul.f32 %v4731_v3, %v945_v32  ;;  %v6382_v20 = vld [vmem:[#allocation30_spill] sm:$0xff] }
 0x36b   :  { %3209 = vmatmul.msk.bf16.gmra.mxu1 %vm4725_vm7, %v3208_v37  ;;  %3335 = vpow2.f32 %v910_v17  ;;  %v6383_v2 = vsub.f32 %v6382_v20, %v4417_v53  ;;  %v6384_v37 = vld [vmem:[#allocation17_spill] sm:$0xff]  ;;  %v942_v17 = vld [vmem:[#allocation3 + $0x40] sm:$0xff] }
 0x36c   :  { %v884_v11 = vsub.f32 %v6384_v37, %v4659_v51  ;;  %v943_v51 = vld [vmem:[#allocation3 + $0x48] sm:$0xff] }
 0x36d   :  { %1927 = vmatpush.bf16.msra.mxu3 %v1909_v24  ;;  %v774_v24 = vmul.f32 1.442695, %v750_v42  ;;  %v776_v8 = vmul.f32 1.442695, %v6383_v2  ;;  %v6387_v2 = vld [vmem:[#allocation37_spill] sm:$0xff] }
 0x36e   :  { %v914_v45 = vmul.f32 1.442695, %v884_v11 }
 0x36f   :  { %3337 = vpow2.f32 %v774_v24 }
 0x370   :  { %v3334_v39 = vpop.eup %3333  ;;  %v1907_v34 = vpop.permute.xlu0 %1906  ;;  %3339 = vpow2.f32 %v776_v8  ;;  %v752_v8 = vsub.f32 %v6387_v2, %v4481_v1  ;;  %v4825_v2 = vld [vmem:[#allocation2 + $0xc0] sm:$0xff] }
 0x371   :  { %v989_v60 = vpop.xlane.xlu1 %988  ;;  %v931_v44 = vsel %vm6293_vm14, %v3334_v39, 0.0  ;;  %1928 = vmatpush.bf16.msra.mxu3 %v1907_v34  ;;  %v3336_v30 = vpop.eup %3335  ;;  %3341 = vpow2.f32 %v914_v45  ;;  %6391 = vst [vmem:[#allocation24_spill] sm:$0xff] %v4825_v2 }
 0x372   :  { %v1009_v4 = vadd.f32 %v989_v60, %v961_v21  ;;  %992 = vadd.xlane.f32.xlu1 %v931_v44  ;;  %v3211_v36 = vpack.c.bf16 %v3334_v39, %v3336_v30  ;;  %v930_v53 = vsel %vm6375_vm5, %v3336_v30, 0.0  ;;  %v4782_v44 = vpop.f32.mrf.mxu2  ;;  %v4792_v30 = vsel %vm443_vm10, %v1386_v26, -1e+30 }
 0x373   :  { %v778_v26 = vmul.f32 1.442695, %v752_v8 }
 0x374   :  { %1026 = vst.msk [vmem:[#allocation3 + $0x58] sm:$0xff] %vm23_vm0, %v1009_v4 }
 0x375   :  { %v4772_v32 = vpop.eup %3337  ;;  %3343 = vpow2.f32 %v778_v26 }
 0x376   :  { %v958_v39 = vmul.f32 %v4772_v32, %v942_v17  ;;  %v6388_v17 = vld [vmem:[#allocation39_spill] sm:$0xff] }
 0x377   :  { %v755_v45 = vsub.f32 %v6388_v17, %v4494_v46 }
 0x378   :  { %v4764_v47 = vpop.permute.xlu0 %1540 }
 0x379   :  { %v1455_v15 = vpop.xlane.xlu1 %1454  ;;  %v784_v1 = vmul.f32 1.442695, %v755_v45 }
 0x37a   :  { %v4744_v31 = vmax.f32 %v4737_v63, %v1455_v15  ;;  %1458 = vmax.xlane.f32.xlu1 %v4741_v55  ;;  %v1394_v48 = vpop.f32.mrf.mxu2 }
 0x37b   :  { %3212 = vmatmul.msk.bf16.gmra.mxu1 %vm4751_vm2, %v3211_v36  ;;  %v6385_v36 = vld [vmem:[#allocation16_spill] sm:$0xff]  ;;  %v4797_v24 = vsel %vm6294_vm12, %v1394_v48, -1e+30  ;;  %3345 = vpow2.f32 %v784_v1  ;;  %v6393_v1 = vld [vmem:[#allocation22_spill] sm:$0xff] }
 0x37c   :  { %2011 = vst.msk [vmem:[#allocation2 + $0xb0] sm:$0xff] %vm23_vm0, %v4744_v31  ;;  %vm6386_vm9 = vcmp.gt.f32.partialorder %v6385_v36, 0.5  ;;  %vm6401_vm5 = vcmp.gt.f32.partialorder %v6385_v36, 0.5 }
 0x37e   :  { %1904 = vrot.lane.b32.xlu0 %v6379_v14, %s3491_s13 }
 0x382   :  { %v1396_v42 = vpop.f32.mrf.mxu2 }
 0x383   :  { %v4806_v37 = vsel %vm447_vm11, %v1396_v42, -1e+30 }
 0x38a   :  { %v4800_v20 = vpop.f32.mrf.mxu2 }
 0x392   :  { %v1401_v11 = vpop.f32.mrf.mxu2 }
 0x393   :  { %867 = vperm.xlu1 %3290, %v6381_v9  }
 0x39b   :  { %1049 = vperm.xlu1 %3290, %v4614_v33   ;;  %v4777_v33 = vpop.eup %3339 }
 0x39c   :  { %v959_v60 = vmul.f32 %v4777_v33, %v943_v51  ;;  %v4784_v18 = vpop.eup %3341 }
 0x39d   :  { %v932_v14 = vsel %vm6386_vm9, %v4784_v18, 0.0  ;;  %vm6400_vm9 = vcmp.gt.f32.partialorder %v6399_v35, 0.5 }
 0x3a3   :  { %v983_v34 = vpop.xlane.xlu0 %982  ;;  %1565 = vperm.xlu1 %3290, %v4707_v22  }
 0x3a4   :  { %v1006_v21 = vadd.f32 %v983_v34, %v958_v39  ;;  %v6389_v39 = vld [vmem:[#allocation47_spill] sm:$0xff]  ;;  %v4814_v34 = vsel %vm6293_vm14, %v1401_v11, -1e+30  ;;  %vm6402_vm14 = vmmov %vm6400_vm9 }
 0x3a5   :  { %6390 = vst [vmem:[#allocation31_spill] sm:$0xff] %v4814_v34  ;;  %vm4852_vm12 = vmpackc.low %vm6402_vm14, %vm6401_vm5  ;;  %vm6412_vm14 = vcmp.gt.f32.partialorder %v4242_v10, 0.5 }
 0x3a6   :  { %1023 = vst.msk [vmem:[#allocation3 + $0x40] sm:$0xff] %vm23_vm0, %v1006_v21  ;;  %v4817_v21 = vpop.eup %3343 }
 0x3a7   :  { %v4821_v46 = vpop.eup %3345 }
 0x3a8   :  { %990 = vadd.xlane.f32.xlu0 %v930_v53  ;;  %v944_v53 = vld [vmem:[#allocation3 + $0x50] sm:$0xff] }
 0x3a9   :  { %v960_v51 = vmul.f32 %v4817_v21, %v944_v53 }
 0x3ab   :  { %v985_v4 = vpop.xlane.xlu0 %984 }
 0x3ac   :  { %v1007_v15 = vadd.f32 %v985_v4, %v959_v60 }
 0x3ae   :  { %1024 = vst.msk [vmem:[#allocation3 + $0x48] sm:$0xff] %vm23_vm0, %v1007_v15  ;;  %v947_v15 = vld [vmem:[#allocation3 + $0x68] sm:$0xff] }
 0x3b0   :  { %994 = vadd.xlane.f32.xlu0 %v932_v14  ;;  %v963_v14 = vmul.f32 %v4821_v46, %v947_v15  ;;  %v6394_v15 = vld [vmem:[#allocation33_spill] sm:$0xff] }
 0x3b8   :  { %1456 = vmax.xlane.f32.xlu0 %v4792_v30 }
 0x3c0   :  { %1462 = vmax.xlane.f32.xlu0 %v4797_v24 }
 0x3cd   :  { %1464 = vmax.xlane.f32.xlu1 %v4806_v37 }
 0x3d4   :  { %1560 = vperm.xlu0 %3288, %v6389_v39  }
 0x3d5   :  { %1468 = vmax.xlane.f32.xlu1 %v4814_v34 }
 0x3dd   :  { %v987_v60 = vpop.xlane.xlu0 %986 }
 0x3de   :  { %v1008_v4 = vadd.f32 %v987_v60, %v960_v51  ;;  %v1031_v60 = vld [vmem:[#allocation4] sm:$0xff] }
 0x3e0   :  { %1025 = vst.msk [vmem:[#allocation3 + $0x50] sm:$0xff] %vm23_vm0, %v1008_v4  ;;  %v4836_v4 = vpop.f32.mrf.mxu2 }
 0x3e5   :  { %v993_v48 = vpop.xlane.xlu1 %992 }
 0x3e6   :  { %v1011_v42 = vadd.f32 %v993_v48, %v963_v14  ;;  %v6395_v14 = vld [vmem:[#allocation34_spill] sm:$0xff] }
 0x3e7   :  { %v6396_v48 = vsub.f32 %v6394_v15, %v6395_v14 }
 0x3e8   :  { %1028 = vst.msk [vmem:[#allocation3 + $0x68] sm:$0xff] %vm23_vm0, %v1011_v42 }
 0x3e9   :  { %v782_v42 = vmul.f32 1.442695, %v6396_v48  ;;  %v948_v48 = vld [vmem:[#allocation3 + $0x70] sm:$0xff] }
 0x3ed   :  { %v1459_v8 = vpop.xlane.xlu1 %1458 }
 0x3ee   :  { %v4828_v26 = vmax.f32 %v4825_v2, %v1459_v8  ;;  %v6417_v2 = vld [vmem:[#allocation28_spill] sm:$0xff] }
 0x3f0   :  { %6392 = vst [vmem:[#allocation38_spill] sm:$0xff] %v4828_v26  ;;  %1580 = vperm.xlu1 %3290, %v4828_v26   ;;  %v1905_v17 = vpop.permute.xlu0 %1904 }
 0x3f1   :  { %2013 = vst.msk [vmem:[#allocation2 + $0xc0] sm:$0xff] %vm23_vm0, %v4828_v26  ;;  %1929 = vmatpush.bf16.msra.mxu3 %v1905_v17  ;;  %v756_v17 = vsub.f32 %v6398_v50, %v6397_v12  ;;  %v1406_v12 = vpop.f32.mrf.mxu2 }
 0x3f3   :  { %v786_v50 = vmul.f32 1.442695, %v756_v17 }
 0x405   :  { %v868_v45 = vpop.permute.xlu1 %867 }
 0x406   :  { %v885_v53 = vsub.f32 %v6393_v1, %v868_v45 }
 0x408   :  { %v916_v51 = vmul.f32 1.442695, %v885_v53  ;;  %v6403_v53 = vmov 0 }
 0x409   :  { %v6404_v53 = vsel %vm4852_vm12, 4294967295, %v6403_v53 }
 0x40a   :  { %3347 = vpow2.f32 %v916_v51  ;;  %6405 = vst [vmem:[#allocation30_spill] sm:$0xff] %v6404_v53  ;;  %v1903_v51 = vpop.permute.xlu2 %1902  ;;  %v6414_v53 = vld [vmem:[#allocation36_spill] sm:$0xff] }
 0x40b   :  { %3349 = vpow2.f32 %v782_v42  ;;  %1930 = vmatpush.bf16.msra.mxu3 %v1903_v51  ;;  %v757_v35 = vsub.f32 %v6414_v53, %v6381_v9  ;;  %v4931_v9 = vld [vmem:[#allocation2 + $0xf8] sm:$0xff] }
 0x40c   :  { %3351 = vpow2.f32 %v786_v50 }
 0x40d   :  { %v1050_v8 = vpop.permute.xlu1 %1049  ;;  %v788_v5 = vmul.f32 1.442695, %v757_v35 }
 0x40e   :  { %v1127_v11 = vmul.f32 %v1050_v8, %v1031_v60 }
 0x40f   :  { %3353 = vpow2.f32 %v788_v5 }
 0x410   :  { %v3348_v7 = vpop.eup %3347  ;;  %v1232_v49 = vadd.f32 %v4585_v52, %v1127_v11  ;;  %v946_v11 = vld [vmem:[#allocation3 + $0x60] sm:$0xff] }
 0x411   :  { %v933_v45 = vsel %vm6400_vm9, %v3348_v7, 0.0  ;;  %v3214_v1 = vpack.c.bf16 %v3348_v7, %v4784_v18  ;;  %v4858_v52 = vpop.eup %3349  ;;  %v4867_v7 = vsel %vm445_vm13, %v4782_v44, -1e+30 }
 0x412   :  { %1248 = vst.msk [vmem:[#allocation4] sm:$0xff] %vm6312_vm1, %v1232_v49  ;;  %996 = vadd.xlane.f32.xlu2 %v933_v45  ;;  %v4862_v49 = vsel %vm6400_vm9, %v1406_v12, -1e+30  ;;  %v962_v18 = vmul.f32 %v4858_v52, %v946_v11  ;;  %v4873_v14 = vpop.eup %3351  ;;  %v1901_v17 = vpop.permute.xlu2 %1900  ;;  %v4877_v45 = vld [vmem:[#allocation2 + $0xb8] sm:$0xff]  ;;  %v4887_v11 = vld [vmem:[#allocation2 + $0xd0] sm:$0xff] }
 0x413   :  { %3215 = vmatmul.msk.bf16.gmra.mxu1 %vm4852_vm12, %v3214_v1  ;;  %6406 = vst [vmem:[#allocation17_spill] sm:$0xff] %v4862_v49  ;;  %v964_v42 = vmul.f32 %v4873_v14, %v948_v48  ;;  %1931 = vmatpush.bf16.msra.mxu3 %v1901_v17  ;;  %v6408_v48 = vld [vmem:[#allocation43_spill] sm:$0xff]  ;;  %v6411_v17 = vld [vmem:[#allocation45_spill] sm:$0xff] }
 0x41a   :  { %1472 = vmax.xlane.f32.xlu1 %v4862_v49  ;;  %1460 = vmax.xlane.f32.xlu2 %v4867_v7  ;;  %v4922_v49 = vpop.eup %3353 }
 0x41b   :  { %v991_v60 = vpop.xlane.xlu0 %990  ;;  %6415 = vst [vmem:[#allocation47_spill] sm:$0xff] %v4922_v49 }
 0x41c   :  { %v1010_v15 = vadd.f32 %v991_v60, %v962_v18  ;;  %v6407_v18 = vld [vmem:[#allocation41_spill] sm:$0xff] }
 0x41e   :  { %1027 = vst.msk [vmem:[#allocation3 + $0x60] sm:$0xff] %vm23_vm0, %v1010_v15  ;;  %v4895_v15 = vpop.permute.xlu1 %1565 }
 0x423   :  { %v995_v8 = vpop.xlane.xlu0 %994 }
 0x424   :  { %v1012_v44 = vadd.f32 %v995_v8, %v964_v42  ;;  %v4898_v42 = vld [vmem:[#allocation2 + $0xd8] sm:$0xff] }
 0x425   :  { %6409 = vst [vmem:[#allocation16_spill] sm:$0xff] %v4898_v42 }
 0x426   :  { %1029 = vst.msk [vmem:[#allocation3 + $0x70] sm:$0xff] %vm23_vm0, %v1012_v44 }
 0x42b   :  { %v1457_v1 = vpop.xlane.xlu0 %1456 }
 0x42c   :  { %v4880_v50 = vmax.f32 %v4877_v45, %v1457_v1  ;;  %v4906_v1 = vld [vmem:[#allocation2 + $0xe8] sm:$0xff] }
 0x42e   :  { %2012 = vst.msk [vmem:[#allocation2 + $0xb8] sm:$0xff] %vm23_vm0, %v4880_v50  ;;  %1575 = vperm.xlu0 %3288, %v4880_v50  }
 0x432   :  { %1545 = vperm.xlu2 %3289, %v6407_v18  }
 0x433   :  { %v1463_v51 = vpop.xlane.xlu0 %1462 }
 0x434   :  { %v4891_v60 = vmax.f32 %v4887_v11, %v1463_v51 }
 0x436   :  { %2015 = vst.msk [vmem:[#allocation2 + $0xd0] sm:$0xff] %vm23_vm0, %v4891_v60 }
 0x43a   :  { %1550 = vperm.xlu2 %3289, %v6408_v48  }
 0x440   :  { %v1465_v8 = vpop.xlane.xlu1 %1464 }
 0x441   :  { %v4901_v44 = vmax.f32 %v4898_v42, %v1465_v8  ;;  %v4917_v8 = vsel %vm6412_vm14, %v4800_v20, -1e+30  ;;  %v4929_v20 = vld [vmem:[#allocation2 + $0xc8] sm:$0xff] }
 0x442   :  { %1555 = vperm.xlu2 %3289, %v6411_v17   ;;  %6413 = vst [vmem:[#allocation39_spill] sm:$0xff] %v4917_v8 }
 0x443   :  { %6410 = vst [vmem:[#allocation37_spill] sm:$0xff] %v4901_v44 }
 0x444   :  { %2016 = vst.msk [vmem:[#allocation2 + $0xd8] sm:$0xff] %vm23_vm0, %v4901_v44 }
 0x448   :  { %v1469_v51 = vpop.xlane.xlu1 %1468 }
 0x449   :  { %v4909_v12 = vmax.f32 %v4906_v1, %v1469_v51  ;;  %v949_v51 = vld [vmem:[#allocation3 + $0x78] sm:$0xff] }
 0x44a   :  { %1570 = vperm.xlu2 %3289, %v4744_v31   ;;  %v965_v25 = vmul.f32 %v4922_v49, %v949_v51 }
 0x44b   :  { %2018 = vst.msk [vmem:[#allocation2 + $0xe8] sm:$0xff] %vm23_vm0, %v4909_v12 }
 0x462   :  { %v4925_v29 = vpop.permute.xlu1 %1580 }
 0x473   :  { %1466 = vmax.xlane.f32.xlu2 %v4917_v8 }
 0x485   :  { %v997_v42 = vpop.xlane.xlu2 %996 }
 0x486   :  { %v1013_v26 = vadd.f32 %v997_v42, %v965_v25 }
 0x488   :  { %1030 = vst.msk [vmem:[#allocation3 + $0x78] sm:$0xff] %vm23_vm0, %v1013_v26  ;;  %v6416_v26 = vld [vmem:[#allocation27_spill] sm:$0xff] }
 0x489   :  { %v1618_v42 = vsub.f32 %v6416_v26, %v4764_v47  ;;  %v6419_v47 = vld [vmem:[#allocation29_spill] sm:$0xff] }
 0x48b   :  { %1590 = vperm.xlu2 %3289, %v4891_v60  }
 0x48d   :  { %v1461_v53 = vpop.xlane.xlu2 %1460  ;;  %v1473_v35 = vpop.xlane.xlu1 %1472 }
 0x48e   :  { %v4934_v5 = vmax.f32 %v4929_v20, %v1461_v53  ;;  %v4937_v10 = vmax.f32 %v4931_v9, %v1473_v35  ;;  %v1634_v53 = vmul.f32 1.442695, %v1618_v42 }
 0x490   :  { %2014 = vst.msk [vmem:[#allocation2 + $0xc8] sm:$0xff] %vm23_vm0, %v4934_v5  ;;  %1585 = vperm.xlu0 %3288, %v4934_v5   ;;  %3355 = vpow2.f32 %v1634_v53 }
 0x491   :  { %2020 = vst.msk [vmem:[#allocation2 + $0xf8] sm:$0xff] %vm23_vm0, %v4937_v10 }
 0x493   :  { %1595 = vperm.xlu2 %3289, %v4901_v44   ;;  %v1623_v44 = vsub.f32 %v4595_v13, %v4895_v15 }
 0x495   :  { %v1546_v35 = vpop.permute.xlu2 %1545 }
 0x496   :  { %v1619_v51 = vsub.f32 %v6417_v2, %v1546_v35  ;;  %v4953_v34 = vpop.eup %3355  ;;  %v1561_v35 = vpop.permute.xlu0 %1560 }
 0x498   :  { %v1636_v8 = vmul.f32 1.442695, %v1619_v51 }
 0x49a   :  { %3357 = vpow2.f32 %v1636_v8  ;;  %v6421_v8 = vld [vmem:[#allocation32_spill] sm:$0xff] }
 0x49b   :  { %1605 = vperm.xlu2 %3289, %v4909_v12  }
 0x49d   :  { %v1551_v25 = vpop.permute.xlu2 %1550 }
 0x49e   :  { %v1620_v26 = vsub.f32 %v6419_v47, %v1551_v25  ;;  %v6422_v47 = vld [vmem:[#allocation35_spill] sm:$0xff] }
 0x4a0   :  { %v4955_v58 = vpop.eup %3357  ;;  %v1638_v2 = vmul.f32 1.442695, %v1620_v26  ;;  %v1576_v15 = vpop.permute.xlu0 %1575 }
 0x4a1   :  { %6418 = vst [vmem:[#allocation22_spill] sm:$0xff] %v4955_v58  ;;  %v3225_v22 = vpack.c.bf16 %v4955_v58, %v4953_v34  ;;  %v1622_v58 = vsub.f32 %v6422_v47, %v1561_v35 }
 0x4a2   :  { %3359 = vpow2.f32 %v1638_v2 }
 0x4a3   :  { %3226 = vmatmul.msk.bf16.vlgmr.msra.gmra.mxu3 %vm4512_vm15, %v3225_v22  ;;  %1615 = vperm.xlu2 %3289, %v4937_v10   ;;  %v1642_v26 = vmul.f32 1.442695, %v1622_v58  ;;  %vm6423_vm15 = vmmov %vm6401_vm5 }
 0x4a4   :  { %v4980_v2 = vsel %vm6423_vm15, %v4836_v4, -1e+30  ;;  %v1625_v4 = vsub.f32 %v4792_v30, %v1576_v15 }
 0x4a5   :  { %v1556_v51 = vpop.permute.xlu2 %1555 }
 0x4a6   :  { %v1621_v42 = vsub.f32 %v6421_v8, %v1556_v51  ;;  %v4984_v51 = vpop.f32.mrf.mxu1  ;;  %v1648_v47 = vmul.f32 1.442695, %v1625_v4 }
 0x4a8   :  { %v1640_v53 = vmul.f32 1.442695, %v1621_v42  ;;  %v4965_v49 = vpop.eup %3359 }
 0x4aa   :  { %3361 = vpow2.f32 %v1640_v53 }
 0x4ab   :  { %1064 = vperm.xlu2 %3289, %v4669_v19   ;;  %v1644_v19 = vmul.f32 1.442695, %v1623_v44  ;;  %3363 = vpow2.f32 %v1642_v26 }
 0x4ad   :  { %3365 = vpow2.f32 %v1644_v19  ;;  %v1571_v13 = vpop.permute.xlu2 %1570 }
 0x4ae   :  { %v1624_v58 = vsub.f32 %v4653_v41, %v1571_v13  ;;  %v4999_v35 = vpop.f32.mrf.mxu1  ;;  %v6425_v41 = vld [vmem:[#allocation46_spill] sm:$0xff] }
 0x4af   :  { %v1494_v30 = vsub.f32 %v6425_v41, %v6389_v39  ;;  %v6426_v39 = vsub.f32 %v4877_v45, %v4880_v50  ;;  %v1503_v45 = vsub.f32 %v4906_v1, %v4909_v12  ;;  %v5034_v50 = vld [vmem:[#allocation2 + $0xe0] sm:$0xff] }
 0x4b0   :  { %v4967_v25 = vpop.eup %3361  ;;  %v1646_v53 = vmul.f32 1.442695, %v1624_v58  ;;  %v1500_v58 = vsub.f32 %v4887_v11, %v4891_v60 }
 0x4b1   :  { %v3228_v22 = vpack.c.bf16 %v4967_v25, %v4965_v49  ;;  %v4986_v43 = vpop.eup %3363 }
 0x4b2   :  { %3367 = vpow2.f32 %v1646_v53  ;;  %v1532_v53 = vmul.f32 1.442695, %v1503_v45 }
 0x4b3   :  { %3229 = vmatmul.msk.bf16.gmra.mxu3 %vm4576_vm4, %v3228_v22  ;;  %1074 = vperm.xlu2 %3289, %v4673_v0   ;;  %v4988_v0 = vpop.eup %3365  ;;  %3369 = vpow2.f32 %v1648_v47  ;;  %vm6431_vm4 = vcmp.gt.f32.partialorder %v4074_v59, 0.5 }
 0x4b4   :  { %v3231_v8 = vpack.c.bf16 %v4988_v0, %v4986_v43 }
 0x4b6   :  { %v5008_v26 = vpop.f32.mrf.mxu1 }
 0x4b8   :  { %v5004_v23 = vpop.eup %3367 }
 0x4b9   :  { %v5006_v44 = vpop.eup %3369 }
 0x4ba   :  { %1470 = vmax.xlane.f32.xlu0 %v4980_v2 }
 0x4bb   :  { %1089 = vperm.xlu2 %3289, %v4772_v32   ;;  %v6424_v32 = vld [vmem:[#allocation40_spill] sm:$0xff] }
 0x4bc   :  { %v1491_v42 = vsub.f32 %v6424_v32, %v6407_v18  ;;  %v3234_v18 = vpack.c.bf16 %v5006_v44, %v5004_v23 }
 0x4be   :  { %v1508_v22 = vmul.f32 1.442695, %v1491_v42  ;;  %v5022_v15 = vpop.f32.mrf.mxu1 }
 0x4c0   :  { %3371 = vpow2.f32 %v1508_v22 }
 0x4c3   :  { %3232 = vmatmul.msk.bf16.gmra.mxu3 %vm4604_vm3, %v3231_v8  ;;  %1104 = vperm.xlu2 %3289, %v4731_v3   ;;  %v1514_v3 = vmul.f32 1.442695, %v1494_v30  ;;  %v1526_v8 = vmul.f32 1.442695, %v1500_v58  ;;  %v1626_v30 = vsub.f32 %v4741_v55, %v4925_v29 }
 0x4c5   :  { %3373 = vpow2.f32 %v1514_v3 }
 0x4c6   :  { %v5012_v19 = vpop.eup %3371  ;;  %v5030_v4 = vpop.f32.mrf.mxu1 }
 0x4cb   :  { %1119 = vperm.xlu2 %3289, %v4873_v14   ;;  %v1520_v14 = vmul.f32 1.442695, %v6426_v39  ;;  %v5020_v13 = vpop.eup %3373  ;;  %v1650_v39 = vmul.f32 1.442695, %v1626_v30 }
 0x4cd   :  { %3375 = vpow2.f32 %v1520_v14 }
 0x4ce   :  { %3377 = vpow2.f32 %v1526_v8  ;;  %v5047_v12 = vpop.f32.mrf.mxu1 }
 0x4cf   :  { %3379 = vpow2.f32 %v1532_v53 }
 0x4d0   :  { %3381 = vpow2.f32 %v1650_v39 }
 0x4d3   :  { %3235 = vmatmul.msk.bf16.gmra.mxu3 %vm4623_vm8, %v3234_v18  ;;  %1803 = vperm.xlu2 %3289, %v5012_v19   ;;  %v5027_v56 = vpop.eup %3375 }
 0x4d4   :  { %v5044_v60 = vpop.eup %3377 }
 0x4d5   :  { %v5050_v47 = vpop.eup %3379 }
 0x4d6   :  { %v1212_v41 = vpop.f32.mrf.mxu1  ;;  %v5069_v45 = vpop.eup %3381 }
 0x4db   :  { %1818 = vperm.xlu2 %3289, %v5020_v13  }
 0x4de   :  { %v5059_v18 = vpop.f32.mrf.mxu1 }
 0x4e3   :  { %1833 = vperm.xlu2 %3289, %v5027_v56  }
 0x4e6   :  { %v1467_v32 = vpop.xlane.xlu2 %1466  ;;  %v5067_v29 = vpop.f32.mrf.mxu1 }
 0x4e7   :  { %v5037_v42 = vmax.f32 %v5034_v50, %v1467_v32 }
 0x4e9   :  { %v1502_v11 = vsub.f32 %v5034_v50, %v5037_v42  ;;  %2017 = vst.msk [vmem:[#allocation2 + $0xe0] sm:$0xff] %vm23_vm0, %v5037_v42  ;;  %1600 = vperm.xlu0 %3288, %v5037_v42   ;;  %v1781_v50 = vld [vmem:[#allocation4 + $0x88] sm:$0xff]  ;;  %v6435_v42 = vsub.f32 %v4931_v9, %v4937_v10 }
 0x4eb   :  { %1848 = vperm.xlu2 %3289, %v5044_v60  }
 0x4ee   :  { %v1591_v1 = vpop.permute.xlu2 %1590 }
 0x4f1   :  { %1059 = vperm.xlu0 %3288, %v4687_v27  }
 0x4f3   :  { %1863 = vperm.xlu2 %3289, %v5050_v47  }
 0x4f6   :  { %v1596_v22 = vpop.permute.xlu2 %1595 }
 0x4f7   :  { %v1629_v53 = vsub.f32 %v4806_v37, %v1596_v22 }
 0x4f9   :  { %1069 = vperm.xlu0 %3288, %v4692_v61   ;;  %v6427_v61 = vld [vmem:[#allocation8_spill] sm:$0xff] }
 0x4fa   :  { %v1490_v55 = vsub.f32 %v6427_v61, %v4527_v54  ;;  %v1656_v54 = vmul.f32 1.442695, %v1629_v53  ;;  %v1219_v61 = vpop.f32.mrf.mxu1  ;;  %v6429_v53 = vld [vmem:[#allocation7_spill] sm:$0xff] }
 0x4fb   :  { %vm6430_vm3 = vcmp.gt.f32.partialorder %v6429_v53, 0.5 }
 0x4fe   :  { %v5056_v3 = vpop.permute.xlu2 %1605 }
 0x501   :  { %1084 = vperm.xlu0 %3288, %v4695_v6   ;;  %v1034_v6 = vld [vmem:[#allocation4 + $0x18] sm:$0xff] }
 0x502   :  { %v1586_v14 = vpop.permute.xlu0 %1585 }
 0x503   :  { %v1627_v27 = vsub.f32 %v4867_v7, %v1586_v14  ;;  %v1506_v7 = vmul.f32 1.442695, %v1490_v55  ;;  %v1628_v14 = vsub.f32 %v4797_v24, %v1591_v1  ;;  %v1036_v55 = vld [vmem:[#allocation4 + $0x28] sm:$0xff] }
 0x505   :  { %v1652_v58 = vmul.f32 1.442695, %v1627_v27  ;;  %v1654_v22 = vmul.f32 1.442695, %v1628_v14 }
 0x506   :  { %v5062_v8 = vpop.permute.xlu2 %1615 }
 0x507   :  { %3383 = vpow2.f32 %v1652_v58  ;;  %v6428_v58 = vld [vmem:[#allocation44_spill] sm:$0xff] }
 0x508   :  { %3385 = vpow2.f32 %v1506_v7  ;;  %v1493_v37 = vsub.f32 %v6428_v58, %v6411_v17  ;;  %v1666_v7 = vsel %vm6430_vm3, %v4953_v34, 0.0  ;;  %v1042_v34 = vld [vmem:[#allocation4 + $0x58] sm:$0xff] }
 0x509   :  { %1099 = vperm.xlu0 %3288, %v4817_v21   ;;  %3387 = vpow2.f32 %v1656_v54 }
 0x50a   :  { %v1512_v24 = vmul.f32 1.442695, %v1493_v37  ;;  %3389 = vpow2.f32 %v1654_v22  ;;  %v6432_v37 = vsub.f32 %v4929_v20, %v4934_v5  ;;  %v5122_v20 = vld [vmem:[#allocation2 + $0xf0] sm:$0xff] }
 0x50b   :  { %v1045_v5 = vld [vmem:[#allocation4 + $0x70] sm:$0xff] }
 0x50c   :  { %3391 = vpow2.f32 %v1512_v24  ;;  %v1524_v22 = vmul.f32 1.442695, %v6432_v37 }
 0x50d   :  { %v5071_v32 = vpop.eup %3383 }
 0x50e   :  { %v1065_v30 = vpop.permute.xlu2 %1064  ;;  %v3237_v39 = vpack.c.bf16 %v5071_v32, %v5069_v45 }
 0x50f   :  { %v1130_v21 = vmul.f32 %v1065_v30, %v1034_v6  ;;  %v5084_v6 = vpop.eup %3385  ;;  %v1039_v30 = vld [vmem:[#allocation4 + $0x40] sm:$0xff] }
 0x510   :  { %3238 = vmatmul.msk.bf16.gmra.mxu3 %vm4645_vm6, %v3237_v39  ;;  %v3388_v17 = vpop.eup %3387  ;;  %vm6433_vm6 = vcmp.gt.f32.partialorder %v4091_v62, 0.5 }
 0x511   :  { %v1235_v27 = vadd.f32 %v4999_v35, %v1130_v21  ;;  %1114 = vperm.xlu0 %3288, %v4821_v46   ;;  %v1496_v46 = vsub.f32 %v4737_v63, %v4744_v31  ;;  %v5094_v39 = vpop.eup %3389  ;;  %v5096_v21 = vpop.f32.mrf.mxu1  ;;  %v1669_v31 = vsel %vm6431_vm4, %v4967_v25, 0.0  ;;  %v1671_v59 = vsel %vm6433_vm6, %v4988_v0, 0.0 }
 0x512   :  { %v3240_v54 = vpack.c.bf16 %v3388_v17, %v5094_v39  ;;  %v5099_v58 = vpop.eup %3391 }
 0x513   :  { %1251 = vst.msk [vmem:[#allocation4 + $0x18] sm:$0xff] %vm6312_vm1, %v1235_v27  ;;  %v1518_v14 = vmul.f32 1.442695, %v1496_v46 }
 0x515   :  { %3393 = vpow2.f32 %v1518_v14 }
 0x516   :  { %v1075_v1 = vpop.permute.xlu2 %1074  ;;  %3395 = vpow2.f32 %v1524_v22 }
 0x517   :  { %v1132_v38 = vmul.f32 %v1075_v1, %v1036_v55 }
 0x519   :  { %v1237_v35 = vadd.f32 %v5022_v15, %v1132_v38  ;;  %1798 = vperm.xlu0 %3288, %v5084_v6   ;;  %v5115_v1 = vpop.f32.mrf.mxu1 }
 0x51b   :  { %1253 = vst.msk [vmem:[#allocation4 + $0x28] sm:$0xff] %vm6312_vm1, %v1237_v35  ;;  %v1530_v35 = vmul.f32 1.442695, %v1502_v11  ;;  %v1536_v11 = vmul.f32 1.442695, %v6435_v42  ;;  %v6442_v42 = vld [vmem:[#allocation24_spill] sm:$0xff] }
 0x51c   :  { %1715 = vadd.xlane.f32.xlu2 %v1666_v7 }
 0x51d   :  { %3397 = vpow2.f32 %v1530_v35 }
 0x51e   :  { %v1090_v15 = vpop.permute.xlu2 %1089  ;;  %3399 = vpow2.f32 %v1536_v11  ;;  %v6443_v11 = vld [vmem:[#allocation38_spill] sm:$0xff] }
 0x51f   :  { %v1135_v27 = vmul.f32 %v1090_v15, %v1039_v30 }
 0x520   :  { %3241 = vmatmul.msk.bf16.gmra.mxu3 %vm4725_vm7, %v3240_v54  ;;  %vm6434_vm7 = vcmp.gt.f32.partialorder %v4126_v16, 0.5  ;;  %v1677_v16 = vsel %vm447_vm11, %v3388_v17, 0.0  ;;  %vm6455_vm11 = vmmov %vm6412_vm14 }
 0x521   :  { %v1240_v63 = vadd.f32 %v1212_v41, %v1135_v27  ;;  %1813 = vperm.xlu0 %3288, %v5099_v58   ;;  %v5113_v41 = vpop.eup %3393  ;;  %v1227_v14 = vpop.f32.mrf.mxu1  ;;  %v1674_v0 = vsel %vm6434_vm7, %v5069_v45, 0.0  ;;  %v1784_v45 = vld [vmem:[#allocation4 + $0xa0] sm:$0xff]  ;;  %vm6463_vm14 = vmmov %vm6423_vm15 }
 0x522   :  { %v5130_v30 = vpop.eup %3395 }
 0x523   :  { %1256 = vst.msk [vmem:[#allocation4 + $0x40] sm:$0xff] %vm6312_vm1, %v1240_v63  ;;  %v5145_v63 = vpop.eup %3397 }
 0x524   :  { %1721 = vadd.xlane.f32.xlu2 %v1669_v31  ;;  %v5154_v9 = vpop.eup %3399 }
 0x526   :  { %v5111_v55 = vpop.f32.mrf.mxu3  ;;  %v1105_v28 = vpop.permute.xlu2 %1104 }
 0x527   :  { %v1138_v24 = vmul.f32 %v1105_v28, %v1042_v34  ;;  %v6436_v28 = vld [vmem:[#allocation42_spill] sm:$0xff] }
 0x528   :  { %v1492_v57 = vsub.f32 %v6436_v28, %v6408_v48  ;;  %v1787_v48 = vld [vmem:[#allocation4 + $0xb8] sm:$0xff]  ;;  %v1033_v28 = vld [vmem:[#allocation4 + $0x10] sm:$0xff] }
 0x529   :  { %v1243_v38 = vadd.f32 %v1219_v61, %v1138_v24  ;;  %1828 = vperm.xlu0 %3288, %v5113_v41  }
 0x52a   :  { %v1510_v17 = vmul.f32 1.442695, %v1492_v57 }
 0x52b   :  { %1259 = vst.msk [vmem:[#allocation4 + $0x58] sm:$0xff] %vm6312_vm1, %v1243_v38  ;;  %v6437_v38 = vld [vmem:[#allocation47_spill] sm:$0xff] }
 0x52c   :  { %1725 = vadd.xlane.f32.xlu2 %v1671_v59  ;;  %3401 = vpow2.f32 %v1510_v17  ;;  %v6439_v59 = vld [vmem:[#allocation10_spill] sm:$0xff] }
 0x52d   :  { %v1471_v25 = vpop.xlane.xlu0 %1470 }
 0x52e   :  { %v5128_v61 = vmax.f32 %v5122_v20, %v1471_v25  ;;  %v1935_v46 = vpop.f32.mrf.mxu3  ;;  %v1120_v53 = vpop.permute.xlu2 %1119 }
 0x52f   :  { %v1141_v7 = vmul.f32 %v1120_v53, %v1045_v5 }
 0x530   :  { %2019 = vst.msk [vmem:[#allocation2 + $0xf0] sm:$0xff] %vm23_vm0, %v5128_v61  ;;  %1610 = vperm.xlu1 %3290, %v5128_v61  }
 0x531   :  { %v1246_v62 = vadd.f32 %v1227_v14, %v1141_v7  ;;  %1843 = vperm.xlu0 %3288, %v5130_v30  }
 0x533   :  { %1262 = vst.msk [vmem:[#allocation4 + $0x70] sm:$0xff] %vm6312_vm1, %v1246_v62 }
 0x534   :  { %1731 = vadd.xlane.f32.xlu2 %v1674_v0  ;;  %v6441_v0 = vld [vmem:[#allocation39_spill] sm:$0xff] }
 0x536   :  { %v5143_v15 = vpop.f32.mrf.mxu3  ;;  %v1804_v54 = vpop.permute.xlu2 %1803 }
 0x537   :  { %v1877_v27 = vmul.f32 %v1804_v54, %v1781_v50  ;;  %v6444_v54 = vsub.f32 %v6442_v42, %v6443_v11 }
 0x538   :  { %1079 = vperm.xlu1 %3290, %v4700_v40  }
 0x539   :  { %v1974_v31 = vadd.f32 %v1935_v46, %v1877_v27  ;;  %1858 = vperm.xlu0 %3288, %v5145_v63   ;;  %v5169_v46 = vpop.eup %3401  ;;  %v1522_v27 = vmul.f32 1.442695, %v6444_v54 }
 0x53b   :  { %1990 = vst.msk [vmem:[#allocation4 + $0x88] sm:$0xff] %vm6312_vm1, %v1974_v31 }
 0x53c   :  { %1737 = vadd.xlane.f32.xlu2 %v1677_v16 }
 0x53e   :  { %v5152_v10 = vpop.f32.mrf.mxu3  ;;  %v1819_v40 = vpop.permute.xlu2 %1818 }
 0x53f   :  { %v1880_v34 = vmul.f32 %v1819_v40, %v1784_v45 }
 0x540   :  { %1094 = vperm.xlu1 %3290, %v4777_v33   ;;  %v6438_v33 = vld [vmem:[#allocation48_spill] sm:$0xff] }
 0x541   :  { %1873 = vperm.xlu0 %3288, %v5154_v9   ;;  %v1495_v5 = vsub.f32 %v6439_v59, %v6438_v33 }
 0x543   :  { %v1516_v25 = vmul.f32 1.442695, %v1495_v5 }
 0x545   :  { %3403 = vpow2.f32 %v1516_v25 }
 0x546   :  { %v1943_v37 = vpop.f32.mrf.mxu3  ;;  %v1834_v7 = vpop.permute.xlu2 %1833 }
 0x547   :  { %v1977_v22 = vadd.f32 %v1943_v37, %v1880_v34  ;;  %v1883_v31 = vmul.f32 %v1834_v7, %v1787_v48  ;;  %v6445_v34 = vld [vmem:[#allocation37_spill] sm:$0xff]  ;;  %v6446_v37 = vld [vmem:[#allocation16_spill] sm:$0xff]  ;;  %v1035_v7 = vld [vmem:[#allocation4 + $0x20] sm:$0xff] }
 0x548   :  { %1109 = vperm.xlu1 %3290, %v4858_v52   ;;  %v6440_v52 = vld [vmem:[#allocation31_spill] sm:$0xff] }
 0x549   :  { %1993 = vst.msk [vmem:[#allocation4 + $0xa0] sm:$0xff] %vm6312_vm1, %v1977_v22  ;;  %v1631_v53 = vsub.f32 %v6440_v52, %v5056_v3  ;;  %v1501_v22 = vsub.f32 %v6446_v37, %v6445_v34  ;;  %v1675_v37 = vsel %vm445_vm13, %v5071_v32, 0.0  ;;  %vm6457_vm13 = vmmov %vm6400_vm9 }
 0x54b   :  { %v1660_v14 = vmul.f32 1.442695, %v1631_v53  ;;  %v5178_v40 = vpop.eup %3403  ;;  %v1528_v33 = vmul.f32 1.442695, %v1501_v22  ;;  %v1504_v53 = vsub.f32 %v5122_v20, %v5128_v61  ;;  %v1038_v20 = vld [vmem:[#allocation4 + $0x38] sm:$0xff]  ;;  %v6450_v61 = vld [vmem:[#allocation13_spill] sm:$0xff] }
 0x54d   :  { %3405 = vpow2.f32 %v1660_v14  ;;  %v6448_v14 = vld [vmem:[#allocation9_spill] sm:$0xff] }
 0x54e   :  { %v5162_v24 = vpop.f32.mrf.mxu3  ;;  %vm6449_vm8 = vcmp.gt.f32.partialorder %v6448_v14, 0.5 }
 0x550   :  { %1124 = vperm.xlu1 %3290, %v6437_v38  }
 0x553   :  { %v5184_v38 = vpop.eup %3405 }
 0x556   :  { %v5167_v35 = vpop.f32.mrf.mxu3 }
 0x558   :  { %1808 = vperm.xlu1 %3290, %v5169_v46  }
 0x55b   :  { %v1601_v62 = vpop.permute.xlu0 %1600 }
 0x55c   :  { %v1630_v50 = vsub.f32 %v6441_v0, %v1601_v62 }
 0x55e   :  { %v1658_v16 = vmul.f32 1.442695, %v1630_v50  ;;  %v1950_v45 = vpop.f32.mrf.mxu3  ;;  %v1534_v50 = vmul.f32 1.442695, %v1504_v53 }
 0x55f   :  { %v1980_v3 = vadd.f32 %v1950_v45, %v1883_v31 }
 0x560   :  { %3407 = vpow2.f32 %v1658_v16  ;;  %1823 = vperm.xlu1 %3290, %v5178_v40  }
 0x561   :  { %3409 = vpow2.f32 %v1522_v27  ;;  %1996 = vst.msk [vmem:[#allocation4 + $0xb8] sm:$0xff] %vm6312_vm1, %v1980_v3  ;;  %v1041_v3 = vld [vmem:[#allocation4 + $0x50] sm:$0xff] }
 0x562   :  { %3411 = vpow2.f32 %v1528_v33  ;;  %v6459_v33 = vld [vmem:[#allocation11_spill] sm:$0xff] }
 0x563   :  { %v1060_v57 = vpop.permute.xlu0 %1059  ;;  %3413 = vpow2.f32 %v1534_v50  ;;  %vm6460_vm5 = vcmp.gt.f32.partialorder %v6459_v33, 0.5 }
 0x564   :  { %v1129_v17 = vmul.f32 %v1060_v57, %v1033_v28  ;;  %v1849_v57 = vpop.permute.xlu2 %1848 }
 0x566   :  { %v3408_v59 = vpop.eup %3407  ;;  %v1234_v5 = vadd.f32 %v4984_v51, %v1129_v17  ;;  %v1668_v51 = vsel %vm6449_vm8, %v4965_v49, 0.0  ;;  %v1044_v17 = vld [vmem:[#allocation4 + $0x68] sm:$0xff] }
 0x567   :  { %v5187_v25 = vpop.eup %3409  ;;  %v3243_v52 = vpack.c.bf16 %v5184_v38, %v3408_v59 }
 0x568   :  { %1250 = vst.msk [vmem:[#allocation4 + $0x10] sm:$0xff] %vm6312_vm1, %v1234_v5  ;;  %1838 = vperm.xlu1 %3290, %v5187_v25   ;;  %v5200_v11 = vpop.eup %3411  ;;  %v1678_v5 = vsel %vm6455_vm11, %v3408_v59, 0.0 }
 0x569   :  { %3244 = vmatmul.msk.bf16.gmra.mxu3 %vm4751_vm2, %v3243_v52  ;;  %vm6451_vm2 = vcmp.gt.f32.partialorder %v6450_v61, 0.5  ;;  %v5208_v16 = vpop.eup %3413 }
 0x56a   :  { %v1672_v54 = vsel %vm6451_vm2, %v5004_v23, 0.0 }
 0x56b   :  { %v1070_v62 = vpop.permute.xlu0 %1069  ;;  %1719 = vadd.xlane.f32.xlu0 %v1668_v51 }
 0x56c   :  { %v1131_v0 = vmul.f32 %v1070_v62, %v1035_v7  ;;  %v5224_v48 = vpop.permute.xlu2 %1863  ;;  %v1780_v7 = vld [vmem:[#allocation4 + $0x80] sm:$0xff] }
 0x56d   :  { %v1683_v62 = vld [vmem:[#allocation3 + $0x80] sm:$0xff] }
 0x56e   :  { %v1236_v42 = vadd.f32 %v5008_v26, %v1131_v0  ;;  %v6452_v26 = vld [vmem:[#allocation17_spill] sm:$0xff]  ;;  %v1699_v50 = vmul.f32 %v5084_v6, %v1683_v62 }
 0x56f   :  { %v1633_v45 = vsub.f32 %v6452_v26, %v5062_v8 }
 0x570   :  { %1252 = vst.msk [vmem:[#allocation4 + $0x20] sm:$0xff] %vm6312_vm1, %v1236_v42  ;;  %1853 = vperm.xlu1 %3290, %v5200_v11  }
 0x571   :  { %v1664_v28 = vmul.f32 1.442695, %v1633_v45 }
 0x573   :  { %v1085_v27 = vpop.permute.xlu0 %1084  ;;  %1727 = vadd.xlane.f32.xlu0 %v1672_v54  ;;  %3415 = vpow2.f32 %v1664_v28 }
 0x574   :  { %v1134_v49 = vmul.f32 %v1085_v27, %v1038_v20  ;;  %v1783_v20 = vld [vmem:[#allocation4 + $0x98] sm:$0xff] }
 0x575   :  { %v1686_v27 = vld [vmem:[#allocation3 + $0x98] sm:$0xff] }
 0x576   :  { %v1239_v31 = vadd.f32 %v5047_v12, %v1134_v49  ;;  %v1702_v26 = vmul.f32 %v5099_v58, %v1686_v27  ;;  %v1694_v27 = vld [vmem:[#allocation3 + $0xd8] sm:$0xff] }
 0x578   :  { %1255 = vst.msk [vmem:[#allocation4 + $0x38] sm:$0xff] %vm6312_vm1, %v1239_v31  ;;  %1868 = vperm.xlu1 %3290, %v5208_v16  }
 0x579   :  { %v5222_v32 = vpop.eup %3415 }
 0x57a   :  { %v1681_v14 = vsel %vm6457_vm13, %v5222_v32, 0.0 }
 0x57b   :  { %v1100_v23 = vpop.permute.xlu0 %1099  ;;  %1733 = vadd.xlane.f32.xlu0 %v1675_v37  ;;  %v1688_v37 = vld [vmem:[#allocation3 + $0xa8] sm:$0xff] }
 0x57c   :  { %v1137_v22 = vmul.f32 %v1100_v23, %v1041_v3  ;;  %v1704_v28 = vmul.f32 %v5178_v40, %v1688_v37  ;;  %v1691_v40 = vld [vmem:[#allocation3 + $0xc0] sm:$0xff] }
 0x57d   :  { %v1043_v37 = vld [vmem:[#allocation4 + $0x60] sm:$0xff] }
 0x57e   :  { %v1242_v12 = vadd.f32 %v5067_v29, %v1137_v22 }
 0x580   :  { %1258 = vst.msk [vmem:[#allocation4 + $0x50] sm:$0xff] %vm6312_vm1, %v1242_v12  ;;  %v1790_v12 = vld [vmem:[#allocation4 + $0xd0] sm:$0xff] }
 0x583   :  { %v1115_v8 = vpop.permute.xlu0 %1114  ;;  %1739 = vadd.xlane.f32.xlu0 %v1678_v5 }
 0x584   :  { %v1140_v52 = vmul.f32 %v1115_v8, %v1044_v17  ;;  %v1789_v8 = vld [vmem:[#allocation4 + $0xc8] sm:$0xff] }
 0x586   :  { %v1245_v53 = vadd.f32 %v5115_v1, %v1140_v52  ;;  %v1886_v52 = vmul.f32 %v1849_v57, %v1790_v12 }
 0x588   :  { %1261 = vst.msk [vmem:[#allocation4 + $0x68] sm:$0xff] %vm6312_vm1, %v1245_v53 }
 0x58b   :  { %v1799_v51 = vpop.permute.xlu0 %1798  ;;  %1745 = vadd.xlane.f32.xlu0 %v1681_v14 }
 0x58c   :  { %v1876_v59 = vmul.f32 %v1799_v51, %v1780_v7 }
 0x58e   :  { %v1973_v0 = vadd.f32 %v5111_v55, %v1876_v59  ;;  %v1786_v55 = vld [vmem:[#allocation4 + $0xb0] sm:$0xff] }
 0x58f   :  { %v1716_v1 = vpop.xlane.xlu2 %1715 }
 0x590   :  { %1989 = vst.msk [vmem:[#allocation4 + $0x80] sm:$0xff] %vm6312_vm1, %v1973_v0  ;;  %v1747_v42 = vadd.f32 %v1716_v1, %v1699_v50  ;;  %v1707_v0 = vmul.f32 %v5187_v25, %v1691_v40  ;;  %v1037_v1 = vld [vmem:[#allocation4 + $0x30] sm:$0xff]  ;;  %v1710_v25 = vmul.f32 %v5200_v11, %v1694_v27 }
 0x592   :  { %1763 = vst.msk [vmem:[#allocation3 + $0x80] sm:$0xff] %vm23_vm0, %v1747_v42  ;;  %v6461_v42 = vld [vmem:[#allocation14_spill] sm:$0xff] }
 0x593   :  { %v1814_v61 = vpop.permute.xlu0 %1813  ;;  %v5234_v54 = vpop.f32.mrf.mxu3  ;;  %vm6462_vm9 = vcmp.gt.f32.partialorder %v6461_v42, 0.5  ;;  %v1791_v42 = vld [vmem:[#allocation4 + $0xd8] sm:$0xff] }
 0x594   :  { %v1879_v49 = vmul.f32 %v1814_v61, %v1783_v20 }
 0x596   :  { %v1976_v31 = vadd.f32 %v5152_v10, %v1879_v49  ;;  %v6458_v10 = vld [vmem:[#allocation22_spill] sm:$0xff] }
 0x597   :  { %v1722_v45 = vpop.xlane.xlu2 %1721  ;;  %v1667_v5 = vsel %vm6460_vm5, %v6458_v10, 0.0 }
 0x598   :  { %1992 = vst.msk [vmem:[#allocation4 + $0x98] sm:$0xff] %vm6312_vm1, %v1976_v31  ;;  %v1750_v6 = vadd.f32 %v1722_v45, %v1702_v26 }
 0x59a   :  { %1766 = vst.msk [vmem:[#allocation3 + $0x98] sm:$0xff] %vm23_vm0, %v1750_v6 }
 0x59b   :  { %v1829_v3 = vpop.permute.xlu0 %1828  ;;  %v1955_v34 = vpop.f32.mrf.mxu3 }
 0x59c   :  { %v1882_v23 = vmul.f32 %v1829_v3, %v1786_v55  ;;  %v1040_v3 = vld [vmem:[#allocation4 + $0x48] sm:$0xff] }
 0x59e   :  { %v1979_v22 = vadd.f32 %v5167_v35, %v1882_v23  ;;  %v6466_v23 = vld [vmem:[#allocation21_spill] sm:$0xff] }
 0x59f   :  { %v1726_v17 = vpop.xlane.xlu2 %1725  ;;  %vm6467_vm15 = vcmp.gt.f32.partialorder %v6466_v23, 0.5 }
 0x5a0   :  { %1995 = vst.msk [vmem:[#allocation4 + $0xb0] sm:$0xff] %vm6312_vm1, %v1979_v22  ;;  %v1752_v58 = vadd.f32 %v1726_v17, %v1704_v28  ;;  %v1676_v22 = vsel %vm6467_vm15, %v5094_v39, 0.0  ;;  %v1782_v39 = vld [vmem:[#allocation4 + $0x90] sm:$0xff] }
 0x5a2   :  { %1768 = vst.msk [vmem:[#allocation3 + $0xa8] sm:$0xff] %vm23_vm0, %v1752_v58  ;;  %1717 = vadd.xlane.f32.xlu1 %v1667_v5  ;;  %v1611_v53 = vpop.permute.xlu1 %1610  ;;  %v6468_v58 = vld [vmem:[#allocation23_spill] sm:$0xff]  ;;  %v1229_v5 = vpop.f32.mrf.mxu1 }
 0x5a3   :  { %v1632_v7 = vsub.f32 %v4980_v2, %v1611_v53  ;;  %v1844_v35 = vpop.permute.xlu0 %1843  ;;  %v1958_v29 = vpop.f32.mrf.mxu3  ;;  %v1670_v2 = vsel %vm6462_vm9, %v4986_v43, 0.0 }
 0x5a4   :  { %v1885_v14 = vmul.f32 %v1844_v35, %v1789_v8  ;;  %v1983_v51 = vadd.f32 %v1958_v29, %v1886_v52  ;;  %v1785_v35 = vld [vmem:[#allocation4 + $0xa8] sm:$0xff] }
 0x5a5   :  { %v1662_v62 = vmul.f32 1.442695, %v1632_v7 }
 0x5a6   :  { %v1982_v59 = vadd.f32 %v1955_v34, %v1885_v14  ;;  %1999 = vst.msk [vmem:[#allocation4 + $0xd0] sm:$0xff] %vm6312_vm1, %v1983_v51  ;;  %v1788_v51 = vld [vmem:[#allocation4 + $0xc0] sm:$0xff]  ;;  %v1793_v34 = vld [vmem:[#allocation4 + $0xe8] sm:$0xff] }
 0x5a7   :  { %3417 = vpow2.f32 %v1662_v62  ;;  %v1732_v50 = vpop.xlane.xlu2 %1731 }
 0x5a8   :  { %1998 = vst.msk [vmem:[#allocation4 + $0xc8] sm:$0xff] %vm6312_vm1, %v1982_v59  ;;  %v1755_v57 = vadd.f32 %v1732_v50, %v1707_v0  ;;  %v1685_v59 = vld [vmem:[#allocation3 + $0x90] sm:$0xff] }
 0x5aa   :  { %1771 = vst.msk [vmem:[#allocation3 + $0xc0] sm:$0xff] %vm23_vm0, %v1755_v57  ;;  %1723 = vadd.xlane.f32.xlu1 %v1670_v2  ;;  %v1080_v20 = vpop.permute.xlu1 %1079  ;;  %v1701_v57 = vmul.f32 %v5169_v46, %v1685_v59  ;;  %v1689_v2 = vld [vmem:[#allocation3 + $0xb0] sm:$0xff]  ;;  %v1692_v46 = vld [vmem:[#allocation3 + $0xc8] sm:$0xff] }
 0x5ab   :  { %v1133_v61 = vmul.f32 %v1080_v20, %v1037_v1  ;;  %v1859_v7 = vpop.permute.xlu0 %1858 }
 0x5ad   :  { %v3418_v49 = vpop.eup %3417  ;;  %v1238_v31 = vadd.f32 %v5030_v4, %v1133_v61  ;;  %v1673_v4 = vsel %vm443_vm10, %v5006_v44, 0.0  ;;  %v1046_v44 = vld [vmem:[#allocation4 + $0x78] sm:$0xff]  ;;  %vm6469_vm10 = vcmp.gt.f32.partialorder %v6468_v58, 0.5  ;;  %v1960_v61 = vpop.f32.mrf.mxu3 }
 0x5ae   :  { %v1680_v26 = vsel %vm6463_vm14, %v3418_v49, 0.0  ;;  %v3246_v45 = vpack.c.bf16 %v5222_v32, %v3418_v49  ;;  %v1679_v10 = vsel %vm6469_vm10, %v5184_v38, 0.0  ;;  %v1705_v49 = vmul.f32 %v5113_v41, %v1689_v2  ;;  %v1695_v41 = vld [vmem:[#allocation3 + $0xe0] sm:$0xff] }
 0x5af   :  { %1254 = vst.msk [vmem:[#allocation4 + $0x30] sm:$0xff] %vm6312_vm1, %v1238_v31  ;;  %v1738_v6 = vpop.xlane.xlu2 %1737  ;;  %1743 = vadd.xlane.f32.xlu2 %v1680_v26 }
 0x5b0   :  { %v1758_v43 = vadd.f32 %v1738_v6, %v1710_v25  ;;  %3247 = vmatmul.msk.bf16.gmra.mxu3 %vm4852_vm12, %v3246_v45  ;;  %v1792_v25 = vld [vmem:[#allocation4 + $0xe0] sm:$0xff] }
 0x5b1   :  { %v1888_v26 = vmul.f32 %v1859_v7, %v1792_v25 }
 0x5b2   :  { %1774 = vst.msk [vmem:[#allocation3 + $0xd8] sm:$0xff] %vm23_vm0, %v1758_v43  ;;  %1729 = vadd.xlane.f32.xlu1 %v1673_v4  ;;  %v1095_v36 = vpop.permute.xlu1 %1094  ;;  %v1708_v43 = vmul.f32 %v5130_v30, %v1692_v46  ;;  %v1889_v4 = vmul.f32 %v5224_v48, %v1793_v34  ;;  %v1698_v30 = vld [vmem:[#allocation3 + $0xf8] sm:$0xff] }
 0x5b3   :  { %v1136_v11 = vmul.f32 %v1095_v36, %v1040_v3  ;;  %v5281_v14 = vpop.permute.xlu0 %1873 }
 0x5b5   :  { %v1241_v32 = vadd.f32 %v5059_v18, %v1136_v11 }
 0x5b7   :  { %1257 = vst.msk [vmem:[#allocation4 + $0x48] sm:$0xff] %vm6312_vm1, %v1241_v32  ;;  %v1711_v32 = vmul.f32 %v5145_v63, %v1695_v41  ;;  %v1687_v63 = vld [vmem:[#allocation3 + $0xa0] sm:$0xff] }
 0x5ba   :  { %1735 = vadd.xlane.f32.xlu1 %v1676_v22  ;;  %v1110_v28 = vpop.permute.xlu1 %1109  ;;  %v1714_v22 = vmul.f32 %v5154_v9, %v1698_v30 }
 0x5bb   :  { %v1139_v12 = vmul.f32 %v1110_v28, %v1043_v37 }
 0x5bd   :  { %v1244_v17 = vadd.f32 %v5096_v21, %v1139_v12 }
 0x5bf   :  { %1260 = vst.msk [vmem:[#allocation4 + $0x60] sm:$0xff] %vm6312_vm1, %v1244_v17 }
 0x5c2   :  { %1741 = vadd.xlane.f32.xlu1 %v1679_v10  ;;  %v1125_v18 = vpop.permute.xlu1 %1124 }
 0x5c3   :  { %v1142_v33 = vmul.f32 %v1125_v18, %v1046_v44  ;;  %v1684_v44 = vld [vmem:[#allocation3 + $0x88] sm:$0xff]  ;;  %v1703_v18 = vmul.f32 %v5020_v13, %v1687_v63 }
 0x5c4   :  { %v1700_v48 = vmul.f32 %v5012_v19, %v1684_v44 }
 0x5c5   :  { %v1247_v8 = vadd.f32 %v1229_v5, %v1142_v33 }
 0x5c7   :  { %1263 = vst.msk [vmem:[#allocation4 + $0x78] sm:$0xff] %vm6312_vm1, %v1247_v8  ;;  %v1697_v8 = vld [vmem:[#allocation3 + $0xf0] sm:$0xff] }
 0x5c8   :  { %v1713_v9 = vmul.f32 %v5208_v16, %v1697_v8  ;;  %v1696_v16 = vld [vmem:[#allocation3 + $0xe8] sm:$0xff] }
 0x5ca   :  { %v1809_v52 = vpop.permute.xlu1 %1808 }
 0x5cb   :  { %v1878_v53 = vmul.f32 %v1809_v52, %v1782_v39  ;;  %v1690_v39 = vld [vmem:[#allocation3 + $0xb8] sm:$0xff] }
 0x5cc   :  { %v1706_v7 = vmul.f32 %v5027_v56, %v1690_v39  ;;  %v1712_v56 = vmul.f32 %v5050_v47, %v1696_v16 }
 0x5cd   :  { %v1975_v21 = vadd.f32 %v5143_v15, %v1878_v53 }
 0x5cf   :  { %1991 = vst.msk [vmem:[#allocation4 + $0x90] sm:$0xff] %vm6312_vm1, %v1975_v21 }
 0x5d2   :  { %v1824_v29 = vpop.permute.xlu1 %1823 }
 0x5d3   :  { %v1881_v40 = vmul.f32 %v1824_v29, %v1785_v35  ;;  %v1693_v35 = vld [vmem:[#allocation3 + $0xd0] sm:$0xff] }
 0x5d4   :  { %v1709_v13 = vmul.f32 %v5044_v60, %v1693_v35 }
 0x5d5   :  { %v1978_v38 = vadd.f32 %v5162_v24, %v1881_v40 }
 0x5d7   :  { %1994 = vst.msk [vmem:[#allocation4 + $0xa8] sm:$0xff] %vm6312_vm1, %v1978_v38  ;;  %v1794_v38 = vld [vmem:[#allocation4 + $0xf0] sm:$0xff] }
 0x5da   :  { %v1839_v62 = vpop.permute.xlu1 %1838 }
 0x5db   :  { %v1884_v0 = vmul.f32 %v1839_v62, %v1788_v51 }
 0x5dd   :  { %v1981_v50 = vadd.f32 %v5234_v54, %v1884_v0 }
 0x5de   :  { %v1720_v15 = vpop.xlane.xlu0 %1719 }
 0x5df   :  { %1997 = vst.msk [vmem:[#allocation4 + $0xc0] sm:$0xff] %vm6312_vm1, %v1981_v50  ;;  %v1749_v1 = vadd.f32 %v1720_v15, %v1701_v57  ;;  %v1795_v57 = vld [vmem:[#allocation4 + $0xf8] sm:$0xff] }
 0x5e0   :  { %v1891_v60 = vmul.f32 %v5281_v14, %v1795_v57 }
 0x5e1   :  { %1765 = vst.msk [vmem:[#allocation3 + $0x90] sm:$0xff] %vm23_vm0, %v1749_v1 }
 0x5e2   :  { %v1854_v24 = vpop.permute.xlu1 %1853 }
 0x5e3   :  { %v1887_v20 = vmul.f32 %v1854_v24, %v1791_v42 }
 0x5e5   :  { %v1984_v27 = vadd.f32 %v1960_v61, %v1887_v20 }
 0x5e6   :  { %v1728_v31 = vpop.xlane.xlu0 %1727 }
 0x5e7   :  { %2000 = vst.msk [vmem:[#allocation4 + $0xd8] sm:$0xff] %vm6312_vm1, %v1984_v27  ;;  %v1753_v54 = vadd.f32 %v1728_v31, %v1705_v49 }
 0x5e9   :  { %1769 = vst.msk [vmem:[#allocation3 + $0xb0] sm:$0xff] %vm23_vm0, %v1753_v54 }
 0x5ea   :  { %v1869_v17 = vpop.permute.xlu1 %1868 }
 0x5eb   :  { %v1890_v51 = vmul.f32 %v1869_v17, %v1794_v38 }
 0x5ec   :  { %v1963_v45 = vpop.f32.mrf.mxu3 }
 0x5ed   :  { %v1985_v6 = vadd.f32 %v1963_v45, %v1888_v26 }
 0x5ee   :  { %v1734_v55 = vpop.xlane.xlu0 %1733 }
 0x5ef   :  { %2001 = vst.msk [vmem:[#allocation4 + $0xe0] sm:$0xff] %vm6312_vm1, %v1985_v6  ;;  %v1756_v3 = vadd.f32 %v1734_v55, %v1708_v43 }
 0x5f1   :  { %1772 = vst.msk [vmem:[#allocation3 + $0xc8] sm:$0xff] %vm23_vm0, %v1756_v3 }
 0x5f4   :  { %v1965_v36 = vpop.f32.mrf.mxu3 }
 0x5f5   :  { %v1986_v11 = vadd.f32 %v1965_v36, %v1889_v4 }
 0x5f6   :  { %v1740_v37 = vpop.xlane.xlu0 %1739 }
 0x5f7   :  { %2002 = vst.msk [vmem:[#allocation4 + $0xe8] sm:$0xff] %vm6312_vm1, %v1986_v11  ;;  %v1759_v23 = vadd.f32 %v1740_v37, %v1711_v32 }
 0x5f9   :  { %1775 = vst.msk [vmem:[#allocation3 + $0xe0] sm:$0xff] %vm23_vm0, %v1759_v23 }
 0x5fe   :  { %v1746_v28 = vpop.xlane.xlu0 %1745 }
 0x5ff   :  { %v1762_v12 = vadd.f32 %v1746_v28, %v1714_v22 }
 0x601   :  { %1778 = vst.msk [vmem:[#allocation3 + $0xf8] sm:$0xff] %vm23_vm0, %v1762_v12 }
 0x615   :  { %v1718_v58 = vpop.xlane.xlu1 %1717 }
 0x616   :  { %v1748_v10 = vadd.f32 %v1718_v58, %v1700_v48 }
 0x618   :  { %1764 = vst.msk [vmem:[#allocation3 + $0x88] sm:$0xff] %vm23_vm0, %v1748_v10 }
 0x61d   :  { %v1724_v33 = vpop.xlane.xlu1 %1723 }
 0x61e   :  { %v1751_v5 = vadd.f32 %v1724_v33, %v1703_v18 }
 0x620   :  { %1767 = vst.msk [vmem:[#allocation3 + $0xa0] sm:$0xff] %vm23_vm0, %v1751_v5 }
 0x622   :  { %v1744_v52 = vpop.xlane.xlu2 %1743 }
 0x623   :  { %v1761_v53 = vadd.f32 %v1744_v52, %v1713_v9 }
 0x625   :  { %1777 = vst.msk [vmem:[#allocation3 + $0xf0] sm:$0xff] %vm23_vm0, %v1761_v53  ;;  %v1730_v19 = vpop.xlane.xlu1 %1729 }
 0x626   :  { %v1754_v21 = vadd.f32 %v1730_v19, %v1706_v7 }
 0x628   :  { %1770 = vst.msk [vmem:[#allocation3 + $0xb8] sm:$0xff] %vm23_vm0, %v1754_v21 }
 0x62d   :  { %v1736_v29 = vpop.xlane.xlu1 %1735 }
 0x62e   :  { %v1757_v40 = vadd.f32 %v1736_v29, %v1709_v13 }
 0x630   :  { %1773 = vst.msk [vmem:[#allocation3 + $0xd0] sm:$0xff] %vm23_vm0, %v1757_v40 }
 0x633   :  { %v1968_v62 = vpop.f32.mrf.mxu3 }
 0x634   :  { %v1987_v59 = vadd.f32 %v1968_v62, %v1890_v51 }
 0x635   :  { %v1742_v0 = vpop.xlane.xlu1 %1741 }
 0x636   :  { %2003 = vst.msk [vmem:[#allocation4 + $0xf0] sm:$0xff] %vm6312_vm1, %v1987_v59  ;;  %v1760_v50 = vadd.f32 %v1742_v0, %v1712_v56 }
 0x638   :  { %1776 = vst.msk [vmem:[#allocation3 + $0xe8] sm:$0xff] %vm23_vm0, %v1760_v50 }
 0x63b   :  { %v1970_v15 = vpop.f32.mrf.mxu3 }
 0x63c   :  { %v1988_v1 = vadd.f32 %v1970_v15, %v1891_v60 }
 0x63e   :  { %2004 = vst.msk [vmem:[#allocation4 + $0xf8] sm:$0xff] %vm6312_vm1, %v1988_v1 }
 0x63f PF:  { %v5315_v42 = vld [vmem:[#allocation3 + $0x20] sm:$0xff]  ;;  %v5317_v24 = vld [vmem:[#allocation3 + $0x10] sm:$0xff]  ;;  %v3492_v47 = vmov 0   ;;  %v5326_v31 = vld [vmem:[#allocation3 + $0x28] sm:$0xff]  ;;  %s3493_s4 = smov 64  }
 0x640   :  { %v5319_v2 = vld [vmem:[#allocation3] sm:$0xff]  ;;  %3421 = vset.pattern.permute.xlu2 %v3492_v47  ;;  %3420 = vset.pattern.permute.xlu1 %v3492_v47  ;;  %v2060_v20 = vmax.f32 %v5315_v42, 1e-30  ;;  %v2058_v61 = vmax.f32 %v5317_v24, 1e-30  ;;  %v5328_v54 = vld [vmem:[#allocation3 + $0x18] sm:$0xff] }
 0x641   :  { %3419 = vset.pattern.permute.xlu0 %v3492_v47  ;;  %v5324_v14 = vmax.f32 %v5319_v2, 1e-30  ;;  %v5333_v6 = vld [vmem:[#allocation3 + $0x8] sm:$0xff]  ;;  %v5336_v43 = vmax.f32 %v5326_v31, 1e-30  ;;  %vm2044_vm6 = vcmp.gt.f32.partialorder %v5315_v42, 0.0 }
 0x642   :  { %3422 = vrcp.f32 %v2060_v20  ;;  %v2141_v27 = vand.u32 2147483647, %v2060_v20  ;;  %v2143_v49 = vand.u32 2147483648, %v2060_v20  ;;  %v2111_v25 = vand.u32 2147483647, %v2058_v61  ;;  %v5392_v29 = vld [vmem:[#allocation3 + $0x40] sm:$0xff] }
 0x643   :  { %3424 = vrcp.f32 %v2058_v61  ;;  %v2113_v46 = vand.u32 2147483648, %v2058_v61  ;;  %v2081_v26 = vand.u32 2147483647, %v5324_v14  ;;  %v2083_v45 = vand.u32 2147483648, %v5324_v14 }
 0x644   :  { %3426 = vrcp.f32 %v5324_v14  ;;  %vm2137_vm0 = vweird.f32 %v2060_v20  ;;  %v5339_v55 = vmax.f32 %v5328_v54, 1e-30  ;;  %vm5341_vm12 = vcmp.eq.f32.partialorder %v2141_v27, 8.507059e+37 }
 0x645   :  { %v2144_v34 = vor.u32 1.1754944e-38, %v2143_v49  ;;  %vm2107_vm3 = vweird.f32 %v2058_v61  ;;  %vm2077_vm4 = vweird.f32 %v5324_v14  ;;  %vm5347_vm7 = vcmp.eq.f32.partialorder %v2111_v25, 8.507059e+37 }
 0x646   :  { %v2114_v36 = vor.u32 1.1754944e-38, %v2113_v46  ;;  %3428 = vrcp.f32 %v5336_v43  ;;  %v5353_v11 = vmax.f32 %v5333_v6, 1e-30  ;;  %vm2042_vm8 = vcmp.gt.f32.partialorder %v5317_v24, 0.0  ;;  %v5429_v46 = vld [vmem:[#allocation3 + $0x38] sm:$0xff] }
 0x647   :  { %vm5356_vm2 = vcmp.eq.f32.partialorder %v2081_v26, 8.507059e+37  ;;  %v2084_v30 = vor.u32 1.1754944e-38, %v2083_v45  ;;  %3430 = vrcp.f32 %v5339_v55  ;;  %v2156_v12 = vand.u32 2147483647, %v5336_v43 }
 0x648   :  { %v3423_v41 = vpop.eup %3422  ;;  %v2158_v17 = vand.u32 2147483648, %v5336_v43  ;;  %v2126_v58 = vand.u32 2147483647, %v5339_v55  ;;  %v2128_v63 = vand.u32 2147483648, %v5339_v55  ;;  %3432 = vrcp.f32 %v5353_v11 }
 0x649   :  { %v3425_v32 = vpop.eup %3424  ;;  %v2133_v37 = vmul.f32 %v3423_v41, %v2060_v20  ;;  %vm2138_vm5 = vweird.f32 %v3423_v41  ;;  %vm2045_vm1 = vcmp.gt.f32.partialorder %v5326_v31, 0.0  ;;  %vm5376_vm11 = vcmp.eq.f32.partialorder %v2156_v12, 8.507059e+37 }
 0x64a   :  { %v3427_v22 = vpop.eup %3426  ;;  %v2103_v28 = vmul.f32 %v3425_v32, %v2058_v61  ;;  %vm2108_vm9 = vweird.f32 %v3425_v32  ;;  %vm5371_vm10 = vmor %vm2137_vm0, %vm2138_vm5  ;;  %v2159_v52 = vor.u32 1.1754944e-38, %v2158_v17  ;;  %vm2092_vm13 = vweird.f32 %v5353_v11 }
 0x64b   :  { %v2134_v44 = vsub.f32 1.0, %v2133_v37  ;;  %v2073_v48 = vmul.f32 %v3427_v22, %v5324_v14  ;;  %vm2078_vm14 = vweird.f32 %v3427_v22  ;;  %vm5383_vm15 = vmor %vm2107_vm3, %vm2108_vm9  ;;  %vm5388_vm0 = vcmp.eq.f32.partialorder %v2126_v58, 8.507059e+37  ;;  %v5453_v37 = vld [vmem:[#allocation3 + $0x30] sm:$0xff]  ;;  %v5475_v58 = vld [vmem:[#allocation3 + $0x58] sm:$0xff] }
 0x64c   :  { %v2104_v10 = vsub.f32 1.0, %v2103_v28  ;;  %v3429_v5 = vpop.eup %3428  ;;  %vm5397_vm5 = vmor %vm2077_vm4, %vm2078_vm14  ;;  %v2129_v51 = vor.u32 1.1754944e-38, %v2128_v63  ;;  %v5409_v15 = vmax.f32 %v5392_v29, 1e-30  ;;  %vm2043_vm14 = vcmp.gt.f32.partialorder %v5328_v54, 0.0 }
 0x64d   :  { %v2135_v18 = vmul.f32 %v3423_v41, %v2134_v44  ;;  %v2074_v33 = vsub.f32 1.0, %v2073_v48  ;;  %v3431_v53 = vpop.eup %3430  ;;  %v2148_v35 = vmul.f32 %v3429_v5, %v5336_v43  ;;  %vm2153_vm3 = vweird.f32 %v3429_v5 }
 0x64e   :  { %v2105_v9 = vmul.f32 %v3425_v32, %v2104_v10  ;;  %v2118_v16 = vmul.f32 %v3431_v53, %v5339_v55  ;;  %vm2123_vm9 = vweird.f32 %v3431_v53  ;;  %v3433_v0 = vpop.eup %3432  ;;  %3434 = vrcp.f32 %v5409_v15  ;;  %v5477_v10 = vld [vmem:[#allocation3 + $0x50] sm:$0xff] }
 0x64f   :  { %v2136_v7 = vadd.f32 %v3423_v41, %v2135_v18  ;;  %v2075_v21 = vmul.f32 %v3427_v22, %v2074_v33  ;;  %v2149_v56 = vsub.f32 1.0, %v2148_v35  ;;  %v2088_v25 = vmul.f32 %v3433_v0, %v5353_v11 }
 0x650   :  { %v2106_v40 = vadd.f32 %v3425_v32, %v2105_v9  ;;  %v2119_v60 = vsub.f32 1.0, %v2118_v16  ;;  %v5468_v31 = vmax.f32 %v5453_v37, 1e-30  ;;  %v2201_v48 = vand.u32 2147483647, %v5409_v15 }
 0x651   :  { %v2140_v62 = vsel %vm5371_vm10, %v3423_v41, %v2136_v7  ;;  %v2076_v59 = vadd.f32 %v3427_v22, %v2075_v21  ;;  %v2150_v61 = vmul.f32 %v3429_v5, %v2149_v56  ;;  %v2096_v41 = vand.u32 2147483647, %v5353_v11  ;;  %v5513_v56 = vld [vmem:[#allocation3 + $0x48] sm:$0xff] }
 0x652   :  { %v2145_v50 = vsel %vm5341_vm12, %v2144_v34, %v2140_v62  ;;  %v2110_v57 = vsel %vm5383_vm15, %v3425_v32, %v2106_v40  ;;  %vm6486_vm12 = vweird.f32 %v5336_v43  ;;  %v2120_v49 = vmul.f32 %v3431_v53, %v2119_v60  ;;  %v5617_v62 = vld [vmem:[#allocation3 + $0x88] sm:$0xff] }
 0x653   :  { %v2316_v1 = vsel %vm2044_vm6, %v2145_v50, 0.0  ;;  %v2115_v47 = vsel %vm5347_vm7, %v2114_v36, %v2110_v57  ;;  %v2080_v20 = vsel %vm5397_vm5, %v3427_v22, %v2076_v59  ;;  %vm5424_vm4 = vmor %vm6486_vm12, %vm2153_vm3  ;;  %vm6489_vm6 = vcmp.gt.f32.partialorder %v5319_v2, 0.0 }
 0x654   :  { %2366 = vperm.xlu2 %3421, %v2316_v1   ;;  %v2314_v14 = vsel %vm2042_vm8, %v2115_v47, 0.0  ;;  %v2085_v27 = vsel %vm5356_vm2, %v2084_v30, %v2080_v20  ;;  %v2151_v26 = vadd.f32 %v3429_v5, %v2150_v61  ;;  %vm6490_vm7 = vweird.f32 %v5339_v55  ;;  %v3435_v17 = vpop.eup %3434 }
 0x655   :  { %2356 = vperm.xlu1 %3420, %v2314_v14   ;;  %v2312_v24 = vsel %vm6489_vm6, %v2085_v27, 0.0  ;;  %vm5436_vm8 = vmor %vm6490_vm7, %vm2123_vm9  ;;  %v2098_v43 = vand.u32 2147483648, %v5353_v11  ;;  %v2121_v3 = vadd.f32 %v3431_v53, %v2120_v49  ;;  %v2089_v34 = vsub.f32 1.0, %v2088_v25 }
 0x656   :  { %2346 = vperm.xlu0 %3419, %v2312_v24   ;;  %vm2093_vm2 = vweird.f32 %v3433_v0  ;;  %v2155_v2 = vsel %vm5424_vm4, %v3429_v5, %v2151_v26  ;;  %v5447_v55 = vmax.f32 %v5429_v46, 1e-30  ;;  %vm2041_vm10 = vcmp.gt.f32.partialorder %v5333_v6, 0.0 }
 0x657   :  { %v2160_v4 = vsel %vm5376_vm11, %v2159_v52, %v2155_v2  ;;  %v2125_v36 = vsel %vm5436_vm8, %v3431_v53, %v2121_v3  ;;  %v2090_v32 = vmul.f32 %v3433_v0, %v2089_v34  ;;  %vm5461_vm15 = vmor %vm2092_vm13, %vm2093_vm2  ;;  %v2099_v22 = vor.u32 1.1754944e-38, %v2098_v43 }
 0x658   :  { %v2317_v23 = vsel %vm2045_vm1, %v2160_v4, 0.0  ;;  %v2130_v30 = vsel %vm5388_vm0, %v2129_v51, %v2125_v36  ;;  %3436 = vrcp.f32 %v5447_v55  ;;  %vm2097_vm11 = vcmp.eq.f32.partialorder %v2096_v41, 8.507059e+37  ;;  %v5548_v41 = vld [vmem:[#allocation3 + $0x68] sm:$0xff] }
 0x659   :  { %v2315_v28 = vsel %vm2043_vm14, %v2130_v30, 0.0  ;;  %v2091_v12 = vadd.f32 %v3433_v0, %v2090_v32  ;;  %vm2048_vm1 = vcmp.gt.f32.partialorder %v5392_v29, 0.0  ;;  %v2193_v44 = vmul.f32 %v3435_v17, %v5409_v15 }
 0x65a   :  { %vm2197_vm13 = vweird.f32 %v5409_v15  ;;  %v2203_v6 = vand.u32 2147483648, %v5409_v15  ;;  %3438 = vrcp.f32 %v5468_v31  ;;  %vm2198_vm0 = vweird.f32 %v3435_v17  ;;  %v5522_v15 = vld [vmem:[#allocation3 + $0x70] sm:$0xff] }
 0x65b   :  { %v2095_v11 = vsel %vm5461_vm15, %v3433_v0, %v2091_v12  ;;  %v2194_v33 = vsub.f32 1.0, %v2193_v44  ;;  %v2186_v5 = vand.u32 2147483647, %v5447_v55  ;;  %vm2047_vm5 = vcmp.gt.f32.partialorder %v5429_v46, 0.0  ;;  %vm5499_vm9 = vmor %vm2197_vm13, %vm2198_vm0 }
 0x65c   :  { %2371 = vperm.xlu2 %3421, %v2317_v23   ;;  %v2100_v63 = vsel %vm2097_vm11, %v2099_v22, %v2095_v11  ;;  %v2188_v9 = vand.u32 2147483648, %v5447_v55  ;;  %v5486_v39 = vmax.f32 %v5475_v58, 1e-30  ;;  %v5489_v52 = vmax.f32 %v5477_v10, 1e-30 }
 0x65d   :  { %2361 = vperm.xlu1 %3420, %v2315_v28   ;;  %v2313_v18 = vsel %vm2041_vm10, %v2100_v63, 0.0  ;;  %v2195_v53 = vmul.f32 %v3435_v17, %v2194_v33  ;;  %vm5491_vm3 = vcmp.eq.f32.partialorder %v2201_v48, 8.507059e+37  ;;  %v2171_v21 = vand.u32 2147483647, %v5468_v31 }
 0x65e   :  { %v3437_v8 = vpop.eup %3436  ;;  %2351 = vperm.xlu0 %3419, %v2313_v18   ;;  %v2204_v13 = vor.u32 1.1754944e-38, %v2203_v6  ;;  %vm2182_vm12 = vweird.f32 %v5447_v55  ;;  %v2173_v40 = vand.u32 2147483648, %v5468_v31  ;;  %3440 = vrcp.f32 %v5486_v39 }
 0x65f   :  { %v2178_v19 = vmul.f32 %v3437_v8, %v5447_v55  ;;  %v2196_v38 = vadd.f32 %v3435_v17, %v2195_v53  ;;  %vm2183_vm4 = vweird.f32 %v3437_v8  ;;  %3442 = vrcp.f32 %v5489_v52 }
 0x660   :  { %v3439_v51 = vpop.eup %3438  ;;  %vm5507_vm6 = vcmp.eq.f32.partialorder %v2186_v5, 8.507059e+37  ;;  %v2189_v59 = vor.u32 1.1754944e-38, %v2188_v9  ;;  %vm2046_vm7 = vcmp.gt.f32.partialorder %v5453_v37, 0.0  ;;  %vm2167_vm8 = vweird.f32 %v5468_v31  ;;  %vm5528_vm14 = vmor %vm2182_vm12, %vm2183_vm4 }
 0x661   :  { %v2179_v16 = vsub.f32 1.0, %v2178_v19  ;;  %v2200_v0 = vsel %vm5499_vm9, %v3435_v17, %v2196_v38  ;;  %v2163_v57 = vmul.f32 %v3439_v51, %v5468_v31  ;;  %vm5518_vm2 = vcmp.eq.f32.partialorder %v2171_v21, 8.507059e+37 }
 0x662   :  { %v2205_v1 = vsel %vm5491_vm3, %v2204_v13, %v2200_v0  ;;  %vm2168_vm15 = vweird.f32 %v3439_v51  ;;  %v2174_v20 = vor.u32 1.1754944e-38, %v2173_v40  ;;  %vm2242_vm11 = vweird.f32 %v5486_v39  ;;  %v5610_v13 = vld [vmem:[#allocation3 + $0x60] sm:$0xff]  ;;  %v5734_v0 = vld [vmem:[#allocation3 + $0x90] sm:$0xff] }
 0x663   :  { %v2180_v50 = vmul.f32 %v3437_v8, %v2179_v16  ;;  %v2320_v61 = vsel %vm2048_vm1, %v2205_v1, 0.0  ;;  %v2164_v27 = vsub.f32 1.0, %v2163_v57  ;;  %v5536_v42 = vmax.f32 %v5513_v56, 1e-30  ;;  %vm5555_vm1 = vmor %vm2167_vm8, %vm2168_vm15  ;;  %v5629_v1 = vld [vmem:[#allocation3 + $0x80] sm:$0xff] }
 0x664   :  { %v3441_v49 = vpop.eup %3440  ;;  %2386 = vperm.xlu2 %3421, %v2320_v61   ;;  %v2246_v25 = vand.u32 2147483647, %v5486_v39  ;;  %v2248_v24 = vand.u32 2147483648, %v5486_v39  ;;  %vm2227_vm10 = vweird.f32 %v5489_v52  ;;  %v5542_v26 = vmax.f32 %v5522_v15, 1e-30 }
 0x665   :  { %v2181_v14 = vadd.f32 %v3437_v8, %v2180_v50  ;;  %v3443_v45 = vpop.eup %3442  ;;  %v2165_v43 = vmul.f32 %v3439_v51, %v2164_v27  ;;  %v2238_v3 = vmul.f32 %v3441_v49, %v5486_v39  ;;  %v2231_v34 = vand.u32 2147483647, %v5489_v52 }
 0x666   :  { %v2223_v4 = vmul.f32 %v3443_v45, %v5489_v52  ;;  %v2233_v36 = vand.u32 2147483648, %v5489_v52  ;;  %3444 = vrcp.f32 %v5536_v42  ;;  %vm2243_vm13 = vweird.f32 %v3441_v49 }
 0x667   :  { %v2185_v29 = vsel %vm5528_vm14, %v3437_v8, %v2181_v14  ;;  %v2166_v23 = vadd.f32 %v3439_v51, %v2165_v43  ;;  %v2239_v30 = vsub.f32 1.0, %v2238_v3  ;;  %vm2228_vm0 = vweird.f32 %v3443_v45 }
 0x668   :  { %v2190_v2 = vsel %vm5507_vm6, %v2189_v59, %v2185_v29  ;;  %v2224_v54 = vsub.f32 1.0, %v2223_v4  ;;  %3446 = vrcp.f32 %v5542_v26  ;;  %v5566_v22 = vmax.f32 %v5548_v41, 1e-30  ;;  %vm5588_vm4 = vmor %vm2227_vm10, %vm2228_vm0 }
 0x669   :  { %v2319_v32 = vsel %vm2047_vm5, %v2190_v2, 0.0  ;;  %v2170_v28 = vsel %vm5555_vm1, %v3439_v51, %v2166_v23  ;;  %vm2051_vm3 = vcmp.gt.f32.partialorder %v5475_v58, 0.0  ;;  %v2240_v12 = vmul.f32 %v3441_v49, %v2239_v30  ;;  %vm5576_vm5 = vmor %vm2242_vm11, %vm2243_vm13 }
 0x66a   :  { %2381 = vperm.xlu1 %3420, %v2319_v32   ;;  %vm2050_vm9 = vcmp.gt.f32.partialorder %v5477_v10, 0.0  ;;  %v2175_v46 = vsel %vm5518_vm2, %v2174_v20, %v2170_v28  ;;  %vm5580_vm12 = vcmp.eq.f32.partialorder %v2246_v25, 8.507059e+37  ;;  %v2249_v11 = vor.u32 1.1754944e-38, %v2248_v24 }
 0x66b   :  { %v2225_v44 = vmul.f32 %v3443_v45, %v2224_v54  ;;  %v2318_v48 = vsel %vm2046_vm7, %v2175_v46, 0.0  ;;  %v2241_v63 = vadd.f32 %v3441_v49, %v2240_v12  ;;  %vm5592_vm6 = vcmp.eq.f32.partialorder %v2231_v34, 8.507059e+37 }
 0x66c   :  { %v2234_v33 = vor.u32 1.1754944e-38, %v2233_v36  ;;  %v3445_v5 = vpop.eup %3444  ;;  %2376 = vperm.xlu0 %3419, %v2318_v48   ;;  %vm2049_vm8 = vcmp.gt.f32.partialorder %v5513_v56, 0.0  ;;  %v2216_v37 = vand.u32 2147483647, %v5536_v42  ;;  %v2218_v9 = vand.u32 2147483648, %v5536_v42  ;;  %v5669_v36 = vld [vmem:[#allocation3 + $0x78] sm:$0xff] }
 0x66d   :  { %v2226_v8 = vadd.f32 %v3443_v45, %v2225_v44  ;;  %3448 = vrcp.f32 %v5566_v22  ;;  %v2245_v39 = vsel %vm5576_vm5, %v3441_v49, %v2241_v63  ;;  %v2208_v52 = vmul.f32 %v3445_v5, %v5536_v42  ;;  %v5695_v44 = vld [vmem:[#allocation3 + $0xa0] sm:$0xff] }
 0x66e   :  { %vm2212_vm7 = vweird.f32 %v5536_v42  ;;  %v2291_v53 = vand.u32 2147483647, %v5542_v26  ;;  %v3447_v7 = vpop.eup %3446  ;;  %v2250_v19 = vsel %vm5580_vm12, %v2249_v11, %v2245_v39  ;;  %vm2213_vm2 = vweird.f32 %v3445_v5 }
 0x66f   :  { %v2230_v21 = vsel %vm5588_vm4, %v3443_v45, %v2226_v8  ;;  %v2293_v35 = vand.u32 2147483648, %v5542_v26  ;;  %v2323_v40 = vsel %vm2051_vm3, %v2250_v19, 0.0  ;;  %v2209_v16 = vsub.f32 1.0, %v2208_v52  ;;  %vm5634_vm10 = vmor %vm2212_vm7, %vm2213_vm2  ;;  %v5713_v19 = vld [vmem:[#allocation3 + $0x98] sm:$0xff] }
 0x670   :  { %v2235_v38 = vsel %vm5592_vm6, %v2234_v33, %v2230_v21  ;;  %v2283_v51 = vmul.f32 %v3447_v7, %v5542_v26  ;;  %2401 = vperm.xlu2 %3421, %v2323_v40   ;;  %vm5621_vm14 = vcmp.eq.f32.partialorder %v2216_v37, 8.507059e+37  ;;  %v2219_v50 = vor.u32 1.1754944e-38, %v2218_v9  ;;  %v5824_v21 = vld [vmem:[#allocation3 + $0xa8] sm:$0xff] }
 0x671   :  { %v2322_v59 = vsel %vm2050_vm9, %v2235_v38, 0.0  ;;  %vm2287_vm15 = vweird.f32 %v5542_v26  ;;  %v2210_v58 = vmul.f32 %v3445_v5, %v2209_v16  ;;  %vm2288_vm11 = vweird.f32 %v3447_v7 }
 0x672   :  { %2396 = vperm.xlu1 %3420, %v2322_v59   ;;  %v2284_v57 = vsub.f32 1.0, %v2283_v51  ;;  %v5627_v60 = vmax.f32 %v5610_v13, 1e-30  ;;  %vm5638_vm1 = vcmp.eq.f32.partialorder %v2291_v53, 8.507059e+37  ;;  %vm2272_vm13 = vweird.f32 %v5566_v22  ;;  %vm5650_vm0 = vmor %vm2287_vm15, %vm2288_vm11 }
 0x673   :  { %v3449_v47 = vpop.eup %3448  ;;  %v2276_v61 = vand.u32 2147483647, %v5566_v22  ;;  %v5645_v14 = vmax.f32 %v5617_v62, 1e-30  ;;  %v2211_v27 = vadd.f32 %v3445_v5, %v2210_v58  ;;  %v2294_v25 = vor.u32 1.1754944e-38, %v2293_v35 }
 0x674   :  { %v2285_v49 = vmul.f32 %v3447_v7, %v2284_v57  ;;  %v2268_v42 = vmul.f32 %v3449_v47, %v5566_v22  ;;  %vm2273_vm3 = vweird.f32 %v3449_v47  ;;  %v2278_v45 = vand.u32 2147483648, %v5566_v22 }
 0x675   :  { %3450 = vrcp.f32 %v5627_v60  ;;  %v5657_v29 = vmax.f32 %v5629_v1, 1e-30  ;;  %v2215_v43 = vsel %vm5634_vm10, %v3445_v5, %v2211_v27  ;;  %vm2054_vm9 = vcmp.gt.f32.partialorder %v5522_v15, 0.0  ;;  %vm5676_vm5 = vmor %vm2272_vm13, %vm2273_vm3 }
 0x676   :  { %v2286_v3 = vadd.f32 %v3447_v7, %v2285_v49  ;;  %v2269_v34 = vsub.f32 1.0, %v2268_v42  ;;  %3452 = vrcp.f32 %v5645_v14  ;;  %v2220_v26 = vsel %vm5621_vm14, %v2219_v50, %v2215_v43 }
 0x677   :  { %v2321_v2 = vsel %vm2049_vm8, %v2220_v26, 0.0  ;;  %v2279_v15 = vor.u32 1.1754944e-38, %v2278_v45  ;;  %3454 = vrcp.f32 %v5657_v29  ;;  %vm2053_vm12 = vcmp.gt.f32.partialorder %v5548_v41, 0.0 }
 0x678   :  { %v2290_v55 = vsel %vm5650_vm0, %v3447_v7, %v2286_v3  ;;  %v2270_v4 = vmul.f32 %v3449_v47, %v2269_v34  ;;  %2391 = vperm.xlu0 %3419, %v2321_v2   ;;  %vm2277_vm4 = vcmp.eq.f32.partialorder %v2276_v61, 8.507059e+37  ;;  %vm2052_vm6 = vcmp.gt.f32.partialorder %v5610_v13, 0.0 }
 0x679   :  { %v2295_v32 = vsel %vm5638_vm1, %v2294_v25, %v2290_v55  ;;  %vm2257_vm8 = vweird.f32 %v5627_v60  ;;  %v2261_v22 = vand.u32 2147483647, %v5627_v60  ;;  %v2263_v28 = vand.u32 2147483648, %v5627_v60 }
 0x67a   :  { %v2326_v56 = vsel %vm2054_vm9, %v2295_v32, 0.0  ;;  %v2271_v30 = vadd.f32 %v3449_v47, %v2270_v4  ;;  %v5687_v12 = vmax.f32 %v5669_v36, 1e-30  ;;  %vm2474_vm7 = vcmp.gt.f32.partialorder %v5617_v62, 0.0 }
 0x67b   :  { %v3451_v54 = vpop.eup %3450  ;;  %2416 = vperm.xlu2 %3421, %v2326_v56   ;;  %vm2525_vm2 = vweird.f32 %v5645_v14  ;;  %v2529_v11 = vand.u32 2147483647, %v5645_v14  ;;  %v2531_v6 = vand.u32 2147483648, %v5645_v14  ;;  %v2514_v18 = vand.u32 2147483647, %v5657_v29 }
 0x67c   :  { %v3453_v46 = vpop.eup %3452  ;;  %v2275_v17 = vsel %vm5676_vm5, %v3449_v47, %v2271_v30  ;;  %v2253_v31 = vmul.f32 %v3451_v54, %v5627_v60  ;;  %vm2258_vm14 = vweird.f32 %v3451_v54  ;;  %3456 = vrcp.f32 %v5687_v12 }
 0x67d   :  { %v2280_v48 = vsel %vm2277_vm4, %v2279_v15, %v2275_v17  ;;  %v2521_v63 = vmul.f32 %v3453_v46, %v5645_v14  ;;  %v3455_v8 = vpop.eup %3454  ;;  %vm2526_vm15 = vweird.f32 %v3453_v46  ;;  %vm2473_vm11 = vcmp.gt.f32.partialorder %v5629_v1, 0.0  ;;  %vm5717_vm1 = vmor %vm2257_vm8, %vm2258_vm14  ;;  %v5777_v15 = vld [vmem:[#allocation3 + $0xb8] sm:$0xff] }
 0x67e   :  { %v2325_v33 = vsel %vm2053_vm12, %v2280_v48, 0.0  ;;  %v2254_v5 = vsub.f32 1.0, %v2253_v31  ;;  %v2516_v9 = vand.u32 2147483648, %v5657_v29  ;;  %v5706_v39 = vmax.f32 %v5695_v44, 1e-30  ;;  %vm5730_vm3 = vmor %vm2525_vm2, %vm2526_vm15 }
 0x67f   :  { %2411 = vperm.xlu1 %3420, %v2325_v33   ;;  %v2522_v37 = vsub.f32 1.0, %v2521_v63  ;;  %vm5708_vm10 = vcmp.eq.f32.partialorder %v2261_v22, 8.507059e+37  ;;  %v2264_v41 = vor.u32 1.1754944e-38, %v2263_v28  ;;  %v2506_v7 = vmul.f32 %v3455_v8, %v5657_v29  ;;  %v5788_v22 = vld [vmem:[#allocation3 + $0xb0] sm:$0xff] }
 0x680   :  { %v2255_v52 = vmul.f32 %v3451_v54, %v2254_v5  ;;  %vm5721_vm13 = vcmp.eq.f32.partialorder %v2529_v11, 8.507059e+37  ;;  %vm2510_vm0 = vweird.f32 %v5657_v29  ;;  %3458 = vrcp.f32 %v5706_v39 }
 0x681   :  { %v2523_v35 = vmul.f32 %v3453_v46, %v2522_v37  ;;  %v2532_v51 = vor.u32 1.1754944e-38, %v2531_v6  ;;  %v2507_v59 = vsub.f32 1.0, %v2506_v7  ;;  %vm2511_vm9 = vweird.f32 %v3455_v8 }
 0x682   :  { %v2256_v38 = vadd.f32 %v3451_v54, %v2255_v52  ;;  %vm5736_vm5 = vcmp.eq.f32.partialorder %v2514_v18, 8.507059e+37  ;;  %v2517_v57 = vor.u32 1.1754944e-38, %v2516_v9  ;;  %v5741_v60 = vmax.f32 %v5713_v19, 1e-30  ;;  %v3457_v47 = vpop.eup %3456  ;;  %vm5753_vm4 = vmor %vm2510_vm0, %vm2511_vm9 }
 0x683   :  { %v2524_v50 = vadd.f32 %v3453_v46, %v2523_v35  ;;  %v2508_v20 = vmul.f32 %v3455_v8, %v2507_v59  ;;  %vm2302_vm12 = vweird.f32 %v5687_v12  ;;  %v2308_v61 = vand.u32 2147483648, %v5687_v12 }
 0x684   :  { %v2260_v10 = vsel %vm5717_vm1, %v3451_v54, %v2256_v38  ;;  %v2298_v25 = vmul.f32 %v3457_v47, %v5687_v12  ;;  %v5759_v42 = vmax.f32 %v5734_v0, 1e-30  ;;  %v2306_v3 = vand.u32 2147483647, %v5687_v12 }
 0x685   :  { %v2265_v14 = vsel %vm5708_vm10, %v2264_v41, %v2260_v10  ;;  %v2528_v27 = vsel %vm5730_vm3, %v3453_v46, %v2524_v50  ;;  %v2509_v43 = vadd.f32 %v3455_v8, %v2508_v20  ;;  %vm2303_vm8 = vweird.f32 %v3457_v47 }
 0x686   :  { %v2324_v24 = vsel %vm2052_vm6, %v2265_v14, 0.0  ;;  %v2533_v45 = vsel %vm5721_vm13, %v2532_v51, %v2528_v27  ;;  %v3459_v34 = vpop.eup %3458  ;;  %v2299_v26 = vsub.f32 1.0, %v2298_v25  ;;  %3460 = vrcp.f32 %v5741_v60  ;;  %vm5783_vm6 = vmor %vm2302_vm12, %vm2303_vm8 }
 0x687   :  { %2406 = vperm.xlu0 %3419, %v2324_v24   ;;  %v2746_v29 = vsel %vm2474_vm7, %v2533_v45, 0.0  ;;  %v2513_v13 = vsel %vm5753_vm4, %v3455_v8, %v2509_v43  ;;  %v2309_v2 = vor.u32 1.1754944e-38, %v2308_v61  ;;  %v2566_v55 = vmul.f32 %v3459_v34, %v5706_v39 }
 0x688   :  { %2785 = vperm.xlu2 %3421, %v2746_v29   ;;  %v2574_v4 = vand.u32 2147483647, %v5706_v39  ;;  %v2518_v32 = vsel %vm5736_vm5, %v2517_v57, %v2513_v13  ;;  %v2300_v23 = vmul.f32 %v3457_v47, %v2299_v26  ;;  %v2576_v62 = vand.u32 2147483648, %v5706_v39 }
 0x689   :  { %3462 = vrcp.f32 %v5759_v42  ;;  %v2745_v56 = vsel %vm2473_vm11, %v2518_v32, 0.0  ;;  %v2567_v54 = vsub.f32 1.0, %v2566_v55  ;;  %vm2570_vm7 = vweird.f32 %v5706_v39  ;;  %v5877_v55 = vld [vmem:[#allocation3 + $0xc8] sm:$0xff] }
 0x68a   :  { %vm2571_vm2 = vweird.f32 %v3459_v34  ;;  %2780 = vperm.xlu1 %3420, %v2745_v56   ;;  %vm2055_vm14 = vcmp.gt.f32.partialorder %v5669_v36, 0.0  ;;  %v2301_v28 = vadd.f32 %v3457_v47, %v2300_v23  ;;  %vm2307_vm15 = vcmp.eq.f32.partialorder %v2306_v3, 8.507059e+37  ;;  %v5891_v56 = vld [vmem:[#allocation3 + $0xc0] sm:$0xff] }
 0x68b   :  { %vm2477_vm10 = vcmp.gt.f32.partialorder %v5695_v44, 0.0  ;;  %v2568_v1 = vmul.f32 %v3459_v34, %v2567_v54  ;;  %vm5792_vm11 = vcmp.eq.f32.partialorder %v2574_v4, 8.507059e+37  ;;  %v5797_v46 = vmax.f32 %v5777_v15, 1e-30  ;;  %vm5801_vm1 = vmor %vm2570_vm7, %vm2571_vm2  ;;  %v5840_v44 = vld [vmem:[#allocation3 + $0xd0] sm:$0xff] }
 0x68c   :  { %v3461_v17 = vpop.eup %3460  ;;  %v2305_v31 = vsel %vm5783_vm6, %v3457_v47, %v2301_v28  ;;  %v2577_v48 = vor.u32 1.1754944e-38, %v2576_v62  ;;  %vm2555_vm13 = vweird.f32 %v5741_v60  ;;  %v5807_v63 = vmax.f32 %v5788_v22, 1e-30 }
 0x68d   :  { %v2310_v6 = vsel %vm2307_vm15, %v2309_v2, %v2305_v31  ;;  %v2569_v18 = vadd.f32 %v3459_v34, %v2568_v1  ;;  %v2551_v33 = vmul.f32 %v3461_v17, %v5741_v60  ;;  %v2559_v5 = vand.u32 2147483647, %v5741_v60 }
 0x68e   :  { %v2327_v37 = vsel %vm2055_vm14, %v2310_v6, 0.0  ;;  %v2561_v9 = vand.u32 2147483648, %v5741_v60  ;;  %v2544_v39 = vand.u32 2147483647, %v5759_v42  ;;  %3464 = vrcp.f32 %v5797_v46 }
 0x68f   :  { %v3463_v8 = vpop.eup %3462  ;;  %2421 = vperm.xlu0 %3419, %v2327_v37   ;;  %v2573_v52 = vsel %vm5801_vm1, %v3459_v34, %v2569_v18  ;;  %v2552_v53 = vsub.f32 1.0, %v2551_v33  ;;  %vm2556_vm0 = vweird.f32 %v3461_v17  ;;  %vm2540_vm3 = vweird.f32 %v5759_v42 }
 0x690   :  { %v2536_v41 = vmul.f32 %v3463_v8, %v5759_v42  ;;  %v2578_v7 = vsel %vm5792_vm11, %v2577_v48, %v2573_v52  ;;  %v2546_v36 = vand.u32 2147483648, %v5759_v42  ;;  %3466 = vrcp.f32 %v5807_v63  ;;  %vm5831_vm12 = vmor %vm2555_vm13, %vm2556_vm0 }
 0x691   :  { %v2749_v35 = vsel %vm2477_vm10, %v2578_v7, 0.0  ;;  %v2553_v40 = vmul.f32 %v3461_v17, %v2552_v53  ;;  %vm2541_vm9 = vweird.f32 %v3463_v8  ;;  %vm2476_vm5 = vcmp.gt.f32.partialorder %v5713_v19, 0.0  ;;  %v5930_v7 = vld [vmem:[#allocation3 + $0xe0] sm:$0xff] }
 0x692   :  { %v2537_v38 = vsub.f32 1.0, %v2536_v41  ;;  %2800 = vperm.xlu2 %3421, %v2749_v35   ;;  %vm5835_vm4 = vcmp.eq.f32.partialorder %v2559_v5, 8.507059e+37  ;;  %v2562_v59 = vor.u32 1.1754944e-38, %v2561_v9  ;;  %vm2475_vm8 = vcmp.gt.f32.partialorder %v5734_v0, 0.0  ;;  %vm5851_vm7 = vmor %vm2540_vm3, %vm2541_vm9  ;;  %v5928_v41 = vld [vmem:[#allocation3 + $0xe8] sm:$0xff] }
 0x693   :  { %v2554_v50 = vadd.f32 %v3461_v17, %v2553_v40  ;;  %vm5842_vm6 = vcmp.eq.f32.partialorder %v2544_v39, 8.507059e+37  ;;  %v5847_v60 = vmax.f32 %v5824_v21, 1e-30  ;;  %v2547_v20 = vor.u32 1.1754944e-38, %v2546_v36 }
 0x694   :  { %v2538_v58 = vmul.f32 %v3463_v8, %v2537_v38  ;;  %v3465_v47 = vpop.eup %3464  ;;  %vm2615_vm2 = vweird.f32 %v5797_v46  ;;  %v2619_v61 = vand.u32 2147483647, %v5797_v46  ;;  %v2621_v14 = vand.u32 2147483648, %v5797_v46 }
 0x695   :  { %v2558_v27 = vsel %vm5831_vm12, %v3461_v17, %v2554_v50  ;;  %v2611_v25 = vmul.f32 %v3465_v47, %v5797_v46  ;;  %v5862_v24 = vmax.f32 %v5840_v44, 1e-30  ;;  %vm2616_vm14 = vweird.f32 %v3465_v47 }
 0x696   :  { %v2539_v49 = vadd.f32 %v3463_v8, %v2538_v58  ;;  %v3467_v42 = vpop.eup %3466  ;;  %v2563_v45 = vsel %vm5835_vm4, %v2562_v59, %v2558_v27  ;;  %vm2600_vm15 = vweird.f32 %v5807_v63  ;;  %3468 = vrcp.f32 %v5847_v60  ;;  %vm5886_vm1 = vmor %vm2615_vm2, %vm2616_vm14 }
 0x697   :  { %v2748_v43 = vsel %vm2476_vm5, %v2563_v45, 0.0  ;;  %v2612_v34 = vsub.f32 1.0, %v2611_v25  ;;  %v2596_v29 = vmul.f32 %v3467_v42, %v5807_v63  ;;  %vm2601_vm10 = vweird.f32 %v3467_v42 }
 0x698   :  { %v2543_v3 = vsel %vm5851_vm7, %v3463_v8, %v2539_v49  ;;  %2795 = vperm.xlu1 %3420, %v2748_v43   ;;  %v2604_v13 = vand.u32 2147483647, %v5807_v63  ;;  %v2606_v2 = vand.u32 2147483648, %v5807_v63  ;;  %3470 = vrcp.f32 %v5862_v24  ;;  %vm5899_vm3 = vmor %vm2600_vm15, %vm2601_vm10 }
 0x699   :  { %v2548_v26 = vsel %vm5842_vm6, %v2547_v20, %v2543_v3  ;;  %v2613_v4 = vmul.f32 %v3465_v47, %v2612_v34  ;;  %v2597_v32 = vsub.f32 1.0, %v2596_v29  ;;  %vm2480_vm11 = vcmp.gt.f32.partialorder %v5777_v15, 0.0 }
 0x69a   :  { %v2747_v19 = vsel %vm2475_vm8, %v2548_v26, 0.0  ;;  %v2622_v62 = vor.u32 1.1754944e-38, %v2621_v14  ;;  %vm2479_vm13 = vcmp.gt.f32.partialorder %v5788_v22, 0.0  ;;  %vm2620_vm0 = vcmp.eq.f32.partialorder %v2619_v61, 8.507059e+37 }
 0x69b   :  { %2790 = vperm.xlu0 %3419, %v2747_v19   ;;  %v2614_v0 = vadd.f32 %v3465_v47, %v2613_v4  ;;  %v2598_v30 = vmul.f32 %v3467_v42, %v2597_v32  ;;  %v5894_v54 = vmax.f32 %v5877_v55, 1e-30  ;;  %vm5903_vm9 = vcmp.eq.f32.partialorder %v2604_v13, 8.507059e+37  ;;  %v5983_v13 = vld [vmem:[#allocation3 + $0xd8] sm:$0xff] }
 0x69c   :  { %v3469_v28 = vpop.eup %3468  ;;  %v2607_v46 = vor.u32 1.1754944e-38, %v2606_v2  ;;  %vm2478_vm5 = vcmp.gt.f32.partialorder %v5824_v21, 0.0  ;;  %vm2585_vm12 = vweird.f32 %v5847_v60  ;;  %v2589_v17 = vand.u32 2147483647, %v5847_v60  ;;  %v5992_v4 = vld [vmem:[#allocation3 + $0xf8] sm:$0xff] }
 0x69d   :  { %v2618_v31 = vsel %vm5886_vm1, %v3465_v47, %v2614_v0  ;;  %v2599_v11 = vadd.f32 %v3467_v42, %v2598_v30  ;;  %v2581_v48 = vmul.f32 %v3469_v28, %v5847_v60  ;;  %v5914_v63 = vmax.f32 %v5891_v56, 1e-30 }
 0x69e   :  { %v2623_v6 = vsel %vm2620_vm0, %v2622_v62, %v2618_v31  ;;  %v2591_v18 = vand.u32 2147483648, %v5847_v60  ;;  %v2664_v33 = vand.u32 2147483647, %v5862_v24  ;;  %3472 = vrcp.f32 %v5894_v54  ;;  %v3471_v5 = vpop.eup %3470 }
 0x69f   :  { %v2752_v8 = vsel %vm2480_vm11, %v2623_v6, 0.0  ;;  %v2603_v37 = vsel %vm5899_vm3, %v3467_v42, %v2599_v11  ;;  %v2582_v9 = vsub.f32 1.0, %v2581_v48  ;;  %vm2586_vm4 = vweird.f32 %v3469_v28 }
 0x6a0   :  { %2815 = vperm.xlu2 %3421, %v2752_v8   ;;  %v2608_v39 = vsel %vm5903_vm9, %v2607_v46, %v2603_v37  ;;  %vm2483_vm8 = vcmp.gt.f32.partialorder %v5840_v44, 0.0  ;;  %v2656_v52 = vmul.f32 %v3471_v5, %v5862_v24  ;;  %v2666_v53 = vand.u32 2147483648, %v5862_v24  ;;  %vm5941_vm7 = vmor %vm2585_vm12, %vm2586_vm4 }
 0x6a1   :  { %v2751_v15 = vsel %vm2479_vm13, %v2608_v39, 0.0  ;;  %v2583_v36 = vmul.f32 %v3469_v28, %v2582_v9  ;;  %vm5934_vm6 = vcmp.eq.f32.partialorder %v2589_v17, 8.507059e+37  ;;  %3474 = vrcp.f32 %v5914_v63 }
 0x6a2   :  { %2810 = vperm.xlu1 %3420, %v2751_v15   ;;  %v2592_v38 = vor.u32 1.1754944e-38, %v2591_v18  ;;  %v2657_v16 = vsub.f32 1.0, %v2656_v52  ;;  %vm2660_vm2 = vweird.f32 %v5862_v24  ;;  %vm2661_vm14 = vweird.f32 %v3471_v5 }
 0x6a3   :  { %v2584_v22 = vadd.f32 %v3469_v28, %v2583_v36  ;;  %vm5946_vm15 = vcmp.eq.f32.partialorder %v2664_v33, 8.507059e+37  ;;  %v5951_v59 = vmax.f32 %v5928_v41, 1e-30  ;;  %v5954_v50 = vmax.f32 %v5930_v7, 1e-30  ;;  %vm5961_vm11 = vmor %vm2660_vm2, %vm2661_vm14 }
 0x6a4   :  { %v3473_v58 = vpop.eup %3472  ;;  %v2658_v57 = vmul.f32 %v3471_v5, %v2657_v16  ;;  %v2667_v60 = vor.u32 1.1754944e-38, %v2666_v53  ;;  %vm2482_vm10 = vcmp.gt.f32.partialorder %v5877_v55, 0.0  ;;  %v2649_v47 = vand.u32 2147483647, %v5894_v54  ;;  %v6033_v53 = vld [vmem:[#allocation3 + $0xf0] sm:$0xff] }
 0x6a5   :  { %v2651_v10 = vand.u32 2147483648, %v5894_v54  ;;  %v2588_v20 = vsel %vm5941_vm7, %v3469_v28, %v2584_v22  ;;  %v2641_v14 = vmul.f32 %v3473_v58, %v5894_v54  ;;  %v2634_v27 = vand.u32 2147483647, %v5914_v63 }
 0x6a6   :  { %3476 = vrcp.f32 %v5951_v59  ;;  %v2593_v49 = vsel %vm5934_vm6, %v2592_v38, %v2588_v20  ;;  %v2659_v25 = vadd.f32 %v3471_v5, %v2658_v57  ;;  %vm2645_vm1 = vweird.f32 %v5894_v54 }
 0x6a7   :  { %v2636_v24 = vand.u32 2147483648, %v5914_v63  ;;  %v3475_v42 = vpop.eup %3474  ;;  %v2750_v45 = vsel %vm2478_vm5, %v2593_v49, 0.0  ;;  %v2642_v43 = vsub.f32 1.0, %v2641_v14  ;;  %vm2646_vm13 = vweird.f32 %v3473_v58 }
 0x6a8   :  { %vm2481_vm0 = vcmp.gt.f32.partialorder %v5891_v56, 0.0  ;;  %3478 = vrcp.f32 %v5954_v50  ;;  %2805 = vperm.xlu0 %3419, %v2750_v45   ;;  %v2663_v3 = vsel %vm5961_vm11, %v3471_v5, %v2659_v25  ;;  %vm5978_vm3 = vcmp.eq.f32.partialorder %v2649_v47, 8.507059e+37  ;;  %vm5999_vm12 = vmor %vm2645_vm1, %vm2646_vm13 }
 0x6a9   :  { %v2652_v29 = vor.u32 1.1754944e-38, %v2651_v10  ;;  %v2626_v26 = vmul.f32 %v3475_v42, %v5914_v63  ;;  %v2668_v21 = vsel %vm5946_vm15, %v2667_v60, %v2663_v3  ;;  %v2643_v2 = vmul.f32 %v3473_v58, %v2642_v43 }
 0x6aa   :  { %vm2630_vm9 = vweird.f32 %v5914_v63  ;;  %vm5988_vm5 = vcmp.eq.f32.partialorder %v2634_v27, 8.507059e+37  ;;  %v2755_v32 = vsel %vm2483_vm8, %v2668_v21, 0.0  ;;  %vm2631_vm4 = vweird.f32 %v3475_v42 }
 0x6ab   :  { %v2627_v62 = vsub.f32 1.0, %v2626_v26  ;;  %v2637_v0 = vor.u32 1.1754944e-38, %v2636_v24  ;;  %2830 = vperm.xlu2 %3421, %v2755_v32   ;;  %v2644_v28 = vadd.f32 %v3473_v58, %v2643_v2  ;;  %vm2705_vm6 = vweird.f32 %v5951_v59  ;;  %vm6017_vm8 = vmor %vm2630_vm9, %vm2631_vm4 }
 0x6ac   :  { %v3477_v30 = vpop.eup %3476  ;;  %v2709_v1 = vand.u32 2147483647, %v5951_v59  ;;  %v6006_v44 = vmax.f32 %v5983_v13, 1e-30  ;;  %v2711_v46 = vand.u32 2147483648, %v5951_v59  ;;  %vm2690_vm2 = vweird.f32 %v5954_v50 }
 0x6ad   :  { %v2628_v12 = vmul.f32 %v3475_v42, %v2627_v62  ;;  %v2701_v54 = vmul.f32 %v3477_v30, %v5951_v59  ;;  %v6011_v17 = vmax.f32 %v5992_v4, 1e-30  ;;  %v2648_v11 = vsel %vm5999_vm12, %v3473_v58, %v2644_v28 }
 0x6ae   :  { %v3479_v31 = vpop.eup %3478  ;;  %vm2706_vm7 = vweird.f32 %v3477_v30  ;;  %3480 = vrcp.f32 %v6006_v44  ;;  %v2653_v6 = vsel %vm5978_vm3, %v2652_v29, %v2648_v11  ;;  %v2694_v63 = vand.u32 2147483647, %v5954_v50 }
 0x6af   :  { %v2629_v18 = vadd.f32 %v3475_v42, %v2628_v12  ;;  %v2702_v33 = vsub.f32 1.0, %v2701_v54  ;;  %v2686_v5 = vmul.f32 %v3479_v31, %v5954_v50  ;;  %v2754_v8 = vsel %vm2482_vm10, %v2653_v6, 0.0  ;;  %vm6041_vm10 = vmor %vm2705_vm6, %vm2706_vm7 }
 0x6b0   :  { %vm2691_vm14 = vweird.f32 %v3479_v31  ;;  %v2696_v37 = vand.u32 2147483648, %v5954_v50  ;;  %2825 = vperm.xlu1 %3420, %v2754_v8   ;;  %3482 = vrcp.f32 %v6011_v17  ;;  %vm2486_vm15 = vcmp.gt.f32.partialorder %v5928_v41, 0.0  ;;  %v2330_v8 = vld [vmem:[#allocation4 + $0x10] sm:$0xff] }
 0x6b1   :  { %v2633_v9 = vsel %vm6017_vm8, %v3475_v42, %v2629_v18  ;;  %v2703_v39 = vmul.f32 %v3477_v30, %v2702_v33  ;;  %v2687_v52 = vsub.f32 1.0, %v2686_v5  ;;  %v2712_v36 = vor.u32 1.1754944e-38, %v2711_v46  ;;  %vm6051_vm13 = vmor %vm2690_vm2, %vm2691_vm14  ;;  %v2367_v46 = vpop.permute.xlu2 %2366  ;;  %v2331_v33 = vld [vmem:[#allocation4 + $0x18] sm:$0xff] }
 0x6b2   :  { %v2638_v15 = vsel %vm5988_vm5, %v2637_v0, %v2633_v9  ;;  %vm2710_vm11 = vcmp.eq.f32.partialorder %v2709_v1, 8.507059e+37  ;;  %vm2485_vm1 = vcmp.gt.f32.partialorder %v5930_v7, 0.0  ;;  %vm6055_vm3 = vcmp.eq.f32.partialorder %v2694_v63, 8.507059e+37  ;;  %v2328_v63 = vld [vmem:[#allocation4] sm:$0xff] }
 0x6b3   :  { %v2753_v35 = vsel %vm2481_vm0, %v2638_v15, 0.0  ;;  %v2704_v40 = vadd.f32 %v3477_v30, %v2703_v39  ;;  %v2688_v38 = vmul.f32 %v3479_v31, %v2687_v52  ;;  %v2697_v56 = vor.u32 1.1754944e-38, %v2696_v37  ;;  %v2329_v37 = vld [vmem:[#allocation4 + $0x8] sm:$0xff] }
 0x6b4   :  { %v3481_v16 = vpop.eup %3480  ;;  %2820 = vperm.xlu0 %3419, %v2753_v35   ;;  %v2503_v59 = vmax.f32 %v6033_v53, 1e-30  ;;  %vm2675_vm0 = vweird.f32 %v6006_v44  ;;  %v2679_v47 = vand.u32 2147483647, %v6006_v44  ;;  %v2681_v10 = vand.u32 2147483648, %v6006_v44  ;;  %v2332_v35 = vld [vmem:[#allocation4 + $0x20] sm:$0xff] }
 0x6b5   :  { %v2708_v58 = vsel %vm6041_vm10, %v3477_v30, %v2704_v40  ;;  %v2689_v57 = vadd.f32 %v3479_v31, %v2688_v38  ;;  %v2671_v60 = vmul.f32 %v3481_v16, %v6006_v44  ;;  %vm2676_vm9 = vweird.f32 %v3481_v16 }
 0x6b6   :  { %v2713_v50 = vsel %vm2710_vm11, %v2712_v36, %v2708_v58  ;;  %3484 = vrcp.f32 %v2503_v59  ;;  %v3483_v20 = vpop.eup %3482  ;;  %v2739_v45 = vand.u32 2147483647, %v6011_v17  ;;  %v2741_v41 = vand.u32 2147483648, %v6011_v17  ;;  %vm6079_vm5 = vmor %vm2675_vm0, %vm2676_vm9 }
 0x6b7   :  { %v2758_v61 = vsel %vm2486_vm15, %v2713_v50, 0.0  ;;  %v2693_v14 = vsel %vm6051_vm13, %v3479_v31, %v2689_v57  ;;  %v2672_v27 = vsub.f32 1.0, %v2671_v60  ;;  %v2731_v25 = vmul.f32 %v3483_v20, %v6011_v17 }
 0x6b8   :  { %2845 = vperm.xlu2 %3421, %v2758_v61   ;;  %v2698_v49 = vsel %vm6055_vm3, %v2697_v56, %v2693_v14  ;;  %v2682_v3 = vor.u32 1.1754944e-38, %v2681_v10  ;;  %vm2735_vm12 = vweird.f32 %v6011_v17  ;;  %vm2736_vm4 = vweird.f32 %v3483_v20  ;;  %v2335_v10 = vld [vmem:[#allocation4 + $0x38] sm:$0xff] }
 0x6b9   :  { %v2757_v24 = vsel %vm2485_vm1, %v2698_v49, 0.0  ;;  %v2673_v42 = vmul.f32 %v3481_v16, %v2672_v27  ;;  %v2732_v34 = vsub.f32 1.0, %v2731_v25  ;;  %vm2680_vm6 = vcmp.eq.f32.partialorder %v2679_v47, 8.507059e+37  ;;  %vm2737_vm2 = vmor %vm2735_vm12, %vm2736_vm4  ;;  %v2372_v5 = vpop.permute.xlu2 %2371 }
 0x6ba   :  { %2840 = vperm.xlu1 %3420, %v2757_v24   ;;  %vm2484_vm8 = vcmp.gt.f32.partialorder %v5983_v13, 0.0  ;;  %vm2488_vm7 = vcmp.gt.f32.partialorder %v5992_v4, 0.0  ;;  %vm2740_vm14 = vcmp.eq.f32.partialorder %v2739_v45, 8.507059e+37  ;;  %v2742_v2 = vor.u32 1.1754944e-38, %v2741_v41  ;;  %v2334_v24 = vld [vmem:[#allocation4 + $0x30] sm:$0xff] }
 0x6bb   :  { %v2674_v29 = vadd.f32 %v3481_v16, %v2673_v42  ;;  %v2733_v26 = vmul.f32 %v3483_v20, %v2732_v34  ;;  %vm2720_vm15 = vweird.f32 %v2503_v59  ;;  %v2726_v62 = vand.u32 2147483648, %v2503_v59  ;;  %v2339_v42 = vld [vmem:[#allocation4 + $0x58] sm:$0xff] }
 0x6bc   :  { %v3485_v7 = vpop.eup %3484  ;;  %v2724_v28 = vand.u32 2147483647, %v2503_v59  ;;  %vm2487_vm13 = vcmp.gt.f32.partialorder %v6033_v53, 0.0  ;;  %v2333_v53 = vld [vmem:[#allocation4 + $0x28] sm:$0xff]  ;;  %v2428_v22 = vmul.f32 %v2367_v46, %v2332_v35  ;;  %vm6581_vm3 = vcmask 523264  }
 0x6bd   :  { %v2678_v21 = vsel %vm6079_vm5, %v3481_v16, %v2674_v29  ;;  %v2716_v19 = vmul.f32 %v3485_v7, %v2503_v59  ;;  %v2734_v23 = vadd.f32 %v3483_v20, %v2733_v26  ;;  %vm2721_vm10 = vweird.f32 %v3485_v7  ;;  %vm6582_vm0 = vmmov %vm6581_vm3 }
 0x6be   :  { %v2683_v32 = vsel %vm2680_vm6, %v2682_v3, %v2678_v21  ;;  %vm2722_vm11 = vmor %vm2720_vm15, %vm2721_vm10  ;;  %v2727_v54 = vor.u32 1.1754944e-38, %v2726_v62  ;;  %vm2725_vm1 = vcmp.eq.f32.partialorder %v2724_v28, 8.507059e+37  ;;  %v2429_v51 = vmul.f32 %v2372_v5, %v2333_v53  ;;  %v2338_v21 = vld [vmem:[#allocation4 + $0x50] sm:$0xff] }
 0x6bf   :  { %v2756_v0 = vsel %vm2484_vm8, %v2683_v32, 0.0  ;;  %v2717_v30 = vsub.f32 1.0, %v2716_v19  ;;  %v2738_v13 = vsel %vm2737_vm2, %v3483_v20, %v2734_v23  ;;  %v2444_v50 = vpack.c.bf16 %v2428_v22, %v2428_v22  ;;  %v2336_v32 = vld [vmem:[#allocation4 + $0x40] sm:$0xff]  ;;  %vm6583_vm9 = vmmov %vm6582_vm0 }
 0x6c0   :  { %2835 = vperm.xlu0 %3419, %v2756_v0   ;;  %v2743_v1 = vsel %vm2740_vm14, %v2742_v2, %v2738_v13  ;;  %v2445_v47 = vpack.c.bf16 %v2429_v51, %v2429_v51  ;;  %vm6584_vm5 = vmmov %vm6582_vm0 }
 0x6c1   :  { %v2718_v44 = vmul.f32 %v3485_v7, %v2717_v30  ;;  %v2760_v12 = vsel %vm2488_vm7, %v2743_v1, 0.0  ;;  %v2387_v58 = vpop.permute.xlu2 %2386  ;;  %v6103_v49 = vunpack.c.l.b16 %v2444_v50  ;;  %v2343_v50 = vld [vmem:[#allocation4 + $0x78] sm:$0xff]  ;;  %vm6585_vm12 = vmmov %vm6582_vm0 }
 0x6c2   :  { %2855 = vperm.xlu1 %3420, %v2760_v12   ;;  %v6105_v25 = vunpack.c.l.b16 %v2445_v47  ;;  %v2432_v28 = vmul.f32 %v2387_v58, %v2336_v32  ;;  %v2764_v32 = vld [vmem:[#allocation4 + $0x90] sm:$0xff]  ;;  %vm6586_vm4 = vmmov %vm6582_vm0 }
 0x6c3   :  { %v2719_v17 = vadd.f32 %v3485_v7, %v2718_v44  ;;  %v2337_v44 = vld [vmem:[#allocation4 + $0x48] sm:$0xff]  ;;  %vm6587_vm6 = vmmov %vm6582_vm0 }
 0x6c4   :  { %v2924_v29 = vpack.c.b16 %v6105_v25, %v6103_v49  ;;  %v2448_v46 = vpack.c.bf16 %v2432_v28, %v2432_v28  ;;  %vm6588_vm8 = vmmov %vm6582_vm0 }
 0x6c5   :  { %v2723_v31 = vsel %vm2722_vm11, %v3485_v7, %v2719_v17 }
 0x6c6   :  { %v2728_v48 = vsel %vm2725_vm1, %v2727_v54, %v2723_v31 }
 0x6c7   :  { %v2357_v11 = vpop.permute.xlu1 %2356  ;;  %v2759_v18 = vsel %vm2487_vm13, %v2728_v48, 0.0  ;;  %v6121_v48 = vunpack.c.l.b16 %v2448_v46 }
 0x6c8   :  { %v2347_v6 = vpop.permute.xlu0 %2346  ;;  %2850 = vperm.xlu0 %3419, %v2759_v18   ;;  %v2426_v39 = vmul.f32 %v2357_v11, %v2330_v8  ;;  %v2341_v18 = vld [vmem:[#allocation4 + $0x68] sm:$0xff] }
 0x6c9   :  { %v2424_v52 = vmul.f32 %v2347_v6, %v2328_v63  ;;  %v2763_v63 = vld [vmem:[#allocation4 + $0x88] sm:$0xff] }
 0x6ca   :  { %v2442_v38 = vpack.c.bf16 %v2426_v39, %v2426_v39  ;;  %v2402_v43 = vpop.permute.xlu2 %2401 }
 0x6cb   :  { %v2440_v16 = vpack.c.bf16 %v2424_v52, %v2424_v52  ;;  %v2435_v34 = vmul.f32 %v2402_v43, %v2339_v42 }
 0x6cc   :  { %v6095_v57 = vunpack.c.l.b16 %v2442_v38 }
 0x6cd   :  { %v6097_v60 = vunpack.c.l.b16 %v2440_v16  ;;  %v2451_v23 = vpack.c.bf16 %v2435_v34, %v2435_v34 }
 0x6cf   :  { %v2362_v4 = vpop.permute.xlu1 %2361  ;;  %v6115_v13 = vunpack.c.l.b16 %v2451_v23 }
 0x6d0   :  { %v2427_v9 = vmul.f32 %v2362_v4, %v2331_v33  ;;  %v2352_v15 = vpop.permute.xlu0 %2351 }
 0x6d1   :  { %v2425_v55 = vmul.f32 %v2352_v15, %v2329_v37  ;;  %v2340_v37 = vld [vmem:[#allocation4 + $0x60] sm:$0xff] }
 0x6d2   :  { %v2443_v36 = vpack.c.bf16 %v2427_v9, %v2427_v9 }
 0x6d3   :  { %v2441_v40 = vpack.c.bf16 %v2425_v55, %v2425_v55  ;;  %v2762_v55 = vld [vmem:[#allocation4 + $0x80] sm:$0xff] }
 0x6d4   :  { %v6091_v56 = vunpack.c.l.b16 %v2443_v36  ;;  %v2342_v36 = vld [vmem:[#allocation4 + $0x70] sm:$0xff] }
 0x6d5   :  { %v6093_v59 = vunpack.c.l.b16 %v2441_v40  ;;  %v2417_v31 = vpop.permute.xlu2 %2416 }
 0x6d6   :  { %v2923_v61 = vpack.c.b16 %v6091_v56, %v6095_v57  ;;  %v2438_v51 = vmul.f32 %v2417_v31, %v2342_v36 }
 0x6d7   :  { %v2922_v20 = vpack.c.b16 %v6093_v59, %v6097_v60 }
 0x6dc   :  { %v2382_v14 = vpop.permute.xlu1 %2381 }
 0x6dd   :  { %v2431_v27 = vmul.f32 %v2382_v14, %v2335_v10 }
 0x6de   :  { %v2377_v41 = vpop.permute.xlu0 %2376 }
 0x6df   :  { %v2447_v45 = vpack.c.bf16 %v2431_v27, %v2431_v27  ;;  %v2430_v3 = vmul.f32 %v2377_v41, %v2334_v24  ;;  %v2454_v24 = vpack.c.bf16 %v2438_v51, %v2438_v51 }
 0x6e1   :  { %v6109_v7 = vunpack.c.l.b16 %v2447_v45  ;;  %v2446_v26 = vpack.c.bf16 %v2430_v3, %v2430_v3  ;;  %v6134_v3 = vunpack.c.l.b16 %v2454_v24 }
 0x6e2   :  { %v2786_v4 = vpop.permute.xlu2 %2785 }
 0x6e3   :  { %v6111_v2 = vunpack.c.l.b16 %v2446_v26  ;;  %v2859_v52 = vmul.f32 %v2786_v4, %v2763_v63  ;;  %v2765_v26 = vld [vmem:[#allocation4 + $0x98] sm:$0xff] }
 0x6e4   :  { %v2397_v19 = vpop.permute.xlu1 %2396 }
 0x6e5   :  { %v2434_v62 = vmul.f32 %v2397_v19, %v2338_v21  ;;  %v2925_v0 = vpack.c.b16 %v6109_v7, %v6111_v2  ;;  %v2875_v38 = vpack.c.bf16 %v2859_v52, %v2859_v52  ;;  %v2767_v52 = vld [vmem:[#allocation4 + $0xa8] sm:$0xff] }
 0x6e7   :  { %v2450_v30 = vpack.c.bf16 %v2434_v62, %v2434_v62  ;;  %v2947_v10 = vunpack.c.l.b16 %v2875_v38 }
 0x6e9   :  { %v6117_v1 = vunpack.c.l.b16 %v2450_v30 }
 0x6ea   :  { %v2392_v12 = vpop.permute.xlu0 %2391 }
 0x6eb   :  { %v2927_v54 = vpack.c.b16 %v6115_v13, %v6117_v1  ;;  %v2433_v17 = vmul.f32 %v2392_v12, %v2337_v44  ;;  %v2769_v44 = vld [vmem:[#allocation4 + $0xb8] sm:$0xff] }
 0x6ec   :  { %v2801_v41 = vpop.permute.xlu2 %2800 }
 0x6ed   :  { %v2449_v11 = vpack.c.bf16 %v2433_v17, %v2433_v17 }
 0x6ef   :  { %v6123_v6 = vunpack.c.l.b16 %v2449_v11 }
 0x6f1   :  { %v2412_v33 = vpop.permute.xlu1 %2411  ;;  %v2926_v5 = vpack.c.b16 %v6123_v6, %v6121_v48 }
 0x6f2   :  { %v2437_v8 = vmul.f32 %v2412_v33, %v2341_v18  ;;  %v2768_v18 = vld [vmem:[#allocation4 + $0xb0] sm:$0xff] }
 0x6f4   :  { %v2453_v9 = vpack.c.bf16 %v2437_v8, %v2437_v8  ;;  %v2766_v8 = vld [vmem:[#allocation4 + $0xa0] sm:$0xff] }
 0x6f6   :  { %v6127_v35 = vunpack.c.l.b16 %v2453_v9  ;;  %v2862_v9 = vmul.f32 %v2801_v41, %v2766_v8 }
 0x6f9   :  { %v2407_v39 = vpop.permute.xlu0 %2406 }
 0x6fa   :  { %v2436_v15 = vmul.f32 %v2407_v39, %v2340_v37  ;;  %v2816_v12 = vpop.permute.xlu2 %2815 }
 0x6fb   :  { %v2865_v31 = vmul.f32 %v2816_v12, %v2769_v44  ;;  %v2772_v44 = vld [vmem:[#allocation4 + $0xd0] sm:$0xff] }
 0x6fc   :  { %v2452_v53 = vpack.c.bf16 %v2436_v15, %v2436_v15  ;;  %v2781_v40 = vpop.permute.xlu1 %2780 }
 0x6fd   :  { %v2858_v22 = vmul.f32 %v2781_v40, %v2762_v55  ;;  %v2881_v4 = vpack.c.bf16 %v2865_v31, %v2865_v31 }
 0x6fe   :  { %v6129_v16 = vunpack.c.l.b16 %v2452_v53  ;;  %v2878_v53 = vpack.c.bf16 %v2862_v9, %v2862_v9 }
 0x6ff   :  { %v2874_v58 = vpack.c.bf16 %v2858_v22, %v2858_v22  ;;  %v2953_v15 = vunpack.c.l.b16 %v2881_v4 }
 0x700   :  { %v2928_v47 = vpack.c.b16 %v6127_v35, %v6129_v16 }
 0x701   :  { %v2946_v14 = vunpack.c.l.b16 %v2874_v58  ;;  %v2422_v27 = vpop.permute.xlu0 %2421  ;;  %v2950_v58 = vunpack.c.l.b16 %v2878_v53 }
 0x702   :  { %v2439_v42 = vmul.f32 %v2422_v27, %v2343_v50 }
 0x703   :  { %v2962_v45 = vpack.c.b16 %v2947_v10, %v2946_v14  ;;  %v2771_v10 = vld [vmem:[#allocation4 + $0xc8] sm:$0xff] }
 0x704   :  { %v2455_v43 = vpack.c.bf16 %v2439_v42, %v2439_v42  ;;  %v2770_v42 = vld [vmem:[#allocation4 + $0xc0] sm:$0xff] }
 0x705   :  { %2970 = vrot.lane.b32.xlu2 %v2962_v45, %s3493_s4  ;;  %v2831_v40 = vpop.permute.xlu2 %2830  ;;  %v2775_v45 = vld [vmem:[#allocation4 + $0xe8] sm:$0xff] }
 0x706   :  { %v6136_v34 = vunpack.c.l.b16 %v2455_v43 }
 0x708   :  { %v2929_v21 = vpack.c.b16 %v6136_v34, %v6134_v3 }
 0x70a   :  { %v2796_v19 = vpop.permute.xlu1 %2795 }
 0x70b   :  { %v2861_v23 = vmul.f32 %v2796_v19, %v2765_v26 }
 0x70d   :  { %v2791_v62 = vpop.permute.xlu0 %2790  ;;  %v2877_v30 = vpack.c.bf16 %v2861_v23, %v2861_v23 }
 0x70e   :  { %v2860_v28 = vmul.f32 %v2791_v62, %v2764_v32 }
 0x70f   :  { %v2949_v46 = vunpack.c.l.b16 %v2877_v30  ;;  %v2774_v30 = vld [vmem:[#allocation4 + $0xe0] sm:$0xff] }
 0x710   :  { %v2876_v17 = vpack.c.bf16 %v2860_v28, %v2860_v28 }
 0x712   :  { %v2948_v11 = vunpack.c.l.b16 %v2876_v17  ;;  %v2846_v41 = vpop.permute.xlu2 %2845 }
 0x713   :  { %v2871_v32 = vmul.f32 %v2846_v41, %v2775_v45 }
 0x714   :  { %v2963_v33 = vpack.c.b16 %v2949_v46, %v2948_v11  ;;  %v2811_v63 = vpop.permute.xlu1 %2810  ;;  %v2868_v11 = vmul.f32 %v2831_v40, %v2772_v44 }
 0x715   :  { %v2864_v37 = vmul.f32 %v2811_v63, %v2768_v18  ;;  %v2887_v46 = vpack.c.bf16 %v2871_v32, %v2871_v32 }
 0x716   :  { %2972 = vrot.lane.b32.xlu0 %v2963_v33, %s3493_s4  ;;  %v2773_v33 = vld [vmem:[#allocation4 + $0xd8] sm:$0xff] }
 0x717   :  { %v2880_v39 = vpack.c.bf16 %v2864_v37, %v2864_v37  ;;  %v2959_v8 = vunpack.c.l.b16 %v2887_v46  ;;  %v2884_v37 = vpack.c.bf16 %v2868_v11, %v2868_v11 }
 0x719   :  { %v2952_v55 = vunpack.c.l.b16 %v2880_v39  ;;  %v2956_v53 = vunpack.c.l.b16 %v2884_v37 }
 0x71a   :  { %v2806_v36 = vpop.permute.xlu0 %2805 }
 0x71b   :  { %v2965_v38 = vpack.c.b16 %v2953_v15, %v2952_v55  ;;  %v2863_v22 = vmul.f32 %v2806_v36, %v2767_v52  ;;  %v2777_v52 = vld [vmem:[#allocation4 + $0xf8] sm:$0xff] }
 0x71d   :  { %v2879_v51 = vpack.c.bf16 %v2863_v22, %v2863_v22  ;;  %2976 = vrot.lane.b32.xlu2 %v2965_v38, %s3493_s4  ;;  %v2776_v22 = vld [vmem:[#allocation4 + $0xf0] sm:$0xff] }
 0x71f   :  { %v2951_v50 = vunpack.c.l.b16 %v2879_v51 }
 0x721   :  { %v2964_v14 = vpack.c.b16 %v2951_v50, %v2950_v58 }
 0x722   :  { %v2826_v27 = vpop.permute.xlu1 %2825 }
 0x723   :  { %v2867_v24 = vmul.f32 %v2826_v27, %v2771_v10  ;;  %2974 = vrot.lane.b32.xlu1 %v2964_v14, %s3493_s4 }
 0x725   :  { %v2883_v43 = vpack.c.bf16 %v2867_v24, %v2867_v24 }
 0x726   :  { %v2821_v26 = vpop.permute.xlu0 %2820 }
 0x727   :  { %v2866_v19 = vmul.f32 %v2821_v26, %v2770_v42  ;;  %v2955_v23 = vunpack.c.l.b16 %v2883_v43 }
 0x729   :  { %v2882_v62 = vpack.c.bf16 %v2866_v19, %v2866_v19 }
 0x72b   :  { %v2954_v28 = vunpack.c.l.b16 %v2882_v62 }
 0x72c   :  { %v2841_v12 = vpop.permute.xlu1 %2840 }
 0x72d   :  { %v2966_v17 = vpack.c.b16 %v2955_v23, %v2954_v28  ;;  %v2870_v31 = vmul.f32 %v2841_v12, %v2774_v30 }
 0x72f   :  { %v2886_v18 = vpack.c.bf16 %v2870_v31, %v2870_v31  ;;  %2978 = vrot.lane.b32.xlu0 %v2966_v17, %s3493_s4 }
 0x731   :  { %v2958_v63 = vunpack.c.l.b16 %v2886_v18 }
 0x732   :  { %v2836_v4 = vpop.permute.xlu0 %2835 }
 0x733   :  { %v2968_v9 = vpack.c.b16 %v2959_v8, %v2958_v63  ;;  %v2869_v39 = vmul.f32 %v2836_v4, %v2773_v33 }
 0x734   :  { %v2856_v55 = vpop.permute.xlu1 %2855 }
 0x735   :  { %v2885_v15 = vpack.c.bf16 %v2869_v39, %v2869_v39  ;;  %2982 = vrot.lane.b32.xlu2 %v2968_v9, %s3493_s4  ;;  %v2873_v36 = vmul.f32 %v2856_v55, %v2777_v52 }
 0x737   :  { %v2957_v38 = vunpack.c.l.b16 %v2885_v15  ;;  %v2889_v51 = vpack.c.bf16 %v2873_v36, %v2873_v36 }
 0x739   :  { %v2967_v40 = vpack.c.b16 %v2957_v38, %v2956_v53  ;;  %v2961_v10 = vunpack.c.l.b16 %v2889_v51 }
 0x73a   :  { %v2851_v58 = vpop.permute.xlu0 %2850 }
 0x73b   :  { %v2872_v50 = vmul.f32 %v2851_v58, %v2776_v22  ;;  %2980 = vrot.lane.b32.xlu1 %v2967_v40, %s3493_s4 }
 0x73d   :  { %v2888_v14 = vpack.c.bf16 %v2872_v50, %v2872_v50 }
 0x73f   :  { %v2960_v27 = vunpack.c.l.b16 %v2888_v14 }
 0x741   :  { %v2969_v24 = vpack.c.b16 %v2961_v10, %v2960_v27 }
 0x743   :  { %2984 = vrot.lane.b32.xlu0 %v2969_v24, %s3493_s4 }
 0x75f   :  { %v2971_v42 = vpop.permute.xlu2 %2970 }
 0x760   :  { %v2989_v45 = vsel %vm6581_vm3, %v2922_v20, %v2971_v42 }
 0x761   :  { %v3019_v41 = vunpack.c.l.b16 %v2989_v45  ;;  %v3020_v43 = vunpack.c.h.b16 %v2989_v45 }
 0x763   :  { %v3035_v26 = vpack.c.b16 %v3019_v41, %v3019_v41  ;;  %v3036_v19 = vpack.c.b16 %v3020_v43, %v3020_v43 }
 0x765   :  { %3067 = vst [vmem:[%s6232_s5] sm:$0xf] %v3035_v26 }
 0x766   :  { %3068 = vst [vmem:[%s6232_s5 + $0x4] sm:$0xf] %v3036_v19 }
 0x777   :  { %v2977_v32 = vpop.permute.xlu2 %2976 }
 0x778   :  { %v2998_v59 = vsel %vm6582_vm0, %v2925_v0, %v2977_v32 }
 0x779   :  { %v3025_v60 = vunpack.c.l.b16 %v2998_v59  ;;  %v3026_v20 = vunpack.c.h.b16 %v2998_v59 }
 0x77b   :  { %v3041_v23 = vpack.c.b16 %v3025_v60, %v3025_v60  ;;  %v3042_v62 = vpack.c.b16 %v3026_v20, %v3026_v20 }
 0x77d   :  { %3073 = vst [vmem:[%s6232_s5 + $0x18] sm:$0xf] %v3041_v23 }
 0x77e   :  { %3074 = vst [vmem:[%s6232_s5 + $0x1c] sm:$0xf] %v3042_v62 }
 0x788   :  { %v2973_v30 = vpop.permute.xlu0 %2972 }
 0x789   :  { %v2992_v7 = vsel %vm6583_vm9, %v2923_v61, %v2973_v30 }
 0x78a   :  { %v3021_v2 = vunpack.c.l.b16 %v2992_v7  ;;  %v3022_v0 = vunpack.c.h.b16 %v2992_v7 }
 0x78c   :  { %v3037_v28 = vpack.c.b16 %v3021_v2, %v3021_v2  ;;  %v3038_v44 = vpack.c.b16 %v3022_v0, %v3022_v0 }
 0x78e   :  { %3069 = vst [vmem:[%s6232_s5 + $0x8] sm:$0xf] %v3037_v28 }
 0x78f   :  { %v2983_v12 = vpop.permute.xlu2 %2982  ;;  %3070 = vst [vmem:[%s6232_s5 + $0xc] sm:$0xf] %v3038_v44 }
 0x790   :  { %v3007_v56 = vsel %vm6584_vm5, %v2928_v47, %v2983_v12 }
 0x791   :  { %v3031_v57 = vunpack.c.l.b16 %v3007_v56  ;;  %v3032_v61 = vunpack.c.h.b16 %v3007_v56 }
 0x793   :  { %v3047_v46 = vpack.c.b16 %v3031_v57, %v3031_v57  ;;  %v3048_v17 = vpack.c.b16 %v3032_v61, %v3032_v61 }
 0x795   :  { %3079 = vst [vmem:[%s6232_s5 + $0x30] sm:$0xf] %v3047_v46  ;;  %v2975_v31 = vpop.permute.xlu1 %2974 }
 0x796   :  { %3080 = vst [vmem:[%s6232_s5 + $0x34] sm:$0xf] %v3048_v17  ;;  %v2995_v35 = vsel %vm6585_vm12, %v2924_v29, %v2975_v31 }
 0x797   :  { %v3023_v16 = vunpack.c.l.b16 %v2995_v35  ;;  %v3024_v47 = vunpack.c.h.b16 %v2995_v35 }
 0x799   :  { %v3039_v11 = vpack.c.b16 %v3023_v16, %v3023_v16  ;;  %v3040_v18 = vpack.c.b16 %v3024_v47, %v3024_v47 }
 0x79b   :  { %3071 = vst [vmem:[%s6232_s5 + $0x10] sm:$0xf] %v3039_v11 }
 0x79c   :  { %3072 = vst [vmem:[%s6232_s5 + $0x14] sm:$0xf] %v3040_v18 }
 0x7a1   :  { %v2979_v33 = vpop.permute.xlu0 %2978 }
 0x7a2   :  { %v3001_v49 = vsel %vm6586_vm4, %v2926_v5, %v2979_v33 }
 0x7a3   :  { %v3027_v25 = vunpack.c.l.b16 %v3001_v49  ;;  %v3028_v29 = vunpack.c.h.b16 %v3001_v49 }
 0x7a5   :  { %v3043_v8 = vpack.c.b16 %v3027_v25, %v3027_v25  ;;  %v3044_v63 = vpack.c.b16 %v3028_v29, %v3028_v29 }
 0x7a7   :  { %3075 = vst [vmem:[%s6232_s5 + $0x20] sm:$0xf] %v3043_v8 }
 0x7a8   :  { %3076 = vst [vmem:[%s6232_s5 + $0x24] sm:$0xf] %v3044_v63 }
 0x7ad   :  { %v2981_v4 = vpop.permute.xlu1 %2980 }
 0x7ae   :  { %v3004_v48 = vsel %vm6587_vm6, %v2927_v54, %v2981_v4 }
 0x7af   :  { %v3029_v6 = vunpack.c.l.b16 %v3004_v48  ;;  %v3030_v5 = vunpack.c.h.b16 %v3004_v48 }
 0x7b1   :  { %v3045_v37 = vpack.c.b16 %v3029_v6, %v3029_v6  ;;  %v3046_v9 = vpack.c.b16 %v3030_v5, %v3030_v5 }
 0x7b3   :  { %3077 = vst [vmem:[%s6232_s5 + $0x28] sm:$0xf] %v3045_v37 }
 0x7b4   :  { %3078 = vst [vmem:[%s6232_s5 + $0x2c] sm:$0xf] %v3046_v9 }
 0x7b5   :  { %v2985_v39 = vpop.permute.xlu0 %2984 }
 0x7b6   :  { %v3010_v13 = vsel %vm6588_vm8, %v2929_v21, %v2985_v39 }
 0x7b7   :  { %v3033_v1 = vunpack.c.l.b16 %v3010_v13  ;;  %v3034_v54 = vunpack.c.h.b16 %v3010_v13 }
 0x7b9   :  { %v3049_v52 = vpack.c.b16 %v3033_v1, %v3033_v1  ;;  %v3050_v15 = vpack.c.b16 %v3034_v54, %v3034_v54 }
 0x7bb   :  { %3081 = vst [vmem:[%s6232_s5 + $0x38] sm:$0xf] %v3049_v52 }
 0x7bc   :  { %3082 = vst [vmem:[%s6232_s5 + $0x3c] sm:$0xf] %v3050_v15 }

// kernel: warp_attn_forward.17
= control target key start
LH: loop header
LB: loop body
LE: loop exit
PB: predicated region body
PF: predicated region fallthrough
CT: control target
= control target key end

     0   :  { %s1573_s0 = inlined_call_operand.vmem [shape: bf16[128,512], index: 0, kind: input, shape index: {}]   ;;  %s1574_s1 = inlined_call_operand.vmem [shape: bf16[512,128], index: 1, kind: input, shape index: {}]   ;;  %s1575_s2 = inlined_call_operand.vmem [shape: f32[1,128], index: 2, kind: input, shape index: {}]   ;;  %s1576_s3 = inlined_call_operand.vmem [shape: f32[128,128], index: 3, kind: input, shape index: {}]   ;;  %s1577_s4 = inlined_call_operand.hbm [shape: f32[128,128], index: 4, kind: output, shape index: {}]  }
   0x1   :  { %v1130_v0 = vld [vmem:[%s1574_s1 + $0x38] sm:$0xff]  ;;  %v1129_v4 = vld [vmem:[%s1574_s1 + $0x30] sm:$0xff]  ;;  %v1128_v8 = vld [vmem:[%s1574_s1 + $0x28] sm:$0xff] }
   0x2   :  { %v1138_v1 = vld [vmem:[%s1574_s1 + $0x78] sm:$0xff]  ;;  %502 = vmatpush.bf16.msra.mxu0 %v1130_v0  ;;  %v1137_v5 = vld [vmem:[%s1574_s1 + $0x70] sm:$0xff]  ;;  %v1136_v9 = vld [vmem:[%s1574_s1 + $0x68] sm:$0xff] }
   0x3   :  { %v1146_v2 = vld [vmem:[%s1574_s1 + $0xb8] sm:$0xff]  ;;  %551 = vmatpush.bf16.msra.mxu1 %v1138_v1  ;;  %v1145_v6 = vld [vmem:[%s1574_s1 + $0xb0] sm:$0xff]  ;;  %v1144_v10 = vld [vmem:[%s1574_s1 + $0xa8] sm:$0xff] }
   0x4   :  { %v1154_v3 = vld [vmem:[%s1574_s1 + $0xf8] sm:$0xff]  ;;  %600 = vmatpush.bf16.msra.mxu2 %v1146_v2  ;;  %v1153_v7 = vld [vmem:[%s1574_s1 + $0xf0] sm:$0xff]  ;;  %v1152_v11 = vld [vmem:[%s1574_s1 + $0xe8] sm:$0xff] }
   0x5   :  { %649 = vmatpush.bf16.msra.mxu3 %v1154_v3  ;;  %v1127_v12 = vld [vmem:[%s1574_s1 + $0x20] sm:$0xff]  ;;  %v1126_v16 = vld [vmem:[%s1574_s1 + $0x18] sm:$0xff] }
   0x6   :  { %503 = vmatpush.bf16.msra.mxu0 %v1129_v4  ;;  %v1135_v13 = vld [vmem:[%s1574_s1 + $0x60] sm:$0xff]  ;;  %v1134_v17 = vld [vmem:[%s1574_s1 + $0x58] sm:$0xff] }
   0x7   :  { %552 = vmatpush.bf16.msra.mxu1 %v1137_v5  ;;  %v1143_v14 = vld [vmem:[%s1574_s1 + $0xa0] sm:$0xff] }
   0x8   :  { %601 = vmatpush.bf16.msra.mxu2 %v1145_v6  ;;  %v1151_v15 = vld [vmem:[%s1574_s1 + $0xe0] sm:$0xff] }
   0x9   :  { %650 = vmatpush.bf16.msra.mxu3 %v1153_v7 }
   0xa   :  { %504 = vmatpush.bf16.msra.mxu0 %v1128_v8 }
   0xb   :  { %553 = vmatpush.bf16.msra.mxu1 %v1136_v9 }
   0xc   :  { %602 = vmatpush.bf16.msra.mxu2 %v1144_v10 }
   0xd   :  { %651 = vmatpush.bf16.msra.mxu3 %v1152_v11 }
   0xe   :  { %505 = vmatpush.bf16.msra.mxu0 %v1127_v12 }
   0xf   :  { %554 = vmatpush.bf16.msra.mxu1 %v1135_v13 }
  0x10   :  { %9 = vsyncpa [#allocation4], 0  ;;  %603 = vmatpush.bf16.msra.mxu2 %v1143_v14  ;;  %v1142_v18 = vld [vmem:[%s1574_s1 + $0x98] sm:$0xff]  ;;  %v1125_v20 = vld [vmem:[%s1574_s1 + $0x10] sm:$0xff]  ;;  %s1185_s22 = smov [#allocation3]   ;;  %s823_s25 = sshll.u32 %s1577_s4, 4  ;;  %s824_s25 = int_to_ptr.hbm [resolvable:$true] %s823_s25 }
  0x11   :  { %652 = vmatpush.bf16.msra.mxu3 %v1151_v15  ;;  %v1150_v19 = vld [vmem:[%s1574_s1 + $0xd8] sm:$0xff]  ;;  %v1133_v21 = vld [vmem:[%s1574_s1 + $0x50] sm:$0xff]  ;;  %v1124_v24 = vld [vmem:[%s1574_s1 + $0x8] sm:$0xff]  ;;  %s1186_s28 = smov 128   ;;  %s1187_s29 = smov 8  }
  0x12   :  { %506 = vmatpush.bf16.msra.mxu0 %v1126_v16  ;;  %v1141_v22 = vld [vmem:[%s1574_s1 + $0x90] sm:$0xff]  ;;  %v1132_v25 = vld [vmem:[%s1574_s1 + $0x48] sm:$0xff]  ;;  %v1123_v28 = vld [vmem:[%s1574_s1] sm:$0xff] }
  0x13   :  { %555 = vmatpush.bf16.msra.mxu1 %v1134_v17  ;;  %v1149_v23 = vld [vmem:[%s1574_s1 + $0xd0] sm:$0xff]  ;;  %v1140_v26 = vld [vmem:[%s1574_s1 + $0x88] sm:$0xff]  ;;  %v1131_v29 = vld [vmem:[%s1574_s1 + $0x40] sm:$0xff] }
  0x14   :  { %604 = vmatpush.bf16.msra.mxu2 %v1142_v18  ;;  %v1148_v27 = vld [vmem:[%s1574_s1 + $0xc8] sm:$0xff]  ;;  %v1139_v30 = vld [vmem:[%s1574_s1 + $0x80] sm:$0xff]  ;;  %v1093_v33 = vld [vmem:[%s1573_s0 + $0xc] sm:$0xf0] }
  0x15   :  { %653 = vmatpush.bf16.msra.mxu3 %v1150_v19  ;;  %v1147_v31 = vld [vmem:[%s1574_s1 + $0xc0] sm:$0xff]  ;;  %v839_v35 = vld [vmem:[%s1573_s0 + $0x10] sm:$0xf0]  ;;  %v845_v36 = vld [vmem:[%s1573_s0 + $0x8] sm:$0xf] }
  0x16   :  { %507 = vmatpush.bf16.msra.mxu0 %v1125_v20  ;;  %v837_v32 = vld [vmem:[%s1573_s0] sm:$0xf]  ;;  %v1091_v34 = vld [vmem:[%s1573_s0 + $0x4] sm:$0xf]  ;;  %v1094_v37 = vld [vmem:[%s1573_s0 + $0x14] sm:$0xf0] }
  0x17   :  { %556 = vmatpush.bf16.msra.mxu1 %v1133_v21  ;;  %v1092_v38 = vld [vmem:[%s1573_s0 + $0xc] sm:$0xf]  ;;  %v847_v39 = vld [vmem:[%s1573_s0 + $0x18] sm:$0xf0]  ;;  %v838_v40 = vor.u32 %v1093_v33, %v837_v32  ;;  %v842_v41 = vor.u32 %v1091_v34, %v839_v35  ;;  %v846_v42 = vor.u32 %v1094_v37, %v845_v36  ;;  %v853_v44 = vld [vmem:[%s1573_s0 + $0x20] sm:$0xf] }
  0x18   :  { %605 = vmatpush.bf16.msra.mxu2 %v1141_v22  ;;  %v850_v43 = vor.u32 %v1092_v38, %v847_v39  ;;  %v1097_v45 = vld [vmem:[%s1573_s0 + $0x2c] sm:$0xf0]  ;;  %v1095_v46 = vld [vmem:[%s1573_s0 + $0x24] sm:$0xf]  ;;  %v855_v47 = vld [vmem:[%s1573_s0 + $0x30] sm:$0xf0] }
  0x19   :  { %654 = vmatpush.bf16.msra.mxu3 %v1149_v23  ;;  %v861_v48 = vld [vmem:[%s1573_s0 + $0x28] sm:$0xf]  ;;  %v1098_v49 = vld [vmem:[%s1573_s0 + $0x34] sm:$0xf0]  ;;  %v1096_v50 = vld [vmem:[%s1573_s0 + $0x2c] sm:$0xf]  ;;  %v854_v52 = vor.u32 %v1097_v45, %v853_v44  ;;  %v858_v53 = vor.u32 %v1095_v46, %v855_v47 }
  0x1a   :  { %508 = vmatpush.bf16.msra.mxu0 %v1124_v24  ;;  %v863_v51 = vld [vmem:[%s1573_s0 + $0x38] sm:$0xf0]  ;;  %v862_v54 = vor.u32 %v1098_v49, %v861_v48  ;;  %v869_v56 = vld [vmem:[%s1573_s0 + $0x40] sm:$0xf]  ;;  %v1101_v57 = vld [vmem:[%s1573_s0 + $0x4c] sm:$0xf0] }
  0x1b   :  { %557 = vmatpush.bf16.msra.mxu1 %v1132_v25  ;;  %v866_v55 = vor.u32 %v1096_v50, %v863_v51  ;;  %v1099_v58 = vld [vmem:[%s1573_s0 + $0x44] sm:$0xf]  ;;  %v871_v59 = vld [vmem:[%s1573_s0 + $0x50] sm:$0xf0]  ;;  %v877_v60 = vld [vmem:[%s1573_s0 + $0x48] sm:$0xf]  ;;  %v870_v0 = vor.u32 %v1101_v57, %v869_v56 }
  0x1c   :  { %606 = vmatpush.bf16.msra.mxu2 %v1140_v26  ;;  %v1102_v61 = vld [vmem:[%s1573_s0 + $0x54] sm:$0xf0]  ;;  %v1100_v62 = vld [vmem:[%s1573_s0 + $0x4c] sm:$0xf]  ;;  %v879_v63 = vld [vmem:[%s1573_s0 + $0x58] sm:$0xf0]  ;;  %v874_v1 = vor.u32 %v1099_v58, %v871_v59 }
  0x1d   :  { %655 = vmatpush.bf16.msra.mxu3 %v1148_v27  ;;  %v878_v2 = vor.u32 %v1102_v61, %v877_v60  ;;  %v882_v3 = vor.u32 %v1100_v62, %v879_v63  ;;  %v885_v4 = vld [vmem:[%s1573_s0 + $0x60] sm:$0xf]  ;;  %v1105_v5 = vld [vmem:[%s1573_s0 + $0x6c] sm:$0xf0]  ;;  %v1103_v6 = vld [vmem:[%s1573_s0 + $0x64] sm:$0xf] }
  0x1e   :  { %509 = vmatpush.bf16.msra.mxu0 %v1123_v28  ;;  %v887_v7 = vld [vmem:[%s1573_s0 + $0x70] sm:$0xf0]  ;;  %v893_v8 = vld [vmem:[%s1573_s0 + $0x68] sm:$0xf]  ;;  %v1106_v9 = vld [vmem:[%s1573_s0 + $0x74] sm:$0xf0]  ;;  %v886_v12 = vor.u32 %v1105_v5, %v885_v4 }
  0x1f   :  { %558 = vmatpush.bf16.msra.mxu1 %v1131_v29  ;;  %v1104_v10 = vld [vmem:[%s1573_s0 + $0x6c] sm:$0xf]  ;;  %v895_v11 = vld [vmem:[%s1573_s0 + $0x78] sm:$0xf0]  ;;  %v890_v13 = vor.u32 %v1103_v6, %v887_v7  ;;  %v894_v14 = vor.u32 %v1106_v9, %v893_v8  ;;  %v901_v16 = vld [vmem:[%s1573_s0 + $0x80] sm:$0xf] }
  0x20   :  { %607 = vmatpush.bf16.msra.mxu2 %v1139_v30  ;;  %v898_v15 = vor.u32 %v1104_v10, %v895_v11  ;;  %v1109_v17 = vld [vmem:[%s1573_s0 + $0x8c] sm:$0xf0]  ;;  %v1107_v18 = vld [vmem:[%s1573_s0 + $0x84] sm:$0xf]  ;;  %v903_v19 = vld [vmem:[%s1573_s0 + $0x90] sm:$0xf0] }
  0x21   :  { %656 = vmatpush.bf16.msra.mxu3 %v1147_v31  ;;  %510 = vmatmul.bf16.vlgmr.msra.gmra.mxu0 %v838_v40  ;;  %v909_v20 = vld [vmem:[%s1573_s0 + $0x88] sm:$0xf]  ;;  %v1110_v21 = vld [vmem:[%s1573_s0 + $0x94] sm:$0xf0]  ;;  %v1108_v22 = vld [vmem:[%s1573_s0 + $0x8c] sm:$0xf]  ;;  %v902_v24 = vor.u32 %v1109_v17, %v901_v16  ;;  %v906_v25 = vor.u32 %v1107_v18, %v903_v19 }
  0x22   :  { %559 = vmatmul.bf16.vlgmr.msra.gmra.mxu1 %v842_v41  ;;  %v911_v23 = vld [vmem:[%s1573_s0 + $0x98] sm:$0xf0]  ;;  %v910_v26 = vor.u32 %v1110_v21, %v909_v20  ;;  %v917_v28 = vld [vmem:[%s1573_s0 + $0xa0] sm:$0xf]  ;;  %v1113_v29 = vld [vmem:[%s1573_s0 + $0xac] sm:$0xf0] }
  0x23   :  { %608 = vmatmul.bf16.vlgmr.msra.gmra.mxu2 %v846_v42  ;;  %v914_v27 = vor.u32 %v1108_v22, %v911_v23  ;;  %v1111_v30 = vld [vmem:[%s1573_s0 + $0xa4] sm:$0xf]  ;;  %v919_v31 = vld [vmem:[%s1573_s0 + $0xb0] sm:$0xf0]  ;;  %v925_v32 = vld [vmem:[%s1573_s0 + $0xa8] sm:$0xf]  ;;  %v918_v36 = vor.u32 %v1113_v29, %v917_v28 }
  0x24   :  { %657 = vmatmul.bf16.vlgmr.msra.gmra.mxu3 %v850_v43  ;;  %v1114_v33 = vld [vmem:[%s1573_s0 + $0xb4] sm:$0xf0]  ;;  %v1112_v34 = vld [vmem:[%s1573_s0 + $0xac] sm:$0xf]  ;;  %v927_v35 = vld [vmem:[%s1573_s0 + $0xb8] sm:$0xf0]  ;;  %v922_v37 = vor.u32 %v1111_v30, %v919_v31 }
  0x25   :  { %v926_v38 = vor.u32 %v1114_v33, %v925_v32  ;;  %v930_v39 = vor.u32 %v1112_v34, %v927_v35  ;;  %v933_v40 = vld [vmem:[%s1573_s0 + $0xc0] sm:$0xf]  ;;  %v1117_v41 = vld [vmem:[%s1573_s0 + $0xcc] sm:$0xf0]  ;;  %v1115_v42 = vld [vmem:[%s1573_s0 + $0xc4] sm:$0xf] }
  0x26   :  { %v935_v43 = vld [vmem:[%s1573_s0 + $0xd0] sm:$0xf0]  ;;  %v941_v44 = vld [vmem:[%s1573_s0 + $0xc8] sm:$0xf]  ;;  %v1118_v45 = vld [vmem:[%s1573_s0 + $0xd4] sm:$0xf0]  ;;  %v934_v48 = vor.u32 %v1117_v41, %v933_v40 }
  0x27   :  { %v1116_v46 = vld [vmem:[%s1573_s0 + $0xcc] sm:$0xf]  ;;  %v943_v47 = vld [vmem:[%s1573_s0 + $0xd8] sm:$0xf0]  ;;  %v938_v49 = vor.u32 %v1115_v42, %v935_v43  ;;  %v942_v50 = vor.u32 %v1118_v45, %v941_v44  ;;  %v957_v56 = vld [vmem:[%s1573_s0 + $0xe8] sm:$0xf] }
  0x28   :  { %v946_v51 = vor.u32 %v1116_v46, %v943_v47  ;;  %v1122_v57 = vld [vmem:[%s1573_s0 + $0xf4] sm:$0xf0]  ;;  %v1120_v58 = vld [vmem:[%s1573_s0 + $0xec] sm:$0xf]  ;;  %v959_v59 = vld [vmem:[%s1573_s0 + $0xf8] sm:$0xf0] }
  0x29   :  { %v958_v62 = vor.u32 %v1122_v57, %v957_v56  ;;  %v962_v63 = vor.u32 %v1120_v58, %v959_v59  ;;  %v1504_v6 = vld [vmem:[%s1575_s2] ss:$0 sm:$0xff]  ;;  %v770_v20 = vld [vmem:[%s1576_s3 + $0x8] sm:$0xff]  ;;  %v771_v30 = vld [vmem:[%s1576_s3 + $0x10] sm:$0xff]  ;;  %s821_s2 = sshll.u32 %s1185_s22, 4  ;;  %s822_s2 = int_to_ptr.vmem [resolvable:$true] %s821_s2 }
  0x2a   :  { %v769_v10 = vld [vmem:[%s1576_s3] sm:$0xff]  ;;  %v772_v40 = vld [vmem:[%s1576_s3 + $0x18] sm:$0xff] }
  0x31   :  { %515 = vmatmul.bf16.gmra.mxu0 %v854_v52  ;;  %v949_v52 = vld [vmem:[%s1573_s0 + $0xe0] sm:$0xf] }
  0x32   :  { %564 = vmatmul.bf16.gmra.mxu1 %v858_v53  ;;  %v1121_v53 = vld [vmem:[%s1573_s0 + $0xec] sm:$0xf0] }
  0x33   :  { %613 = vmatmul.bf16.gmra.mxu2 %v862_v54  ;;  %v1119_v54 = vld [vmem:[%s1573_s0 + $0xe4] sm:$0xf]  ;;  %v950_v60 = vor.u32 %v1121_v53, %v949_v52 }
  0x34   :  { %662 = vmatmul.bf16.gmra.mxu3 %v866_v55  ;;  %v951_v55 = vld [vmem:[%s1573_s0 + $0xf0] sm:$0xf0] }
  0x35   :  { %v954_v61 = vor.u32 %v1119_v54, %v951_v55 }
  0x41   :  { %520 = vmatmul.bf16.gmra.mxu0 %v870_v0 }
  0x42   :  { %569 = vmatmul.bf16.gmra.mxu1 %v874_v1 }
  0x43   :  { %618 = vmatmul.bf16.gmra.mxu2 %v878_v2 }
  0x44   :  { %667 = vmatmul.bf16.gmra.mxu3 %v882_v3 }
  0x51   :  { %525 = vmatmul.bf16.gmra.mxu0 %v886_v12 }
  0x52   :  { %574 = vmatmul.bf16.gmra.mxu1 %v890_v13 }
  0x53   :  { %623 = vmatmul.bf16.gmra.mxu2 %v894_v14 }
  0x54   :  { %672 = vmatmul.bf16.gmra.mxu3 %v898_v15 }
  0x61   :  { %530 = vmatmul.bf16.gmra.mxu0 %v902_v24 }
  0x62   :  { %579 = vmatmul.bf16.gmra.mxu1 %v906_v25 }
  0x63   :  { %628 = vmatmul.bf16.gmra.mxu2 %v910_v26 }
  0x64   :  { %677 = vmatmul.bf16.gmra.mxu3 %v914_v27 }
  0x71   :  { %535 = vmatmul.bf16.gmra.mxu0 %v918_v36 }
  0x72   :  { %584 = vmatmul.bf16.gmra.mxu1 %v922_v37 }
  0x73   :  { %633 = vmatmul.bf16.gmra.mxu2 %v926_v38 }
  0x74   :  { %682 = vmatmul.bf16.gmra.mxu3 %v930_v39 }
  0x81   :  { %540 = vmatmul.bf16.gmra.mxu0 %v934_v48 }
  0x82   :  { %589 = vmatmul.bf16.gmra.mxu1 %v938_v49 }
  0x83   :  { %638 = vmatmul.bf16.gmra.mxu2 %v942_v50  ;;  %v773_v50 = vld [vmem:[%s1576_s3 + $0x20] sm:$0xff] }
  0x84   :  { %687 = vmatmul.bf16.gmra.mxu3 %v946_v51 }
  0x91   :  { %545 = vmatmul.bf16.gmra.mxu0 %v950_v60  ;;  %v774_v60 = vld [vmem:[%s1576_s3 + $0x28] sm:$0xff] }
  0x92   :  { %594 = vmatmul.bf16.gmra.mxu1 %v954_v61 }
  0x93   :  { %643 = vmatmul.bf16.gmra.mxu2 %v958_v62 }
  0x94   :  { %692 = vmatmul.bf16.gmra.mxu3 %v962_v63 }
  0x9e   :  { %v511_v0 = vpop.f32.mrf.mxu0 }
  0x9f   :  { %v560_v1 = vpop.f32.mrf.mxu1 }
  0xa0   :  { %v561_v2 = vadd.f32 %v560_v1, %v511_v0 }
  0xa6   :  { %v609_v3 = vpop.f32.mrf.mxu2  ;;  %v513_v7 = vpop.f32.mrf.mxu0 }
  0xa7   :  { %v658_v4 = vpop.f32.mrf.mxu3  ;;  %v610_v5 = vadd.f32 %v609_v3, %v561_v2  ;;  %v562_v8 = vpop.f32.mrf.mxu1 }
  0xa8   :  { %v563_v13 = vadd.f32 %v562_v8, %v513_v7  ;;  %v775_v7 = vld [vmem:[%s1576_s3 + $0x30] sm:$0xff] }
  0xa9   :  { %v659_v9 = vadd.f32 %v658_v4, %v610_v5 }
  0xab   :  { %v753_v11 = vadd.f32 %v1504_v6, %v659_v9 }
  0xad   :  { %v785_v12 = vadd.f32 %v769_v10, %v753_v11 }
  0xae   :  { %v611_v14 = vpop.f32.mrf.mxu2  ;;  %v516_v17 = vpop.f32.mrf.mxu0 }
  0xaf   :  { %v660_v15 = vpop.f32.mrf.mxu3  ;;  %801 = vst [vmem:[#allocation3] sm:$0xff] %v785_v12  ;;  %v612_v16 = vadd.f32 %v611_v14, %v563_v13  ;;  %v565_v18 = vpop.f32.mrf.mxu1 }
  0xb0   :  { %v566_v22 = vadd.f32 %v565_v18, %v516_v17  ;;  %v776_v17 = vld [vmem:[%s1576_s3 + $0x38] sm:$0xff] }
  0xb1   :  { %v661_v19 = vadd.f32 %v660_v15, %v612_v16 }
  0xb3   :  { %v754_v21 = vadd.f32 %v1504_v6, %v661_v19 }
  0xb5   :  { %v786_v23 = vadd.f32 %v770_v20, %v754_v21 }
  0xb6   :  { %v614_v24 = vpop.f32.mrf.mxu2  ;;  %v518_v27 = vpop.f32.mrf.mxu0 }
  0xb7   :  { %v663_v25 = vpop.f32.mrf.mxu3  ;;  %802 = vst [vmem:[#allocation3 + $0x8] sm:$0xff] %v786_v23  ;;  %v615_v26 = vadd.f32 %v614_v24, %v566_v22  ;;  %v567_v28 = vpop.f32.mrf.mxu1 }
  0xb8   :  { %v568_v33 = vadd.f32 %v567_v28, %v518_v27  ;;  %v777_v27 = vld [vmem:[%s1576_s3 + $0x40] sm:$0xff] }
  0xb9   :  { %v664_v29 = vadd.f32 %v663_v25, %v615_v26 }
  0xbb   :  { %v755_v31 = vadd.f32 %v1504_v6, %v664_v29 }
  0xbd   :  { %v787_v32 = vadd.f32 %v771_v30, %v755_v31 }
  0xbe   :  { %v616_v34 = vpop.f32.mrf.mxu2  ;;  %v521_v37 = vpop.f32.mrf.mxu0 }
  0xbf   :  { %v665_v35 = vpop.f32.mrf.mxu3  ;;  %803 = vst [vmem:[#allocation3 + $0x10] sm:$0xff] %v787_v32  ;;  %v617_v36 = vadd.f32 %v616_v34, %v568_v33  ;;  %v570_v38 = vpop.f32.mrf.mxu1 }
  0xc0   :  { %v571_v42 = vadd.f32 %v570_v38, %v521_v37  ;;  %v778_v37 = vld [vmem:[%s1576_s3 + $0x48] sm:$0xff] }
  0xc1   :  { %v666_v39 = vadd.f32 %v665_v35, %v617_v36 }
  0xc3   :  { %v756_v41 = vadd.f32 %v1504_v6, %v666_v39 }
  0xc5   :  { %v788_v43 = vadd.f32 %v772_v40, %v756_v41 }
  0xc6   :  { %v619_v44 = vpop.f32.mrf.mxu2  ;;  %v523_v47 = vpop.f32.mrf.mxu0 }
  0xc7   :  { %v668_v45 = vpop.f32.mrf.mxu3  ;;  %804 = vst [vmem:[#allocation3 + $0x18] sm:$0xff] %v788_v43  ;;  %v620_v46 = vadd.f32 %v619_v44, %v571_v42  ;;  %v572_v48 = vpop.f32.mrf.mxu1 }
  0xc8   :  { %v573_v53 = vadd.f32 %v572_v48, %v523_v47  ;;  %v779_v47 = vld [vmem:[%s1576_s3 + $0x50] sm:$0xff] }
  0xc9   :  { %v669_v49 = vadd.f32 %v668_v45, %v620_v46 }
  0xcb   :  { %v757_v51 = vadd.f32 %v1504_v6, %v669_v49 }
  0xcd   :  { %v789_v52 = vadd.f32 %v773_v50, %v757_v51 }
  0xce   :  { %v621_v54 = vpop.f32.mrf.mxu2  ;;  %v526_v57 = vpop.f32.mrf.mxu0 }
  0xcf   :  { %v670_v55 = vpop.f32.mrf.mxu3  ;;  %805 = vst [vmem:[#allocation3 + $0x20] sm:$0xff] %v789_v52  ;;  %v622_v56 = vadd.f32 %v621_v54, %v573_v53  ;;  %v575_v58 = vpop.f32.mrf.mxu1 }
  0xd0   :  { %v576_v62 = vadd.f32 %v575_v58, %v526_v57  ;;  %v780_v57 = vld [vmem:[%s1576_s3 + $0x58] sm:$0xff] }
  0xd1   :  { %v671_v59 = vadd.f32 %v670_v55, %v622_v56 }
  0xd3   :  { %v758_v61 = vadd.f32 %v1504_v6, %v671_v59 }
  0xd5   :  { %v790_v63 = vadd.f32 %v774_v60, %v758_v61 }
  0xd6   :  { %v624_v0 = vpop.f32.mrf.mxu2  ;;  %v528_v3 = vpop.f32.mrf.mxu0 }
  0xd7   :  { %v673_v1 = vpop.f32.mrf.mxu3  ;;  %806 = vst [vmem:[#allocation3 + $0x28] sm:$0xff] %v790_v63  ;;  %v625_v2 = vadd.f32 %v624_v0, %v576_v62  ;;  %v577_v4 = vpop.f32.mrf.mxu1 }
  0xd8   :  { %v578_v10 = vadd.f32 %v577_v4, %v528_v3  ;;  %v781_v3 = vld [vmem:[%s1576_s3 + $0x60] sm:$0xff] }
  0xd9   :  { %v674_v5 = vadd.f32 %v673_v1, %v625_v2 }
  0xdb   :  { %v759_v8 = vadd.f32 %v1504_v6, %v674_v5 }
  0xdd   :  { %v791_v9 = vadd.f32 %v775_v7, %v759_v8 }
  0xde   :  { %v626_v11 = vpop.f32.mrf.mxu2  ;;  %v531_v14 = vpop.f32.mrf.mxu0 }
  0xdf   :  { %v675_v12 = vpop.f32.mrf.mxu3  ;;  %807 = vst [vmem:[#allocation3 + $0x30] sm:$0xff] %v791_v9  ;;  %v627_v13 = vadd.f32 %v626_v11, %v578_v10  ;;  %v580_v15 = vpop.f32.mrf.mxu1 }
  0xe0   :  { %v581_v19 = vadd.f32 %v580_v15, %v531_v14  ;;  %v782_v14 = vld [vmem:[%s1576_s3 + $0x68] sm:$0xff] }
  0xe1   :  { %v676_v16 = vadd.f32 %v675_v12, %v627_v13 }
  0xe3   :  { %v760_v18 = vadd.f32 %v1504_v6, %v676_v16 }
  0xe5   :  { %v792_v20 = vadd.f32 %v776_v17, %v760_v18 }
  0xe6   :  { %v629_v21 = vpop.f32.mrf.mxu2  ;;  %v533_v24 = vpop.f32.mrf.mxu0 }
  0xe7   :  { %v678_v22 = vpop.f32.mrf.mxu3  ;;  %808 = vst [vmem:[#allocation3 + $0x38] sm:$0xff] %v792_v20  ;;  %v630_v23 = vadd.f32 %v629_v21, %v581_v19  ;;  %v582_v25 = vpop.f32.mrf.mxu1 }
  0xe8   :  { %v583_v30 = vadd.f32 %v582_v25, %v533_v24 }
  0xe9   :  { %v679_v26 = vadd.f32 %v678_v22, %v630_v23  ;;  %v783_v22 = vld [vmem:[%s1576_s3 + $0x70] sm:$0xff] }
  0xeb   :  { %v761_v28 = vadd.f32 %v1504_v6, %v679_v26 }
  0xed   :  { %v793_v29 = vadd.f32 %v777_v27, %v761_v28 }
  0xee   :  { %v631_v31 = vpop.f32.mrf.mxu2  ;;  %v536_v34 = vpop.f32.mrf.mxu0 }
  0xef   :  { %v680_v32 = vpop.f32.mrf.mxu3  ;;  %809 = vst [vmem:[#allocation3 + $0x40] sm:$0xff] %v793_v29  ;;  %v632_v33 = vadd.f32 %v631_v31, %v583_v30  ;;  %v585_v35 = vpop.f32.mrf.mxu1 }
  0xf0   :  { %v586_v39 = vadd.f32 %v585_v35, %v536_v34 }
  0xf1   :  { %v681_v36 = vadd.f32 %v680_v32, %v632_v33  ;;  %v784_v32 = vld [vmem:[%s1576_s3 + $0x78] sm:$0xff] }
  0xf3   :  { %v762_v38 = vadd.f32 %v1504_v6, %v681_v36 }
  0xf5   :  { %v794_v40 = vadd.f32 %v778_v37, %v762_v38 }
  0xf6   :  { %v634_v41 = vpop.f32.mrf.mxu2  ;;  %v538_v44 = vpop.f32.mrf.mxu0 }
  0xf7   :  { %v683_v42 = vpop.f32.mrf.mxu3  ;;  %810 = vst [vmem:[#allocation3 + $0x48] sm:$0xff] %v794_v40  ;;  %v635_v43 = vadd.f32 %v634_v41, %v586_v39  ;;  %v587_v45 = vpop.f32.mrf.mxu1 }
  0xf8   :  { %v588_v50 = vadd.f32 %v587_v45, %v538_v44 }
  0xf9   :  { %v684_v46 = vadd.f32 %v683_v42, %v635_v43 }
  0xfb   :  { %v763_v48 = vadd.f32 %v1504_v6, %v684_v46 }
  0xfd   :  { %v795_v49 = vadd.f32 %v779_v47, %v763_v48 }
  0xfe   :  { %v636_v51 = vpop.f32.mrf.mxu2  ;;  %v541_v54 = vpop.f32.mrf.mxu0 }
  0xff   :  { %v685_v52 = vpop.f32.mrf.mxu3  ;;  %811 = vst [vmem:[#allocation3 + $0x50] sm:$0xff] %v795_v49  ;;  %v637_v53 = vadd.f32 %v636_v51, %v588_v50  ;;  %v590_v55 = vpop.f32.mrf.mxu1 }
 0x100   :  { %v591_v59 = vadd.f32 %v590_v55, %v541_v54 }
 0x101   :  { %v686_v56 = vadd.f32 %v685_v52, %v637_v53 }
 0x103   :  { %v764_v58 = vadd.f32 %v1504_v6, %v686_v56 }
 0x105   :  { %v796_v60 = vadd.f32 %v780_v57, %v764_v58 }
 0x106   :  { %v639_v61 = vpop.f32.mrf.mxu2  ;;  %v543_v0 = vpop.f32.mrf.mxu0 }
 0x107   :  { %v688_v62 = vpop.f32.mrf.mxu3  ;;  %812 = vst [vmem:[#allocation3 + $0x58] sm:$0xff] %v796_v60  ;;  %v640_v63 = vadd.f32 %v639_v61, %v591_v59  ;;  %v592_v1 = vpop.f32.mrf.mxu1 }
 0x108   :  { %v593_v7 = vadd.f32 %v592_v1, %v543_v0 }
 0x109   :  { %v689_v2 = vadd.f32 %v688_v62, %v640_v63 }
 0x10b   :  { %v765_v4 = vadd.f32 %v1504_v6, %v689_v2 }
 0x10d   :  { %v797_v5 = vadd.f32 %v781_v3, %v765_v4 }
 0x10e   :  { %v641_v8 = vpop.f32.mrf.mxu2  ;;  %v546_v11 = vpop.f32.mrf.mxu0 }
 0x10f   :  { %v690_v9 = vpop.f32.mrf.mxu3  ;;  %813 = vst [vmem:[#allocation3 + $0x60] sm:$0xff] %v797_v5  ;;  %v642_v10 = vadd.f32 %v641_v8, %v593_v7  ;;  %v595_v12 = vpop.f32.mrf.mxu1 }
 0x110   :  { %v596_v16 = vadd.f32 %v595_v12, %v546_v11 }
 0x111   :  { %v691_v13 = vadd.f32 %v690_v9, %v642_v10 }
 0x113   :  { %v766_v15 = vadd.f32 %v1504_v6, %v691_v13 }
 0x115   :  { %v798_v17 = vadd.f32 %v782_v14, %v766_v15 }
 0x116   :  { %v644_v18 = vpop.f32.mrf.mxu2  ;;  %v548_v23 = vpop.f32.mrf.mxu0 }
 0x117   :  { %v693_v19 = vpop.f32.mrf.mxu3  ;;  %814 = vst [vmem:[#allocation3 + $0x68] sm:$0xff] %v798_v17  ;;  %v645_v20 = vadd.f32 %v644_v18, %v596_v16  ;;  %v597_v24 = vpop.f32.mrf.mxu1 }
 0x118   :  { %v598_v27 = vadd.f32 %v597_v24, %v548_v23 }
 0x119   :  { %v694_v21 = vadd.f32 %v693_v19, %v645_v20 }
 0x11b   :  { %v767_v25 = vadd.f32 %v1504_v6, %v694_v21 }
 0x11d   :  { %v799_v26 = vadd.f32 %v783_v22, %v767_v25 }
 0x11e   :  { %v646_v28 = vpop.f32.mrf.mxu2 }
 0x11f   :  { %815 = vst [vmem:[#allocation3 + $0x70] sm:$0xff] %v799_v26  ;;  %v647_v29 = vadd.f32 %v646_v28, %v598_v27  ;;  %v695_v30 = vpop.f32.mrf.mxu3 }
 0x121   :  { %v696_v31 = vadd.f32 %v695_v30, %v647_v29 }
 0x123   :  { %v768_v33 = vadd.f32 %v1504_v6, %v696_v31 }
 0x125   :  { %v800_v34 = vadd.f32 %v784_v32, %v768_v33 }
 0x127   :  { %816 = vst [vmem:[#allocation3 + $0x78] sm:$0xff] %v800_v34 }
 0x128   :  { %829 = dma.vmem_to_hbm [thread:$0]  %s822_s2, 2048, %s824_s25, [#allocation4], %s1186_s28, %s1186_s28, %s1187_s29  }
 0x129   :  { %1183 = dma.done.wait [#allocation4], 2048  }
 0x12a   :  { %1184 = vsyncadd [#allocation4], 4294965248 }
 0x12b   :  { %834 = vsyncpa [#allocation4], 1 }

</bundles_post_ra>
